<compile_context>
chip_gen: v7x
topology: tpu7x:2x2x1
jax: 0.10.0
libtpu: 0.0.40
codegen_flags: <defaults>
</compile_context>

<pallas_src>
import numpy as np

import jax
import jax.numpy as jnp
from jax.experimental import pallas as pl
from jax.experimental.pallas import tpu as pltpu


# ----------------------------- Pallas kernels ------------------------------


def _conv_stack_kernel(x_ref, *refs):
    """Fused conv1+relu+conv2+relu+maxpool+conv3+relu+conv4+relu (one sample)."""
    out_ref = refs[-1]
    (sm32, sp32, sm16, sp16,
     b1m, b10, b1p, bias1,
     b2m, b20, b2p, bias2,
     rsel_e, rsel_o, csel_e, csel_o,
     b3m, b30, b3p, bias3,
     b4m, b40, b4p, bias4) = [r[...] for r in refs[:-1]]

    f32 = jnp.float32

    def band_conv(act, s_m, s_p, bnd_m, bnd_0, bnd_p, bias):
        # 3x3 conv (stride 1, pad 1) + bias + ReLU on a (H, W*Cin) row panel.
        t_m = jnp.dot(act, bnd_m, preferred_element_type=f32)
        t_0 = jnp.dot(act, bnd_0, preferred_element_type=f32)
        t_p = jnp.dot(act, bnd_p, preferred_element_type=f32)
        acc = (jnp.dot(s_m, t_m, preferred_element_type=f32)
               + t_0
               + jnp.dot(s_p, t_p, preferred_element_type=f32)
               + bias)
        return jnp.maximum(acc, 0.0)

    act = x_ref[0]                                          # (32, 96)  NHWC panel
    act = band_conv(act, sm32, sp32, b1m, b10, b1p, bias1)  # (32, 256) conv1+relu
    act = band_conv(act, sm32, sp32, b2m, b20, b2p, bias2)  # (32, 128) conv2+relu

    # 2x2 / stride-2 max pool via exact 0/1 row/column selection matmuls.
    rows = jnp.maximum(jnp.dot(rsel_e, act, preferred_element_type=f32),
                       jnp.dot(rsel_o, act, preferred_element_type=f32))   # (16, 128)
    act = jnp.maximum(jnp.dot(rows, csel_e, preferred_element_type=f32),
                      jnp.dot(rows, csel_o, preferred_element_type=f32))   # (16, 64)

    act = band_conv(act, sm16, sp16, b3m, b30, b3p, bias3)  # (16, 128) conv3+relu
    act = band_conv(act, sm16, sp16, b4m, b40, b4p, bias4)  # (16, 128) conv4+relu

    out_ref[0] = act


def conv_stack(x_panels, consts):
    """x_panels: (N, 32, 96) f32 NHWC row panels -> (N, 16, 128) conv4 panels."""
    n = x_panels.shape[0]
    in_specs = [pl.BlockSpec((1, 32, 96), lambda i: (i, 0, 0))]
    for c in consts:
        in_specs.append(pl.BlockSpec(tuple(c.shape), lambda i: (0, 0)))
    return pl.pallas_call(
        _conv_stack_kernel,
        out_shape=jax.ShapeDtypeStruct((n, 16, 128), jnp.float32),
        grid=(n,),
        in_specs=in_specs,
        out_specs=pl.BlockSpec((1, 16, 128), lambda i: (i, 0, 0)),
        compiler_params=pltpu.CompilerParams(
            dimension_semantics=("parallel",)),
    )(x_panels, *consts)


def _fc_kernel(x_ref, w_ref, b_ref, o_ref):
    # bf16 x bf16 MXU matmul with f32 accumulation, + bias (no activation).
    acc = jnp.dot(x_ref[...].astype(jnp.bfloat16), w_ref[...],
                  preferred_element_type=jnp.float32)
    o_ref[...] = (acc + b_ref[...]).astype(o_ref.dtype)


def fc_matmul(x, w_bf16, b, *, tn=1024):
    """(M, 2048) f32 @ (2048, 3072) bf16 + (1, 3072) f32, tiled over outputs."""
    m, k = x.shape
    _, n_out = w_bf16.shape
    assert n_out % tn == 0
    return pl.pallas_call(
        _fc_kernel,
        out_shape=jax.ShapeDtypeStruct((m, n_out), jnp.float32),
        grid=(n_out // tn,),
        in_specs=[
            pl.BlockSpec((m, k), lambda j: (0, 0)),
            pl.BlockSpec((k, tn), lambda j: (0, j)),
            pl.BlockSpec((1, tn), lambda j: (0, j)),
        ],
        out_specs=pl.BlockSpec((m, tn), lambda j: (0, j)),
        compiler_params=pltpu.CompilerParams(
            dimension_semantics=("parallel",),
            vmem_limit_bytes=32 * 1024 * 1024),
    )(x, w_bf16, b)


# ---------------------- host-side constant preparation ----------------------


def _band_matrices(w, width):
    """Conv weight (Cout, Cin, 3, 3) -> 3 banded matrices (W*Cin, W*Cout), one
    per vertical tap dy in (-1, 0, +1):
        B_dy[xin*Cin + ci, x*Cout + co] = w[co, ci, dy+1, xin-x+1]  if |xin-x|<=1
    (x zero-padding is implicit: the band simply never reaches outside [0, W))."""
    w = np.asarray(w, np.float32)
    cout, cin = w.shape[0], w.shape[1]
    bands = []
    for dy in (-1, 0, 1):
        band = np.zeros((width * cin, width * cout), np.float32)
        for x in range(width):
            for dx in (-1, 0, 1):
                xin = x + dx
                if 0 <= xin < width:
                    band[xin * cin:(xin + 1) * cin,
                         x * cout:(x + 1) * cout] = w[:, :, dy + 1, dx + 1].T
        bands.append(band)
    return bands


def _shift_matrix(width, dy):
    """(S_dy @ M)[y] = M[y + dy] (rows shifted, zero rows at the y borders)."""
    s = np.zeros((width, width), np.float32)
    for y in range(width):
        if 0 <= y + dy < width:
            s[y, y + dy] = 1.0
    return s


def _pool_selectors(width, ch):
    """0/1 selectors implementing a 2x2/stride-2 max pool on a (W, W*ch) panel."""
    half = width // 2
    r_e = np.zeros((half, width), np.float32)
    r_o = np.zeros((half, width), np.float32)
    r_e[np.arange(half), 2 * np.arange(half)] = 1.0
    r_o[np.arange(half), 2 * np.arange(half) + 1] = 1.0
    c_e = np.zeros((width * ch, half * ch), np.float32)
    c_o = np.zeros((width * ch, half * ch), np.float32)
    for j in range(half):
        for c in range(ch):
            c_e[(2 * j) * ch + c, j * ch + c] = 1.0
            c_o[(2 * j + 1) * ch + c, j * ch + c] = 1.0
    return r_e, r_o, c_e, c_o


def _bias_panel(b, width):
    return np.tile(np.asarray(b, np.float32), width)[None, :]   # (1, W*Cout)


def prepare_params(p):
    """One-time host-side prep (outside jit): banded conv matrices, shift and
    pool-selector matrices, bias panels, and the pre-transposed / pre-permuted
    / bf16 fc weight.  Nothing here is re-done per forward pass."""
    sm32, sp32 = _shift_matrix(32, -1), _shift_matrix(32, +1)
    sm16, sp16 = _shift_matrix(16, -1), _shift_matrix(16, +1)
    r_e, r_o, c_e, c_o = _pool_selectors(32, 4)

    b1m, b10, b1p = _band_matrices(p["w1"], 32)
    b2m, b20, b2p = _band_matrices(p["w2"], 32)
    b3m, b30, b3p = _band_matrices(p["w3"], 16)
    b4m, b40, b4p = _band_matrices(p["w4"], 16)

    consts = [sm32, sp32, sm16, sp16,
              b1m, b10, b1p, _bias_panel(p["b1"], 32),
              b2m, b20, b2p, _bias_panel(p["b2"], 32),
              r_e, r_o, c_e, c_o,
              b3m, b30, b3p, _bias_panel(p["b3"], 16),
              b4m, b40, b4p, _bias_panel(p["b4"], 16)]
    consts = [jnp.asarray(c) for c in consts]

    # fc: torch computes flat_nchw @ Wfc.T + b.  The conv kernel emits
    # (N, 16, 128) panels whose flat order is k' = y*128 + x*8 + c, while torch
    # flattens in (c, y, x) order -> permute the rows of the transposed weight
    # once on the host to absorb the layout difference, then cast to bf16.
    idx = np.arange(2 * 32 * 32)
    y, x, c = idx // 128, (idx // 8) % 16, idx % 8
    src = c * 256 + y * 16 + x
    wfc = np.asarray(p["wfc"], np.float32)                       # (3072, 2048)
    wfc_perm = jnp.asarray(wfc[:, src].T).astype(jnp.bfloat16)   # (2048, 3072)
    bfc = jnp.asarray(np.asarray(p["bfc"], np.float32)[None, :])  # (1, 3072)

    return {"conv_consts": consts, "wfc_perm": wfc_perm, "bfc": bfc}


# ------------------------------ forward pass --------------------------------


@jax.jit
def net1_forward(x_nchw, prep):
    n = x_nchw.shape[0]
    # NCHW -> NHWC row panels (N, H, W*C); tiny one-off layout op (24 KB).
    x_panels = jnp.transpose(x_nchw, (0, 2, 3, 1)).reshape(n, 32, 32 * 3)
    feat = conv_stack(x_panels, prep["conv_consts"])         # (N, 16, 128)
    feat = feat.reshape(n, 2 * 32 * 32)                      # contiguous, free
    return fc_matmul(feat, prep["wfc_perm"], prep["bfc"])    # (N, 3072)


# ------------------------- reference & param init ---------------------------


def net1_reference(x, p):
    def conv(x, w, b):
        y = jax.lax.conv_general_dilated(
            x, w, window_strides=(1, 1), padding=((1, 1), (1, 1)),
            dimension_numbers=("NCHW", "OIHW", "NCHW"))
        return jax.nn.relu(y + b[None, :, None, None])

    y = conv(x, p["w1"], p["b1"])
    y = conv(y, p["w2"], p["b2"])
    y = jax.lax.reduce_window(y, -jnp.inf, jax.lax.max,
                              (1, 1, 2, 2), (1, 1, 2, 2), "VALID")
    y = conv(y, p["w3"], p["b3"])
    y = conv(y, p["w4"], p["b4"])
    y = y.reshape(-1, 2 * 32 * 32)
    return y @ p["wfc"].T + p["bfc"]


def init_params(key):
    ks = jax.random.split(key, 10)

    def cw(k, cout, cin):
        return jax.random.normal(k, (cout, cin, 3, 3), jnp.float32) * 0.1

    def cb(k, cout):
        return jax.random.normal(k, (cout,), jnp.float32) * 0.1

    p = {}
    p["w1"], p["b1"] = cw(ks[0], 8, 3), cb(ks[1], 8)
    p["w2"], p["b2"] = cw(ks[2], 4, 8), cb(ks[3], 4)
    p["w3"], p["b3"] = cw(ks[4], 8, 4), cb(ks[5], 8)
    p["w4"], p["b4"] = cw(ks[6], 8, 8), cb(ks[7], 8)
    p["wfc"] = jax.random.normal(ks[8], (3072, 2048), jnp.float32) * 0.02
    p["bfc"] = jax.random.normal(ks[9], (3072,), jnp.float32) * 0.02
    return p


if __name__ == "__main__":
    key = jax.random.PRNGKey(0)
    kx, kp = jax.random.split(key)
    # Spatial size must be 32x32 so that 8*16*16 == 2*32*32 matches the fc view.
    x = jax.random.normal(kx, (2, 3, 32, 32), jnp.float32)
    params = init_params(kp)
    prep = prepare_params(params)   # one-time host-side prep (outside jit)

    out = net1_forward(x, prep)
    out = jax.block_until_ready(out)
    assert out.shape == (2, 3072), out.shape

    ref = net1_reference(x, params)
    err = float(jnp.max(jnp.abs(out - ref)))
    # bf16 fc weight -> ~1e-3 expected error; 2e-2 gives comfortable margin.
    assert err < 2e-2, f"max abs error too large: {err}"
    print("KERNEL_OK")
</pallas_src>

<mosaic_0001>
module attributes {stable_mosaic.version = 11 : i64} {
  func.func @_conv_stack_kernel(%arg0: i32, %arg1: memref<1x32x96xf32, #tpu.memory_space<vmem>>, %arg2: memref<32x32xf32, #tpu.memory_space<vmem>>, %arg3: memref<32x32xf32, #tpu.memory_space<vmem>>, %arg4: memref<16x16xf32, #tpu.memory_space<vmem>>, %arg5: memref<16x16xf32, #tpu.memory_space<vmem>>, %arg6: memref<96x256xf32, #tpu.memory_space<vmem>>, %arg7: memref<96x256xf32, #tpu.memory_space<vmem>>, %arg8: memref<96x256xf32, #tpu.memory_space<vmem>>, %arg9: memref<1x256xf32, #tpu.memory_space<vmem>>, %arg10: memref<256x128xf32, #tpu.memory_space<vmem>>, %arg11: memref<256x128xf32, #tpu.memory_space<vmem>>, %arg12: memref<256x128xf32, #tpu.memory_space<vmem>>, %arg13: memref<1x128xf32, #tpu.memory_space<vmem>>, %arg14: memref<16x32xf32, #tpu.memory_space<vmem>>, %arg15: memref<16x32xf32, #tpu.memory_space<vmem>>, %arg16: memref<128x64xf32, #tpu.memory_space<vmem>>, %arg17: memref<128x64xf32, #tpu.memory_space<vmem>>, %arg18: memref<64x128xf32, #tpu.memory_space<vmem>>, %arg19: memref<64x128xf32, #tpu.memory_space<vmem>>, %arg20: memref<64x128xf32, #tpu.memory_space<vmem>>, %arg21: memref<1x128xf32, #tpu.memory_space<vmem>>, %arg22: memref<128x128xf32, #tpu.memory_space<vmem>>, %arg23: memref<128x128xf32, #tpu.memory_space<vmem>>, %arg24: memref<128x128xf32, #tpu.memory_space<vmem>>, %arg25: memref<1x128xf32, #tpu.memory_space<vmem>>, %arg26: memref<1x16x128xf32, #tpu.memory_space<vmem>>) attributes {dimension_semantics = [#tpu.dimension_semantics<parallel>], iteration_bounds = array<i64: 2>, scalar_prefetch = 0 : i64, scratch_operands = 0 : i64, tpu.core_type = #tpu.core_type<tc>, window_params = [{transform_indices = @transform_0, window_bounds = array<i64: 1, 32, 96>}, {pipeline_mode = #tpu.pipeline_mode<synchronous>, transform_indices = @transform_1, window_bounds = array<i64: 32, 32>}, {pipeline_mode = #tpu.pipeline_mode<synchronous>, transform_indices = @transform_2, window_bounds = array<i64: 32, 32>}, {pipeline_mode = #tpu.pipeline_mode<synchronous>, transform_indices = @transform_3, window_bounds = array<i64: 16, 16>}, {pipeline_mode = #tpu.pipeline_mode<synchronous>, transform_indices = @transform_4, window_bounds = array<i64: 16, 16>}, {pipeline_mode = #tpu.pipeline_mode<synchronous>, transform_indices = @transform_5, window_bounds = array<i64: 96, 256>}, {pipeline_mode = #tpu.pipeline_mode<synchronous>, transform_indices = @transform_6, window_bounds = array<i64: 96, 256>}, {pipeline_mode = #tpu.pipeline_mode<synchronous>, transform_indices = @transform_7, window_bounds = array<i64: 96, 256>}, {pipeline_mode = #tpu.pipeline_mode<synchronous>, transform_indices = @transform_8, window_bounds = array<i64: 1, 256>}, {pipeline_mode = #tpu.pipeline_mode<synchronous>, transform_indices = @transform_9, window_bounds = array<i64: 256, 128>}, {pipeline_mode = #tpu.pipeline_mode<synchronous>, transform_indices = @transform_10, window_bounds = array<i64: 256, 128>}, {pipeline_mode = #tpu.pipeline_mode<synchronous>, transform_indices = @transform_11, window_bounds = array<i64: 256, 128>}, {pipeline_mode = #tpu.pipeline_mode<synchronous>, transform_indices = @transform_12, window_bounds = array<i64: 1, 128>}, {pipeline_mode = #tpu.pipeline_mode<synchronous>, transform_indices = @transform_13, window_bounds = array<i64: 16, 32>}, {pipeline_mode = #tpu.pipeline_mode<synchronous>, transform_indices = @transform_14, window_bounds = array<i64: 16, 32>}, {pipeline_mode = #tpu.pipeline_mode<synchronous>, transform_indices = @transform_15, window_bounds = array<i64: 128, 64>}, {pipeline_mode = #tpu.pipeline_mode<synchronous>, transform_indices = @transform_16, window_bounds = array<i64: 128, 64>}, {pipeline_mode = #tpu.pipeline_mode<synchronous>, transform_indices = @transform_17, window_bounds = array<i64: 64, 128>}, {pipeline_mode = #tpu.pipeline_mode<synchronous>, transform_indices = @transform_18, window_bounds = array<i64: 64, 128>}, {pipeline_mode = #tpu.pipeline_mode<synchronous>, transform_indices = @transform_19, window_bounds = array<i64: 64, 128>}, {pipeline_mode = #tpu.pipeline_mode<synchronous>, transform_indices = @transform_20, window_bounds = array<i64: 1, 128>}, {pipeline_mode = #tpu.pipeline_mode<synchronous>, transform_indices = @transform_21, window_bounds = array<i64: 128, 128>}, {pipeline_mode = #tpu.pipeline_mode<synchronous>, transform_indices = @transform_22, window_bounds = array<i64: 128, 128>}, {pipeline_mode = #tpu.pipeline_mode<synchronous>, transform_indices = @transform_23, window_bounds = array<i64: 128, 128>}, {pipeline_mode = #tpu.pipeline_mode<synchronous>, transform_indices = @transform_24, window_bounds = array<i64: 1, 128>}, {transform_indices = @transform_25, window_bounds = array<i64: 1, 16, 128>}]} {
    %c0 = arith.constant 0 : index
    %c0_0 = arith.constant 0 : index
    %0 = vector.load %arg2[%c0, %c0_0] : memref<32x32xf32, #tpu.memory_space<vmem>>, vector<32x32xf32>
    %c0_1 = arith.constant 0 : index
    %c0_2 = arith.constant 0 : index
    %1 = vector.load %arg3[%c0_1, %c0_2] : memref<32x32xf32, #tpu.memory_space<vmem>>, vector<32x32xf32>
    %c0_3 = arith.constant 0 : index
    %c0_4 = arith.constant 0 : index
    %2 = vector.load %arg4[%c0_3, %c0_4] : memref<16x16xf32, #tpu.memory_space<vmem>>, vector<16x16xf32>
    %c0_5 = arith.constant 0 : index
    %c0_6 = arith.constant 0 : index
    %3 = vector.load %arg5[%c0_5, %c0_6] : memref<16x16xf32, #tpu.memory_space<vmem>>, vector<16x16xf32>
    %c0_7 = arith.constant 0 : index
    %c0_8 = arith.constant 0 : index
    %4 = vector.load %arg6[%c0_7, %c0_8] : memref<96x256xf32, #tpu.memory_space<vmem>>, vector<96x256xf32>
    %c0_9 = arith.constant 0 : index
    %c0_10 = arith.constant 0 : index
    %5 = vector.load %arg7[%c0_9, %c0_10] : memref<96x256xf32, #tpu.memory_space<vmem>>, vector<96x256xf32>
    %c0_11 = arith.constant 0 : index
    %c0_12 = arith.constant 0 : index
    %6 = vector.load %arg8[%c0_11, %c0_12] : memref<96x256xf32, #tpu.memory_space<vmem>>, vector<96x256xf32>
    %c0_13 = arith.constant 0 : index
    %c0_14 = arith.constant 0 : index
    %7 = vector.load %arg9[%c0_13, %c0_14] : memref<1x256xf32, #tpu.memory_space<vmem>>, vector<1x256xf32>
    %c0_15 = arith.constant 0 : index
    %c0_16 = arith.constant 0 : index
    %8 = vector.load %arg10[%c0_15, %c0_16] : memref<256x128xf32, #tpu.memory_space<vmem>>, vector<256x128xf32>
    %c0_17 = arith.constant 0 : index
    %c0_18 = arith.constant 0 : index
    %9 = vector.load %arg11[%c0_17, %c0_18] : memref<256x128xf32, #tpu.memory_space<vmem>>, vector<256x128xf32>
    %c0_19 = arith.constant 0 : index
    %c0_20 = arith.constant 0 : index
    %10 = vector.load %arg12[%c0_19, %c0_20] : memref<256x128xf32, #tpu.memory_space<vmem>>, vector<256x128xf32>
    %c0_21 = arith.constant 0 : index
    %c0_22 = arith.constant 0 : index
    %11 = vector.load %arg13[%c0_21, %c0_22] : memref<1x128xf32, #tpu.memory_space<vmem>>, vector<1x128xf32>
    %c0_23 = arith.constant 0 : index
    %c0_24 = arith.constant 0 : index
    %12 = vector.load %arg14[%c0_23, %c0_24] : memref<16x32xf32, #tpu.memory_space<vmem>>, vector<16x32xf32>
    %c0_25 = arith.constant 0 : index
    %c0_26 = arith.constant 0 : index
    %13 = vector.load %arg15[%c0_25, %c0_26] : memref<16x32xf32, #tpu.memory_space<vmem>>, vector<16x32xf32>
    %c0_27 = arith.constant 0 : index
    %c0_28 = arith.constant 0 : index
    %14 = vector.load %arg16[%c0_27, %c0_28] : memref<128x64xf32, #tpu.memory_space<vmem>>, vector<128x64xf32>
    %c0_29 = arith.constant 0 : index
    %c0_30 = arith.constant 0 : index
    %15 = vector.load %arg17[%c0_29, %c0_30] : memref<128x64xf32, #tpu.memory_space<vmem>>, vector<128x64xf32>
    %c0_31 = arith.constant 0 : index
    %c0_32 = arith.constant 0 : index
    %16 = vector.load %arg18[%c0_31, %c0_32] : memref<64x128xf32, #tpu.memory_space<vmem>>, vector<64x128xf32>
    %c0_33 = arith.constant 0 : index
    %c0_34 = arith.constant 0 : index
    %17 = vector.load %arg19[%c0_33, %c0_34] : memref<64x128xf32, #tpu.memory_space<vmem>>, vector<64x128xf32>
    %c0_35 = arith.constant 0 : index
    %c0_36 = arith.constant 0 : index
    %18 = vector.load %arg20[%c0_35, %c0_36] : memref<64x128xf32, #tpu.memory_space<vmem>>, vector<64x128xf32>
    %c0_37 = arith.constant 0 : index
    %c0_38 = arith.constant 0 : index
    %19 = vector.load %arg21[%c0_37, %c0_38] : memref<1x128xf32, #tpu.memory_space<vmem>>, vector<1x128xf32>
    %c0_39 = arith.constant 0 : index
    %c0_40 = arith.constant 0 : index
    %20 = vector.load %arg22[%c0_39, %c0_40] : memref<128x128xf32, #tpu.memory_space<vmem>>, vector<128x128xf32>
    %c0_41 = arith.constant 0 : index
    %c0_42 = arith.constant 0 : index
    %21 = vector.load %arg23[%c0_41, %c0_42] : memref<128x128xf32, #tpu.memory_space<vmem>>, vector<128x128xf32>
    %c0_43 = arith.constant 0 : index
    %c0_44 = arith.constant 0 : index
    %22 = vector.load %arg24[%c0_43, %c0_44] : memref<128x128xf32, #tpu.memory_space<vmem>>, vector<128x128xf32>
    %c0_45 = arith.constant 0 : index
    %c0_46 = arith.constant 0 : index
    %23 = vector.load %arg25[%c0_45, %c0_46] : memref<1x128xf32, #tpu.memory_space<vmem>>, vector<1x128xf32>
    %c0_47 = arith.constant 0 : index
    %c0_48 = arith.constant 0 : index
    %c0_49 = arith.constant 0 : index
    %24 = vector.load %arg1[%c0_47, %c0_48, %c0_49] : memref<1x32x96xf32, #tpu.memory_space<vmem>>, vector<1x32x96xf32>
    %25 = vector.shape_cast %24 : vector<1x32x96xf32> to vector<32x96xf32>
    %cst = arith.constant dense<0.000000e+00> : vector<32x256xf32>
    %26 = tpu.matmul %25, %4, %cst {dimension_numbers = #tpu.dot_dimension_numbers<[1], [0], [0], [1], [0, 0, 1, 1], [], []>} : vector<32x96xf32>, vector<96x256xf32>, vector<32x256xf32> -> vector<32x256xf32>
    %cst_50 = arith.constant dense<0.000000e+00> : vector<32x256xf32>
    %27 = tpu.matmul %25, %5, %cst_50 {dimension_numbers = #tpu.dot_dimension_numbers<[1], [0], [0], [1], [0, 0, 1, 1], [], []>} : vector<32x96xf32>, vector<96x256xf32>, vector<32x256xf32> -> vector<32x256xf32>
    %cst_51 = arith.constant dense<0.000000e+00> : vector<32x256xf32>
    %28 = tpu.matmul %25, %6, %cst_51 {dimension_numbers = #tpu.dot_dimension_numbers<[1], [0], [0], [1], [0, 0, 1, 1], [], []>} : vector<32x96xf32>, vector<96x256xf32>, vector<32x256xf32> -> vector<32x256xf32>
    %cst_52 = arith.constant dense<0.000000e+00> : vector<32x256xf32>
    %29 = tpu.matmul %0, %26, %cst_52 {dimension_numbers = #tpu.dot_dimension_numbers<[1], [0], [0], [1], [0, 0, 1, 1], [], []>} : vector<32x32xf32>, vector<32x256xf32>, vector<32x256xf32> -> vector<32x256xf32>
    %30 = arith.addf %29, %27 : vector<32x256xf32>
    %cst_53 = arith.constant dense<0.000000e+00> : vector<32x256xf32>
    %31 = tpu.matmul %1, %28, %cst_53 {dimension_numbers = #tpu.dot_dimension_numbers<[1], [0], [0], [1], [0, 0, 1, 1], [], []>} : vector<32x32xf32>, vector<32x256xf32>, vector<32x256xf32> -> vector<32x256xf32>
    %32 = arith.addf %30, %31 : vector<32x256xf32>
    %33 = vector.broadcast %7 : vector<1x256xf32> to vector<32x256xf32>
    %34 = arith.addf %32, %33 : vector<32x256xf32>
    %cst_54 = arith.constant 0.000000e+00 : f32
    %35 = vector.broadcast %cst_54 : f32 to vector<32x256xf32>
    %36 = arith.maximumf %34, %35 : vector<32x256xf32>
    %cst_55 = arith.constant dense<0.000000e+00> : vector<32x128xf32>
    %37 = tpu.matmul %36, %8, %cst_55 {dimension_numbers = #tpu.dot_dimension_numbers<[1], [0], [0], [1], [0, 0, 1, 1], [], []>} : vector<32x256xf32>, vector<256x128xf32>, vector<32x128xf32> -> vector<32x128xf32>
    %cst_56 = arith.constant dense<0.000000e+00> : vector<32x128xf32>
    %38 = tpu.matmul %36, %9, %cst_56 {dimension_numbers = #tpu.dot_dimension_numbers<[1], [0], [0], [1], [0, 0, 1, 1], [], []>} : vector<32x256xf32>, vector<256x128xf32>, vector<32x128xf32> -> vector<32x128xf32>
    %cst_57 = arith.constant dense<0.000000e+00> : vector<32x128xf32>
    %39 = tpu.matmul %36, %10, %cst_57 {dimension_numbers = #tpu.dot_dimension_numbers<[1], [0], [0], [1], [0, 0, 1, 1], [], []>} : vector<32x256xf32>, vector<256x128xf32>, vector<32x128xf32> -> vector<32x128xf32>
    %cst_58 = arith.constant dense<0.000000e+00> : vector<32x128xf32>
    %40 = tpu.matmul %0, %37, %cst_58 {dimension_numbers = #tpu.dot_dimension_numbers<[1], [0], [0], [1], [0, 0, 1, 1], [], []>} : vector<32x32xf32>, vector<32x128xf32>, vector<32x128xf32> -> vector<32x128xf32>
    %41 = arith.addf %40, %38 : vector<32x128xf32>
    %cst_59 = arith.constant dense<0.000000e+00> : vector<32x128xf32>
    %42 = tpu.matmul %1, %39, %cst_59 {dimension_numbers = #tpu.dot_dimension_numbers<[1], [0], [0], [1], [0, 0, 1, 1], [], []>} : vector<32x32xf32>, vector<32x128xf32>, vector<32x128xf32> -> vector<32x128xf32>
    %43 = arith.addf %41, %42 : vector<32x128xf32>
    %44 = vector.broadcast %11 : vector<1x128xf32> to vector<32x128xf32>
    %45 = arith.addf %43, %44 : vector<32x128xf32>
    %cst_60 = arith.constant 0.000000e+00 : f32
    %46 = vector.broadcast %cst_60 : f32 to vector<32x128xf32>
    %47 = arith.maximumf %45, %46 : vector<32x128xf32>
    %cst_61 = arith.constant dense<0.000000e+00> : vector<16x128xf32>
    %48 = tpu.matmul %12, %47, %cst_61 {dimension_numbers = #tpu.dot_dimension_numbers<[1], [0], [0], [1], [0, 0, 1, 1], [], []>} : vector<16x32xf32>, vector<32x128xf32>, vector<16x128xf32> -> vector<16x128xf32>
    %cst_62 = arith.constant dense<0.000000e+00> : vector<16x128xf32>
    %49 = tpu.matmul %13, %47, %cst_62 {dimension_numbers = #tpu.dot_dimension_numbers<[1], [0], [0], [1], [0, 0, 1, 1], [], []>} : vector<16x32xf32>, vector<32x128xf32>, vector<16x128xf32> -> vector<16x128xf32>
    %50 = arith.maximumf %48, %49 : vector<16x128xf32>
    %cst_63 = arith.constant dense<0.000000e+00> : vector<16x64xf32>
    %51 = tpu.matmul %50, %14, %cst_63 {dimension_numbers = #tpu.dot_dimension_numbers<[1], [0], [0], [1], [0, 0, 1, 1], [], []>} : vector<16x128xf32>, vector<128x64xf32>, vector<16x64xf32> -> vector<16x64xf32>
    %cst_64 = arith.constant dense<0.000000e+00> : vector<16x64xf32>
    %52 = tpu.matmul %50, %15, %cst_64 {dimension_numbers = #tpu.dot_dimension_numbers<[1], [0], [0], [1], [0, 0, 1, 1], [], []>} : vector<16x128xf32>, vector<128x64xf32>, vector<16x64xf32> -> vector<16x64xf32>
    %53 = arith.maximumf %51, %52 : vector<16x64xf32>
    %cst_65 = arith.constant dense<0.000000e+00> : vector<16x128xf32>
    %54 = tpu.matmul %53, %16, %cst_65 {dimension_numbers = #tpu.dot_dimension_numbers<[1], [0], [0], [1], [0, 0, 1, 1], [], []>} : vector<16x64xf32>, vector<64x128xf32>, vector<16x128xf32> -> vector<16x128xf32>
    %cst_66 = arith.constant dense<0.000000e+00> : vector<16x128xf32>
    %55 = tpu.matmul %53, %17, %cst_66 {dimension_numbers = #tpu.dot_dimension_numbers<[1], [0], [0], [1], [0, 0, 1, 1], [], []>} : vector<16x64xf32>, vector<64x128xf32>, vector<16x128xf32> -> vector<16x128xf32>
    %cst_67 = arith.constant dense<0.000000e+00> : vector<16x128xf32>
    %56 = tpu.matmul %53, %18, %cst_67 {dimension_numbers = #tpu.dot_dimension_numbers<[1], [0], [0], [1], [0, 0, 1, 1], [], []>} : vector<16x64xf32>, vector<64x128xf32>, vector<16x128xf32> -> vector<16x128xf32>
    %cst_68 = arith.constant dense<0.000000e+00> : vector<16x128xf32>
    %57 = tpu.matmul %2, %54, %cst_68 {dimension_numbers = #tpu.dot_dimension_numbers<[1], [0], [0], [1], [0, 0, 1, 1], [], []>} : vector<16x16xf32>, vector<16x128xf32>, vector<16x128xf32> -> vector<16x128xf32>
    %58 = arith.addf %57, %55 : vector<16x128xf32>
    %cst_69 = arith.constant dense<0.000000e+00> : vector<16x128xf32>
    %59 = tpu.matmul %3, %56, %cst_69 {dimension_numbers = #tpu.dot_dimension_numbers<[1], [0], [0], [1], [0, 0, 1, 1], [], []>} : vector<16x16xf32>, vector<16x128xf32>, vector<16x128xf32> -> vector<16x128xf32>
    %60 = arith.addf %58, %59 : vector<16x128xf32>
    %61 = vector.broadcast %19 : vector<1x128xf32> to vector<16x128xf32>
    %62 = arith.addf %60, %61 : vector<16x128xf32>
    %cst_70 = arith.constant 0.000000e+00 : f32
    %63 = vector.broadcast %cst_70 : f32 to vector<16x128xf32>
    %64 = arith.maximumf %62, %63 : vector<16x128xf32>
    %cst_71 = arith.constant dense<0.000000e+00> : vector<16x128xf32>
    %65 = tpu.matmul %64, %20, %cst_71 {dimension_numbers = #tpu.dot_dimension_numbers<[1], [0], [0], [1], [0, 0, 1, 1], [], []>} : vector<16x128xf32>, vector<128x128xf32>, vector<16x128xf32> -> vector<16x128xf32>
    %cst_72 = arith.constant dense<0.000000e+00> : vector<16x128xf32>
    %66 = tpu.matmul %64, %21, %cst_72 {dimension_numbers = #tpu.dot_dimension_numbers<[1], [0], [0], [1], [0, 0, 1, 1], [], []>} : vector<16x128xf32>, vector<128x128xf32>, vector<16x128xf32> -> vector<16x128xf32>
    %cst_73 = arith.constant dense<0.000000e+00> : vector<16x128xf32>
    %67 = tpu.matmul %64, %22, %cst_73 {dimension_numbers = #tpu.dot_dimension_numbers<[1], [0], [0], [1], [0, 0, 1, 1], [], []>} : vector<16x128xf32>, vector<128x128xf32>, vector<16x128xf32> -> vector<16x128xf32>
    %cst_74 = arith.constant dense<0.000000e+00> : vector<16x128xf32>
    %68 = tpu.matmul %2, %65, %cst_74 {dimension_numbers = #tpu.dot_dimension_numbers<[1], [0], [0], [1], [0, 0, 1, 1], [], []>} : vector<16x16xf32>, vector<16x128xf32>, vector<16x128xf32> -> vector<16x128xf32>
    %69 = arith.addf %68, %66 : vector<16x128xf32>
    %cst_75 = arith.constant dense<0.000000e+00> : vector<16x128xf32>
    %70 = tpu.matmul %3, %67, %cst_75 {dimension_numbers = #tpu.dot_dimension_numbers<[1], [0], [0], [1], [0, 0, 1, 1], [], []>} : vector<16x16xf32>, vector<16x128xf32>, vector<16x128xf32> -> vector<16x128xf32>
    %71 = arith.addf %69, %70 : vector<16x128xf32>
    %72 = vector.broadcast %23 : vector<1x128xf32> to vector<16x128xf32>
    %73 = arith.addf %71, %72 : vector<16x128xf32>
    %cst_76 = arith.constant 0.000000e+00 : f32
    %74 = vector.broadcast %cst_76 : f32 to vector<16x128xf32>
    %75 = arith.maximumf %73, %74 : vector<16x128xf32>
    %c0_77 = arith.constant 0 : index
    %c0_78 = arith.constant 0 : index
    %c0_79 = arith.constant 0 : index
    %76 = vector.load %arg26[%c0_77, %c0_78, %c0_79] : memref<1x16x128xf32, #tpu.memory_space<vmem>>, vector<1x16x128xf32>
    %77 = vector.shape_cast %76 : vector<1x16x128xf32> to vector<16x128xf32>
    %78 = vector.shape_cast %75 : vector<16x128xf32> to vector<1x16x128xf32>
    tpu.vector_store %arg26[%c0_77, %c0_78, %c0_79], %78 {strides = array<i32>} : memref<1x16x128xf32, #tpu.memory_space<vmem>>, vector<1x16x128xf32>,
    return
  }
  func.func @transform_0(%arg0: i32) -> (i32, i32, i32) {
    %c0_i32 = arith.constant 0 : i32
    %c0_i32_0 = arith.constant 0 : i32
    %c0_i32_1 = arith.constant 0 : i32
    return %arg0, %c0_i32, %c0_i32_0 : i32, i32, i32
  }
  func.func @transform_1(%arg0: i32) -> (i32, i32) {
    %c0_i32 = arith.constant 0 : i32
    %c0_i32_0 = arith.constant 0 : i32
    %c0_i32_1 = arith.constant 0 : i32
    return %c0_i32, %c0_i32_0 : i32, i32
  }
  func.func @transform_2(%arg0: i32) -> (i32, i32) {
    %c0_i32 = arith.constant 0 : i32
    %c0_i32_0 = arith.constant 0 : i32
    %c0_i32_1 = arith.constant 0 : i32
    return %c0_i32, %c0_i32_0 : i32, i32
  }
  func.func @transform_3(%arg0: i32) -> (i32, i32) {
    %c0_i32 = arith.constant 0 : i32
    %c0_i32_0 = arith.constant 0 : i32
    %c0_i32_1 = arith.constant 0 : i32
    return %c0_i32, %c0_i32_0 : i32, i32
  }
  func.func @transform_4(%arg0: i32) -> (i32, i32) {
    %c0_i32 = arith.constant 0 : i32
    %c0_i32_0 = arith.constant 0 : i32
    %c0_i32_1 = arith.constant 0 : i32
    return %c0_i32, %c0_i32_0 : i32, i32
  }
  func.func @transform_5(%arg0: i32) -> (i32, i32) {
    %c0_i32 = arith.constant 0 : i32
    %c0_i32_0 = arith.constant 0 : i32
    %c0_i32_1 = arith.constant 0 : i32
    return %c0_i32, %c0_i32_0 : i32, i32
  }
  func.func @transform_6(%arg0: i32) -> (i32, i32) {
    %c0_i32 = arith.constant 0 : i32
    %c0_i32_0 = arith.constant 0 : i32
    %c0_i32_1 = arith.constant 0 : i32
    return %c0_i32, %c0_i32_0 : i32, i32
  }
  func.func @transform_7(%arg0: i32) -> (i32, i32) {
    %c0_i32 = arith.constant 0 : i32
    %c0_i32_0 = arith.constant 0 : i32
    %c0_i32_1 = arith.constant 0 : i32
    return %c0_i32, %c0_i32_0 : i32, i32
  }
  func.func @transform_8(%arg0: i32) -> (i32, i32) {
    %c0_i32 = arith.constant 0 : i32
    %c0_i32_0 = arith.constant 0 : i32
    %c0_i32_1 = arith.constant 0 : i32
    return %c0_i32, %c0_i32_0 : i32, i32
  }
  func.func @transform_9(%arg0: i32) -> (i32, i32) {
    %c0_i32 = arith.constant 0 : i32
    %c0_i32_0 = arith.constant 0 : i32
    %c0_i32_1 = arith.constant 0 : i32
    return %c0_i32, %c0_i32_0 : i32, i32
  }
  func.func @transform_10(%arg0: i32) -> (i32, i32) {
    %c0_i32 = arith.constant 0 : i32
    %c0_i32_0 = arith.constant 0 : i32
    %c0_i32_1 = arith.constant 0 : i32
    return %c0_i32, %c0_i32_0 : i32, i32
  }
  func.func @transform_11(%arg0: i32) -> (i32, i32) {
    %c0_i32 = arith.constant 0 : i32
    %c0_i32_0 = arith.constant 0 : i32
    %c0_i32_1 = arith.constant 0 : i32
    return %c0_i32, %c0_i32_0 : i32, i32
  }
  func.func @transform_12(%arg0: i32) -> (i32, i32) {
    %c0_i32 = arith.constant 0 : i32
    %c0_i32_0 = arith.constant 0 : i32
    %c0_i32_1 = arith.constant 0 : i32
    return %c0_i32, %c0_i32_0 : i32, i32
  }
  func.func @transform_13(%arg0: i32) -> (i32, i32) {
    %c0_i32 = arith.constant 0 : i32
    %c0_i32_0 = arith.constant 0 : i32
    %c0_i32_1 = arith.constant 0 : i32
    return %c0_i32, %c0_i32_0 : i32, i32
  }
  func.func @transform_14(%arg0: i32) -> (i32, i32) {
    %c0_i32 = arith.constant 0 : i32
    %c0_i32_0 = arith.constant 0 : i32
    %c0_i32_1 = arith.constant 0 : i32
    return %c0_i32, %c0_i32_0 : i32, i32
  }
  func.func @transform_15(%arg0: i32) -> (i32, i32) {
    %c0_i32 = arith.constant 0 : i32
    %c0_i32_0 = arith.constant 0 : i32
    %c0_i32_1 = arith.constant 0 : i32
    return %c0_i32, %c0_i32_0 : i32, i32
  }
  func.func @transform_16(%arg0: i32) -> (i32, i32) {
    %c0_i32 = arith.constant 0 : i32
    %c0_i32_0 = arith.constant 0 : i32
    %c0_i32_1 = arith.constant 0 : i32
    return %c0_i32, %c0_i32_0 : i32, i32
  }
  func.func @transform_17(%arg0: i32) -> (i32, i32) {
    %c0_i32 = arith.constant 0 : i32
    %c0_i32_0 = arith.constant 0 : i32
    %c0_i32_1 = arith.constant 0 : i32
    return %c0_i32, %c0_i32_0 : i32, i32
  }
  func.func @transform_18(%arg0: i32) -> (i32, i32) {
    %c0_i32 = arith.constant 0 : i32
    %c0_i32_0 = arith.constant 0 : i32
    %c0_i32_1 = arith.constant 0 : i32
    return %c0_i32, %c0_i32_0 : i32, i32
  }
  func.func @transform_19(%arg0: i32) -> (i32, i32) {
    %c0_i32 = arith.constant 0 : i32
    %c0_i32_0 = arith.constant 0 : i32
    %c0_i32_1 = arith.constant 0 : i32
    return %c0_i32, %c0_i32_0 : i32, i32
  }
  func.func @transform_20(%arg0: i32) -> (i32, i32) {
    %c0_i32 = arith.constant 0 : i32
    %c0_i32_0 = arith.constant 0 : i32
    %c0_i32_1 = arith.constant 0 : i32
    return %c0_i32, %c0_i32_0 : i32, i32
  }
  func.func @transform_21(%arg0: i32) -> (i32, i32) {
    %c0_i32 = arith.constant 0 : i32
    %c0_i32_0 = arith.constant 0 : i32
    %c0_i32_1 = arith.constant 0 : i32
    return %c0_i32, %c0_i32_0 : i32, i32
  }
  func.func @transform_22(%arg0: i32) -> (i32, i32) {
    %c0_i32 = arith.constant 0 : i32
    %c0_i32_0 = arith.constant 0 : i32
    %c0_i32_1 = arith.constant 0 : i32
    return %c0_i32, %c0_i32_0 : i32, i32
  }
  func.func @transform_23(%arg0: i32) -> (i32, i32) {
    %c0_i32 = arith.constant 0 : i32
    %c0_i32_0 = arith.constant 0 : i32
    %c0_i32_1 = arith.constant 0 : i32
    return %c0_i32, %c0_i32_0 : i32, i32
  }
  func.func @transform_24(%arg0: i32) -> (i32, i32) {
    %c0_i32 = arith.constant 0 : i32
    %c0_i32_0 = arith.constant 0 : i32
    %c0_i32_1 = arith.constant 0 : i32
    return %c0_i32, %c0_i32_0 : i32, i32
  }
  func.func @transform_25(%arg0: i32) -> (i32, i32, i32) {
    %c0_i32 = arith.constant 0 : i32
    %c0_i32_0 = arith.constant 0 : i32
    %c0_i32_1 = arith.constant 0 : i32
    return %arg0, %c0_i32, %c0_i32_0 : i32, i32, i32
  }
}

module attributes {stable_mosaic.version = 11 : i64} {
  func.func @_fc_kernel(%arg0: i32, %arg1: memref<2x2048xf32, #tpu.memory_space<vmem>>, %arg2: memref<2048x1024xbf16, #tpu.memory_space<vmem>>, %arg3: memref<1x1024xf32, #tpu.memory_space<vmem>>, %arg4: memref<2x1024xf32, #tpu.memory_space<vmem>>) attributes {dimension_semantics = [#tpu.dimension_semantics<parallel>], iteration_bounds = array<i64: 3>, scalar_prefetch = 0 : i64, scratch_operands = 0 : i64, tpu.core_type = #tpu.core_type<tc>, window_params = [{pipeline_mode = #tpu.pipeline_mode<synchronous>, transform_indices = @transform_0, window_bounds = array<i64: 2, 2048>}, {transform_indices = @transform_1, window_bounds = array<i64: 2048, 1024>}, {transform_indices = @transform_2, window_bounds = array<i64: 1, 1024>}, {transform_indices = @transform_3, window_bounds = array<i64: 2, 1024>}]} {
    %c0 = arith.constant 0 : index
    %c0_0 = arith.constant 0 : index
    %0 = vector.load %arg1[%c0, %c0_0] : memref<2x2048xf32, #tpu.memory_space<vmem>>, vector<2x2048xf32>
    %1 = arith.truncf %0 : vector<2x2048xf32> to vector<2x2048xbf16>
    %c0_1 = arith.constant 0 : index
    %c0_2 = arith.constant 0 : index
    %2 = vector.load %arg2[%c0_1, %c0_2] : memref<2048x1024xbf16, #tpu.memory_space<vmem>>, vector<2048x1024xbf16>
    %cst = arith.constant dense<0.000000e+00> : vector<2x1024xf32>
    %3 = tpu.matmul %1, %2, %cst {dimension_numbers = #tpu.dot_dimension_numbers<[1], [0], [0], [1], [0, 0, 1, 1], [], []>} : vector<2x2048xbf16>, vector<2048x1024xbf16>, vector<2x1024xf32> -> vector<2x1024xf32>
    %c0_3 = arith.constant 0 : index
    %c0_4 = arith.constant 0 : index
    %4 = vector.load %arg3[%c0_3, %c0_4] : memref<1x1024xf32, #tpu.memory_space<vmem>>, vector<1x1024xf32>
    %5 = vector.broadcast %4 : vector<1x1024xf32> to vector<2x1024xf32>
    %6 = arith.addf %3, %5 : vector<2x1024xf32>
    %c0_5 = arith.constant 0 : index
    %c0_6 = arith.constant 0 : index
    %7 = vector.load %arg4[%c0_5, %c0_6] : memref<2x1024xf32, #tpu.memory_space<vmem>>, vector<2x1024xf32>
    tpu.vector_store %arg4[%c0_5, %c0_6], %6 {strides = array<i32>} : memref<2x1024xf32, #tpu.memory_space<vmem>>, vector<2x1024xf32>,
    return
  }
  func.func @transform_0(%arg0: i32) -> (i32, i32) {
    %c0_i32 = arith.constant 0 : i32
    %c0_i32_0 = arith.constant 0 : i32
    %c0_i32_1 = arith.constant 0 : i32
    return %c0_i32, %c0_i32_0 : i32, i32
  }
  func.func @transform_1(%arg0: i32) -> (i32, i32) {
    %c0_i32 = arith.constant 0 : i32
    %c0_i32_0 = arith.constant 0 : i32
    return %c0_i32, %arg0 : i32, i32
  }
  func.func @transform_2(%arg0: i32) -> (i32, i32) {
    %c0_i32 = arith.constant 0 : i32
    %c0_i32_0 = arith.constant 0 : i32
    return %c0_i32, %arg0 : i32, i32
  }
  func.func @transform_3(%arg0: i32) -> (i32, i32) {
    %c0_i32 = arith.constant 0 : i32
    %c0_i32_0 = arith.constant 0 : i32
    return %c0_i32, %arg0 : i32, i32
  }
}

</mosaic_0001>

<bundles_post_ra>
// kernel: net1_forward.2
= control target key start
LH: loop header
LB: loop body
LE: loop exit
PB: predicated region body
PF: predicated region fallthrough
CT: control target
= control target key end

     0   :  { %s6779_s0 = inlined_call_operand.vmem [shape: f32[2,32,96], index: 0, kind: input, shape index: {}]   ;;  %s6780_s1 = inlined_call_operand.hbm [shape: f32[32,32], index: 1, kind: input, shape index: {}]   ;;  %s6781_s2 = inlined_call_operand.hbm [shape: f32[32,32], index: 2, kind: input, shape index: {}]   ;;  %s6782_s3 = inlined_call_operand.hbm [shape: f32[16,16], index: 3, kind: input, shape index: {}]   ;;  %s6783_s4 = inlined_call_operand.hbm [shape: f32[16,16], index: 4, kind: input, shape index: {}]   ;;  %s6784_s5 = inlined_call_operand.hbm [shape: f32[96,256], index: 5, kind: input, shape index: {}]   ;;  %s6785_s6 = inlined_call_operand.hbm [shape: f32[96,256], index: 6, kind: input, shape index: {}]   ;;  %s6786_s7 = inlined_call_operand.hbm [shape: f32[96,256], index: 7, kind: input, shape index: {}]   ;;  %s6787_s8 = inlined_call_operand.hbm [shape: f32[1,256], index: 8, kind: input, shape index: {}]   ;;  %s6788_s9 = inlined_call_operand.hbm [shape: f32[256,128], index: 9, kind: input, shape index: {}]   ;;  %s6789_s10 = inlined_call_operand.hbm [shape: f32[256,128], index: 10, kind: input, shape index: {}]   ;;  %s6790_s11 = inlined_call_operand.hbm [shape: f32[256,128], index: 11, kind: input, shape index: {}]   ;;  %s6791_s12 = inlined_call_operand.hbm [shape: f32[1,128], index: 12, kind: input, shape index: {}]   ;;  %s6792_s13 = inlined_call_operand.hbm [shape: f32[16,32], index: 13, kind: input, shape index: {}]   ;;  %s6793_s14 = inlined_call_operand.hbm [shape: f32[16,32], index: 14, kind: input, shape index: {}]   ;;  %s6794_s15 = inlined_call_operand.vmem [shape: f32[128,64], index: 15, kind: input, shape index: {}]   ;;  %s6795_s16 = inlined_call_operand.vmem [shape: f32[128,64], index: 16, kind: input, shape index: {}]   ;;  %s6796_s17 = inlined_call_operand.hbm [shape: f32[64,128], index: 17, kind: input, shape index: {}]   ;;  %s6797_s18 = inlined_call_operand.hbm [shape: f32[64,128], index: 18, kind: input, shape index: {}]   ;;  %s6798_s19 = inlined_call_operand.hbm [shape: f32[64,128], index: 19, kind: input, shape index: {}]   ;;  %s6799_s20 = inlined_call_operand.hbm [shape: f32[1,128], index: 20, kind: input, shape index: {}]   ;;  %s6800_s21 = inlined_call_operand.hbm [shape: f32[128,128], index: 21, kind: input, shape index: {}]   ;;  %s6801_s22 = inlined_call_operand.hbm [shape: f32[128,128], index: 22, kind: input, shape index: {}]   ;;  %s6802_s23 = inlined_call_operand.hbm [shape: f32[128,128], index: 23, kind: input, shape index: {}]   ;;  %s6803_s24 = inlined_call_operand.hbm [shape: f32[1,128], index: 24, kind: input, shape index: {}]   ;;  %s6804_s25 = inlined_call_operand.vmem [shape: f32[2,16,128], index: 25, kind: output, shape index: {}]  }
   0x1   :  { %6836 = sst [smem:[#allocation51_spill]] %s6779_s0 }
   0x2   :  { %6837 = sst [smem:[#allocation52_spill]] %s6780_s1 }
   0x3   :  { %6838 = sst [smem:[#allocation53_spill]] %s6781_s2 }
   0x4   :  { %6839 = sst [smem:[#allocation54_spill]] %s6782_s3 }
   0x5   :  { %6840 = sst [smem:[#allocation55_spill]] %s6783_s4 }
   0x6   :  { %6841 = sst [smem:[#allocation56_spill]] %s6784_s5 }
   0x7   :  { %6842 = sst [smem:[#allocation57_spill]] %s6785_s6 }
   0x8   :  { %6843 = sst [smem:[#allocation58_spill]] %s6786_s7 }
   0x9   :  { %6844 = sst [smem:[#allocation59_spill]] %s6787_s8 }
   0xa   :  { %6845 = sst [smem:[#allocation60_spill]] %s6788_s9 }
   0xb   :  { %6846 = sst [smem:[#allocation61_spill]] %s6789_s10 }
   0xc   :  { %6847 = sst [smem:[#allocation62_spill]] %s6791_s12 }
   0xd   :  { %6848 = sst [smem:[#allocation63_spill]] %s6793_s14 }
   0xe   :  { %6849 = sst [smem:[#allocation64_spill]] %s6794_s15 }
   0xf   :  { %6850 = sst [smem:[#allocation65_spill]] %s6795_s16 }
  0x10   :  { %6851 = sst [smem:[#allocation66_spill]] %s6797_s18 }
  0x11   :  { %6852 = sst [smem:[#allocation67_spill]] %s6803_s24 }
  0x12   :  { %6853 = sst [smem:[#allocation68_spill]] %s6804_s25 }
  0x13   :  { %30 = vsyncpa [#allocation3], 0 }
  0x14   :  { %31 = vsyncpa [#allocation5], 0 }
  0x15   :  { %32 = vsyncpa [#allocation8], 0 }
  0x16   :  { %33 = vsyncpa [#allocation11], 0 }
  0x17   :  { %34 = vsyncpa [#allocation14], 0 }
  0x18   :  { %35 = vsyncpa [#allocation17], 0 }
  0x19   :  { %36 = vsyncpa [#allocation20], 0 }
  0x1a   :  { %37 = vsyncpa [#allocation23], 0 }
  0x1b   :  { %38 = vsyncpa [#allocation26], 0 }
  0x1c   :  { %39 = vsyncpa [#allocation29], 0 }
  0x1d   :  { %40 = vsyncpa [#allocation32], 0 }
  0x1e   :  { %41 = vsyncpa [#allocation35], 0  ;;  %s5960_s29 = smov 0  }
  0x1f LB: > { %6854 = sst [smem:[#allocation48_spill]] %s5801_s29  ;;  %s5966_s2 = sadd.s32 4294967295, %s5801_s29   ;;  %s5801_s29 = sphi %s5960_s29, %s47_s29  }
  0x20   : > { %6855 = sst [smem:[#allocation49_spill]] %s5966_s2  ;;  %p3715_p0 = scmp.ge.s32.totalorder %s5801_s29, 1 }
  0x21   : > { %p608_p1 = scmp.lt.s32.totalorder %s5801_s29, 3  ;;  %p6822_p2 = scmp.eq.s32.totalorder %s5966_s2, 0 }
  0x22   : > { %s5803_s30 = smov [#allocation4]   ;;  %s5804_s3 = smov [#allocation7]  }
  0x23   : > { %p5971_p3 = pnand %p3715_p0, %p608_p1  ;;  %s633_s7 = sshll.u32 %s5803_s30, 4  ;;  %s5975_s7 = int_to_ptr.vmem [resolvable:$true] %s633_s7 }
  0x24   : > { %s659_s26 = sshll.u32 %s5804_s3, 4  ;;  %s5805_s8 = smov [#allocation10]   ;;  %s5979_s26 = int_to_ptr.vmem [resolvable:$true] %s659_s26 }
  0x25   : > { %s6856_s6 = scalar_select %p5971_p3, 1, 0 }
  0x26   : > { %p4985_p4 = pneg %p5971_p3  ;;  %s5987_s27 = sshll.u32 %s5805_s8, 4  ;;  %s686_s27 = int_to_ptr.vmem [resolvable:$true] %s5987_s27 }
  0x27   : > { %6857 = sst [smem:[#allocation50_spill]] %s6856_s6  ;;  %s6859_s9 = sld [smem:[#allocation53_spill]] }
  0x28   : > { %p5983_p5 = pnand %p6822_p2, %p4985_p4 }
  0x2a   : > { %p5997_p7 = pneg %p5983_p5 }
  0x2d   : > { %s5131_s5 = scalar_lea.hbm %s6859_s9, 512 }
  0x2e   : > { %p5132_p6 = scmp.ne.s32.totalorder %s6859_s9, %s5131_s5  ;;  %p5138_p10 = scmp.lt.u32.totalorder %s5131_s5, %s6859_s9 }
  0x30   : > { %p5134_p8 = pnand %p5997_p7, %p5132_p6 }
  0x32   : > { %p5135_p9 = pneg %p5134_p8 }
  0x34   : > { %p5140_p11 = pnand %p5138_p10, %p5135_p9 }
  0x36   : > { %5143 = shalt.err (!%p5140_p11)
}
  0x37   : > { %s5144_s4 = scalar_lea.vmem %s5975_s7, 512  ;;  %p5152_p1 = scmp.lt.s32.totalorder %s5975_s7, %s5975_s7 }
  0x38   : > { %p5145_p12 = scmp.ne.s32.totalorder %s5975_s7, %s5144_s4  ;;  %p5153_p4 = scmp.lt.s32.totalorder %s5144_s4, %s5144_s4 }
  0x3a   : > { %p5147_p13 = pnand %p5145_p12, %p5997_p7  ;;  %p5154_p6 = por %p5153_p4, %p5152_p1 }
  0x3c   : > { %p5148_p0 = pneg %p5147_p13 }
  0x3e   : > { %p5155_p8 = pnand %p5154_p6, %p5148_p0 }
  0x40   : > { %5158 = shalt.err (!%p5155_p8)
}
  0x41   : > { %s6824_s28 = smov 128   ;;  %s6830_s29 = smov 8  }
  0x42   : > { %4991 = dma.hbm_to_vmem [thread:$0]  (!%p5983_p5), %s6859_s9, 512, %s5975_s7, [#allocation5], %s6824_s28, %s6824_s28, %s6830_s29  }
  0x43   : > { %s6861_s25 = sld [smem:[#allocation55_spill]] }
  0x49   : > { %s5159_s4 = scalar_lea.hbm %s6861_s25, 256 }
  0x4a   : > { %p5160_p9 = scmp.ne.s32.totalorder %s6861_s25, %s5159_s4  ;;  %p5166_p12 = scmp.lt.u32.totalorder %s5159_s4, %s6861_s25 }
  0x4c   : > { %p5162_p10 = pnand %p5160_p9, %p5997_p7 }
  0x4e   : > { %p5163_p11 = pneg %p5162_p10 }
  0x50   : > { %p5168_p13 = pnand %p5166_p12, %p5163_p11 }
  0x52   : > { %5171 = shalt.err (!%p5168_p13)
}
  0x53   : > { %s5172_s7 = scalar_lea.vmem %s5979_s26, 256  ;;  %p5180_p6 = scmp.lt.s32.totalorder %s5979_s26, %s5979_s26 }
  0x54   : > { %p5173_p0 = scmp.ne.s32.totalorder %s5979_s26, %s5172_s7  ;;  %p5181_p8 = scmp.lt.s32.totalorder %s5172_s7, %s5172_s7 }
  0x56   : > { %p5175_p1 = pnand %p5173_p0, %p5997_p7  ;;  %p5182_p9 = por %p5181_p8, %p5180_p6 }
  0x58   : > { %p5176_p4 = pneg %p5175_p1 }
  0x5a   : > { %p5183_p10 = pnand %p5182_p9, %p5176_p4 }
  0x5c   : > { %5186 = shalt.err (!%p5183_p10)
}
  0x5d   : > { %4997 = dma.hbm_to_vmem [thread:$0]  (!%p5983_p5), %s6861_s25, 256, %s5979_s26, [#allocation8], %s6824_s28, %s6824_s28, %s6830_s29  }
  0x5e   : > { %s5808_s2 = smov [#allocation13]   ;;  %s6862_s30 = sld [smem:[#allocation57_spill]] }
  0x5f   : > { %s712_s6 = sshll.u32 %s5808_s2, 4  ;;  %s713_s6 = int_to_ptr.vmem [resolvable:$true] %s712_s6 }
  0x64   : > { %s5187_s8 = scalar_lea.hbm %s6862_s30, 3072 }
  0x65   : > { %p5188_p11 = scmp.ne.s32.totalorder %s6862_s30, %s5187_s8  ;;  %p5194_p0 = scmp.lt.u32.totalorder %s5187_s8, %s6862_s30 }
  0x67   : > { %p5190_p12 = pnand %p5188_p11, %p5997_p7 }
  0x69   : > { %p5191_p13 = pneg %p5190_p12 }
  0x6b   : > { %p5196_p1 = pnand %p5194_p0, %p5191_p13 }
  0x6d   : > { %5199 = shalt.err (!%p5196_p1)
}
  0x6e   : > { %s5200_s26 = scalar_lea.vmem %s686_s27, 3072  ;;  %p5208_p9 = scmp.lt.s32.totalorder %s686_s27, %s686_s27 }
  0x6f   : > { %p5201_p4 = scmp.ne.s32.totalorder %s686_s27, %s5200_s26  ;;  %p5209_p10 = scmp.lt.s32.totalorder %s5200_s26, %s5200_s26 }
  0x71   : > { %p5203_p6 = pnand %p5201_p4, %p5997_p7  ;;  %p5210_p2 = por %p5209_p10, %p5208_p9 }
  0x73   : > { %p5204_p8 = pneg %p5203_p6 }
  0x75   : > { %p5211_p3 = pnand %p5210_p2, %p5204_p8 }
  0x77   : > { %5214 = shalt.err (!%p5211_p3)
}
  0x78   : > { %s6826_s15 = smov 256   ;;  %s6828_s16 = smov 16  }
  0x79   : > { %5003 = dma.hbm_to_vmem [thread:$0]  (!%p5983_p5), %s6862_s30, 3072, %s686_s27, [#allocation11], %s6826_s15, %s6826_s15, %s6828_s16  }
  0x7a   : > { %s6863_s0 = sld [smem:[#allocation59_spill]] }
  0x80   : > { %s5215_s8 = scalar_lea.hbm %s6863_s0, 32 }
  0x81   : > { %p5216_p2 = scmp.ne.s32.totalorder %s6863_s0, %s5215_s8  ;;  %p5222_p12 = scmp.lt.u32.totalorder %s5215_s8, %s6863_s0 }
  0x83   : > { %p5218_p3 = pnand %p5216_p2, %p5997_p7 }
  0x85   : > { %p5219_p11 = pneg %p5218_p3 }
  0x87   : > { %p5224_p13 = pnand %p5222_p12, %p5219_p11 }
  0x89   : > { %5227 = shalt.err (!%p5224_p13)
}
  0x8a   : > { %s5228_s24 = scalar_lea.vmem %s713_s6, 32  ;;  %p5236_p6 = scmp.lt.s32.totalorder %s713_s6, %s713_s6 }
  0x8b   : > { %p5229_p0 = scmp.ne.s32.totalorder %s713_s6, %s5228_s24  ;;  %p5237_p8 = scmp.lt.s32.totalorder %s5228_s24, %s5228_s24 }
  0x8d   : > { %p5231_p1 = pnand %p5229_p0, %p5997_p7  ;;  %p5238_p9 = por %p5237_p8, %p5236_p6 }
  0x8f   : > { %p5232_p4 = pneg %p5231_p1 }
  0x91   : > { %p5239_p10 = pnand %p5238_p9, %p5232_p4 }
  0x93   : > { %5242 = shalt.err (!%p5239_p10)
}
  0x94   : > { %5009 = dma.hbm_to_vmem [thread:$0]  (!%p5983_p5), %s6863_s0, 32, %s713_s6, [#allocation14]  }
  0x95   : > { %s5811_s28 = smov [#allocation16]   ;;  %s5812_s5 = smov [#allocation19]  }
  0x96   : > { %s735_s2 = sshll.u32 %s5811_s28, 4  ;;  %s762_s8 = sshll.u32 %s5812_s5, 4  ;;  %s736_s2 = int_to_ptr.vmem [resolvable:$true] %s735_s2  ;;  %s763_s8 = int_to_ptr.vmem [resolvable:$true] %s762_s8 }
  0x97   : > { %s6864_s10 = sld [smem:[#allocation61_spill]] }
  0x9d   : > { %s5243_s26 = scalar_lea.hbm %s6864_s10, 4096 }
  0x9e   : > { %p5244_p2 = scmp.ne.s32.totalorder %s6864_s10, %s5243_s26  ;;  %p5250_p12 = scmp.lt.u32.totalorder %s5243_s26, %s6864_s10 }
  0xa0   : > { %p5246_p3 = pnand %p5244_p2, %p5997_p7 }
  0xa2   : > { %p5247_p11 = pneg %p5246_p3 }
  0xa4   : > { %p5252_p13 = pnand %p5250_p12, %p5247_p11 }
  0xa6   : > { %5255 = shalt.err (!%p5252_p13)
}
  0xa7   : > { %s5256_s6 = scalar_lea.vmem %s736_s2, 4096  ;;  %p5264_p6 = scmp.lt.s32.totalorder %s736_s2, %s736_s2 }
  0xa8   : > { %p5257_p0 = scmp.ne.s32.totalorder %s736_s2, %s5256_s6  ;;  %p5265_p8 = scmp.lt.s32.totalorder %s5256_s6, %s5256_s6 }
  0xaa   : > { %p5259_p1 = pnand %p5257_p0, %p5997_p7  ;;  %p5266_p9 = por %p5265_p8, %p5264_p6 }
  0xac   : > { %p5260_p4 = pneg %p5259_p1 }
  0xae   : > { %p5267_p10 = pnand %p5266_p9, %p5260_p4 }
  0xb0   : > { %5270 = shalt.err (!%p5267_p10)
}
  0xb1   : > { %s6865_s15 = smov 128   ;;  %s6866_s12 = sld [smem:[#allocation62_spill]] }
  0xb2   : > { %5015 = dma.hbm_to_vmem [thread:$0]  (!%p5983_p5), %s6864_s10, 4096, %s736_s2, [#allocation17], %s6865_s15, %s6865_s15, %s6830_s29  }
  0xb7   : > { %s5271_s4 = scalar_lea.hbm %s6866_s12, 16 }
  0xb8   : > { %p5272_p2 = scmp.ne.s32.totalorder %s6866_s12, %s5271_s4  ;;  %p5278_p12 = scmp.lt.u32.totalorder %s5271_s4, %s6866_s12 }
  0xba   : > { %p5274_p3 = pnand %p5272_p2, %p5997_p7 }
  0xbc   : > { %p5275_p11 = pneg %p5274_p3 }
  0xbe   : > { %p5280_p13 = pnand %p5278_p12, %p5275_p11 }
  0xc0   : > { %5283 = shalt.err (!%p5280_p13)
}
  0xc1   : > { %s5284_s6 = scalar_lea.vmem %s763_s8, 16  ;;  %s5291_s2 = scalar_lea.vmem %s763_s8, 32 }
  0xc2   : > { %p5285_p0 = scmp.ne.s32.totalorder %s763_s8, %s5284_s6  ;;  %p5292_p6 = scmp.lt.s32.totalorder %s763_s8, %s763_s8 }
  0xc3   : > { %p5293_p8 = scmp.lt.s32.totalorder %s5291_s2, %s5284_s6 }
  0xc4   : > { %p5287_p1 = pnand %p5285_p0, %p5997_p7 }
  0xc5   : > { %p5294_p9 = por %p5293_p8, %p5292_p6 }
  0xc6   : > { %p5288_p4 = pneg %p5287_p1 }
  0xc8   : > { %p5295_p10 = pnand %p5294_p9, %p5288_p4 }
  0xca   : > { %5298 = shalt.err (!%p5295_p10)
}
  0xcb   : > { %5021 = dma.hbm_to_vmem [thread:$0]  (!%p5983_p5), %s6866_s12, 16, %s763_s8, [#allocation20]  }
  0xcc   : > { %s5813_s28 = smov [#allocation22]   ;;  %s5814_s4 = smov [#allocation25]  }
  0xcd   : > { %s785_s5 = sshll.u32 %s5813_s28, 4  ;;  %s817_s7 = sshll.u32 %s5814_s4, 4  ;;  %s786_s5 = int_to_ptr.vmem [resolvable:$true] %s785_s5  ;;  %s818_s7 = int_to_ptr.vmem [resolvable:$true] %s817_s7 }
  0xce   : > { %s6867_s14 = sld [smem:[#allocation63_spill]] }
  0xd4   : > { %s5299_s27 = scalar_lea.hbm %s6867_s14, 256 }
  0xd5   : > { %p5300_p2 = scmp.ne.s32.totalorder %s6867_s14, %s5299_s27  ;;  %p5306_p12 = scmp.lt.u32.totalorder %s5299_s27, %s6867_s14 }
  0xd7   : > { %p5302_p3 = pnand %p5300_p2, %p5997_p7 }
  0xd9   : > { %p5303_p11 = pneg %p5302_p3 }
  0xdb   : > { %p5308_p13 = pnand %p5306_p12, %p5303_p11 }
  0xdd   : > { %5311 = shalt.err (!%p5308_p13)
}
  0xde   : > { %s5312_s8 = scalar_lea.vmem %s786_s5, 256  ;;  %p5320_p6 = scmp.lt.s32.totalorder %s786_s5, %s786_s5 }
  0xdf   : > { %p5313_p0 = scmp.ne.s32.totalorder %s786_s5, %s5312_s8  ;;  %p5321_p8 = scmp.lt.s32.totalorder %s5312_s8, %s5312_s8 }
  0xe1   : > { %p5315_p1 = pnand %p5313_p0, %p5997_p7  ;;  %p5322_p9 = por %p5321_p8, %p5320_p6 }
  0xe3   : > { %p5316_p4 = pneg %p5315_p1 }
  0xe5   : > { %p5323_p10 = pnand %p5322_p9, %p5316_p4 }
  0xe7   : > { %5326 = shalt.err (!%p5323_p10)
}
  0xe8   : > { %s6868_s9 = smov 8   ;;  %s6869_s18 = sld [smem:[#allocation66_spill]] }
  0xe9   : > { %5027 = dma.hbm_to_vmem [thread:$0]  (!%p5983_p5), %s6867_s14, 256, %s786_s5, [#allocation23], %s6865_s15, %s6865_s15, %s6868_s9  }
  0xee   : > { %s5327_s24 = scalar_lea.hbm %s6869_s18, 1024 }
  0xef   : > { %p5328_p2 = scmp.ne.s32.totalorder %s6869_s18, %s5327_s24  ;;  %p5334_p12 = scmp.lt.u32.totalorder %s5327_s24, %s6869_s18 }
  0xf1   : > { %p5330_p3 = pnand %p5328_p2, %p5997_p7 }
  0xf3   : > { %p5331_p11 = pneg %p5330_p3 }
  0xf5   : > { %p5336_p13 = pnand %p5334_p12, %p5331_p11 }
  0xf7   : > { %5339 = shalt.err (!%p5336_p13)
}
  0xf8   : > { %s5340_s8 = scalar_lea.vmem %s818_s7, 1024  ;;  %p5348_p6 = scmp.lt.s32.totalorder %s818_s7, %s818_s7 }
  0xf9   : > { %p5341_p0 = scmp.ne.s32.totalorder %s818_s7, %s5340_s8  ;;  %p5349_p8 = scmp.lt.s32.totalorder %s5340_s8, %s5340_s8 }
  0xfb   : > { %p5343_p1 = pnand %p5341_p0, %p5997_p7  ;;  %p5350_p9 = por %p5349_p8, %p5348_p6 }
  0xfd   : > { %p5344_p4 = pneg %p5343_p1 }
  0xff   : > { %p5351_p10 = pnand %p5350_p9, %p5344_p4 }
 0x101   : > { %5354 = shalt.err (!%p5351_p10)
}
 0x102   : > { %5033 = dma.hbm_to_vmem [thread:$0]  (!%p5983_p5), %s6869_s18, 1024, %s818_s7, [#allocation26], %s6865_s15, %s6865_s15, %s6868_s9  }
 0x103   : > { %s5815_s28 = smov [#allocation28]   ;;  %s5816_s26 = smov [#allocation31]  }
 0x104   : > { %s844_s4 = sshll.u32 %s5815_s28, 4  ;;  %s867_s24 = sshll.u32 %s5816_s26, 4  ;;  %s845_s4 = int_to_ptr.vmem [resolvable:$true] %s844_s4  ;;  %s868_s24 = int_to_ptr.vmem [resolvable:$true] %s867_s24 }
 0x105   : > { %s5355_s2 = scalar_lea.hbm %s6799_s20, 16 }
 0x106   : > { %p5356_p2 = scmp.ne.s32.totalorder %s6799_s20, %s5355_s2  ;;  %p5362_p12 = scmp.lt.u32.totalorder %s5355_s2, %s6799_s20 }
 0x108   : > { %p5358_p3 = pnand %p5356_p2, %p5997_p7 }
 0x10a   : > { %p5359_p11 = pneg %p5358_p3 }
 0x10c   : > { %p5364_p13 = pnand %p5362_p12, %p5359_p11 }
 0x10e   : > { %5367 = shalt.err (!%p5364_p13)
}
 0x10f   : > { %s5368_s7 = scalar_lea.vmem %s845_s4, 16  ;;  %s5375_s29 = scalar_lea.vmem %s845_s4, 32 }
 0x110   : > { %p5369_p0 = scmp.ne.s32.totalorder %s845_s4, %s5368_s7  ;;  %p5376_p6 = scmp.lt.s32.totalorder %s845_s4, %s845_s4 }
 0x111   : > { %p5377_p8 = scmp.lt.s32.totalorder %s5375_s29, %s5368_s7 }
 0x112   : > { %p5371_p1 = pnand %p5369_p0, %p5997_p7 }
 0x113   : > { %p5378_p9 = por %p5377_p8, %p5376_p6 }
 0x114   : > { %p5372_p4 = pneg %p5371_p1 }
 0x116   : > { %p5379_p10 = pnand %p5378_p9, %p5372_p4 }
 0x118   : > { %5382 = shalt.err (!%p5379_p10)
}
 0x119   : > { %5039 = dma.hbm_to_vmem [thread:$0]  (!%p5983_p5), %s6799_s20, 16, %s845_s4, [#allocation29]  }
 0x11a   : > { %s5383_s6 = scalar_lea.hbm %s6801_s22, 2048 }
 0x11b   : > { %p5384_p2 = scmp.ne.s32.totalorder %s6801_s22, %s5383_s6  ;;  %p5390_p12 = scmp.lt.u32.totalorder %s5383_s6, %s6801_s22 }
 0x11d   : > { %p5386_p3 = pnand %p5384_p2, %p5997_p7 }
 0x11f   : > { %p5387_p11 = pneg %p5386_p3 }
 0x121   : > { %p5392_p13 = pnand %p5390_p12, %p5387_p11 }
 0x123   : > { %5395 = shalt.err (!%p5392_p13)
}
 0x124   : > { %s5396_s7 = scalar_lea.vmem %s868_s24, 2048  ;;  %p5404_p6 = scmp.lt.s32.totalorder %s868_s24, %s868_s24 }
 0x125   : > { %p5397_p0 = scmp.ne.s32.totalorder %s868_s24, %s5396_s7  ;;  %p5405_p8 = scmp.lt.s32.totalorder %s5396_s7, %s5396_s7 }
 0x127   : > { %p5399_p1 = pnand %p5397_p0, %p5997_p7  ;;  %p5406_p9 = por %p5405_p8, %p5404_p6 }
 0x129   : > { %p5400_p4 = pneg %p5399_p1 }
 0x12b   : > { %p5407_p10 = pnand %p5406_p9, %p5400_p4 }
 0x12d   : > { %5410 = shalt.err (!%p5407_p10)
}
 0x12e   : > { %5045 = dma.hbm_to_vmem [thread:$0]  (!%p5983_p5), %s6801_s22, 2048, %s868_s24, [#allocation32], %s6865_s15, %s6865_s15, %s6868_s9  }
 0x12f   : > { %s5817_s28 = smov [#allocation2]   ;;  %s5818_s0 = smov [#allocation6]  }
 0x130   : > { %s620_s26 = sshll.u32 %s5817_s28, 4  ;;  %s646_s27 = sshll.u32 %s5818_s0, 4  ;;  %s621_s26 = int_to_ptr.vmem [resolvable:$true] %s620_s26  ;;  %s647_s27 = int_to_ptr.vmem [resolvable:$true] %s646_s27 }
 0x131   : > { %s6870_s16 = sld [smem:[#allocation52_spill]] }
 0x137   : > { %s5411_s8 = scalar_lea.hbm %s6870_s16, 512 }
 0x138   : > { %p5412_p2 = scmp.ne.s32.totalorder %s6870_s16, %s5411_s8  ;;  %p5418_p12 = scmp.lt.u32.totalorder %s5411_s8, %s6870_s16 }
 0x13a   : > { %p5414_p3 = pnand %p5412_p2, %p5997_p7 }
 0x13c   : > { %p5415_p11 = pneg %p5414_p3 }
 0x13e   : > { %p5420_p13 = pnand %p5418_p12, %p5415_p11 }
 0x140   : > { %5423 = shalt.err (!%p5420_p13)
}
 0x141   : > { %s5424_s24 = scalar_lea.vmem %s621_s26, 512  ;;  %p5432_p6 = scmp.lt.s32.totalorder %s621_s26, %s621_s26 }
 0x142   : > { %p5425_p0 = scmp.ne.s32.totalorder %s621_s26, %s5424_s24  ;;  %p5433_p8 = scmp.lt.s32.totalorder %s5424_s24, %s5424_s24 }
 0x144   : > { %p5427_p1 = pnand %p5425_p0, %p5997_p7  ;;  %p5434_p9 = por %p5433_p8, %p5432_p6 }
 0x146   : > { %p5428_p4 = pneg %p5427_p1 }
 0x148   : > { %p5435_p10 = pnand %p5434_p9, %p5428_p4 }
 0x14a   : > { %5438 = shalt.err (!%p5435_p10)
}
 0x14b   : > { %4988 = dma.hbm_to_vmem [thread:$0]  (!%p5983_p5), %s6870_s16, 512, %s621_s26, [#allocation3], %s6865_s15, %s6865_s15, %s6868_s9  }
 0x14c   : > { %s6871_s6 = sld [smem:[#allocation54_spill]] }
 0x152   : > { %s5439_s2 = scalar_lea.hbm %s6871_s6, 256 }
 0x153   : > { %p5440_p2 = scmp.ne.s32.totalorder %s6871_s6, %s5439_s2  ;;  %p5446_p12 = scmp.lt.u32.totalorder %s5439_s2, %s6871_s6 }
 0x155   : > { %p5442_p3 = pnand %p5440_p2, %p5997_p7 }
 0x157   : > { %p5443_p11 = pneg %p5442_p3 }
 0x159   : > { %p5448_p13 = pnand %p5446_p12, %p5443_p11 }
 0x15b   : > { %5451 = shalt.err (!%p5448_p13)
}
 0x15c   : > { %s5452_s24 = scalar_lea.vmem %s647_s27, 256  ;;  %p5460_p6 = scmp.lt.s32.totalorder %s647_s27, %s647_s27 }
 0x15d   : > { %p5453_p0 = scmp.ne.s32.totalorder %s647_s27, %s5452_s24  ;;  %p5461_p8 = scmp.lt.s32.totalorder %s5452_s24, %s5452_s24 }
 0x15f   : > { %p5455_p1 = pnand %p5453_p0, %p5997_p7  ;;  %p5462_p9 = por %p5461_p8, %p5460_p6 }
 0x161   : > { %p5456_p4 = pneg %p5455_p1 }
 0x163   : > { %p5463_p10 = pnand %p5462_p9, %p5456_p4 }
 0x165   : > { %5466 = shalt.err (!%p5463_p10)
}
 0x166   : > { %4994 = dma.hbm_to_vmem [thread:$0]  (!%p5983_p5), %s6871_s6, 256, %s647_s27, [#allocation5], %s6865_s15, %s6865_s15, %s6868_s9  }
 0x167   : > { %s5819_s29 = smov [#allocation9]   ;;  %s5820_s0 = smov [#allocation12]  }
 0x168   : > { %s672_s28 = sshll.u32 %s5819_s29, 4  ;;  %s698_s2 = sshll.u32 %s5820_s0, 4  ;;  %s673_s28 = int_to_ptr.vmem [resolvable:$true] %s672_s28  ;;  %s699_s2 = int_to_ptr.vmem [resolvable:$true] %s698_s2 }
 0x169   : > { %s6872_s7 = sld [smem:[#allocation56_spill]] }
 0x16f   : > { %s5467_s4 = scalar_lea.hbm %s6872_s7, 3072 }
 0x170   : > { %p5468_p2 = scmp.ne.s32.totalorder %s6872_s7, %s5467_s4  ;;  %p5474_p12 = scmp.lt.u32.totalorder %s5467_s4, %s6872_s7 }
 0x172   : > { %p5470_p3 = pnand %p5468_p2, %p5997_p7 }
 0x174   : > { %p5471_p11 = pneg %p5470_p3 }
 0x176   : > { %p5476_p13 = pnand %p5474_p12, %p5471_p11 }
 0x178   : > { %5479 = shalt.err (!%p5476_p13)
}
 0x179   : > { %s5480_s27 = scalar_lea.vmem %s673_s28, 3072  ;;  %p5488_p6 = scmp.lt.s32.totalorder %s673_s28, %s673_s28 }
 0x17a   : > { %p5481_p0 = scmp.ne.s32.totalorder %s673_s28, %s5480_s27  ;;  %p5489_p8 = scmp.lt.s32.totalorder %s5480_s27, %s5480_s27 }
 0x17c   : > { %p5483_p1 = pnand %p5481_p0, %p5997_p7  ;;  %p5490_p9 = por %p5489_p8, %p5488_p6 }
 0x17e   : > { %p5484_p4 = pneg %p5483_p1 }
 0x180   : > { %p5491_p10 = pnand %p5490_p9, %p5484_p4 }
 0x182   : > { %5494 = shalt.err (!%p5491_p10)
}
 0x183   : > { %s6873_s12 = smov 16   ;;  %s6874_s10 = smov 256  }
 0x184   : > { %5000 = dma.hbm_to_vmem [thread:$0]  (!%p5983_p5), %s6872_s7, 3072, %s673_s28, [#allocation8], %s6874_s10, %s6874_s10, %s6873_s12  }
 0x185   : > { %s6875_s5 = sld [smem:[#allocation58_spill]] }
 0x18b   : > { %s5495_s4 = scalar_lea.hbm %s6875_s5, 3072 }
 0x18c   : > { %p5496_p2 = scmp.ne.s32.totalorder %s6875_s5, %s5495_s4  ;;  %p5502_p12 = scmp.lt.u32.totalorder %s5495_s4, %s6875_s5 }
 0x18e   : > { %p5498_p3 = pnand %p5496_p2, %p5997_p7 }
 0x190   : > { %p5499_p11 = pneg %p5498_p3 }
 0x192   : > { %p5504_p13 = pnand %p5502_p12, %p5499_p11 }
 0x194   : > { %5507 = shalt.err (!%p5504_p13)
}
 0x195   : > { %s5508_s14 = scalar_lea.vmem %s699_s2, 3072  ;;  %p5516_p6 = scmp.lt.s32.totalorder %s699_s2, %s699_s2 }
 0x196   : > { %p5509_p0 = scmp.ne.s32.totalorder %s699_s2, %s5508_s14  ;;  %p5517_p8 = scmp.lt.s32.totalorder %s5508_s14, %s5508_s14 }
 0x198   : > { %p5511_p1 = pnand %p5509_p0, %p5997_p7  ;;  %p5518_p9 = por %p5517_p8, %p5516_p6 }
 0x19a   : > { %p5512_p4 = pneg %p5511_p1 }
 0x19c   : > { %p5519_p10 = pnand %p5518_p9, %p5512_p4 }
 0x19e   : > { %5522 = shalt.err (!%p5519_p10)
}
 0x19f   : > { %5006 = dma.hbm_to_vmem [thread:$0]  (!%p5983_p5), %s6875_s5, 3072, %s699_s2, [#allocation11], %s6874_s10, %s6874_s10, %s6873_s12  }
 0x1a0   : > { %s5821_s29 = smov [#allocation15]   ;;  %s5822_s8 = smov [#allocation18]  }
 0x1a1   : > { %s722_s0 = sshll.u32 %s5821_s29, 4  ;;  %s748_s4 = sshll.u32 %s5822_s8, 4  ;;  %s723_s0 = int_to_ptr.vmem [resolvable:$true] %s722_s0  ;;  %s749_s4 = int_to_ptr.vmem [resolvable:$true] %s748_s4 }
 0x1a2   : > { %s6876_s27 = sld [smem:[#allocation60_spill]] }
 0x1a8   : > { %s5523_s14 = scalar_lea.hbm %s6876_s27, 4096 }
 0x1a9   : > { %p5524_p2 = scmp.ne.s32.totalorder %s6876_s27, %s5523_s14  ;;  %p5530_p12 = scmp.lt.u32.totalorder %s5523_s14, %s6876_s27 }
 0x1ab   : > { %p5526_p3 = pnand %p5524_p2, %p5997_p7 }
 0x1ad   : > { %p5527_p11 = pneg %p5526_p3 }
 0x1af   : > { %p5532_p13 = pnand %p5530_p12, %p5527_p11 }
 0x1b1   : > { %5535 = shalt.err (!%p5532_p13)
}
 0x1b2   : > { %s5536_s2 = scalar_lea.vmem %s723_s0, 4096  ;;  %p5544_p6 = scmp.lt.s32.totalorder %s723_s0, %s723_s0 }
 0x1b3   : > { %p5537_p0 = scmp.ne.s32.totalorder %s723_s0, %s5536_s2  ;;  %p5545_p8 = scmp.lt.s32.totalorder %s5536_s2, %s5536_s2 }
 0x1b5   : > { %p5539_p1 = pnand %p5537_p0, %p5997_p7  ;;  %p5546_p9 = por %p5545_p8, %p5544_p6 }
 0x1b7   : > { %p5540_p4 = pneg %p5539_p1 }
 0x1b9   : > { %p5547_p10 = pnand %p5546_p9, %p5540_p4 }
 0x1bb   : > { %5550 = shalt.err (!%p5547_p10)
}
 0x1bc   : > { %5012 = dma.hbm_to_vmem [thread:$0]  (!%p5983_p5), %s6876_s27, 4096, %s723_s0, [#allocation14], %s6865_s15, %s6865_s15, %s6868_s9  }
 0x1bd   : > { %s5551_s10 = scalar_lea.hbm %s6790_s11, 4096 }
 0x1be   : > { %p5552_p2 = scmp.ne.s32.totalorder %s6790_s11, %s5551_s10  ;;  %p5558_p12 = scmp.lt.u32.totalorder %s5551_s10, %s6790_s11 }
 0x1c0   : > { %p5554_p3 = pnand %p5552_p2, %p5997_p7 }
 0x1c2   : > { %p5555_p11 = pneg %p5554_p3 }
 0x1c4   : > { %p5560_p13 = pnand %p5558_p12, %p5555_p11 }
 0x1c6   : > { %5563 = shalt.err (!%p5560_p13)
}
 0x1c7   : > { %s5564_s26 = scalar_lea.vmem %s749_s4, 4096  ;;  %p5572_p6 = scmp.lt.s32.totalorder %s749_s4, %s749_s4 }
 0x1c8   : > { %p5565_p0 = scmp.ne.s32.totalorder %s749_s4, %s5564_s26  ;;  %p5573_p8 = scmp.lt.s32.totalorder %s5564_s26, %s5564_s26 }
 0x1ca   : > { %p5567_p1 = pnand %p5565_p0, %p5997_p7  ;;  %p5574_p9 = por %p5573_p8, %p5572_p6 }
 0x1cc   : > { %p5568_p4 = pneg %p5567_p1 }
 0x1ce   : > { %p5575_p10 = pnand %p5574_p9, %p5568_p4 }
 0x1d0   : > { %5578 = shalt.err (!%p5575_p10)
}
 0x1d1   : > { %5018 = dma.hbm_to_vmem [thread:$0]  (!%p5983_p5), %s6790_s11, 4096, %s749_s4, [#allocation17], %s6865_s15, %s6865_s15, %s6868_s9  }
 0x1d2   : > { %s5823_s6 = smov [#allocation21]   ;;  %s5824_s18 = smov [#allocation24]  }
 0x1d3   : > { %s772_s2 = sshll.u32 %s5823_s6, 4  ;;  %s804_s16 = sshll.u32 %s5824_s18, 4  ;;  %s773_s2 = int_to_ptr.vmem [resolvable:$true] %s772_s2  ;;  %s805_s16 = int_to_ptr.vmem [resolvable:$true] %s804_s16 }
 0x1d4   : > { %s5579_s10 = scalar_lea.hbm %s6792_s13, 256 }
 0x1d5   : > { %p5580_p2 = scmp.ne.s32.totalorder %s6792_s13, %s5579_s10  ;;  %p5586_p12 = scmp.lt.u32.totalorder %s5579_s10, %s6792_s13 }
 0x1d7   : > { %p5582_p3 = pnand %p5580_p2, %p5997_p7 }
 0x1d9   : > { %p5583_p11 = pneg %p5582_p3 }
 0x1db   : > { %p5588_p13 = pnand %p5586_p12, %p5583_p11 }
 0x1dd   : > { %5591 = shalt.err (!%p5588_p13)
}
 0x1de   : > { %s5592_s4 = scalar_lea.vmem %s773_s2, 256  ;;  %p5600_p6 = scmp.lt.s32.totalorder %s773_s2, %s773_s2 }
 0x1df   : > { %p5593_p0 = scmp.ne.s32.totalorder %s773_s2, %s5592_s4  ;;  %p5601_p8 = scmp.lt.s32.totalorder %s5592_s4, %s5592_s4 }
 0x1e1   : > { %p5595_p1 = pnand %p5593_p0, %p5997_p7  ;;  %p5602_p9 = por %p5601_p8, %p5600_p6 }
 0x1e3   : > { %p5596_p4 = pneg %p5595_p1 }
 0x1e5   : > { %p5603_p10 = pnand %p5602_p9, %p5596_p4 }
 0x1e7   : > { %5606 = shalt.err (!%p5603_p10)
}
 0x1e8   : > { %5024 = dma.hbm_to_vmem [thread:$0]  (!%p5983_p5), %s6792_s13, 256, %s773_s2, [#allocation20], %s6865_s15, %s6865_s15, %s6868_s9  }
 0x1e9   : > { %s5607_s18 = scalar_lea.hbm %s6796_s17, 1024 }
 0x1ea   : > { %p5608_p2 = scmp.ne.s32.totalorder %s6796_s17, %s5607_s18  ;;  %p5614_p12 = scmp.lt.u32.totalorder %s5607_s18, %s6796_s17 }
 0x1ec   : > { %p5610_p3 = pnand %p5608_p2, %p5997_p7 }
 0x1ee   : > { %p5611_p11 = pneg %p5610_p3 }
 0x1f0   : > { %p5616_p13 = pnand %p5614_p12, %p5611_p11 }
 0x1f2   : > { %5619 = shalt.err (!%p5616_p13)
}
 0x1f3   : > { %s5620_s29 = scalar_lea.vmem %s805_s16, 1024  ;;  %p5628_p6 = scmp.lt.s32.totalorder %s805_s16, %s805_s16 }
 0x1f4   : > { %p5621_p0 = scmp.ne.s32.totalorder %s805_s16, %s5620_s29  ;;  %p5629_p8 = scmp.lt.s32.totalorder %s5620_s29, %s5620_s29 }
 0x1f6   : > { %p5623_p1 = pnand %p5621_p0, %p5997_p7  ;;  %p5630_p9 = por %p5629_p8, %p5628_p6 }
 0x1f8   : > { %p5624_p4 = pneg %p5623_p1 }
 0x1fa   : > { %p5631_p10 = pnand %p5630_p9, %p5624_p4 }
 0x1fc   : > { %5634 = shalt.err (!%p5631_p10)
}
 0x1fd   : > { %5030 = dma.hbm_to_vmem [thread:$0]  (!%p5983_p5), %s6796_s17, 1024, %s805_s16, [#allocation23], %s6865_s15, %s6865_s15, %s6868_s9  }
 0x1fe   : > { %s5825_s24 = smov [#allocation27]   ;;  %s5826_s26 = smov [#allocation30]  }
 0x1ff   : > { %s830_s4 = sshll.u32 %s5825_s24, 4  ;;  %s854_s0 = sshll.u32 %s5826_s26, 4  ;;  %s831_s4 = int_to_ptr.vmem [resolvable:$true] %s830_s4  ;;  %s855_s0 = int_to_ptr.vmem [resolvable:$true] %s854_s0 }
 0x200   : > { %s5635_s18 = scalar_lea.hbm %s6798_s19, 1024 }
 0x201   : > { %p5636_p2 = scmp.ne.s32.totalorder %s6798_s19, %s5635_s18  ;;  %p5642_p12 = scmp.lt.u32.totalorder %s5635_s18, %s6798_s19 }
 0x203   : > { %p5638_p3 = pnand %p5636_p2, %p5997_p7 }
 0x205   : > { %p5639_p11 = pneg %p5638_p3 }
 0x207   : > { %p5644_p13 = pnand %p5642_p12, %p5639_p11 }
 0x209   : > { %5647 = shalt.err (!%p5644_p13)
}
 0x20a   : > { %s5648_s16 = scalar_lea.vmem %s831_s4, 1024  ;;  %p5656_p6 = scmp.lt.s32.totalorder %s831_s4, %s831_s4 }
 0x20b   : > { %p5649_p0 = scmp.ne.s32.totalorder %s831_s4, %s5648_s16  ;;  %p5657_p8 = scmp.lt.s32.totalorder %s5648_s16, %s5648_s16 }
 0x20d   : > { %p5651_p1 = pnand %p5649_p0, %p5997_p7  ;;  %p5658_p9 = por %p5657_p8, %p5656_p6 }
 0x20f   : > { %p5652_p4 = pneg %p5651_p1 }
 0x211   : > { %p5659_p10 = pnand %p5658_p9, %p5652_p4 }
 0x213   : > { %5662 = shalt.err (!%p5659_p10)
}
 0x214   : > { %5036 = dma.hbm_to_vmem [thread:$0]  (!%p5983_p5), %s6798_s19, 1024, %s831_s4, [#allocation26], %s6865_s15, %s6865_s15, %s6868_s9  }
 0x215   : > { %s5663_s26 = scalar_lea.hbm %s6800_s21, 2048 }
 0x216   : > { %p5664_p2 = scmp.ne.s32.totalorder %s6800_s21, %s5663_s26  ;;  %p5670_p12 = scmp.lt.u32.totalorder %s5663_s26, %s6800_s21 }
 0x218   : > { %p5666_p3 = pnand %p5664_p2, %p5997_p7 }
 0x21a   : > { %p5667_p11 = pneg %p5666_p3 }
 0x21c   : > { %p5672_p13 = pnand %p5670_p12, %p5667_p11 }
 0x21e   : > { %5675 = shalt.err (!%p5672_p13)
}
 0x21f   : > { %s5676_s12 = scalar_lea.vmem %s855_s0, 2048  ;;  %p5684_p6 = scmp.lt.s32.totalorder %s855_s0, %s855_s0 }
 0x220   : > { %p5677_p0 = scmp.ne.s32.totalorder %s855_s0, %s5676_s12  ;;  %p5685_p8 = scmp.lt.s32.totalorder %s5676_s12, %s5676_s12 }
 0x222   : > { %p5679_p1 = pnand %p5677_p0, %p5997_p7  ;;  %p5686_p9 = por %p5685_p8, %p5684_p6 }
 0x224   : > { %p5680_p4 = pneg %p5679_p1 }
 0x226   : > { %p5687_p10 = pnand %p5686_p9, %p5680_p4 }
 0x228   : > { %5690 = shalt.err (!%p5687_p10)
}
 0x229   : > { %5042 = dma.hbm_to_vmem [thread:$0]  (!%p5983_p5), %s6800_s21, 2048, %s855_s0, [#allocation29], %s6865_s15, %s6865_s15, %s6868_s9  }
 0x22a   : > { %s5827_s28 = smov [#allocation33]   ;;  %s5828_s29 = smov [#allocation34]  }
 0x22b   : > { %s880_s16 = sshll.u32 %s5827_s28, 4  ;;  %s894_s2 = sshll.u32 %s5828_s29, 4  ;;  %s881_s16 = int_to_ptr.vmem [resolvable:$true] %s880_s16  ;;  %s895_s2 = int_to_ptr.vmem [resolvable:$true] %s894_s2 }
 0x22c   : > { %s5691_s26 = scalar_lea.hbm %s6802_s23, 2048 }
 0x22d   : > { %p5692_p2 = scmp.ne.s32.totalorder %s6802_s23, %s5691_s26  ;;  %p5698_p12 = scmp.lt.u32.totalorder %s5691_s26, %s6802_s23 }
 0x22f   : > { %p5694_p3 = pnand %p5692_p2, %p5997_p7 }
 0x231   : > { %p5695_p11 = pneg %p5694_p3 }
 0x233   : > { %p5700_p13 = pnand %p5698_p12, %p5695_p11 }
 0x235   : > { %5703 = shalt.err (!%p5700_p13)
}
 0x236   : > { %s5704_s0 = scalar_lea.vmem %s881_s16, 2048  ;;  %p5712_p6 = scmp.lt.s32.totalorder %s881_s16, %s881_s16 }
 0x237   : > { %p5705_p0 = scmp.ne.s32.totalorder %s881_s16, %s5704_s0  ;;  %p5713_p8 = scmp.lt.s32.totalorder %s5704_s0, %s5704_s0 }
 0x239   : > { %p5707_p1 = pnand %p5705_p0, %p5997_p7  ;;  %p5714_p9 = por %p5713_p8, %p5712_p6 }
 0x23b   : > { %p5708_p4 = pneg %p5707_p1 }
 0x23d   : > { %p5715_p10 = pnand %p5714_p9, %p5708_p4 }
 0x23f   : > { %5718 = shalt.err (!%p5715_p10)
}
 0x240   : > { %5048 = dma.hbm_to_vmem [thread:$0]  (!%p5983_p5), %s6802_s23, 2048, %s881_s16, [#allocation32], %s6865_s15, %s6865_s15, %s6868_s9  }
 0x241   : > { %s6877_s29 = sld [smem:[#allocation67_spill]] }
 0x247   : > { %s6878_s8 = smov %s6877_s29  ;;  %s5719_s24 = scalar_lea.hbm %s6877_s29, 16 }
 0x248   : > { %p5720_p2 = scmp.ne.s32.totalorder %s6878_s8, %s5719_s24  ;;  %p5726_p12 = scmp.lt.u32.totalorder %s5719_s24, %s6878_s8 }
 0x24a   : > { %p5722_p3 = pnand %p5720_p2, %p5997_p7 }
 0x24c   : > { %p5723_p11 = pneg %p5722_p3 }
 0x24e   : > { %p5728_p13 = pnand %p5726_p12, %p5723_p11 }
 0x250   : > { %5731 = shalt.err (!%p5728_p13)
}
 0x251   : > { %s5732_s7 = scalar_lea.vmem %s895_s2, 16  ;;  %s5739_s15 = scalar_lea.vmem %s895_s2, 32 }
 0x252   : > { %p5733_p0 = scmp.ne.s32.totalorder %s895_s2, %s5732_s7  ;;  %p5740_p6 = scmp.lt.s32.totalorder %s895_s2, %s895_s2 }
 0x253   : > { %p5741_p8 = scmp.lt.s32.totalorder %s5739_s15, %s5732_s7 }
 0x254   : > { %p5735_p1 = pnand %p5733_p0, %p5997_p7 }
 0x255   : > { %p5742_p9 = por %p5741_p8, %p5740_p6 }
 0x256   : > { %p5736_p4 = pneg %p5735_p1 }
 0x258   : > { %p5743_p10 = pnand %p5742_p9, %p5736_p4 }
 0x25a   : > { %5746 = shalt.err (!%p5743_p10)
}
 0x25b   : > { %5051 = dma.hbm_to_vmem [thread:$0]  (!%p5983_p5), %s6878_s8, 16, %s895_s2, [#allocation35]  }
 0x25c   : > { %s6879_s0 = sld [smem:[#allocation50_spill]] }
 0x262   : > { %p6880_p2 = scmp.ne.s32.totalorder %s6879_s0, 0 }
 0x263   : > { %s6881_s12 = sld [smem:[#allocation49_spill]] (!%p6880_p2) }
 0x264   : > { %915 = sbr.rel (%p6880_p2) target bundleno = 3009 (0xbc1), region = 120 }
 0x269   : > { %p6882_p3 = scmp.eq.s32.totalorder (!%p6880_p2), %s6881_s12, 0 }
 0x26b   : > { %5752 = dma.done.wait (%p6882_p3), [#allocation3], 512   ;;  %p6883_p7 = pmov %p6882_p3 }
 0x26c   : > { %p6884_p11 = pmov %p6882_p3 }
 0x26d   : > { %5754 = vsyncadd (%p6883_p7), [#allocation3], 4294966784 }
 0x26e   : > { %5756 = dma.done.wait (%p6884_p11), [#allocation5], 768   ;;  %p6885_p12 = pmov %p6882_p3 }
 0x26f   : > { %p6886_p13 = pmov %p6882_p3 }
 0x270   : > { %5758 = vsyncadd (%p6885_p12), [#allocation5], 4294966528 }
 0x271   : > { %5760 = dma.done.wait (%p6886_p13), [#allocation8], 3328   ;;  %p6887_p5 = pmov %p6882_p3 }
 0x272   : > { %p6888_p0 = pmov %p6882_p3 }
 0x273   : > { %5762 = vsyncadd (%p6887_p5), [#allocation8], 4294963968 }
 0x274   : > { %5764 = dma.done.wait (%p6888_p0), [#allocation11], 6144   ;;  %p6889_p1 = pmov %p6888_p0 }
 0x275   : > { %p6890_p4 = pmov %p6888_p0 }
 0x276   : > { %5766 = vsyncadd (%p6889_p1), [#allocation11], 4294961152 }
 0x277   : > { %5768 = dma.done.wait (%p6890_p4), [#allocation14], 4128   ;;  %p6891_p6 = pmov %p6888_p0 }
 0x278   : > { %p6892_p8 = pmov %p6888_p0 }
 0x279   : > { %5770 = vsyncadd (%p6891_p6), [#allocation14], 4294963168 }
 0x27a   : > { %5772 = dma.done.wait (%p6892_p8), [#allocation17], 8192   ;;  %p6893_p9 = pmov %p6888_p0 }
 0x27b   : > { %p6894_p10 = pmov %p6888_p0 }
 0x27c   : > { %5774 = vsyncadd (%p6893_p9), [#allocation17], 4294959104 }
 0x27d   : > { %5776 = dma.done.wait (%p6894_p10), [#allocation20], 272   ;;  %p6895_p2 = pmov %p6888_p0 }
 0x27e   : > { %p6896_p3 = pmov %p6888_p0 }
 0x27f   : > { %5778 = vsyncadd (%p6895_p2), [#allocation20], 4294967024 }
 0x280   : > { %5780 = dma.done.wait (%p6896_p3), [#allocation23], 1280   ;;  %p6897_p7 = pmov %p6888_p0 }
 0x281   : > { %p6898_p11 = pmov %p6888_p0 }
 0x282   : > { %5782 = vsyncadd (%p6897_p7), [#allocation23], 4294966016 }
 0x283   : > { %5784 = dma.done.wait (%p6898_p11), [#allocation26], 2048   ;;  %p6899_p12 = pmov %p6888_p0 }
 0x284   : > { %p6900_p13 = pmov %p6888_p0 }
 0x285   : > { %5786 = vsyncadd (%p6899_p12), [#allocation26], 4294965248 }
 0x286   : > { %5788 = dma.done.wait (%p6900_p13), [#allocation29], 2064   ;;  %p6901_p5 = pmov %p6888_p0 }
 0x288   : > { %5790 = vsyncadd (%p6901_p5), [#allocation29], 4294965232 }
 0x289   : > { %5792 = dma.done.wait (%p6888_p0), [#allocation32], 4096   ;;  %p6902_p1 = pmov %p6888_p0 }
 0x28a   : > { %p6903_p4 = pmov %p6888_p0 }
 0x28b   : > { %5794 = vsyncadd (%p6902_p1), [#allocation32], 4294963200 }
 0x28c   : > { %5796 = dma.done.wait (%p6903_p4), [#allocation35], 16   ;;  %p6904_p6 = pmov %p6888_p0 }
 0x28d   : > { %v5829_v0 = vmov 0.0   ;;  %v1090_v1 = vld [vmem:[#allocation9 + $0x8] sm:$0xff]  ;;  %v1092_v2 = vld [vmem:[#allocation9 + $0x18] sm:$0xff]  ;;  %v1089_v3 = vld [vmem:[#allocation9] sm:$0xff]  ;;  %p1067_p8 = scmp.lt.s32.totalorder %s6881_s12, 1  ;;  %s6905_s4 = sld [smem:[#allocation51_spill]] }
 0x28e   : > { %5798 = vsyncadd (%p6904_p6), [#allocation35], 4294967280  ;;  %1450 = vmatprep.mubr.f32.mxu0 %v5829_v0  ;;  %1539 = vmatprep.mubr.f32.mxu1 %v5829_v0  ;;  %v4425_v4 = vpack.c.bf16 %v1092_v2, %v1090_v1  ;;  %v1091_v5 = vld [vmem:[#allocation9 + $0x10] sm:$0xff]  ;;  %v1094_v6 = vld [vmem:[#allocation9 + $0x28] sm:$0xff]  ;;  %vm1373_vm0 = vcmask 785408   ;;  %vm1653_vm1 = vcmask 261120  }
 0x28f   : > { %v1096_v7 = vld [vmem:[#allocation9 + $0x38] sm:$0xff]  ;;  %v4427_v8 = vpack.c.bf16 %v1091_v5, %v1089_v3  ;;  %v1093_v10 = vld [vmem:[#allocation9 + $0x20] sm:$0xff]  ;;  %v1095_v11 = vld [vmem:[#allocation9 + $0x30] sm:$0xff]  ;;  %s6911_s12 = smov (!%p1067_p8, %s6881_s12), 1  ;;  %s6906_s24 = sld [smem:[#allocation65_spill]]  ;;  %vm2650_vm2 = vcmask 523264  }
 0x290   : > { %v4429_v9 = vpack.c.bf16 %v1096_v7, %v1094_v6  ;;  %v1098_v12 = vld [vmem:[#allocation9 + $0x48] sm:$0xff]  ;;  %4426 = vmatprep.subr.bf16.mxu0 %v4425_v4  ;;  %v1100_v13 = vld [vmem:[#allocation9 + $0x58] sm:$0xff]  ;;  %v4431_v14 = vpack.c.bf16 %v1095_v11, %v1093_v10  ;;  %v1097_v16 = vld [vmem:[#allocation9 + $0x40] sm:$0xff]  ;;  %s3817_s1 = sshll.u32 %s6911_s12, 5  ;;  %s6907_s7 = sld [smem:[#allocation64_spill]]  ;;  %vm2882_vm3 = vcmask 130048  }
 0x291   : > { %4428 = vmatpush1.bf16.msra.mxu0 %v4427_v8  ;;  %v4433_v15 = vpack.c.bf16 %v1100_v13, %v1098_v12  ;;  %v1099_v17 = vld [vmem:[#allocation9 + $0x50] sm:$0xff]  ;;  %v1102_v18 = vld [vmem:[#allocation9 + $0x68] sm:$0xff]  ;;  %v1104_v19 = vld [vmem:[#allocation9 + $0x78] sm:$0xff]  ;;  %s3818_s14 = sshll.u32 %s6911_s12, 4  ;;  %s6908_s15 = sld [smem:[#allocation68_spill]] }
 0x292   : > { %4430 = vmatprep.subr.bf16.mxu0 %v4429_v9  ;;  %v4435_v20 = vpack.c.bf16 %v1099_v17, %v1097_v16  ;;  %v4437_v21 = vpack.c.bf16 %v1104_v19, %v1102_v18  ;;  %v1101_v22 = vld [vmem:[#allocation9 + $0x60] sm:$0xff]  ;;  %v1103_v23 = vld [vmem:[#allocation9 + $0x70] sm:$0xff]  ;;  %v1106_v24 = vld [vmem:[#allocation9 + $0x88] sm:$0xff] }
 0x293   : > { %v1108_v25 = vld [vmem:[#allocation9 + $0x98] sm:$0xff]  ;;  %v4439_v26 = vpack.c.bf16 %v1103_v23, %v1101_v22  ;;  %v1105_v28 = vld [vmem:[#allocation9 + $0x80] sm:$0xff]  ;;  %v1107_v29 = vld [vmem:[#allocation9 + $0x90] sm:$0xff]  ;;  %s6516_s10 = scalar_lea.vmem %s6905_s4, %s3817_s1 }
 0x294   : > { %v4441_v27 = vpack.c.bf16 %v1108_v25, %v1106_v24  ;;  %v1110_v30 = vld [vmem:[#allocation9 + $0xa8] sm:$0xff]  ;;  %v1112_v31 = vld [vmem:[#allocation9 + $0xb8] sm:$0xff]  ;;  %v4443_v32 = vpack.c.bf16 %v1107_v29, %v1105_v28  ;;  %v1109_v33 = vld [vmem:[#allocation9 + $0xa0] sm:$0xff] }
 0x295   : > { %4432 = vmatpush1.bf16.msra.mxu0 %v4431_v14  ;;  %v1111_v34 = vld [vmem:[#allocation9 + $0xb0] sm:$0xff]  ;;  %v1138_v35 = vld [vmem:[#allocation12 + $0x8] sm:$0xff]  ;;  %v4445_v36 = vpack.c.bf16 %v1112_v31, %v1110_v30  ;;  %v1140_v37 = vld [vmem:[#allocation12 + $0x18] sm:$0xff] }
 0x296   : > { %4434 = vmatprep.subr.bf16.mxu0 %v4433_v15  ;;  %v1114_v38 = vld [vmem:[#allocation10 + $0x8] sm:$0xff]  ;;  %v1116_v39 = vld [vmem:[#allocation10 + $0x18] sm:$0xff]  ;;  %v1113_v41 = vld [vmem:[#allocation10] sm:$0xff]  ;;  %v4447_v48 = vpack.c.bf16 %v1111_v34, %v1109_v33  ;;  %v4473_v52 = vpack.c.bf16 %v1140_v37, %v1138_v35 }
 0x297   : > { %v4449_v40 = vpack.c.bf16 %v1116_v39, %v1114_v38  ;;  %v1115_v42 = vld [vmem:[#allocation10 + $0x10] sm:$0xff]  ;;  %v1118_v43 = vld [vmem:[#allocation10 + $0x28] sm:$0xff]  ;;  %v1120_v45 = vld [vmem:[#allocation10 + $0x38] sm:$0xff]  ;;  %s1076_s9 = scalar_lea.vmem %s6908_s15, %s3818_s14 }
 0x298   : > { %v4451_v44 = vpack.c.bf16 %v1115_v42, %v1113_v41  ;;  %v1117_v46 = vld [vmem:[#allocation10 + $0x20] sm:$0xff]  ;;  %v1119_v47 = vld [vmem:[#allocation10 + $0x30] sm:$0xff]  ;;  %v4453_v49 = vpack.c.bf16 %v1120_v45, %v1118_v43  ;;  %v1122_v50 = vld [vmem:[#allocation10 + $0x48] sm:$0xff] }
 0x299   : > { %4436 = vmatpush1.bf16.msra.mxu0 %v4435_v20  ;;  %4450 = vmatprep.subr.bf16.mxu1 %v4449_v40  ;;  %v1124_v51 = vld [vmem:[#allocation10 + $0x58] sm:$0xff]  ;;  %v1137_v53 = vld [vmem:[#allocation12] sm:$0xff]  ;;  %v1139_v54 = vld [vmem:[#allocation12 + $0x10] sm:$0xff]  ;;  %v4455_v56 = vpack.c.bf16 %v1119_v47, %v1117_v46 }
 0x29a   : > { %4438 = vmatprep.subr.bf16.mxu0 %v4437_v21  ;;  %v1142_v55 = vld [vmem:[#allocation12 + $0x28] sm:$0xff]  ;;  %4452 = vmatpush1.bf16.msra.mxu1 %v4451_v44  ;;  %v1144_v57 = vld [vmem:[#allocation12 + $0x38] sm:$0xff]  ;;  %v4457_v58 = vpack.c.bf16 %v1124_v51, %v1122_v50  ;;  %v1121_v59 = vld [vmem:[#allocation10 + $0x40] sm:$0xff]  ;;  %v4475_v1 = vpack.c.bf16 %v1139_v54, %v1137_v53 }
 0x29b   : > { %4454 = vmatprep.subr.bf16.mxu1 %v4453_v49  ;;  %v1123_v60 = vld [vmem:[#allocation10 + $0x50] sm:$0xff]  ;;  %v1126_v61 = vld [vmem:[#allocation10 + $0x68] sm:$0xff]  ;;  %v1128_v62 = vld [vmem:[#allocation10 + $0x78] sm:$0xff]  ;;  %v4477_v2 = vpack.c.bf16 %v1144_v57, %v1142_v55 }
 0x29c   : > { %v6519_v63 = vld [vmem:[%s6516_s10] sm:$0xff]  ;;  %v1143_v4 = vld [vmem:[#allocation12 + $0x30] sm:$0xff]  ;;  %v1146_v5 = vld [vmem:[#allocation12 + $0x48] sm:$0xff]  ;;  %v4459_v6 = vpack.c.bf16 %v1123_v60, %v1121_v59  ;;  %v4461_v8 = vpack.c.bf16 %v1128_v62, %v1126_v61 }
 0x29d   : > { %4440 = vmatpush1.bf16.msra.mxu0 %v4439_v26  ;;  %v1141_v3 = vld [vmem:[#allocation12 + $0x20] sm:$0xff]  ;;  %v1148_v7 = vld [vmem:[#allocation12 + $0x58] sm:$0xff]  ;;  %v1127_v10 = vld [vmem:[#allocation10 + $0x70] sm:$0xff] }
 0x29e   : > { %4442 = vmatprep.subr.bf16.mxu0 %v4441_v27  ;;  %4456 = vmatpush1.bf16.msra.mxu1 %v4455_v56  ;;  %v1125_v9 = vld [vmem:[#allocation10 + $0x60] sm:$0xff]  ;;  %v6525_v11 = vld [vmem:[%s6516_s10 + $0x8] sm:$0xff]  ;;  %v4479_v12 = vpack.c.bf16 %v1143_v4, %v1141_v3  ;;  %v4481_v13 = vpack.c.bf16 %v1148_v7, %v1146_v5  ;;  %v1147_v15 = vld [vmem:[#allocation12 + $0x50] sm:$0xff] }
 0x29f   : > { %4458 = vmatprep.subr.bf16.mxu1 %v4457_v58  ;;  %v1145_v14 = vld [vmem:[#allocation12 + $0x40] sm:$0xff]  ;;  %v4463_v16 = vpack.c.bf16 %v1127_v10, %v1125_v9  ;;  %v1150_v17 = vld [vmem:[#allocation12 + $0x68] sm:$0xff]  ;;  %v1152_v18 = vld [vmem:[#allocation12 + $0x78] sm:$0xff] }
 0x2a0   : > { %v4483_v19 = vpack.c.bf16 %v1147_v15, %v1145_v14  ;;  %v1371_v20 = vld [vmem:[%s6516_s10 + $0x10] sm:$0xff]  ;;  %v4485_v21 = vpack.c.bf16 %v1152_v18, %v1150_v17  ;;  %v1149_v22 = vld [vmem:[#allocation12 + $0x60] sm:$0xff]  ;;  %v1154_v24 = vld [vmem:[#allocation12 + $0x88] sm:$0xff] }
 0x2a1   : > { %4444 = vmatpush1.bf16.msra.mxu0 %v4443_v32  ;;  %v1151_v23 = vld [vmem:[#allocation12 + $0x70] sm:$0xff]  ;;  %v1156_v25 = vld [vmem:[#allocation12 + $0x98] sm:$0xff]  ;;  %v1153_v29 = vld [vmem:[#allocation12 + $0x80] sm:$0xff] }
 0x2a2   : > { %4446 = vmatprep.subr.bf16.mxu0 %v4445_v36  ;;  %4460 = vmatpush1.bf16.msra.mxu1 %v4459_v6  ;;  %v4487_v26 = vpack.c.bf16 %v1151_v23, %v1149_v22  ;;  %v1372_v27 = vld [vmem:[%s6516_s10 + $0x18] sm:$0xff]  ;;  %v4489_v28 = vpack.c.bf16 %v1156_v25, %v1154_v24  ;;  %v1155_v30 = vld [vmem:[#allocation12 + $0x90] sm:$0xff]  ;;  %v1158_v31 = vld [vmem:[#allocation12 + $0xa8] sm:$0xff] }
 0x2a3   : > { %4462 = vmatprep.subr.bf16.mxu1 %v4461_v8  ;;  %v1160_v32 = vld [vmem:[#allocation12 + $0xb8] sm:$0xff]  ;;  %v4491_v33 = vpack.c.bf16 %v1155_v30, %v1153_v29  ;;  %v1157_v35 = vld [vmem:[#allocation12 + $0xa0] sm:$0xff]  ;;  %v1159_v36 = vld [vmem:[#allocation12 + $0xb0] sm:$0xff] }
 0x2a4   : > { %v4493_v34 = vpack.c.bf16 %v1160_v32, %v1158_v31  ;;  %v4495_v37 = vpack.c.bf16 %v1159_v36, %v1157_v35  ;;  %v1130_v38 = vld [vmem:[#allocation10 + $0x88] sm:$0xff]  ;;  %v1132_v39 = vld [vmem:[#allocation10 + $0x98] sm:$0xff]  ;;  %v1129_v41 = vld [vmem:[#allocation10 + $0x80] sm:$0xff] }
 0x2a5   : > { %4448 = vmatpush1.bf16.msra.mxu0 %v4447_v48  ;;  %v4465_v40 = vpack.c.bf16 %v1132_v39, %v1130_v38  ;;  %v1131_v42 = vld [vmem:[#allocation10 + $0x90] sm:$0xff]  ;;  %v1134_v44 = vld [vmem:[#allocation10 + $0xa8] sm:$0xff]  ;;  %v1136_v45 = vld [vmem:[#allocation10 + $0xb8] sm:$0xff] }
 0x2a6   : > { %4474 = vmatprep.subr.bf16.mxu0 %v4473_v52  ;;  %4464 = vmatpush1.bf16.msra.mxu1 %v4463_v16  ;;  %v4467_v43 = vpack.c.bf16 %v1131_v42, %v1129_v41  ;;  %v4469_v46 = vpack.c.bf16 %v1136_v45, %v1134_v44  ;;  %v1133_v47 = vld [vmem:[#allocation10 + $0xa0] sm:$0xff]  ;;  %v1135_v48 = vld [vmem:[#allocation10 + $0xb0] sm:$0xff]  ;;  %v6560_v42 = vld [vmem:[#allocation2 + $0x8] sm:$0xff] }
 0x2a7   : > { %4466 = vmatprep.subr.bf16.mxu1 %v4465_v40  ;;  %v4471_v49 = vpack.c.bf16 %v1135_v48, %v1133_v47  ;;  %v1178_v50 = vld [vmem:[#allocation15 + $0x80] sm:$0xff]  ;;  %v1179_v51 = vld [vmem:[#allocation15 + $0x88] sm:$0xff]  ;;  %v1180_v56 = vld [vmem:[#allocation15 + $0x90] sm:$0xff] }
 0x2a8   : > { %3766 = vmatmul.mubr.msk.f32.vlgmr.msra.gmra.mrb[0].mxu0 %vm1373_vm0, %v6519_v63  ;;  %v1162_v52 = vld [vmem:[#allocation15] sm:$0xff]  ;;  %v4513_v53 = vpack.c.bf16 %v1179_v51, %v1178_v50  ;;  %v1163_v54 = vld [vmem:[#allocation15 + $0x8] sm:$0xff]  ;;  %v1181_v57 = vld [vmem:[#allocation15 + $0x98] sm:$0xff] }
 0x2a9   : > { %4476 = vmatpush1.bf16.msra.mxu0 %v4475_v1  ;;  %1456 = vmatprep.mubr.f32.mxu0 %v5829_v0  ;;  %v4515_v55 = vpack.c.bf16 %v1163_v54, %v1162_v52  ;;  %v1164_v58 = vld [vmem:[#allocation15 + $0x10] sm:$0xff]  ;;  %v1165_v59 = vld [vmem:[#allocation15 + $0x18] sm:$0xff]  ;;  %v4517_v60 = vpack.c.bf16 %v1181_v57, %v1180_v56  ;;  %v1182_v62 = vld [vmem:[#allocation15 + $0xa0] sm:$0xff] }
 0x2aa   : > { %4478 = vmatprep.subr.bf16.mxu0 %v4477_v2  ;;  %4468 = vmatpush1.bf16.msra.mxu1 %v4467_v43  ;;  %v4519_v61 = vpack.c.bf16 %v1165_v59, %v1164_v58  ;;  %v1166_v2 = vld [vmem:[#allocation15 + $0x20] sm:$0xff]  ;;  %v1167_v3 = vld [vmem:[#allocation15 + $0x28] sm:$0xff]  ;;  %v1184_v5 = vld [vmem:[#allocation15 + $0xb0] sm:$0xff] }
 0x2ab   : > { %4470 = vmatprep.subr.bf16.mxu1 %v4469_v46  ;;  %v4523_v4 = vpack.c.bf16 %v1167_v3, %v1166_v2  ;;  %v1185_v6 = vld [vmem:[#allocation15 + $0xb8] sm:$0xff]  ;;  %v1168_v8 = vld [vmem:[#allocation15 + $0x30] sm:$0xff]  ;;  %v1186_v10 = vld [vmem:[#allocation15 + $0xc0] sm:$0xff] }
 0x2ac   : > { %3767 = vmatmul.mubr.msk.f32.gmra.mrb[2].mxu0 %vm1373_vm0, %v6525_v11  ;;  %v4525_v7 = vpack.c.bf16 %v1185_v6, %v1184_v5  ;;  %v1169_v9 = vld [vmem:[#allocation15 + $0x38] sm:$0xff]  ;;  %v1170_v14 = vld [vmem:[#allocation15 + $0x40] sm:$0xff]  ;;  %v1171_v15 = vld [vmem:[#allocation15 + $0x48] sm:$0xff] }
 0x2ad   : > { %4480 = vmatpush1.bf16.msra.mxu0 %v4479_v12  ;;  %1462 = vmatprep.mubr.f32.mxu0 %v5829_v0  ;;  %v4527_v12 = vpack.c.bf16 %v1169_v9, %v1168_v8  ;;  %v1188_v16 = vld [vmem:[#allocation15 + $0xd0] sm:$0xff]  ;;  %v1189_v17 = vld [vmem:[#allocation15 + $0xd8] sm:$0xff]  ;;  %v4531_v18 = vpack.c.bf16 %v1171_v15, %v1170_v14  ;;  %v1190_v22 = vld [vmem:[#allocation15 + $0xe0] sm:$0xff] }
 0x2ae   : > { %4482 = vmatprep.subr.bf16.mxu0 %v4481_v13  ;;  %4472 = vmatpush1.bf16.msra.mxu1 %v4471_v49  ;;  %v1191_v23 = vld [vmem:[#allocation15 + $0xe8] sm:$0xff]  ;;  %v6555_v41 = vld [vmem:[#allocation2] sm:$0xff]  ;;  %v6570_v49 = vld [vmem:[#allocation2 + $0x18] sm:$0xff] }
 0x2af   : > { %v4537_v25 = vpack.c.bf16 %v1191_v23, %v1190_v22  ;;  %v6565_v45 = vld [vmem:[#allocation2 + $0x10] sm:$0xff]  ;;  %v1197_v5 = vld [vmem:[#allocation16 + $0x18] sm:$0xff]  ;;  %v1214_v6 = vld [vmem:[#allocation16 + $0xa0] sm:$0xff] }
 0x2b0   : > { %3768 = vmatmul.mubr.msk.f32.gmra.mrb[4].mxu0 %vm1373_vm0, %v1371_v20  ;;  %v1211_v54 = vld [vmem:[#allocation16 + $0x88] sm:$0xff]  ;;  %v1217_v14 = vld [vmem:[#allocation16 + $0xb8] sm:$0xff] }
 0x2b1   : > { %4484 = vmatpush1.bf16.msra.mxu0 %v4483_v19  ;;  %1468 = vmatprep.mubr.f32.mxu0 %v5829_v0  ;;  %v4533_v19 = vpack.c.bf16 %v1189_v17, %v1188_v16  ;;  %v6580_v8 = vld [vmem:[#allocation4 + $0x8] sm:$0xff]  ;;  %v6585_v15 = vld [vmem:[#allocation4 + $0x10] sm:$0xff]  ;;  %v6590_v22 = vld [vmem:[#allocation4 + $0x18] sm:$0xff] }
 0x2b2   : > { %4486 = vmatprep.subr.bf16.mxu0 %v4485_v21  ;;  %3770 = vmatmul.mubr.msk.f32.vlgmr.msra.gmra.mrb[0].mxu1 %vm1373_vm0, %v6519_v63  ;;  %v1173_v21 = vld [vmem:[#allocation15 + $0x58] sm:$0xff] }
 0x2b3   : > { %1545 = vmatprep.mubr.f32.mxu1 %v5829_v0 }
 0x2b4   : > { %3769 = vmatmul.mubr.msk.f32.gmra.mrb[6].mxu0 %vm1373_vm0, %v1372_v27 }
 0x2b5   : > { %4488 = vmatpush1.bf16.msra.mxu0 %v4487_v26  ;;  %1628 = vmatprep.mubr.f32.mxu0 %v5829_v0  ;;  %v1174_v26 = vld [vmem:[#allocation15 + $0x60] sm:$0xff] }
 0x2b6   : > { %4490 = vmatprep.subr.bf16.mxu0 %v4489_v28  ;;  %3771 = vmatmul.mubr.msk.f32.gmra.mrb[2].mxu1 %vm1373_vm0, %v6525_v11 }
 0x2b7   : > { %1551 = vmatprep.mubr.f32.mxu1 %v5829_v0 }
 0x2b9   : > { %4492 = vmatpush1.bf16.msra.mxu0 %v4491_v33 }
 0x2ba   : > { %4494 = vmatprep.subr.bf16.mxu0 %v4493_v34  ;;  %3772 = vmatmul.mubr.msk.f32.gmra.mrb[4].mxu1 %vm1373_vm0, %v1371_v20 }
 0x2bb   : > { %1557 = vmatprep.mubr.f32.mxu1 %v5829_v0 }
 0x2bd   : > { %4496 = vmatpush1.bf16.msra.mxu0 %v4495_v37 }
 0x2be   : > { %3773 = vmatmul.mubr.msk.f32.gmra.mrb[6].mxu1 %vm1373_vm0, %v1372_v27  ;;  %4514 = vmatprep.subr.bf16.mxu0 %v4513_v53  ;;  %v1210_v53 = vld [vmem:[#allocation16 + $0x80] sm:$0xff] }
 0x2bf   : > { %1730 = vmatprep.mubr.f32.mxu1 %v5829_v0  ;;  %v4545_v59 = vpack.c.bf16 %v1211_v54, %v1210_v53 }
 0x2c0   : > { %3774 = vmatmul.mubr.msk.f32.vlgmr.msra.gmra.mrb[8].mxu0 %vm1373_vm0, %v6519_v63  ;;  %v1183_v63 = vld [vmem:[#allocation15 + $0xa8] sm:$0xff] }
 0x2c1   : > { %1634 = vmatprep.mubr.f32.mxu0 %v5829_v0  ;;  %4516 = vmatpush3.bf16.msra.mxu0 %v4515_v55  ;;  %v4521_v1 = vpack.c.bf16 %v1183_v63, %v1182_v62  ;;  %v1212_v62 = vld [vmem:[#allocation16 + $0x90] sm:$0xff]  ;;  %v1213_v63 = vld [vmem:[#allocation16 + $0x98] sm:$0xff] }
 0x2c2   : > { %4518 = vmatprep.subr.bf16.mxu0 %v4517_v60  ;;  %v1194_v60 = vld [vmem:[#allocation16] sm:$0xff]  ;;  %v4549_v3 = vpack.c.bf16 %v1213_v63, %v1212_v62 }
 0x2c4   : > { %3775 = vmatmul.mubr.msk.f32.gmra.mrb[10].mxu0 %vm1373_vm0, %v6525_v11  ;;  %v1187_v11 = vld [vmem:[#allocation15 + $0xc8] sm:$0xff] }
 0x2c5   : > { %1640 = vmatprep.mubr.f32.mxu0 %v5829_v0  ;;  %4520 = vmatpush3.bf16.msra.mxu0 %v4519_v61  ;;  %v4529_v13 = vpack.c.bf16 %v1187_v11, %v1186_v10  ;;  %v1195_v61 = vld [vmem:[#allocation16 + $0x8] sm:$0xff]  ;;  %v1198_v11 = vld [vmem:[#allocation16 + $0x20] sm:$0xff] }
 0x2c6   : > { %4522 = vmatprep.subr.bf16.mxu0 %v4521_v1  ;;  %v6575_v1 = vld [vmem:[#allocation4] sm:$0xff]  ;;  %v4547_v2 = vpack.c.bf16 %v1195_v61, %v1194_v60 }
 0x2c7   : > { %v1161_v61 = vld [vmem:[#allocation13] sm:$0x3] }
 0x2c8   : > { %3776 = vmatmul.mubr.msk.f32.gmra.mrb[12].mxu0 %vm1373_vm0, %v1371_v20  ;;  %v1172_v20 = vld [vmem:[#allocation15 + $0x50] sm:$0xff] }
 0x2c9   : > { %1646 = vmatprep.mubr.f32.mxu0 %v5829_v0  ;;  %4524 = vmatpush3.bf16.msra.mxu0 %v4523_v4  ;;  %v4535_v24 = vpack.c.bf16 %v1173_v21, %v1172_v20  ;;  %v1196_v4 = vld [vmem:[#allocation16 + $0x10] sm:$0xff]  ;;  %v1218_v20 = vld [vmem:[#allocation16 + $0xc0] sm:$0xff]  ;;  %v1219_v21 = vld [vmem:[#allocation16 + $0xc8] sm:$0xff] }
 0x2ca   : > { %4526 = vmatprep.subr.bf16.mxu0 %v4525_v7  ;;  %v1215_v7 = vld [vmem:[#allocation16 + $0xa8] sm:$0xff]  ;;  %v4551_v9 = vpack.c.bf16 %v1197_v5, %v1196_v4 }
 0x2cb   : > { %v4553_v10 = vpack.c.bf16 %v1215_v7, %v1214_v6  ;;  %v1226_v6 = vld [vmem:[#allocation18] sm:$0xff]  ;;  %v1227_v7 = vld [vmem:[#allocation18 + $0x8] sm:$0xff] }
 0x2cc   : > { %3777 = vmatmul.mubr.msk.f32.gmra.mrb[14].mxu0 %vm1373_vm0, %v1372_v27  ;;  %v1175_v27 = vld [vmem:[#allocation15 + $0x68] sm:$0xff] }
 0x2cd   : > { %4528 = vmatpush3.bf16.msra.mxu0 %v4527_v12  ;;  %v4539_v28 = vpack.c.bf16 %v1175_v27, %v1174_v26  ;;  %v1199_v12 = vld [vmem:[#allocation16 + $0x28] sm:$0xff]  ;;  %v1220_v27 = vld [vmem:[#allocation16 + $0xd0] sm:$0xff] }
 0x2ce   : > { %4530 = vmatprep.subr.bf16.mxu0 %v4529_v13  ;;  %v1216_v13 = vld [vmem:[#allocation16 + $0xb0] sm:$0xff]  ;;  %v4555_v16 = vpack.c.bf16 %v1199_v12, %v1198_v11  ;;  %v1203_v26 = vld [vmem:[#allocation16 + $0x48] sm:$0xff]  ;;  %v1245_v11 = vld [vmem:[#allocation18 + $0x98] sm:$0xff] }
 0x2cf   : > { %v4557_v17 = vpack.c.bf16 %v1217_v14, %v1216_v13  ;;  %v4579_v14 = vpack.c.bf16 %v1227_v7, %v1226_v6  ;;  %v1238_v7 = vld [vmem:[#allocation18 + $0x60] sm:$0xff] }
 0x2d1   : > { %4532 = vmatpush3.bf16.msra.mxu0 %v4531_v18  ;;  %v1200_v18 = vld [vmem:[#allocation16 + $0x30] sm:$0xff] }
 0x2d2   : > { %4534 = vmatprep.subr.bf16.mxu0 %v4533_v19  ;;  %v1201_v19 = vld [vmem:[#allocation16 + $0x38] sm:$0xff] }
 0x2d3   : > { %v4559_v23 = vpack.c.bf16 %v1201_v19, %v1200_v18 }
 0x2d5   : > { %4536 = vmatpush3.bf16.msra.mxu0 %v4535_v24  ;;  %v4561_v24 = vpack.c.bf16 %v1219_v21, %v1218_v20  ;;  %v1228_v20 = vld [vmem:[#allocation18 + $0x10] sm:$0xff]  ;;  %v1229_v21 = vld [vmem:[#allocation18 + $0x18] sm:$0xff] }
 0x2d6   : > { %4538 = vmatprep.subr.bf16.mxu0 %v4537_v25  ;;  %v1202_v25 = vld [vmem:[#allocation16 + $0x40] sm:$0xff] }
 0x2d9   : > { %4540 = vmatpush3.bf16.msra.mxu0 %v4539_v28  ;;  %v1221_v28 = vld [vmem:[#allocation16 + $0xd8] sm:$0xff] }
 0x37b   : > { %v1452_v29 = vpop.f32.mrb[0].mxu0 }
 0x37c   : > { %v1454_v30 = vpop.f32.mrb[1].mxu0 }
 0x37f   : > { %v1458_v31 = vpop.f32.mrb[2].mxu0 }
 0x380   : > { %v4499_v32 = vpack.c.bf16 %v1458_v31, %v1452_v29  ;;  %v1460_v33 = vpop.f32.mrb[3].mxu0  ;;  %v4563_v29 = vpack.c.bf16 %v1203_v26, %v1202_v25  ;;  %v1204_v31 = vld [vmem:[#allocation16 + $0x50] sm:$0xff]  ;;  %v1247_v25 = vld [vmem:[#allocation18 + $0xa8] sm:$0xff] }
 0x381   : > { %v4497_v34 = vpack.c.bf16 %v1460_v33, %v1454_v30  ;;  %v4565_v30 = vpack.c.bf16 %v1221_v28, %v1220_v27  ;;  %v1223_v33 = vld [vmem:[#allocation16 + $0xe8] sm:$0xff]  ;;  %v4583_v28 = vpack.c.bf16 %v1229_v21, %v1228_v20 }
 0x383   : > { %4498 = vmatprep.subr.bf16.mxu1 %v4497_v34  ;;  %v1464_v35 = vpop.f32.mrb[4].mxu0 }
 0x384   : > { %4500 = vmatpush1.bf16.msra.mxu1 %v4499_v32  ;;  %v1466_v36 = vpop.f32.mrb[5].mxu0  ;;  %v1205_v32 = vld [vmem:[#allocation16 + $0x58] sm:$0xff] }
 0x385   : > { %v4567_v34 = vpack.c.bf16 %v1205_v32, %v1204_v31 }
 0x387   : > { %v1470_v37 = vpop.f32.mrb[6].mxu0 }
 0x388   : > { %v4503_v38 = vpack.c.bf16 %v1470_v37, %v1464_v35  ;;  %v1472_v39 = vpop.f32.mrb[7].mxu0  ;;  %v1207_v37 = vld [vmem:[#allocation16 + $0x68] sm:$0xff] }
 0x389   : > { %v4501_v40 = vpack.c.bf16 %v1472_v39, %v1466_v36  ;;  %v1206_v36 = vld [vmem:[#allocation16 + $0x60] sm:$0xff]  ;;  %v1192_v39 = vld [vmem:[#allocation15 + $0xf0] sm:$0xff] }
 0x38b   : > { %4502 = vmatprep.subr.bf16.mxu1 %v4501_v40  ;;  %v1193_v40 = vld [vmem:[#allocation15 + $0xf8] sm:$0xff] }
 0x38c   : > { %4504 = vmatpush1.bf16.msra.mxu1 %v4503_v38  ;;  %v4571_v38 = vpack.c.bf16 %v1207_v37, %v1206_v36  ;;  %v1249_v36 = vld [vmem:[#allocation18 + $0xb8] sm:$0xff] }
 0x38f   : > { %3778 = vmatmul.mubr.msk.f32.vlgmr.msra.gmra.mrb[0].mxu1 %vm1653_vm1, %v6555_v41 }
 0x390   : > { %1736 = vmatprep.mubr.f32.mxu1 %v5829_v0 }
 0x393   : > { %v1630_v43 = vpop.f32.mrb[8].mxu0  ;;  %3779 = vmatmul.mubr.msk.f32.gmra.mrb[2].mxu1 %vm1653_vm1, %v6560_v42 }
 0x394   : > { %v1632_v44 = vpop.f32.mrb[9].mxu0  ;;  %1742 = vmatprep.mubr.f32.mxu1 %v5829_v0 }
 0x397   : > { %v1636_v46 = vpop.f32.mrb[10].mxu0  ;;  %3780 = vmatmul.mubr.msk.f32.gmra.mrb[4].mxu1 %vm1653_vm1, %v6565_v45 }
 0x398   : > { %v4507_v47 = vpack.c.bf16 %v1636_v46, %v1630_v43  ;;  %v1638_v48 = vpop.f32.mrb[11].mxu0  ;;  %1748 = vmatprep.mubr.f32.mxu1 %v5829_v0  ;;  %v4541_v43 = vpack.c.bf16 %v1193_v40, %v1192_v39  ;;  %v1177_v46 = vld [vmem:[#allocation15 + $0x78] sm:$0xff] }
 0x399   : > { %v4505_v50 = vpack.c.bf16 %v1638_v48, %v1632_v44  ;;  %v1176_v44 = vld [vmem:[#allocation15 + $0x70] sm:$0xff] }
 0x39a   : > { %v4543_v48 = vpack.c.bf16 %v1177_v46, %v1176_v44  ;;  %4542 = vmatprep.subr.bf16.mxu0 %v4541_v43 }
 0x39b   : > { %v1642_v51 = vpop.f32.mrb[12].mxu0  ;;  %4506 = vmatprep.subr.bf16.mxu1 %v4505_v50  ;;  %3781 = vmatmul.mubr.msk.f32.gmra.mrb[6].mxu1 %vm1653_vm1, %v6570_v49  ;;  %v1225_v50 = vld [vmem:[#allocation16 + $0xf8] sm:$0xff] }
 0x39c   : > { %v1644_v52 = vpop.f32.mrb[13].mxu0  ;;  %4508 = vmatpush1.bf16.msra.mxu1 %v4507_v47  ;;  %1831 = vmatprep.mubr.f32.mxu1 %v5829_v0  ;;  %v1224_v47 = vld [vmem:[#allocation16 + $0xf0] sm:$0xff] }
 0x39d   : > { %v4573_v53 = vpack.c.bf16 %v1225_v50, %v1224_v47  ;;  %4544 = vmatpush3.bf16.msra.mxu0 %v4543_v48  ;;  %v1232_v47 = vld [vmem:[#allocation18 + $0x30] sm:$0xff]  ;;  %v1233_v48 = vld [vmem:[#allocation18 + $0x38] sm:$0xff] }
 0x39f   : > { %v1648_v55 = vpop.f32.mrb[14].mxu0 }
 0x3a0   : > { %v4511_v56 = vpack.c.bf16 %v1648_v55, %v1642_v51  ;;  %v1650_v57 = vpop.f32.mrb[15].mxu0  ;;  %v1208_v51 = vld [vmem:[#allocation16 + $0x70] sm:$0xff]  ;;  %v1242_v55 = vld [vmem:[#allocation18 + $0x80] sm:$0xff] }
 0x3a1   : > { %v4509_v58 = vpack.c.bf16 %v1650_v57, %v1644_v52  ;;  %v1209_v52 = vld [vmem:[#allocation16 + $0x78] sm:$0xff] }
 0x3a2   : > { %v4575_v54 = vpack.c.bf16 %v1209_v52, %v1208_v51  ;;  %v1250_v51 = vld [vmem:[#allocation18 + $0xc0] sm:$0xff]  ;;  %v1251_v52 = vld [vmem:[#allocation18 + $0xc8] sm:$0xff] }
 0x3a3   : > { %4510 = vmatprep.subr.bf16.mxu1 %v4509_v58  ;;  %v1865_v58 = vlaneseq }
 0x3a4   : > { %4512 = vmatpush1.bf16.msra.mxu1 %v4511_v56  ;;  %v1243_v56 = vld [vmem:[#allocation18 + $0x88] sm:$0xff] }
 0x3a5   : > { %4546 = vmatprep.subr.bf16.mxu1 %v4545_v59  ;;  %v4577_v57 = vpack.c.bf16 %v1243_v56, %v1242_v55  ;;  %v1866_v59 = vshrl.u32 %v1865_v58, 7  ;;  %v4593_v56 = vpack.c.bf16 %v1251_v52, %v1250_v51  ;;  %v1235_v58 = vld [vmem:[#allocation18 + $0x48] sm:$0xff] }
 0x3a7   : > { %3782 = vmatmul.mubr.msk.f32.vlgmr.msra.gmra.mrb[0].mxu1 %vm1653_vm1, %v6575_v1  ;;  %4578 = vmatprep.subr.bf16.mxu0 %v4577_v57  ;;  %v1867_v60 = vsub.s32 0, %v1866_v59  ;;  %v1871_v62 = vsub.s32 1, %v1866_v59  ;;  %v1234_v57 = vld [vmem:[#allocation18 + $0x40] sm:$0xff]  ;;  %v1252_v59 = vld [vmem:[#allocation18 + $0xd0] sm:$0xff] }
 0x3a8   : > { %1837 = vmatprep.mubr.f32.mxu1 %v5829_v0  ;;  %4548 = vmatpush3.bf16.msra.mxu1 %v4547_v2 }
 0x3a9   : > { %4550 = vmatprep.subr.bf16.mxu1 %v4549_v3  ;;  %v1868_v63 = vrot.slane %v1161_v61, %v1867_v60  ;;  %v1872_v2 = vrot.slane %v1161_v61, %v1871_v62  ;;  %v1253_v60 = vld [vmem:[#allocation18 + $0xd8] sm:$0xff]  ;;  %v4595_v61 = vpack.c.bf16 %v1235_v58, %v1234_v57 }
 0x3aa   : > { %v4597_v62 = vpack.c.bf16 %v1253_v60, %v1252_v59  ;;  %v1280_v59 = vld [vmem:[%s6906_s24 + $0x8] sm:$0xff] }
 0x3ab   : > { %3783 = vmatmul.mubr.msk.f32.gmra.mrb[2].mxu1 %vm1653_vm1, %v6580_v8 }
 0x3ac   : > { %1843 = vmatprep.mubr.f32.mxu1 %v5829_v0  ;;  %4552 = vmatpush3.bf16.msra.mxu1 %v4551_v9 }
 0x3ad   : > { %4554 = vmatprep.subr.bf16.mxu1 %v4553_v10  ;;  %v1244_v10 = vld [vmem:[#allocation18 + $0x90] sm:$0xff] }
 0x3ae   : > { %v4581_v19 = vpack.c.bf16 %v1245_v11, %v1244_v10  ;;  %v1256_v10 = vld [vmem:[#allocation18 + $0xf0] sm:$0xff]  ;;  %v1257_v11 = vld [vmem:[#allocation18 + $0xf8] sm:$0xff] }
 0x3af   : > { %3784 = vmatmul.mubr.msk.f32.gmra.mrb[4].mxu1 %vm1653_vm1, %v6585_v15 }
 0x3b0   : > { %1849 = vmatprep.mubr.f32.mxu1 %v5829_v0  ;;  %4556 = vmatpush3.bf16.msra.mxu1 %v4555_v16  ;;  %v1222_v0 = vld [vmem:[#allocation16 + $0xe0] sm:$0xff] }
 0x3b1   : > { %4558 = vmatprep.subr.bf16.mxu1 %v4557_v17  ;;  %v4569_v35 = vpack.c.bf16 %v1223_v33, %v1222_v0  ;;  %v1230_v0 = vld [vmem:[#allocation18 + $0x20] sm:$0xff]  ;;  %v1231_v33 = vld [vmem:[#allocation18 + $0x28] sm:$0xff] }
 0x3b2   : > { %v4587_v39 = vpack.c.bf16 %v1231_v33, %v1230_v0 }
 0x3b3   : > { %3785 = vmatmul.mubr.msk.f32.gmra.mrb[6].mxu1 %vm1653_vm1, %v6590_v22 }
 0x3b4   : > { %4560 = vmatpush3.bf16.msra.mxu1 %v4559_v23 }
 0x3b5   : > { %4562 = vmatprep.subr.bf16.mxu1 %v4561_v24  ;;  %v1246_v24 = vld [vmem:[#allocation18 + $0xa0] sm:$0xff] }
 0x3b6   : > { %v4585_v32 = vpack.c.bf16 %v1247_v25, %v1246_v24 }
 0x3b8   : > { %4564 = vmatpush3.bf16.msra.mxu1 %v4563_v29 }
 0x3b9   : > { %4566 = vmatprep.subr.bf16.mxu1 %v4565_v30 }
 0x3bc   : > { %4568 = vmatpush3.bf16.msra.mxu1 %v4567_v34 }
 0x3bd   : > { %4570 = vmatprep.subr.bf16.mxu1 %v4569_v35  ;;  %v1248_v35 = vld [vmem:[#allocation18 + $0xb0] sm:$0xff] }
 0x3be   : > { %v4589_v46 = vpack.c.bf16 %v1249_v36, %v1248_v35 }
 0x3c0   : > { %4572 = vmatpush3.bf16.msra.mxu1 %v4571_v38 }
 0x3c1   : > { %4574 = vmatprep.subr.bf16.mxu1 %v4573_v53 }
 0x3c4   : > { %4576 = vmatpush3.bf16.msra.mxu1 %v4575_v54  ;;  %v4591_v54 = vpack.c.bf16 %v1233_v48, %v1232_v47 }
 0x47a   : > { %v1833_v3 = vpop.f32.mrb[0].mxu1 }
 0x47b   : > { %v1875_v4 = vadd.f32 %v1868_v63, %v1833_v3  ;;  %v1835_v5 = vpop.f32.mrb[1].mxu1  ;;  %v1254_v3 = vld [vmem:[#allocation18 + $0xe0] sm:$0xff] }
 0x47c   : > { %v1876_v9 = vadd.f32 %v1872_v2, %v1835_v5 }
 0x47d   : > { %v6596_v16 = vmax.f32 %v1875_v4, 0.0  ;;  %v1255_v4 = vld [vmem:[#allocation18 + $0xe8] sm:$0xff] }
 0x47e   : > { %v6594_v12 = vmax.f32 %v1876_v9, 0.0  ;;  %v1839_v13 = vpop.f32.mrb[2].mxu1  ;;  %v4601_v6 = vpack.c.bf16 %v1255_v4, %v1254_v3  ;;  %v1239_v9 = vld [vmem:[#allocation18 + $0x68] sm:$0xff]  ;;  %v1286_v3 = vld [vmem:[%s6906_s24 + $0x38] sm:$0xff] }
 0x47f   : > { %v1877_v17 = vadd.f32 %v1868_v63, %v1839_v13  ;;  %v1841_v18 = vpop.f32.mrb[3].mxu1  ;;  %v4605_v13 = vpack.c.bf16 %v1257_v11, %v1256_v10 }
 0x480   : > { %v1878_v23 = vadd.f32 %v1872_v2, %v1841_v18  ;;  %1955 = vmatprep.mubr.f32.mxu0 %v6594_v12  ;;  %2040 = vmatprep.mubr.f32.mxu1 %v6594_v12 }
 0x481   : > { %1956 = vmatmul.mubr.f32.vlgmr.msra.gmra.mrb[16].mxu0 %v6596_v16  ;;  %2041 = vmatmul.mubr.f32.vlgmr.msra.gmra.mrb[8].mxu1 %v6596_v16  ;;  %v6604_v29 = vmax.f32 %v1877_v17, 0.0  ;;  %v1241_v17 = vld [vmem:[#allocation18 + $0x78] sm:$0xff] }
 0x482   : > { %v6602_v26 = vmax.f32 %v1878_v23, 0.0  ;;  %4580 = vmatpush3.bf16.msra.mxu0 %v4579_v14  ;;  %v1845_v27 = vpop.f32.mrb[4].mxu1  ;;  %v1240_v14 = vld [vmem:[#allocation18 + $0x70] sm:$0xff] }
 0x483   : > { %v1879_v30 = vadd.f32 %v1868_v63, %v1845_v27  ;;  %v1847_v31 = vpop.f32.mrb[5].mxu1  ;;  %4582 = vmatprep.subr.bf16.mxu0 %v4581_v19  ;;  %v4607_v18 = vpack.c.bf16 %v1241_v17, %v1240_v14 }
 0x484   : > { %v1880_v34 = vadd.f32 %v1872_v2, %v1847_v31  ;;  %1960 = vmatprep.mubr.f32.mxu0 %v6602_v26  ;;  %2045 = vmatprep.mubr.f32.mxu1 %v6602_v26 }
 0x485   : > { %1961 = vmatmul.mubr.f32.gmra.mrb[18].mxu0 %v6604_v29  ;;  %2046 = vmatmul.mubr.f32.gmra.mrb[10].mxu1 %v6604_v29  ;;  %v1887_v40 = vmax.f32 %v1879_v30, 0.0 }
 0x486   : > { %v1888_v37 = vmax.f32 %v1880_v34, 0.0  ;;  %4584 = vmatpush3.bf16.msra.mxu0 %v4583_v28  ;;  %v1851_v38 = vpop.f32.mrb[6].mxu1 }
 0x487   : > { %v1881_v43 = vadd.f32 %v1868_v63, %v1851_v38  ;;  %v1853_v44 = vpop.f32.mrb[7].mxu1  ;;  %4586 = vmatprep.subr.bf16.mxu0 %v4585_v32  ;;  %v1236_v63 = vld [vmem:[#allocation18 + $0x50] sm:$0xff] }
 0x488   : > { %v1882_v50 = vadd.f32 %v1872_v2, %v1853_v44  ;;  %1965 = vmatprep.mubr.f32.mxu0 %v1888_v37  ;;  %2050 = vmatprep.mubr.f32.mxu1 %v1888_v37  ;;  %v1237_v2 = vld [vmem:[#allocation18 + $0x58] sm:$0xff] }
 0x489   : > { %1966 = vmatmul.mubr.f32.gmra.mrb[20].mxu0 %v1887_v40  ;;  %2051 = vmatmul.mubr.f32.gmra.mrb[12].mxu1 %v1887_v40  ;;  %v1889_v55 = vmax.f32 %v1881_v43, 0.0  ;;  %v4599_v5 = vpack.c.bf16 %v1237_v2, %v1236_v63  ;;  %v1285_v2 = vld [vmem:[%s6906_s24 + $0x30] sm:$0xff] }
 0x48a   : > { %v1890_v53 = vmax.f32 %v1882_v50, 0.0  ;;  %4588 = vmatpush3.bf16.msra.mxu0 %v4587_v39  ;;  %v4685_v4 = vpack.c.bf16 %v1286_v3, %v1285_v2  ;;  %v1303_v2 = vld [vmem:[#allocation25] sm:$0xff]  ;;  %v1304_v3 = vld [vmem:[#allocation25 + $0x8] sm:$0xff] }
 0x48b   : > { %4590 = vmatprep.subr.bf16.mxu0 %v4589_v46 }
 0x48c   : > { %1970 = vmatprep.mubr.f32.mxu0 %v1890_v53  ;;  %2055 = vmatprep.mubr.f32.mxu1 %v1890_v53 }
 0x48d   : > { %1971 = vmatmul.mubr.f32.gmra.mrb[22].mxu0 %v1889_v55  ;;  %2056 = vmatmul.mubr.f32.gmra.mrb[14].mxu1 %v1889_v55 }
 0x48e   : > { %4592 = vmatpush3.bf16.msra.mxu0 %v4591_v54  ;;  %2125 = vmatprep.mubr.f32.mxu0 %v6594_v12  ;;  %v4603_v12 = vpack.c.bf16 %v1239_v9, %v1238_v7  ;;  %v3794_v9 = vld [vmem:[#allocation19] ss:$0 sm:$0xff] }
 0x48f   : > { %4594 = vmatprep.subr.bf16.mxu0 %v4593_v56  ;;  %4123 = vmatprep.mubr.msk.f32.mxu1 %vm1653_vm1, %v6555_v41 }
 0x492   : > { %4596 = vmatpush3.bf16.msra.mxu0 %v4595_v61  ;;  %v1283_v61 = vld [vmem:[%s6906_s24 + $0x20] sm:$0xff] }
 0x493   : > { %4598 = vmatprep.subr.bf16.mxu0 %v4597_v62  ;;  %v1284_v62 = vld [vmem:[%s6906_s24 + $0x28] sm:$0xff] }
 0x494   : > { %v4681_v63 = vpack.c.bf16 %v1284_v62, %v1283_v61  ;;  %v1295_v61 = vld [vmem:[#allocation24] sm:$0xff]  ;;  %v1296_v62 = vld [vmem:[#allocation24 + $0x8] sm:$0xff] }
 0x496   : > { %4600 = vmatpush3.bf16.msra.mxu0 %v4599_v5  ;;  %v1287_v5 = vld [vmem:[%s6906_s24 + $0x40] sm:$0xff] }
 0x497   : > { %4602 = vmatprep.subr.bf16.mxu0 %v4601_v6  ;;  %v1288_v6 = vld [vmem:[%s6906_s24 + $0x48] sm:$0xff] }
 0x498   : > { %v4689_v7 = vpack.c.bf16 %v1288_v6, %v1287_v5 }
 0x49a   : > { %4604 = vmatpush3.bf16.msra.mxu0 %v4603_v12 }
 0x49b   : > { %4606 = vmatprep.subr.bf16.mxu0 %v4605_v13 }
 0x49e   : > { %4608 = vmatpush3.bf16.msra.mxu0 %v4607_v18 }
 0x4a1   : > { %2126 = vmatmul.mubr.f32.vlgmr.msra.gmra.mrb[24].mxu0 %v6596_v16 }
 0x4a2   : > { %2130 = vmatprep.mubr.f32.mxu0 %v6602_v26 }
 0x4a5   : > { %2131 = vmatmul.mubr.f32.gmra.mrb[26].mxu0 %v6604_v29 }
 0x4a6   : > { %2135 = vmatprep.mubr.f32.mxu0 %v1888_v37 }
 0x4a9   : > { %2136 = vmatmul.mubr.f32.gmra.mrb[28].mxu0 %v1887_v40 }
 0x4aa   : > { %2140 = vmatprep.mubr.f32.mxu0 %v1890_v53 }
 0x4ad   : > { %2141 = vmatmul.mubr.f32.gmra.mrb[30].mxu0 %v1889_v55 }
 0x554   : > { %v3851_v41 = vpop.f32.mrb[16].mxu0  ;;  %v3895_v19 = vpop.f32.mrb[8].mxu1 }
 0x555   : > { %v3852_v20 = vpop.f32.mrb[17].mxu0  ;;  %v3896_v21 = vpop.f32.mrb[9].mxu1 }
 0x556   : > { %v3853_v23 = vadd.f32 %v3852_v20, %v3851_v41  ;;  %v6616_v24 = vadd.f32 %v3896_v21, %v3895_v19 }
 0x558   : > { %v3854_v25 = vpop.f32.mrb[18].mxu0  ;;  %v3898_v27 = vpop.f32.mrb[10].mxu1 }
 0x559   : > { %v3855_v28 = vpop.f32.mrb[19].mxu0  ;;  %v3899_v30 = vpop.f32.mrb[11].mxu1 }
 0x55a   : > { %v3856_v16 = vadd.f32 %v3855_v28, %v3854_v25  ;;  %v6618_v31 = vadd.f32 %v3899_v30, %v3898_v27 }
 0x55c   : > { %v4609_v26 = vpack.c.bf16 %v3856_v16, %v3853_v23  ;;  %v3857_v29 = vpop.f32.mrb[20].mxu0  ;;  %v3901_v32 = vpop.f32.mrb[12].mxu1 }
 0x55d   : > { %v3858_v0 = vpop.f32.mrb[21].mxu0  ;;  %v3902_v33 = vpop.f32.mrb[13].mxu1 }
 0x55e   : > { %v3859_v34 = vadd.f32 %v3858_v0, %v3857_v29  ;;  %v6620_v35 = vadd.f32 %v3902_v33, %v3901_v32  ;;  %4610 = vmatprep.subr.bf16.mxu1 %v4609_v26  ;;  %v1263_v29 = vld [vmem:[%s6907_s7] sm:$0xff]  ;;  %v1264_v32 = vld [vmem:[%s6907_s7 + $0x8] sm:$0xff]  ;;  %v1265_v33 = vld [vmem:[%s6907_s7 + $0x10] sm:$0xff] }
 0x55f   : > { %4612 = vmatpush3.bf16.msra.mxu1 %v4609_v26  ;;  %v1261_v26 = vld [vmem:[#allocation22] sm:$0xff]  ;;  %v4641_v0 = vpack.c.bf16 %v1264_v32, %v1263_v29  ;;  %v1311_v29 = vld [vmem:[#allocation27] sm:$0xff]  ;;  %v1312_v32 = vld [vmem:[#allocation27 + $0x8] sm:$0xff] }
 0x560   : > { %v3860_v36 = vpop.f32.mrb[22].mxu0  ;;  %v3904_v37 = vpop.f32.mrb[14].mxu1 }
 0x561   : > { %v3861_v38 = vpop.f32.mrb[23].mxu0  ;;  %v3905_v39 = vpop.f32.mrb[15].mxu1 }
 0x562   : > { %v3862_v40 = vadd.f32 %v3861_v38, %v3860_v36  ;;  %v6622_v43 = vadd.f32 %v3905_v39, %v3904_v37  ;;  %v1267_v37 = vld [vmem:[%s6907_s7 + $0x20] sm:$0xff]  ;;  %v1268_v38 = vld [vmem:[%s6907_s7 + $0x28] sm:$0xff] }
 0x563   : > { %v4649_v39 = vpack.c.bf16 %v1268_v38, %v1267_v37 }
 0x564   : > { %v4613_v44 = vpack.c.bf16 %v3862_v40, %v3859_v34  ;;  %v1266_v34 = vld [vmem:[%s6907_s7 + $0x18] sm:$0xff]  ;;  %v1269_v40 = vld [vmem:[%s6907_s7 + $0x30] sm:$0xff] }
 0x565   : > { %v4645_v36 = vpack.c.bf16 %v1266_v34, %v1265_v33 }
 0x566   : > { %4614 = vmatprep.subr.bf16.mxu1 %v4613_v44 }
 0x567   : > { %4616 = vmatpush3.bf16.msra.mxu1 %v4613_v44 }
 0x56a   : > { %4124 = vmatmul.mubr.msk.f32.vlgmr.msra.gmra.mrb[16].mxu1 %vm1653_vm1, %v6560_v42 }
 0x56b   : > { %4126 = vmatprep.mubr.msk.f32.mxu1 %vm1653_vm1, %v6565_v45 }
 0x56e   : > { %4127 = vmatmul.mubr.msk.f32.gmra.mrb[18].mxu1 %vm1653_vm1, %v6570_v49  ;;  %v1259_v49 = vld [vmem:[#allocation21] sm:$0xff] }
 0x56f   : > { %4137 = vmatprep.mubr.msk.f32.mxu1 %vm1653_vm1, %v6575_v1  ;;  %v1279_v1 = vld [vmem:[%s6906_s24] sm:$0xff] }
 0x570   : > { %v4673_v60 = vpack.c.bf16 %v1280_v59, %v1279_v1  ;;  %v1277_v1 = vld [vmem:[%s6907_s7 + $0x70] sm:$0xff]  ;;  %v1278_v59 = vld [vmem:[%s6907_s7 + $0x78] sm:$0xff] }
 0x572   : > { %4674 = vmatprep.subr.bf16.mxu0 %v4673_v60 }
 0x573   : > { %4676 = vmatpush3.bf16.msra.mxu0 %v4673_v60  ;;  %v1293_v60 = vld [vmem:[%s6906_s24 + $0x70] sm:$0xff] }
 0x574   : > { %v3939_v46 = vpop.f32.mrb[24].mxu0 }
 0x575   : > { %v3940_v47 = vpop.f32.mrb[25].mxu0 }
 0x576   : > { %v3941_v48 = vadd.f32 %v3940_v47, %v3939_v46  ;;  %v1271_v46 = vld [vmem:[%s6907_s7 + $0x40] sm:$0xff]  ;;  %v1272_v47 = vld [vmem:[%s6907_s7 + $0x48] sm:$0xff] }
 0x578   : > { %v3942_v50 = vpop.f32.mrb[26].mxu0 }
 0x579   : > { %v3943_v51 = vpop.f32.mrb[27].mxu0 }
 0x57a   : > { %v3944_v52 = vadd.f32 %v3943_v51, %v3942_v50  ;;  %v1273_v50 = vld [vmem:[%s6907_s7 + $0x50] sm:$0xff]  ;;  %v1274_v51 = vld [vmem:[%s6907_s7 + $0x58] sm:$0xff] }
 0x57c   : > { %v4617_v53 = vpack.c.bf16 %v3944_v52, %v3941_v48  ;;  %v3945_v54 = vpop.f32.mrb[28].mxu0  ;;  %v4657_v48 = vpack.c.bf16 %v1272_v47, %v1271_v46  ;;  %v1289_v52 = vld [vmem:[%s6906_s24 + $0x50] sm:$0xff] }
 0x57d   : > { %v3946_v55 = vpop.f32.mrb[29].mxu0  ;;  %v1316_v46 = vld [vmem:[#allocation27 + $0x28] sm:$0xff] }
 0x57e   : > { %v3947_v56 = vadd.f32 %v3946_v55, %v3945_v54  ;;  %4618 = vmatprep.subr.bf16.mxu1 %v4617_v53  ;;  %v1290_v54 = vld [vmem:[%s6906_s24 + $0x58] sm:$0xff] }
 0x57f   : > { %4620 = vmatpush3.bf16.msra.mxu1 %v4617_v53  ;;  %v4661_v53 = vpack.c.bf16 %v1274_v51, %v1273_v50  ;;  %v4693_v55 = vpack.c.bf16 %v1290_v54, %v1289_v52  ;;  %v1318_v50 = vld [vmem:[#allocation27 + $0x38] sm:$0xff]  ;;  %v1337_v54 = vld [vmem:[#allocation31 + $0x8] sm:$0xff] }
 0x580   : > { %v3948_v42 = vpop.f32.mrb[30].mxu0  ;;  %v6748_v52 = vld [vmem:[#allocation6] sm:$0xff] }
 0x581   : > { %v3949_v45 = vpop.f32.mrb[31].mxu0 }
 0x582   : > { %v3950_v57 = vadd.f32 %v3949_v45, %v3948_v42  ;;  %v1276_v42 = vld [vmem:[%s6907_s7 + $0x68] sm:$0xff]  ;;  %v1291_v45 = vld [vmem:[%s6906_s24 + $0x60] sm:$0xff] }
 0x584   : > { %v4621_v58 = vpack.c.bf16 %v3950_v57, %v3947_v56  ;;  %v1275_v56 = vld [vmem:[%s6907_s7 + $0x60] sm:$0xff] }
 0x585   : > { %v4665_v57 = vpack.c.bf16 %v1276_v42, %v1275_v56  ;;  %v1338_v56 = vld [vmem:[#allocation31 + $0x10] sm:$0xff]  ;;  %v1339_v42 = vld [vmem:[#allocation31 + $0x18] sm:$0xff] }
 0x586   : > { %4622 = vmatprep.subr.bf16.mxu1 %v4621_v58 }
 0x587   : > { %4624 = vmatpush3.bf16.msra.mxu1 %v4621_v58  ;;  %v1292_v58 = vld [vmem:[%s6906_s24 + $0x68] sm:$0xff] }
 0x58a   : > { %4138 = vmatmul.mubr.msk.f32.vlgmr.msra.gmra.mrb[16].mxu1 %vm1653_vm1, %v6580_v8  ;;  %v1281_v8 = vld [vmem:[%s6906_s24 + $0x10] sm:$0xff] }
 0x58b   : > { %4140 = vmatprep.mubr.msk.f32.mxu1 %vm1653_vm1, %v6585_v15  ;;  %v1282_v15 = vld [vmem:[%s6906_s24 + $0x18] sm:$0xff] }
 0x58e   : > { %4141 = vmatmul.mubr.msk.f32.gmra.mrb[18].mxu1 %vm1653_vm1, %v6590_v22  ;;  %v4677_v22 = vpack.c.bf16 %v1282_v15, %v1281_v8  ;;  %v4669_v8 = vpack.c.bf16 %v1278_v59, %v1277_v1  ;;  %v1294_v15 = vld [vmem:[%s6906_s24 + $0x78] sm:$0xff] }
 0x58f   : > { %4151 = vmatprep.mubr.msk.f32.mxu1 %vm1653_vm1, %v1259_v49  ;;  %v4697_v49 = vpack.c.bf16 %v1292_v58, %v1291_v45  ;;  %v4797_v45 = vpack.c.bf16 %v1339_v42, %v1338_v56  ;;  %v1341_v58 = vld [vmem:[#allocation31 + $0x28] sm:$0xff]  ;;  %v1342_v1 = vld [vmem:[#allocation31 + $0x30] sm:$0xff]  ;;  %v1343_v59 = vld [vmem:[#allocation31 + $0x38] sm:$0xff] }
 0x590   : > { %4678 = vmatprep.subr.bf16.mxu0 %v4677_v22  ;;  %v1355_v56 = vld [vmem:[#allocation33 + $0x18] sm:$0xff] }
 0x591   : > { %4680 = vmatpush3.bf16.msra.mxu0 %v4677_v22  ;;  %v4701_v22 = vpack.c.bf16 %v1294_v15, %v1293_v60  ;;  %v4805_v60 = vpack.c.bf16 %v1343_v59, %v1342_v1  ;;  %v1345_v15 = vld [vmem:[#allocation31 + $0x48] sm:$0xff]  ;;  %v1358_v59 = vld [vmem:[#allocation33 + $0x30] sm:$0xff] }
 0x592   : > { %4682 = vmatprep.subr.bf16.mxu0 %v4681_v63 }
 0x595   : > { %4684 = vmatpush3.bf16.msra.mxu0 %v4681_v63  ;;  %v4705_v63 = vpack.c.bf16 %v1296_v62, %v1295_v61  ;;  %v1346_v61 = vld [vmem:[#allocation31 + $0x50] sm:$0xff]  ;;  %v1347_v62 = vld [vmem:[#allocation31 + $0x58] sm:$0xff] }
 0x596   : > { %4686 = vmatprep.subr.bf16.mxu0 %v4685_v4 }
 0x599   : > { %4688 = vmatpush3.bf16.msra.mxu0 %v4685_v4  ;;  %v4721_v4 = vpack.c.bf16 %v1304_v3, %v1303_v2  ;;  %v1348_v2 = vld [vmem:[#allocation31 + $0x60] sm:$0xff]  ;;  %v1349_v3 = vld [vmem:[#allocation31 + $0x68] sm:$0xff] }
 0x59a   : > { %4690 = vmatprep.subr.bf16.mxu0 %v4689_v7 }
 0x59d   : > { %4692 = vmatpush3.bf16.msra.mxu0 %v4689_v7  ;;  %v1297_v7 = vld [vmem:[#allocation24 + $0x10] sm:$0xff] }
 0x59e   : > { %4694 = vmatprep.subr.bf16.mxu0 %v4693_v55 }
 0x5a1   : > { %4696 = vmatpush3.bf16.msra.mxu0 %v4693_v55 }
 0x5a2   : > { %4698 = vmatprep.subr.bf16.mxu0 %v4697_v49 }
 0x5a5   : > { %4700 = vmatpush3.bf16.msra.mxu0 %v4697_v49 }
 0x5a6   : > { %4702 = vmatprep.subr.bf16.mxu0 %v4701_v22 }
 0x5a9   : > { %4704 = vmatpush3.bf16.msra.mxu0 %v4701_v22 }
 0x5aa   : > { %4722 = vmatprep.subr.bf16.mxu0 %v4721_v4 }
 0x65d   : > { %v4139_v10 = vpop.f32.mrb[16].mxu1 }
 0x65e   : > { %v4865_v11 = vadd.f32 %v4139_v10, %v6618_v31  ;;  %v2297_v12 = vpop.f32.mrb[17].mxu1  ;;  %v1298_v10 = vld [vmem:[#allocation24 + $0x18] sm:$0xff] }
 0x65f   : > { %v4866_v13 = vadd.f32 %v6616_v24, %v2297_v12  ;;  %v1260_v24 = vld [vmem:[#allocation21 + $0x8] sm:$0xff]  ;;  %v1306_v12 = vld [vmem:[#allocation25 + $0x18] sm:$0xff] }
 0x660   : > { %v2327_v14 = vadd.f32 %v4865_v11, %v3794_v9  ;;  %v1305_v11 = vld [vmem:[#allocation25 + $0x10] sm:$0xff] }
 0x661   : > { %v2326_v17 = vadd.f32 %v4866_v13, %v3794_v9  ;;  %v4142_v18 = vpop.f32.mrb[18].mxu1 }
 0x662   : > { %v2331_v41 = vmax.f32 %v2327_v14, 0.0  ;;  %v4867_v19 = vadd.f32 %v4142_v18, %v6622_v43  ;;  %v2307_v20 = vpop.f32.mrb[19].mxu1  ;;  %v1270_v43 = vld [vmem:[%s6907_s7 + $0x38] sm:$0xff]  ;;  %v4709_v18 = vpack.c.bf16 %v1298_v10, %v1297_v7  ;;  %v6754_v10 = vld [vmem:[#allocation7] sm:$0xff] }
 0x663   : > { %v2330_v21 = vmax.f32 %v2326_v17, 0.0  ;;  %v4868_v23 = vadd.f32 %v6620_v35, %v2307_v20  ;;  %v1262_v35 = vld [vmem:[#allocation22 + $0x8] sm:$0xff]  ;;  %v4653_v44 = vpack.c.bf16 %v1270_v43, %v1269_v40  ;;  %v1300_v20 = vld [vmem:[#allocation24 + $0x28] sm:$0xff] }
 0x664   : > { %v2329_v25 = vadd.f32 %v4867_v19, %v3794_v9  ;;  %v1299_v19 = vld [vmem:[#allocation24 + $0x20] sm:$0xff] }
 0x665   : > { %v4625_v27 = vpack.c.bf16 %v2331_v41, %v2330_v21  ;;  %v2328_v28 = vadd.f32 %v4868_v23, %v3794_v9  ;;  %v4725_v41 = vpack.c.bf16 %v1306_v12, %v1305_v11  ;;  %v1307_v21 = vld [vmem:[#allocation25 + $0x20] sm:$0xff]  ;;  %v1308_v23 = vld [vmem:[#allocation25 + $0x28] sm:$0xff] }
 0x666   : > { %v2333_v30 = vmax.f32 %v2329_v25, 0.0  ;;  %v4713_v25 = vpack.c.bf16 %v1300_v20, %v1299_v19  ;;  %v1320_v11 = vld [vmem:[#allocation30] sm:$0xff]  ;;  %v1321_v12 = vld [vmem:[#allocation30 + $0x8] sm:$0xff]  ;;  %v1323_v19 = vld [vmem:[#allocation30 + $0x18] sm:$0xff] }
 0x667   : > { %v2332_v16 = vmax.f32 %v2328_v28, 0.0  ;;  %4626 = vmatprep.subr.bf16.mxu1 %v4625_v27  ;;  %v1301_v28 = vld [vmem:[#allocation24 + $0x30] sm:$0xff] }
 0x668   : > { %4628 = vmatpush3.bf16.msra.mxu1 %v4625_v27  ;;  %v6760_v20 = vld [vmem:[#allocation7 + $0x8] sm:$0xff] }
 0x669   : > { %v4629_v31 = vpack.c.bf16 %v2333_v30, %v2332_v16  ;;  %v1302_v30 = vld [vmem:[#allocation24 + $0x38] sm:$0xff] }
 0x66a   : > { %v4717_v16 = vpack.c.bf16 %v1302_v30, %v1301_v28  ;;  %v1326_v28 = vld [vmem:[#allocation30 + $0x30] sm:$0xff]  ;;  %v1327_v30 = vld [vmem:[#allocation30 + $0x38] sm:$0xff] }
 0x66b   : > { %4630 = vmatprep.subr.bf16.mxu1 %v4629_v31 }
 0x66c   : > { %4632 = vmatpush3.bf16.msra.mxu1 %v4629_v31 }
 0x66d   : > { %4634 = vmatprep.subr.bf16.mxu1 %v4625_v27 }
 0x66f   : > { %4152 = vmatmul.mubr.msk.f32.vlgmr.msra.gmra.mrb[20].mxu1 %vm1653_vm1, %v1260_v24  ;;  %v1310_v24 = vld [vmem:[#allocation25 + $0x38] sm:$0xff] }
 0x670   : > { %4636 = vmatpush3.bf16.msra.mxu1 %v4625_v27  ;;  %4162 = vmatprep.mubr.msk.f32.mxu1 %vm1653_vm1, %v1261_v26  ;;  %v4729_v27 = vpack.c.bf16 %v1308_v23, %v1307_v21  ;;  %v1324_v23 = vld [vmem:[#allocation30 + $0x20] sm:$0xff] }
 0x671   : > { %4638 = vmatprep.subr.bf16.mxu1 %v4629_v31 }
 0x674   : > { %4640 = vmatpush3.bf16.msra.mxu1 %v4629_v31  ;;  %v1309_v31 = vld [vmem:[#allocation25 + $0x30] sm:$0xff] }
 0x675   : > { %4642 = vmatprep.subr.bf16.mxu1 %v4641_v0  ;;  %v4733_v26 = vpack.c.bf16 %v1310_v24, %v1309_v31  ;;  %v1328_v31 = vld [vmem:[#allocation30 + $0x40] sm:$0xff]  ;;  %v1329_v24 = vld [vmem:[#allocation30 + $0x48] sm:$0xff] }
 0x677   : > { %4163 = vmatmul.mubr.msk.f32.vlgmr.msra.gmra.mrb[22].mxu1 %vm1653_vm1, %v1262_v35  ;;  %v1313_v35 = vld [vmem:[#allocation27 + $0x10] sm:$0xff] }
 0x678   : > { %4644 = vmatpush3.bf16.msra.mxu1 %v4641_v0  ;;  %v4737_v0 = vpack.c.bf16 %v1312_v32, %v1311_v29  ;;  %v1330_v29 = vld [vmem:[#allocation30 + $0x50] sm:$0xff]  ;;  %v1331_v32 = vld [vmem:[#allocation30 + $0x58] sm:$0xff] }
 0x679   : > { %4646 = vmatprep.subr.bf16.mxu1 %v4645_v36 }
 0x67c   : > { %4648 = vmatpush3.bf16.msra.mxu1 %v4645_v36  ;;  %v1314_v36 = vld [vmem:[#allocation27 + $0x18] sm:$0xff] }
 0x67d   : > { %4650 = vmatprep.subr.bf16.mxu1 %v4649_v39  ;;  %v4741_v43 = vpack.c.bf16 %v1314_v36, %v1313_v35  ;;  %v1334_v36 = vld [vmem:[#allocation30 + $0x70] sm:$0xff] }
 0x680   : > { %4652 = vmatpush3.bf16.msra.mxu1 %v4649_v39 }
 0x681   : > { %4654 = vmatprep.subr.bf16.mxu1 %v4653_v44 }
 0x684   : > { %4656 = vmatpush3.bf16.msra.mxu1 %v4653_v44  ;;  %v1315_v44 = vld [vmem:[#allocation27 + $0x20] sm:$0xff] }
 0x685   : > { %4658 = vmatprep.subr.bf16.mxu1 %v4657_v48  ;;  %v4745_v47 = vpack.c.bf16 %v1316_v46, %v1315_v44  ;;  %v1352_v44 = vld [vmem:[#allocation33] sm:$0xff]  ;;  %v1353_v46 = vld [vmem:[#allocation33 + $0x8] sm:$0xff] }
 0x688   : > { %4660 = vmatpush3.bf16.msra.mxu1 %v4657_v48  ;;  %v1317_v48 = vld [vmem:[#allocation27 + $0x30] sm:$0xff] }
 0x689   : > { %4662 = vmatprep.subr.bf16.mxu1 %v4661_v53  ;;  %v4749_v51 = vpack.c.bf16 %v1318_v50, %v1317_v48  ;;  %v3809_v48 = vld [vmem:[#allocation28] ss:$0 sm:$0xff] }
 0x68c   : > { %4664 = vmatpush3.bf16.msra.mxu1 %v4661_v53  ;;  %v1336_v53 = vld [vmem:[#allocation31] sm:$0xff] }
 0x68d   : > { %4666 = vmatprep.subr.bf16.mxu1 %v4665_v57  ;;  %v4793_v55 = vpack.c.bf16 %v1337_v54, %v1336_v53 }
 0x690   : > { %4668 = vmatpush3.bf16.msra.mxu1 %v4665_v57  ;;  %v1340_v57 = vld [vmem:[#allocation31 + $0x20] sm:$0xff] }
 0x691   : > { %4670 = vmatprep.subr.bf16.mxu1 %v4669_v8  ;;  %v4801_v49 = vpack.c.bf16 %v1341_v58, %v1340_v57  ;;  %v1356_v58 = vld [vmem:[#allocation33 + $0x20] sm:$0xff] }
 0x694   : > { %4672 = vmatpush3.bf16.msra.mxu1 %v4669_v8  ;;  %v1344_v8 = vld [vmem:[#allocation31 + $0x40] sm:$0xff] }
 0x695   : > { %4706 = vmatprep.subr.bf16.mxu1 %v4705_v63  ;;  %v4809_v22 = vpack.c.bf16 %v1345_v15, %v1344_v8  ;;  %v1360_v15 = vld [vmem:[#allocation33 + $0x40] sm:$0xff] }
 0x742   : > { %v4153_v5 = vpop.f32.mrb[20].mxu1 }
 0x743   : > { %v2406_v6 = vpop.f32.mrb[21].mxu1 }
 0x74a   : > { %v4164_v9 = vpop.f32.mrb[22].mxu1 }
 0x74b   : > { %v2497_v13 = vmax.f32 %v4153_v5, %v4164_v9  ;;  %v2487_v14 = vpop.f32.mrb[23].mxu1  ;;  %v6752_v9 = vld [vmem:[#allocation6 + $0x8] sm:$0xff] }
 0x74c   : > { %v2496_v17 = vmax.f32 %v2406_v6, %v2487_v14 }
 0x74e   : > { %4197 = vmatprep.mubr.f32.mxu1 %v2496_v17  ;;  %4232 = vmatprep.mubr.f32.mxu0 %v2496_v17 }
 0x74f   : > { %4198 = vmatmul.mubr.f32.vlgmr.msra.gmra.mrb[24].mxu1 %v2497_v13  ;;  %4233 = vmatmul.mubr.f32.vlgmr.msra.gmra.mrb[32].mxu0 %v2497_v13 }
 0x750   : > { %4708 = vmatpush3.bf16.msra.mxu1 %v4705_v63  ;;  %4724 = vmatpush3.bf16.msra.mxu0 %v4721_v4  ;;  %v4813_v63 = vpack.c.bf16 %v1347_v62, %v1346_v61  ;;  %v4817_v4 = vpack.c.bf16 %v1349_v3, %v1348_v2  ;;  %v1362_v62 = vld [vmem:[#allocation33 + $0x50] sm:$0xff]  ;;  %v1364_v3 = vld [vmem:[#allocation33 + $0x60] sm:$0xff] }
 0x751   : > { %4710 = vmatprep.subr.bf16.mxu1 %v4709_v18  ;;  %4726 = vmatprep.subr.bf16.mxu0 %v4725_v41 }
 0x754   : > { %4712 = vmatpush3.bf16.msra.mxu1 %v4709_v18  ;;  %4728 = vmatpush3.bf16.msra.mxu0 %v4725_v41  ;;  %v4761_v18 = vpack.c.bf16 %v1321_v12, %v1320_v11  ;;  %v1322_v41 = vld [vmem:[#allocation30 + $0x10] sm:$0xff] }
 0x755   : > { %4714 = vmatprep.subr.bf16.mxu1 %v4713_v25  ;;  %4730 = vmatprep.subr.bf16.mxu0 %v4729_v27  ;;  %v4765_v21 = vpack.c.bf16 %v1323_v19, %v1322_v41  ;;  %v3814_v41 = vld [vmem:[#allocation34] ss:$0 sm:$0xff] }
 0x758   : > { %4716 = vmatpush3.bf16.msra.mxu1 %v4713_v25  ;;  %4732 = vmatpush3.bf16.msra.mxu0 %v4729_v27  ;;  %v1325_v25 = vld [vmem:[#allocation30 + $0x28] sm:$0xff] }
 0x759   : > { %4718 = vmatprep.subr.bf16.mxu1 %v4717_v16  ;;  %4734 = vmatprep.subr.bf16.mxu0 %v4733_v26  ;;  %v4769_v27 = vpack.c.bf16 %v1325_v25, %v1324_v23 }
 0x75c   : > { %4720 = vmatpush3.bf16.msra.mxu1 %v4717_v16  ;;  %4736 = vmatpush3.bf16.msra.mxu0 %v4733_v26  ;;  %v4773_v16 = vpack.c.bf16 %v1327_v30, %v1326_v28  ;;  %v4777_v26 = vpack.c.bf16 %v1329_v24, %v1328_v31 }
 0x75d   : > { %4738 = vmatprep.subr.bf16.mxu1 %v4737_v0 }
 0x822   : > { %v4199_v33 = vpop.f32.mrb[24].mxu1  ;;  %v4234_v34 = vpop.f32.mrb[32].mxu0 }
 0x823   : > { %v2649_v37 = vmax.f32 %v4199_v33, %v4234_v34  ;;  %v2564_v38 = vpop.f32.mrb[25].mxu1  ;;  %v2639_v39 = vpop.f32.mrb[33].mxu0  ;;  %v1332_v33 = vld [vmem:[#allocation30 + $0x60] sm:$0xff]  ;;  %v1333_v34 = vld [vmem:[#allocation30 + $0x68] sm:$0xff] }
 0x824   : > { %v2648_v40 = vmax.f32 %v2564_v38, %v2639_v39  ;;  %v4785_v35 = vpack.c.bf16 %v1333_v34, %v1332_v33  ;;  %v1350_v39 = vld [vmem:[#allocation31 + $0x70] sm:$0xff] }
 0x826   : > { %4251 = vmatprep.mubr.msk.f32.mxu1 %vm2650_vm2, %v2648_v40  ;;  %4270 = vmatprep.mubr.msk.f32.mxu0 %vm2650_vm2, %v2648_v40 }
 0x827   : > { %4252 = vmatmul.mubr.msk.f32.vlgmr.msra.gmra.mrb[26].mxu1 %vm2650_vm2, %v2649_v37  ;;  %4271 = vmatmul.mubr.msk.f32.vlgmr.msra.gmra.mrb[34].mxu0 %vm2650_vm2, %v2649_v37 }
 0x828   : > { %4740 = vmatpush3.bf16.msra.mxu1 %v4737_v0  ;;  %4289 = vmatprep.mubr.msk.f32.mxu1 %vm2650_vm2, %v2648_v40  ;;  %v4781_v0 = vpack.c.bf16 %v1331_v32, %v1330_v29  ;;  %v1351_v40 = vld [vmem:[#allocation31 + $0x78] sm:$0xff] }
 0x829   : > { %4742 = vmatprep.subr.bf16.mxu1 %v4741_v43  ;;  %4296 = vmatprep.mubr.msk.f32.mxu0 %vm2882_vm3, %v6748_v52 }
 0x82c   : > { %4744 = vmatpush3.bf16.msra.mxu1 %v4741_v43  ;;  %v4821_v43 = vpack.c.bf16 %v1351_v40, %v1350_v39 }
 0x82d   : > { %4746 = vmatprep.subr.bf16.mxu1 %v4745_v47 }
 0x830   : > { %4748 = vmatpush3.bf16.msra.mxu1 %v4745_v47  ;;  %v4825_v47 = vpack.c.bf16 %v1353_v46, %v1352_v44 }
 0x831   : > { %4750 = vmatprep.subr.bf16.mxu1 %v4749_v51 }
 0x834   : > { %4752 = vmatpush3.bf16.msra.mxu1 %v4749_v51 }
 0x835   : > { %4794 = vmatprep.subr.bf16.mxu1 %v4793_v55 }
 0x837   : > { %4290 = vmatmul.mubr.msk.f32.vlgmr.msra.gmra.mrb[28].mxu1 %vm2650_vm2, %v2649_v37  ;;  %v1335_v37 = vld [vmem:[#allocation30 + $0x78] sm:$0xff] }
 0x838   : > { %4796 = vmatpush3.bf16.msra.mxu1 %v4793_v55  ;;  %v4789_v38 = vpack.c.bf16 %v1335_v37, %v1334_v36  ;;  %v1354_v55 = vld [vmem:[#allocation33 + $0x10] sm:$0xff] }
 0x839   : > { %4798 = vmatprep.subr.bf16.mxu1 %v4797_v45  ;;  %v4829_v57 = vpack.c.bf16 %v1355_v56, %v1354_v55 }
 0x83c   : > { %4800 = vmatpush3.bf16.msra.mxu1 %v4797_v45 }
 0x83d   : > { %4802 = vmatprep.subr.bf16.mxu1 %v4801_v49 }
 0x840   : > { %4804 = vmatpush3.bf16.msra.mxu1 %v4801_v49  ;;  %v1357_v49 = vld [vmem:[#allocation33 + $0x28] sm:$0xff] }
 0x841   : > { %4806 = vmatprep.subr.bf16.mxu1 %v4805_v60  ;;  %v4833_v1 = vpack.c.bf16 %v1357_v49, %v1356_v58 }
 0x844   : > { %4808 = vmatpush3.bf16.msra.mxu1 %v4805_v60  ;;  %v1359_v60 = vld [vmem:[#allocation33 + $0x38] sm:$0xff] }
 0x845   : > { %4810 = vmatprep.subr.bf16.mxu1 %v4809_v22  ;;  %v4837_v8 = vpack.c.bf16 %v1359_v60, %v1358_v59 }
 0x848   : > { %4812 = vmatpush3.bf16.msra.mxu1 %v4809_v22  ;;  %v1361_v22 = vld [vmem:[#allocation33 + $0x48] sm:$0xff] }
 0x849   : > { %4814 = vmatprep.subr.bf16.mxu1 %v4813_v63  ;;  %v4841_v61 = vpack.c.bf16 %v1361_v22, %v1360_v15 }
 0x84c   : > { %4816 = vmatpush3.bf16.msra.mxu1 %v4813_v63  ;;  %v1363_v63 = vld [vmem:[#allocation33 + $0x58] sm:$0xff] }
 0x84d   : > { %4818 = vmatprep.subr.bf16.mxu1 %v4817_v4  ;;  %v4845_v2 = vpack.c.bf16 %v1363_v63, %v1362_v62 }
 0x850   : > { %4820 = vmatpush3.bf16.msra.mxu1 %v4817_v4  ;;  %v1365_v4 = vld [vmem:[#allocation33 + $0x68] sm:$0xff] }
 0x851   : > { %4822 = vmatprep.subr.bf16.mxu1 %v4821_v43 }
 0x854   : > { %4824 = vmatpush3.bf16.msra.mxu1 %v4821_v43 }
 0x8fa   : > { %v4253_v5 = vpop.f32.mrb[26].mxu1 }
 0x8fb   : > { %v2723_v6 = vpop.f32.mrb[27].mxu1 }
 0x8fc   : > { %v4753_v7 = vpack.c.bf16 %v4253_v5, %v2723_v6  ;;  %v1366_v5 = vld [vmem:[#allocation33 + $0x70] sm:$0xff]  ;;  %v1367_v6 = vld [vmem:[#allocation33 + $0x78] sm:$0xff] }
 0x8fe   : > { %4754 = vmatprep.subr.bf16.mxu0 %v4753_v7 }
 0x8ff   : > { %4756 = vmatpush3.bf16.msra.mxu0 %v4753_v7  ;;  %v4853_v7 = vpack.c.bf16 %v1367_v6, %v1366_v5 }
 0x902   : > { %4297 = vmatmul.mubr.msk.f32.vlgmr.msra.gmra.mrb[34].mxu0 %vm2882_vm3, %v6752_v9 }
 0x903   : > { %4303 = vmatprep.mubr.msk.f32.mxu0 %vm2882_vm3, %v6754_v10 }
 0x90a   : > { %v4291_v13 = vpop.f32.mrb[28].mxu1 }
 0x90b   : > { %v2873_v14 = vpop.f32.mrb[29].mxu1 }
 0x90c   : > { %v4757_v17 = vpack.c.bf16 %v4291_v13, %v2873_v14 }
 0x90e   : > { %4758 = vmatprep.subr.bf16.mxu0 %v4757_v17 }
 0x90f   : > { %4760 = vmatpush3.bf16.msra.mxu0 %v4757_v17 }
 0x910   : > { %4762 = vmatprep.subr.bf16.mxu0 %v4761_v18 }
 0x912   : > { %4304 = vmatmul.mubr.msk.f32.vlgmr.msra.gmra.mrb[34].mxu0 %vm2882_vm3, %v6760_v20 }
 0x913   : > { %4764 = vmatpush3.bf16.msra.mxu0 %v4761_v18 }
 0x914   : > { %4766 = vmatprep.subr.bf16.mxu0 %v4765_v21 }
 0x917   : > { %4768 = vmatpush3.bf16.msra.mxu0 %v4765_v21 }
 0x918   : > { %4770 = vmatprep.subr.bf16.mxu0 %v4769_v27 }
 0x91b   : > { %4772 = vmatpush3.bf16.msra.mxu0 %v4769_v27 }
 0x91c   : > { %4774 = vmatprep.subr.bf16.mxu0 %v4773_v16 }
 0x91f   : > { %4776 = vmatpush3.bf16.msra.mxu0 %v4773_v16 }
 0x920   : > { %4778 = vmatprep.subr.bf16.mxu0 %v4777_v26 }
 0x923   : > { %4780 = vmatpush3.bf16.msra.mxu0 %v4777_v26 }
 0x924   : > { %4782 = vmatprep.subr.bf16.mxu0 %v4781_v0 }
 0x927   : > { %4784 = vmatpush3.bf16.msra.mxu0 %v4781_v0 }
 0x928   : > { %4786 = vmatprep.subr.bf16.mxu0 %v4785_v35 }
 0x92b   : > { %4788 = vmatpush3.bf16.msra.mxu0 %v4785_v35 }
 0x92c   : > { %4790 = vmatprep.subr.bf16.mxu0 %v4789_v38 }
 0x92f   : > { %4792 = vmatpush3.bf16.msra.mxu0 %v4789_v38 }
 0x930   : > { %4826 = vmatprep.subr.bf16.mxu0 %v4825_v47 }
 0x9e5   : > { %v4305_v50 = vpop.f32.mrb[34].mxu0 }
 0x9e6   : > { %v3054_v51 = vadd.f32 %v4305_v50, %v3809_v48  ;;  %v3036_v53 = vpop.f32.mrb[35].mxu0 }
 0x9e7   : > { %v3053_v54 = vadd.f32 %v3809_v48, %v3036_v53 }
 0x9e8   : > { %v3056_v45 = vmax.f32 %v3054_v51, 0.0 }
 0x9e9   : > { %v3055_v42 = vmax.f32 %v3053_v54, 0.0 }
 0x9eb   : > { %4338 = vmatprep.mubr.f32.mxu0 %v3055_v42  ;;  %4373 = vmatprep.mubr.f32.mxu1 %v3055_v42 }
 0x9ec   : > { %4339 = vmatmul.mubr.f32.vlgmr.msra.gmra.mrb[36].mxu0 %v3056_v45  ;;  %4374 = vmatmul.mubr.f32.vlgmr.msra.gmra.mrb[30].mxu1 %v3056_v45 }
 0x9ed   : > { %4828 = vmatpush3.bf16.msra.mxu0 %v4825_v47  ;;  %4408 = vmatprep.mubr.f32.mxu0 %v3055_v42 }
 0x9ee   : > { %4830 = vmatprep.subr.bf16.mxu0 %v4829_v57  ;;  %4415 = vmatprep.mubr.msk.f32.mxu1 %vm2882_vm3, %v6748_v52  ;;  %v4849_v52 = vpack.c.bf16 %v1365_v4, %v1364_v3 }
 0x9f1   : > { %4832 = vmatpush3.bf16.msra.mxu0 %v4829_v57 }
 0x9f2   : > { %4834 = vmatprep.subr.bf16.mxu0 %v4833_v1 }
 0x9f5   : > { %4836 = vmatpush3.bf16.msra.mxu0 %v4833_v1 }
 0x9f6   : > { %4838 = vmatprep.subr.bf16.mxu0 %v4837_v8 }
 0x9f9   : > { %4840 = vmatpush3.bf16.msra.mxu0 %v4837_v8 }
 0x9fa   : > { %4842 = vmatprep.subr.bf16.mxu0 %v4841_v61 }
 0x9fd   : > { %4844 = vmatpush3.bf16.msra.mxu0 %v4841_v61 }
 0x9fe   : > { %4846 = vmatprep.subr.bf16.mxu0 %v4845_v2 }
 0xa01   : > { %4848 = vmatpush3.bf16.msra.mxu0 %v4845_v2 }
 0xa02   : > { %4850 = vmatprep.subr.bf16.mxu0 %v4849_v52 }
 0xa05   : > { %4852 = vmatpush3.bf16.msra.mxu0 %v4849_v52 }
 0xa06   : > { %4854 = vmatprep.subr.bf16.mxu0 %v4853_v7 }
 0xa09   : > { %4856 = vmatpush3.bf16.msra.mxu0 %v4853_v7 }
 0xa0c   : > { %4409 = vmatmul.mubr.f32.vlgmr.msra.gmra.mrb[38].mxu0 %v3056_v45 }
 0xabf   : > { %v4340_v11 = vpop.f32.mrb[36].mxu0 }
 0xac0   : > { %v3123_v12 = vpop.f32.mrb[37].mxu0 }
 0xac1   : > { %v4857_v13 = vpack.c.bf16 %v4340_v11, %v3123_v12 }
 0xac3   : > { %4858 = vmatprep.subr.bf16.mxu1 %v4857_v13 }
 0xac4   : > { %4860 = vmatpush3.bf16.msra.mxu1 %v4857_v13 }
 0xac7   : > { %4416 = vmatmul.mubr.msk.f32.vlgmr.msra.gmra.mrb[30].mxu1 %vm2882_vm3, %v6752_v9 }
 0xac8   : > { %4422 = vmatprep.mubr.msk.f32.mxu1 %vm2882_vm3, %v6754_v10 }
 0xadf   : > { %v4410_v14 = vpop.f32.mrb[38].mxu0 }
 0xae0   : > { %v3273_v17 = vpop.f32.mrb[39].mxu0 }
 0xae1   : > { %v4861_v18 = vpack.c.bf16 %v4410_v14, %v3273_v17 }
 0xae3   : > { %4862 = vmatprep.subr.bf16.mxu1 %v4861_v18 }
 0xae4   : > { %4864 = vmatpush3.bf16.msra.mxu1 %v4861_v18 }
 0xae7   : > { %4423 = vmatmul.mubr.msk.f32.vlgmr.msra.gmra.mrb[30].mxu1 %vm2882_vm3, %v6760_v20 }
 0xbba   : > { %v4424_v19 = vpop.f32.mrb[30].mxu1 }
 0xbbb   : > { %v3441_v21 = vadd.f32 %v4424_v19, %v3814_v41  ;;  %v3423_v23 = vpop.f32.mrb[31].mxu1 }
 0xbbc   : > { %v3440_v9 = vadd.f32 %v3814_v41, %v3423_v23 }
 0xbbd   : > { %v3443_v25 = vmax.f32 %v3441_v21, 0.0 }
 0xbbe   : > { %v3442_v10 = vmax.f32 %v3440_v9, 0.0 }
 0xbbf   : > { %3445 = vst [vmem:[%s1076_s9 + $0x8] sm:$0xff] %v3443_v25 }
 0xbc0   : > { %3444 = vst [vmem:[%s1076_s9] sm:$0xff] %v3442_v10 }
 0xbc1 PF: > { %s6909_s16 = sld [smem:[#allocation48_spill]] }
 0xbc7   : > { %s47_s29 = sadd.s32 1, %s6909_s16  }
 0xbc8   : > { %p44_p9 = scmp.ge.s32.totalorder %s47_s29, 4  }
 0xbca   :  { %46 = sbr.rel (!%p44_p9) target bundleno = 31 (0x1f), region = 239 }
 0xbd1   :  { %3467 = vsyncpa [#allocation3], 1 }
 0xbd2   :  { %3469 = vsyncpa [#allocation3 + $0x1], 1 }
 0xbd3   :  { %3470 = vsyncpa [#allocation5], 1 }
 0xbd4   :  { %3471 = vsyncpa [#allocation8], 1 }
 0xbd5   :  { %3472 = vsyncpa [#allocation11], 1 }
 0xbd6   :  { %3473 = vsyncpa [#allocation14], 1 }
 0xbd7   :  { %3474 = vsyncpa [#allocation17], 1 }
 0xbd8   :  { %3475 = vsyncpa [#allocation20], 1 }
 0xbd9   :  { %3476 = vsyncpa [#allocation23], 1 }
 0xbda   :  { %3477 = vsyncpa [#allocation26], 1 }
 0xbdb   :  { %3478 = vsyncpa [#allocation29], 1 }
 0xbdc   :  { %3479 = vsyncpa [#allocation32], 1 }
 0xbdd   :  { %3480 = vsyncpa [#allocation35], 1 }

// kernel: net1_forward.3
= control target key start
LH: loop header
LB: loop body
LE: loop exit
PB: predicated region body
PF: predicated region fallthrough
CT: control target
= control target key end

     0   :  { %8 = vsyncpa [#allocation3], 0  ;;  %s10813_s0 = inlined_call_operand.vmem [shape: f32[2,2048], index: 0, kind: input, shape index: {}]   ;;  %s10814_s1 = inlined_call_operand.hbm [shape: bf16[2048,3072], index: 1, kind: input, shape index: {}]   ;;  %s10815_s2 = inlined_call_operand.hbm [shape: f32[1,3072], index: 2, kind: input, shape index: {}]   ;;  %s10816_s3 = inlined_call_operand.hbm [shape: f32[2,3072], index: 3, kind: output, shape index: {}]  }
   0x1   :  { %10 = vsyncpa [#allocation3 + $0x1], 0 }
   0x2   :  { %11 = vsyncpa [#allocation6], 0 }
   0x3   :  { %13 = vsyncpa [#allocation6 + $0x1], 0 }
   0x4   :  { %14 = vsyncpa [#allocation4], 0 }
   0x5   :  { %16 = vsyncpa [#allocation4 + $0x1], 0  ;;  %s9374_s12 = smov 0   ;;  %s9376_s13 = smov 0  }
   0x6   :  { %s9378_s14 = smov 0   ;;  %s9380_s15 = smov 0  }
   0x7 LB: > { %s9395_s16 = sadd.s32 4294967295, %s9345_s15   ;;  %s7990_s17 = sadd.s32 4294967294, %s9345_s15   ;;  %s9345_s15 = sphi %s9380_s15, %s10833_s15   ;;  %s9341_s14 = sphi %s9378_s14, %s10832_s14   ;;  %s9337_s13 = sphi %s9376_s13, %s10831_s13   ;;  %s9333_s12 = sphi %s9374_s12, %s10830_s12  }
   0x8   : > { %s9399_s18 = sadd.s32 1, %s9345_s15   ;;  %s50_s19 = sadd.s32 1, %s9341_s14 }
   0x9   : > { %s47_s20 = ssub.s32 %s9345_s15, %s9399_s18  ;;  %p57_p0 = scmp.ne.s32.totalorder %s9341_s14, %s9337_s13 }
   0xa   : > { %p48_p1 = scmp.eq.s32.totalorder %s47_s20, 0  ;;  %p58_p2 = scmp.eq.s32.totalorder %s9345_s15, 0 }
   0xb   : > { %p63_p3 = scmp.ne.s32.totalorder %s9337_s13, %s9333_s12  ;;  %p64_p4 = scmp.eq.s32.totalorder %s9395_s16, 0 }
   0xc   : > { %s9411_s21 = scalar_select %p48_p1, %s9341_s14, %s50_s19  }
   0xd   : > { %p9413_p5 = por %p58_p2, %p57_p0  ;;  %p9417_p6 = por %p64_p4, %p63_p3 }
   0xe   : > { %p113_p7 = scmp.eq.s32.totalorder %s9395_s16, 2  ;;  %p119_p8 = scmp.eq.s32.totalorder %s7990_s17, 2 }
   0xf   : > { %s10820_s23 = scalar_select %p9417_p6, 1, 0 }
  0x10   : > { %p9172_p9 = scmp.lt.s32.totalorder %s9345_s15, 3  ;;  %p9423_p10 = por %p113_p7, %p57_p0 }
  0x11   : > { %p9427_p11 = por %p119_p8, %p63_p3  ;;  %s9432_s26 = sand.u32 1, %s9341_s14  }
  0x12   : > { %s10821_s24 = scalar_select %p9423_p10, 1, 0 }
  0x13   : > { %s10822_s25 = scalar_select %p9427_p11, 1, 0 }
  0x14   : > { %s9032_s27 = sshll.u32 %s9345_s15, 9  ;;  %s7993_s28 = sshll.u32 %s9432_s26, 13 }
  0x15   : > { %s9439_s4 = scalar_lea.hbm %s10814_s1, %s9032_s27  ;;  %s146_s5 = scalar_lea.vmem [#allocation2], %s7993_s28 }
  0x16   : > { %s153_s6 = sshll.u32 %s146_s5, 4  ;;  %p9443_p12 = pnand %p9172_p9, %p9413_p5  ;;  %s9447_s6 = int_to_ptr.vmem [resolvable:$true] %s153_s6 }
  0x17   : > { %s143_s8 = scalar_lea.sflag [#allocation3], %s9432_s26  ;;  %s9215_s9 = scalar_lea.hbm %s9439_s4, 131072 }
  0x18   : > { %p9216_p0 = scmp.ne.s32.totalorder %s9439_s4, %s9215_s9  ;;  %p9217_p1 = pneg %p9443_p12 }
  0x19   : > { %s9220_s17 = scalar_lea.hbm %s10814_s1, 393216  ;;  %p9221_p4 = scmp.lt.u32.totalorder %s9439_s4, %s10814_s1 }
  0x1a   : > { %p9218_p2 = pnand %p9217_p1, %p9216_p0  ;;  %p9222_p5 = scmp.lt.u32.totalorder %s9220_s17, %s9215_s9 }
  0x1b   : > { %p9224_p8 = scmp.lt.u32.totalorder %s9215_s9, %s9439_s4 }
  0x1c   : > { %p9219_p3 = pneg %p9218_p2  ;;  %p9223_p7 = por %p9222_p5, %p9221_p4 }
  0x1e   : > { %p9225_p9 = por %p9224_p8, %p9223_p7 }
  0x20   : > { %p9226_p13 = pnand %p9225_p9, %p9219_p3 }
  0x22   : > { %9229 = shalt.err (!%p9226_p13)
}
  0x23   : > { %s9230_s22 = scalar_lea.vmem %s9447_s6, 131072  ;;  %s9347_s27 = smov [#allocation2]  }
  0x24   : > { %p9231_p0 = scmp.ne.s32.totalorder %s9447_s6, %s9230_s22  ;;  %s9235_s28 = sshll.u32 %s9347_s27, 4  ;;  %s9236_s28 = int_to_ptr.vmem [resolvable:$false] %s9235_s28 }
  0x25   : > { %s9237_s29 = scalar_lea.vmem %s9236_s28, 262144  ;;  %p9238_p10 = scmp.lt.s32.totalorder %s9447_s6, %s9236_s28 }
  0x26   : > { %p9233_p2 = pnand %p9231_p0, %p9217_p1  ;;  %p9239_p4 = scmp.lt.s32.totalorder %s9237_s29, %s9230_s22 }
  0x28   : > { %p9234_p11 = pneg %p9233_p2  ;;  %p9240_p5 = por %p9239_p4, %p9238_p10 }
  0x2a   : > { %p9241_p7 = pnand %p9240_p5, %p9234_p11 }
  0x2c   : > { %9244 = shalt.err (!%p9241_p7)
}
  0x2d   : > { %s9348_s30 = smov 1536   ;;  %s9349_s5 = smov 512  }
  0x2e   : > { %s9350_s9 = smov 32   ;;  %p180_p13 = scmp.lt.s32.totalorder %s9345_s15, 4 }
  0x2f   : > { %9164 = dma.hbm_to_vmem [thread:$0]  (!%p9443_p12), %s9439_s4, 131072, %s9447_s6, %s143_s8, %s9348_s30, %s9349_s5, %s9350_s9  }
  0x30   : > { %s7996_s10 = sshll.u32 %s9432_s26, 3  ;;  %s9033_s11 = sshll.u32 %s9345_s15, 7 }
  0x31   : > { %p10824_p10 = scmp.ge.s32.totalorder %s9345_s15, 1  ;;  %s9490_s22 = scalar_lea.hbm %s10815_s2, %s9033_s11 }
  0x32   : > { %s167_s27 = scalar_lea.vmem [#allocation5], %s7996_s10  ;;  %s164_s4 = scalar_lea.sflag [#allocation6], %s9432_s26 }
  0x33   : > { %p9483_p11 = pnand %p10824_p10, %p180_p13  ;;  %s175_s28 = sshll.u32 %s167_s27, 4  ;;  %s176_s28 = int_to_ptr.vmem [resolvable:$true] %s175_s28 }
  0x34   : > { %s9245_s6 = scalar_lea.hbm %s9490_s22, 128  ;;  %s9250_s30 = scalar_lea.hbm %s10815_s2, 384 }
  0x35   : > { %s10825_s17 = scalar_select %p9483_p11, 1, 0 }
  0x36   : > { %p9246_p3 = scmp.ne.s32.totalorder %s9490_s22, %s9245_s6  ;;  %p9251_p0 = scmp.lt.u32.totalorder %s9490_s22, %s10815_s2 }
  0x37   : > { %p9252_p2 = scmp.lt.u32.totalorder %s9250_s30, %s9245_s6  ;;  %p9254_p5 = scmp.lt.u32.totalorder %s9245_s6, %s9490_s22 }
  0x38   : > { %p9248_p8 = pnand %p9246_p3, %p9217_p1 }
  0x39   : > { %p9253_p4 = por %p9252_p2, %p9251_p0 }
  0x3a   : > { %p9249_p9 = pneg %p9248_p8 }
  0x3b   : > { %p9255_p7 = por %p9254_p5, %p9253_p4 }
  0x3d   : > { %p9256_p13 = pnand %p9255_p7, %p9249_p9 }
  0x3f   : > { %9259 = shalt.err (!%p9256_p13)
}
  0x40   : > { %s9260_s26 = scalar_lea.vmem %s176_s28, 128  ;;  %s9351_s10 = smov [#allocation5]  }
  0x41   : > { %p9261_p10 = scmp.ne.s32.totalorder %s176_s28, %s9260_s26  ;;  %s9265_s11 = sshll.u32 %s9351_s10, 4  ;;  %s9266_s11 = int_to_ptr.vmem [resolvable:$false] %s9265_s11 }
  0x42   : > { %s9267_s19 = scalar_lea.vmem %s9266_s11, 256  ;;  %p9268_p6 = scmp.lt.s32.totalorder %s176_s28, %s9266_s11 }
  0x43   : > { %p9263_p3 = pnand %p9261_p10, %p9217_p1  ;;  %p9269_p11 = scmp.lt.s32.totalorder %s9267_s19, %s9260_s26 }
  0x45   : > { %p9264_p8 = pneg %p9263_p3  ;;  %p9270_p0 = por %p9269_p11, %p9268_p6 }
  0x47   : > { %p9271_p2 = pnand %p9270_p0, %p9264_p8 }
  0x49   : > { %9274 = shalt.err (!%p9271_p2)
}
  0x4a   : > { %9167 = dma.hbm_to_vmem [thread:$0]  (!%p9443_p12), %s9490_s22, 128, %s176_s28, %s164_s4  }
  0x4b   : > { %p10826_p9 = scmp.ne.s32.totalorder %s10825_s17, 0 }
  0x4c   : > { %s9515_s20 = sand.u32 (!%p10826_p9), 1, %s9337_s13   ;;  %p10827_p6 = scmp.ne.s32.totalorder (!%p10826_p9), %s10820_s23, 0 }
  0x4d   : > { %184 = sbr.rel (%p10826_p9) target bundleno = 1351 (0x547), region = 32  ;;  %s8000_s27 = sshll.u32 (!%p10826_p9), %s9515_s20, 13 }
  0x4e   : > { %s187_s6 = scalar_lea.sflag (!%p10826_p9), [#allocation3], %s9515_s20  ;;  %s9519_s8 = scalar_lea.vmem (!%p10826_p9), [#allocation2], %s8000_s27 }
  0x54   : > { %9320 = dma.done.wait (%p10827_p6), %s187_s6, 131072  }
  0x55   : > { %9322 = vsyncadd (%p10827_p6), %s187_s6, 4294836224  ;;  %s8001_s7 = sshll.u32 %s9515_s20, 3  ;;  %s196_s17 = scalar_lea.sflag [#allocation6], %s9515_s20 }
  0x56   : > { %s9527_s22 = scalar_lea.vmem [#allocation5], %s8001_s7 }
  0x57   : > { %9324 = dma.done.wait (%p10827_p6), %s196_s17, 128  }
  0x58   : > { %9326 = vsyncadd (%p10827_p6), %s196_s17, 4294967168  ;;  %v338_v0 = vld [vmem:[%s9519_s8] sm:$0xff]  ;;  %v339_v2 = vld [vmem:[%s9519_s8 + $0x8] sm:$0xff]  ;;  %v9352_v32 = vmov 1983009808   ;;  %v242_v34 = vlaneseq  ;;  %s8002_s10 = sshll.u32 %s9515_s20, 4 }
  0x59   : > { %v342_v1 = vld [vmem:[%s9519_s8 + $0x20] sm:$0xff]  ;;  %v343_v4 = vld [vmem:[%s9519_s8 + $0x28] sm:$0xff]  ;;  %v240_v33 = vunpack.c.l.s4 %v9352_v32  ;;  %s10456_s11 = scalar_lea.vmem [#allocation7], %s8002_s10  ;;  %s9034_s19 = sshll.u32 %s9395_s16, 8 }
  0x5a   : > { %v8004_v3 = vcombine.high %v338_v0, %v342_v1  ;;  %v8003_v5 = vcombine.low %v338_v0, %v342_v1  ;;  %v346_v6 = vld [vmem:[%s9519_s8 + $0x40] sm:$0xff]  ;;  %v8006_v8 = vcombine.high %v339_v2, %v343_v4  ;;  %v8005_v9 = vcombine.low %v339_v2, %v343_v4  ;;  %v347_v11 = vld [vmem:[%s9519_s8 + $0x48] sm:$0xff]  ;;  %s7897_s27 = sshll.u32 %s10456_s11, 4  ;;  %s10769_s7 = scalar_lea.hbm %s10816_s3, %s9034_s19  ;;  %s10771_s27 = int_to_ptr.vmem [resolvable:$true] %s7897_s27 }
  0x5b   : > { %v350_v7 = vld [vmem:[%s9519_s8 + $0x60] sm:$0xff]  ;;  %v351_v12 = vld [vmem:[%s9519_s8 + $0x68] sm:$0xff]  ;;  %v241_v43 = vunpack.c.0.s8 %v240_v33  ;;  %v9555_v44 = vshrl.u32 %v242_v34, 7  ;;  %s7883_s17 = scalar_lea.sflag [#allocation4], %s9515_s20  ;;  %p10828_p1 = scmp.ne.s32.totalorder %s10821_s24, 0 }
  0x5c   : > { %v8012_v10 = vcombine.high %v346_v6, %v350_v7  ;;  %v354_v13 = vld [vmem:[%s9519_s8 + $0x80] sm:$0xff]  ;;  %6524 = vmatprep.subr.bf16.mxu0 %v8004_v3  ;;  %v8014_v14 = vcombine.high %v347_v11, %v351_v12  ;;  %v355_v16 = vld [vmem:[%s9519_s8 + $0x88] sm:$0xff]  ;;  %6852 = vmatprep.subr.bf16.mxu1 %v8006_v8  ;;  %v8011_v18 = vcombine.low %v346_v6, %v350_v7  ;;  %s9353_s16 = smov [#allocation7]  }
  0x5d   : > { %v358_v15 = vld [vmem:[%s9519_s8 + $0xa0] sm:$0xff]  ;;  %v359_v17 = vld [vmem:[%s9519_s8 + $0xa8] sm:$0xff]  ;;  %6525 = vmatpush1.bf16.msra.mxu0 %v8003_v5  ;;  %6853 = vmatpush1.bf16.msra.mxu1 %v8005_v9  ;;  %v8013_v19 = vcombine.low %v347_v11, %v351_v12  ;;  %v9562_v53 = vsub.s32 %v241_v43, %v9555_v44  ;;  %s9279_s23 = sshll.u32 %s9353_s16, 4  ;;  %s9280_s23 = int_to_ptr.vmem [resolvable:$false] %s9279_s23 }
  0x5e   : > { %6526 = vmatprep.subr.bf16.mxu0 %v8012_v10  ;;  %v8020_v20 = vcombine.high %v354_v13, %v358_v15  ;;  %6854 = vmatprep.subr.bf16.mxu1 %v8014_v14  ;;  %v8022_v21 = vcombine.high %v355_v16, %v359_v17  ;;  %v362_v22 = vld [vmem:[%s9519_s8 + $0xc0] sm:$0xff]  ;;  %v363_v24 = vld [vmem:[%s9519_s8 + $0xc8] sm:$0xff]  ;;  %v8019_v26 = vcombine.low %v354_v13, %v358_v15  ;;  %s9281_s28 = scalar_lea.vmem %s9280_s23, 512  ;;  %p9282_p5 = scmp.lt.s32.totalorder %s10771_s27, %s9280_s23 }
  0x5f   : > { %v366_v23 = vld [vmem:[%s9519_s8 + $0xe0] sm:$0xff]  ;;  %v367_v25 = vld [vmem:[%s9519_s8 + $0xe8] sm:$0xff]  ;;  %v8021_v27 = vcombine.low %v355_v16, %v359_v17 }
  0x60   : > { %v8028_v28 = vcombine.high %v362_v22, %v366_v23  ;;  %v8030_v29 = vcombine.high %v363_v24, %v367_v25  ;;  %v370_v30 = vld [vmem:[%s9519_s8 + $0x100] sm:$0xff]  ;;  %v371_v35 = vld [vmem:[%s9519_s8 + $0x108] sm:$0xff]  ;;  %v8027_v37 = vcombine.low %v362_v22, %v366_v23  ;;  %v8029_v38 = vcombine.low %v363_v24, %v367_v25 }
  0x61   : > { %6527 = vmatpush1.bf16.msra.mxu0 %v8011_v18  ;;  %6855 = vmatpush1.bf16.msra.mxu1 %v8013_v19  ;;  %v374_v31 = vld [vmem:[%s9519_s8 + $0x120] sm:$0xff]  ;;  %v375_v36 = vld [vmem:[%s9519_s8 + $0x128] sm:$0xff] }
  0x62   : > { %6528 = vmatprep.subr.bf16.mxu0 %v8020_v20  ;;  %6856 = vmatprep.subr.bf16.mxu1 %v8022_v21  ;;  %v8036_v39 = vcombine.high %v370_v30, %v374_v31  ;;  %v8038_v40 = vcombine.high %v371_v35, %v375_v36  ;;  %v378_v41 = vld [vmem:[%s9519_s8 + $0x140] sm:$0xff]  ;;  %v379_v45 = vld [vmem:[%s9519_s8 + $0x148] sm:$0xff]  ;;  %v8035_v47 = vcombine.low %v370_v30, %v374_v31 }
  0x63   : > { %v382_v42 = vld [vmem:[%s9519_s8 + $0x160] sm:$0xff]  ;;  %v383_v46 = vld [vmem:[%s9519_s8 + $0x168] sm:$0xff]  ;;  %v8037_v48 = vcombine.low %v371_v35, %v375_v36 }
  0x64   : > { %v8044_v49 = vcombine.high %v378_v41, %v382_v42  ;;  %v8046_v50 = vcombine.high %v379_v45, %v383_v46  ;;  %v386_v51 = vld [vmem:[%s9519_s8 + $0x180] sm:$0xff]  ;;  %v387_v54 = vld [vmem:[%s9519_s8 + $0x188] sm:$0xff]  ;;  %v8043_v56 = vcombine.low %v378_v41, %v382_v42  ;;  %v8045_v57 = vcombine.low %v379_v45, %v383_v46 }
  0x65   : > { %6529 = vmatpush1.bf16.msra.mxu0 %v8019_v26  ;;  %6857 = vmatpush1.bf16.msra.mxu1 %v8021_v27  ;;  %v390_v52 = vld [vmem:[%s9519_s8 + $0x1a0] sm:$0xff]  ;;  %v391_v55 = vld [vmem:[%s9519_s8 + $0x1a8] sm:$0xff] }
  0x66   : > { %6530 = vmatprep.subr.bf16.mxu0 %v8028_v28  ;;  %6858 = vmatprep.subr.bf16.mxu1 %v8030_v29  ;;  %v8052_v58 = vcombine.high %v386_v51, %v390_v52  ;;  %v9569_v59 = vld [vmem:[%s10813_s0] sm:$0xff]  ;;  %v8054_v60 = vcombine.high %v387_v54, %v391_v55  ;;  %v395_v0 = vld [vmem:[%s9519_s8 + $0x1c8] sm:$0xff]  ;;  %v8051_v2 = vcombine.low %v386_v51, %v390_v52 }
  0x67   : > { %v394_v61 = vld [vmem:[%s9519_s8 + $0x1c0] sm:$0xff]  ;;  %v9575_v63 = vrot.slane %v9569_v59, %v9562_v53  ;;  %v399_v1 = vld [vmem:[%s9519_s8 + $0x1e8] sm:$0xff]  ;;  %v8053_v4 = vcombine.low %v387_v54, %v391_v55 }
  0x68   : > { %v398_v62 = vld [vmem:[%s9519_s8 + $0x1e0] sm:$0xff]  ;;  %v8062_v6 = vcombine.high %v395_v0, %v399_v1  ;;  %v403_v10 = vld [vmem:[%s9519_s8 + $0x208] sm:$0xff]  ;;  %v8061_v13 = vcombine.low %v395_v0, %v399_v1 }
  0x69   : > { %6531 = vmatpush1.bf16.msra.mxu0 %v8027_v37  ;;  %6859 = vmatpush1.bf16.msra.mxu1 %v8029_v38  ;;  %v253_v3 = vcombine.high %v9575_v63, %v9575_v63  ;;  %v8060_v5 = vcombine.high %v394_v61, %v398_v62  ;;  %v402_v7 = vld [vmem:[%s9519_s8 + $0x200] sm:$0xff]  ;;  %v407_v11 = vld [vmem:[%s9519_s8 + $0x228] sm:$0xff]  ;;  %v8059_v12 = vcombine.low %v394_v61, %v398_v62 }
  0x6a   : > { %6532 = vmatprep.subr.bf16.mxu0 %v8036_v39  ;;  %6860 = vmatprep.subr.bf16.mxu1 %v8038_v40  ;;  %v406_v8 = vld [vmem:[%s9519_s8 + $0x220] sm:$0xff]  ;;  %v8070_v15 = vcombine.high %v403_v10, %v407_v11  ;;  %v411_v18 = vld [vmem:[%s9519_s8 + $0x248] sm:$0xff]  ;;  %v8069_v21 = vcombine.low %v403_v10, %v407_v11 }
  0x6b   : > { %v9583_v9 = vpack.c.bf16 %v253_v3, %v253_v3  ;;  %v8068_v14 = vcombine.high %v402_v7, %v406_v8  ;;  %v410_v16 = vld [vmem:[%s9519_s8 + $0x240] sm:$0xff]  ;;  %v415_v19 = vld [vmem:[%s9519_s8 + $0x268] sm:$0xff]  ;;  %v8067_v20 = vcombine.low %v402_v7, %v406_v8 }
  0x6c   : > { %v414_v17 = vld [vmem:[%s9519_s8 + $0x260] sm:$0xff]  ;;  %v8078_v23 = vcombine.high %v411_v18, %v415_v19  ;;  %v419_v26 = vld [vmem:[%s9519_s8 + $0x288] sm:$0xff]  ;;  %v8077_v29 = vcombine.low %v411_v18, %v415_v19 }
  0x6d   : > { %6533 = vmatpush1.bf16.msra.mxu0 %v8035_v47  ;;  %6861 = vmatpush1.bf16.msra.mxu1 %v8037_v48  ;;  %v8076_v22 = vcombine.high %v410_v16, %v414_v17  ;;  %v418_v24 = vld [vmem:[%s9519_s8 + $0x280] sm:$0xff]  ;;  %v423_v27 = vld [vmem:[%s9519_s8 + $0x2a8] sm:$0xff]  ;;  %v8075_v28 = vcombine.low %v410_v16, %v414_v17 }
  0x6e   : > { %6534 = vmatprep.subr.bf16.mxu0 %v8044_v49  ;;  %6862 = vmatprep.subr.bf16.mxu1 %v8046_v50  ;;  %v422_v25 = vld [vmem:[%s9519_s8 + $0x2a0] sm:$0xff]  ;;  %v8086_v31 = vcombine.high %v419_v26, %v423_v27  ;;  %v427_v34 = vld [vmem:[%s9519_s8 + $0x2c8] sm:$0xff]  ;;  %v8085_v37 = vcombine.low %v419_v26, %v423_v27 }
  0x6f   : > { %6556 = vmatprep.mubr.bf16.mxu0 %v9583_v9  ;;  %6884 = vmatprep.mubr.bf16.mxu1 %v9583_v9  ;;  %v8084_v30 = vcombine.high %v418_v24, %v422_v25  ;;  %v426_v32 = vld [vmem:[%s9519_s8 + $0x2c0] sm:$0xff]  ;;  %v431_v35 = vld [vmem:[%s9519_s8 + $0x2e8] sm:$0xff]  ;;  %v8083_v36 = vcombine.low %v418_v24, %v422_v25  ;;  %v9632_v25 = vpack.c.bf16 %v9575_v63, %v9575_v63 }
  0x70   : > { %v430_v33 = vld [vmem:[%s9519_s8 + $0x2e0] sm:$0xff]  ;;  %v8094_v39 = vcombine.high %v427_v34, %v431_v35  ;;  %v435_v42 = vld [vmem:[%s9519_s8 + $0x308] sm:$0xff]  ;;  %v8093_v46 = vcombine.low %v427_v34, %v431_v35 }
  0x71   : > { %6535 = vmatpush1.bf16.msra.mxu0 %v8043_v56  ;;  %6863 = vmatpush1.bf16.msra.mxu1 %v8045_v57  ;;  %v8092_v38 = vcombine.high %v426_v32, %v430_v33  ;;  %v434_v40 = vld [vmem:[%s9519_s8 + $0x300] sm:$0xff]  ;;  %v439_v43 = vld [vmem:[%s9519_s8 + $0x328] sm:$0xff]  ;;  %v8091_v45 = vcombine.low %v426_v32, %v430_v33 }
  0x72   : > { %6536 = vmatprep.subr.bf16.mxu0 %v8052_v58  ;;  %6864 = vmatprep.subr.bf16.mxu1 %v8054_v60  ;;  %v438_v41 = vld [vmem:[%s9519_s8 + $0x320] sm:$0xff]  ;;  %v8102_v48 = vcombine.high %v435_v42, %v439_v43  ;;  %v443_v51 = vld [vmem:[%s9519_s8 + $0x348] sm:$0xff]  ;;  %v8101_v55 = vcombine.low %v435_v42, %v439_v43 }
  0x73   : > { %v8100_v47 = vcombine.high %v434_v40, %v438_v41  ;;  %v442_v49 = vld [vmem:[%s9519_s8 + $0x340] sm:$0xff]  ;;  %v447_v52 = vld [vmem:[%s9519_s8 + $0x368] sm:$0xff]  ;;  %v8099_v54 = vcombine.low %v434_v40, %v438_v41 }
  0x74   : > { %v446_v50 = vld [vmem:[%s9519_s8 + $0x360] sm:$0xff]  ;;  %v8110_v57 = vcombine.high %v443_v51, %v447_v52  ;;  %v451_v61 = vld [vmem:[%s9519_s8 + $0x388] sm:$0xff]  ;;  %v8109_v1 = vcombine.low %v443_v51, %v447_v52 }
  0x75   : > { %6537 = vmatpush1.bf16.msra.mxu0 %v8051_v2  ;;  %6865 = vmatpush1.bf16.msra.mxu1 %v8053_v4  ;;  %v8108_v56 = vcombine.high %v442_v49, %v446_v50  ;;  %v450_v58 = vld [vmem:[%s9519_s8 + $0x380] sm:$0xff]  ;;  %v455_v62 = vld [vmem:[%s9519_s8 + $0x3a8] sm:$0xff]  ;;  %v8107_v0 = vcombine.low %v442_v49, %v446_v50 }
  0x76   : > { %6538 = vmatprep.subr.bf16.mxu0 %v8060_v5  ;;  %6866 = vmatprep.subr.bf16.mxu1 %v8062_v6  ;;  %v454_v60 = vld [vmem:[%s9519_s8 + $0x3a0] sm:$0xff]  ;;  %v8118_v3 = vcombine.high %v451_v61, %v455_v62  ;;  %v238_v6 = vcombine.high %v9569_v59, %v9569_v59  ;;  %v459_v7 = vld [vmem:[%s9519_s8 + $0x3c8] sm:$0xff]  ;;  %v8117_v11 = vcombine.low %v451_v61, %v455_v62 }
  0x77   : > { %v8116_v2 = vcombine.high %v450_v58, %v454_v60  ;;  %v458_v4 = vld [vmem:[%s9519_s8 + $0x3c0] sm:$0xff]  ;;  %v463_v8 = vld [vmem:[%s9519_s8 + $0x3e8] sm:$0xff]  ;;  %v8115_v10 = vcombine.low %v450_v58, %v454_v60 }
  0x78   : > { %v462_v5 = vld [vmem:[%s9519_s8 + $0x3e0] sm:$0xff]  ;;  %v9622_v16 = vrot.slane %v238_v6, %v9562_v53  ;;  %v467_v59 = vld [vmem:[%s9519_s8 + $0x408] sm:$0xff]  ;;  %v8125_v19 = vcombine.low %v459_v7, %v463_v8 }
  0x79   : > { %6539 = vmatpush1.bf16.msra.mxu0 %v8059_v12  ;;  %6867 = vmatpush1.bf16.msra.mxu1 %v8061_v13  ;;  %v8124_v12 = vcombine.high %v458_v4, %v462_v5  ;;  %v8126_v13 = vcombine.high %v459_v7, %v463_v8  ;;  %v471_v17 = vld [vmem:[%s9519_s8 + $0x428] sm:$0xff]  ;;  %v8123_v18 = vcombine.low %v458_v4, %v462_v5  ;;  %v482_v32 = vld [vmem:[%s9519_s8 + $0x480] sm:$0xff] }
  0x7a   : > { %6540 = vmatprep.subr.bf16.mxu0 %v8068_v14  ;;  %6868 = vmatprep.subr.bf16.mxu1 %v8070_v15  ;;  %v466_v14 = vld [vmem:[%s9519_s8 + $0x400] sm:$0xff]  ;;  %v254_v24 = vcombine.high %v9622_v16, %v9622_v16  ;;  %v475_v26 = vld [vmem:[%s9519_s8 + $0x448] sm:$0xff] }
  0x7b   : > { %v470_v15 = vld [vmem:[%s9519_s8 + $0x420] sm:$0xff]  ;;  %v479_v27 = vld [vmem:[%s9519_s8 + $0x468] sm:$0xff] }
  0x7c   : > { %v486_v33 = vld [vmem:[%s9519_s8 + $0x4a0] sm:$0xff]  ;;  %v9638_v34 = vpack.c.bf16 %v254_v24, %v254_v24  ;;  %v483_v63 = vld [vmem:[%s9519_s8 + $0x488] sm:$0xff] }
  0x7d   : > { %6541 = vmatpush1.bf16.msra.mxu0 %v8067_v20  ;;  %6869 = vmatpush1.bf16.msra.mxu1 %v8069_v21  ;;  %v8132_v20 = vcombine.high %v466_v14, %v470_v15  ;;  %v8134_v21 = vcombine.high %v467_v59, %v471_v17  ;;  %v487_v35 = vld [vmem:[%s9519_s8 + $0x4a8] sm:$0xff]  ;;  %v490_v40 = vld [vmem:[%s9519_s8 + $0x4c0] sm:$0xff] }
  0x7e   : > { %6542 = vmatprep.subr.bf16.mxu0 %v8076_v22  ;;  %6870 = vmatprep.subr.bf16.mxu1 %v8078_v23  ;;  %v474_v22 = vld [vmem:[%s9519_s8 + $0x440] sm:$0xff]  ;;  %v491_v42 = vld [vmem:[%s9519_s8 + $0x4c8] sm:$0xff] }
  0x7f   : > { %v478_v23 = vld [vmem:[%s9519_s8 + $0x460] sm:$0xff]  ;;  %v495_v43 = vld [vmem:[%s9519_s8 + $0x4e8] sm:$0xff] }
  0x80   : > { %v494_v41 = vld [vmem:[%s9519_s8 + $0x4e0] sm:$0xff]  ;;  %v499_v51 = vld [vmem:[%s9519_s8 + $0x508] sm:$0xff] }
  0x81   : > { %6543 = vmatpush1.bf16.msra.mxu0 %v8075_v28  ;;  %6871 = vmatpush1.bf16.msra.mxu1 %v8077_v29  ;;  %v8131_v28 = vcombine.low %v466_v14, %v470_v15  ;;  %v8133_v29 = vcombine.low %v467_v59, %v471_v17  ;;  %v498_v49 = vld [vmem:[%s9519_s8 + $0x500] sm:$0xff]  ;;  %v503_v52 = vld [vmem:[%s9519_s8 + $0x528] sm:$0xff] }
  0x82   : > { %6544 = vmatprep.subr.bf16.mxu0 %v8084_v30  ;;  %6872 = vmatprep.subr.bf16.mxu1 %v8086_v31  ;;  %v8140_v30 = vcombine.high %v474_v22, %v478_v23  ;;  %v8142_v31 = vcombine.high %v475_v26, %v479_v27  ;;  %v502_v50 = vld [vmem:[%s9519_s8 + $0x520] sm:$0xff]  ;;  %v507_v61 = vld [vmem:[%s9519_s8 + $0x548] sm:$0xff] }
  0x83   : > { %v506_v58 = vld [vmem:[%s9519_s8 + $0x540] sm:$0xff]  ;;  %v511_v62 = vld [vmem:[%s9519_s8 + $0x568] sm:$0xff] }
  0x84   : > { %v510_v60 = vld [vmem:[%s9519_s8 + $0x560] sm:$0xff]  ;;  %v515_v6 = vld [vmem:[%s9519_s8 + $0x588] sm:$0xff] }
  0x85   : > { %6545 = vmatpush1.bf16.msra.mxu0 %v8083_v36  ;;  %6873 = vmatpush1.bf16.msra.mxu1 %v8085_v37  ;;  %v8139_v36 = vcombine.low %v474_v22, %v478_v23  ;;  %v8141_v37 = vcombine.low %v475_v26, %v479_v27  ;;  %v514_v4 = vld [vmem:[%s9519_s8 + $0x580] sm:$0xff]  ;;  %v519_v7 = vld [vmem:[%s9519_s8 + $0x5a8] sm:$0xff]  ;;  %v8171_v8 = vcombine.low %v506_v58, %v510_v60 }
  0x86   : > { %6546 = vmatprep.subr.bf16.mxu0 %v8092_v38  ;;  %6874 = vmatprep.subr.bf16.mxu1 %v8094_v39  ;;  %v8148_v38 = vcombine.high %v482_v32, %v486_v33  ;;  %v8150_v39 = vcombine.high %v483_v63, %v487_v35  ;;  %v518_v5 = vld [vmem:[%s9519_s8 + $0x5a0] sm:$0xff]  ;;  %v523_v15 = vld [vmem:[%s9519_s8 + $0x5c8] sm:$0xff] }
  0x87   : > { %v526_v14 = vld [vmem:[%s9519_s8 + $0x5e0] sm:$0xff]  ;;  %v527_v59 = vld [vmem:[%s9519_s8 + $0x5e8] sm:$0xff]  ;;  %v8179_v17 = vcombine.low %v514_v4, %v518_v5 }
  0x88   : > { %v534_v22 = vld [vmem:[%s9519_s8 + $0x620] sm:$0xff]  ;;  %v531_v23 = vld [vmem:[%s9519_s8 + $0x608] sm:$0xff]  ;;  %v8189_v27 = vcombine.low %v523_v15, %v527_v59 }
  0x89   : > { %6547 = vmatpush1.bf16.msra.mxu0 %v8091_v45  ;;  %6875 = vmatpush1.bf16.msra.mxu1 %v8093_v46  ;;  %v8147_v45 = vcombine.low %v482_v32, %v486_v33  ;;  %v8149_v46 = vcombine.low %v483_v63, %v487_v35  ;;  %v535_v24 = vld [vmem:[%s9519_s8 + $0x628] sm:$0xff] }
  0x8a   : > { %6548 = vmatprep.subr.bf16.mxu0 %v8100_v47  ;;  %6876 = vmatprep.subr.bf16.mxu1 %v8102_v48  ;;  %v8156_v47 = vcombine.high %v490_v40, %v494_v41  ;;  %v8158_v48 = vcombine.high %v491_v42, %v495_v43  ;;  %v539_v32 = vld [vmem:[%s9519_s8 + $0x648] sm:$0xff]  ;;  %v8197_v35 = vcombine.low %v531_v23, %v535_v24 }
  0x8b   : > { %v543_v33 = vld [vmem:[%s9519_s8 + $0x668] sm:$0xff] }
  0x8d   : > { %6549 = vmatpush1.bf16.msra.mxu0 %v8099_v54  ;;  %6877 = vmatpush1.bf16.msra.mxu1 %v8101_v55  ;;  %v8155_v54 = vcombine.low %v490_v40, %v494_v41  ;;  %v8157_v55 = vcombine.low %v491_v42, %v495_v43  ;;  %v547_v40 = vld [vmem:[%s9519_s8 + $0x688] sm:$0xff]  ;;  %v8205_v43 = vcombine.low %v539_v32, %v543_v33 }
  0x8e   : > { %6550 = vmatprep.subr.bf16.mxu0 %v8108_v56  ;;  %6878 = vmatprep.subr.bf16.mxu1 %v8110_v57  ;;  %v8164_v56 = vcombine.high %v498_v49, %v502_v50  ;;  %v8166_v57 = vcombine.high %v499_v51, %v503_v52  ;;  %v551_v41 = vld [vmem:[%s9519_s8 + $0x6a8] sm:$0xff] }
  0x91   : > { %6551 = vmatpush1.bf16.msra.mxu0 %v8107_v0  ;;  %6879 = vmatpush1.bf16.msra.mxu1 %v8109_v1  ;;  %v8163_v0 = vcombine.low %v498_v49, %v502_v50  ;;  %v8165_v1 = vcombine.low %v499_v51, %v503_v52  ;;  %v555_v49 = vld [vmem:[%s9519_s8 + $0x6c8] sm:$0xff]  ;;  %v8213_v52 = vcombine.low %v547_v40, %v551_v41 }
  0x92   : > { %6552 = vmatprep.subr.bf16.mxu0 %v8116_v2  ;;  %6880 = vmatprep.subr.bf16.mxu1 %v8118_v3  ;;  %v8172_v2 = vcombine.high %v506_v58, %v510_v60  ;;  %v8174_v3 = vcombine.high %v507_v61, %v511_v62  ;;  %v559_v50 = vld [vmem:[%s9519_s8 + $0x6e8] sm:$0xff] }
  0x93   : > { %v563_v58 = vld [vmem:[%s9519_s8 + $0x708] sm:$0xff] }
  0x94   : > { %v567_v60 = vld [vmem:[%s9519_s8 + $0x728] sm:$0xff] }
  0x95   : > { %6553 = vmatpush1.bf16.msra.mxu0 %v8115_v10  ;;  %6881 = vmatpush1.bf16.msra.mxu1 %v8117_v11  ;;  %v8173_v10 = vcombine.low %v507_v61, %v511_v62  ;;  %v8180_v11 = vcombine.high %v514_v4, %v518_v5  ;;  %v8221_v62 = vcombine.low %v555_v49, %v559_v50  ;;  %v571_v4 = vld [vmem:[%s9519_s8 + $0x748] sm:$0xff] }
  0x96   : > { %6554 = vmatprep.subr.bf16.mxu0 %v8124_v12  ;;  %6882 = vmatprep.subr.bf16.mxu1 %v8126_v13  ;;  %v8182_v12 = vcombine.high %v515_v6, %v519_v7  ;;  %v522_v13 = vld [vmem:[%s9519_s8 + $0x5c0] sm:$0xff]  ;;  %v575_v5 = vld [vmem:[%s9519_s8 + $0x768] sm:$0xff] }
  0x97   : > { %v8187_v26 = vcombine.low %v522_v13, %v526_v14 }
  0x99   : > { %6555 = vmatpush1.bf16.msra.mxu0 %v8123_v18  ;;  %6883 = vmatpush1.bf16.msra.mxu1 %v8125_v19  ;;  %v8181_v18 = vcombine.low %v515_v6, %v519_v7  ;;  %v8188_v19 = vcombine.high %v522_v13, %v526_v14  ;;  %v8229_v7 = vcombine.low %v563_v58, %v567_v60  ;;  %v579_v13 = vld [vmem:[%s9519_s8 + $0x788] sm:$0xff] }
  0x9a   : > { %6565 = vmatprep.subr.bf16.mxu0 %v8132_v20  ;;  %6893 = vmatprep.subr.bf16.mxu1 %v8134_v21  ;;  %v8190_v20 = vcombine.high %v523_v15, %v527_v59  ;;  %v530_v21 = vld [vmem:[%s9519_s8 + $0x600] sm:$0xff]  ;;  %v583_v14 = vld [vmem:[%s9519_s8 + $0x7a8] sm:$0xff]  ;;  %v8237_v59 = vcombine.low %v571_v4, %v575_v5 }
  0x9b   : > { %v8195_v63 = vcombine.low %v530_v21, %v534_v22 }
  0x9c   : > { %6557 = vmatmul.mubr.bf16.vlgmr.msra.gmra.mrb[0].mxu0 %v9632_v25  ;;  %6885 = vmatmul.mubr.bf16.vlgmr.msra.gmra.mrb[0].mxu1 %v9632_v25 }
  0x9d   : > { %6566 = vmatpush1.bf16.msra.mxu0 %v8131_v28  ;;  %6894 = vmatpush1.bf16.msra.mxu1 %v8133_v29  ;;  %v8196_v28 = vcombine.high %v530_v21, %v534_v22  ;;  %v8198_v29 = vcombine.high %v531_v23, %v535_v24  ;;  %v587_v21 = vld [vmem:[%s9519_s8 + $0x7c8] sm:$0xff] }
  0x9e   : > { %6567 = vmatprep.subr.bf16.mxu0 %v8140_v30  ;;  %6895 = vmatprep.subr.bf16.mxu1 %v8142_v31  ;;  %v538_v30 = vld [vmem:[%s9519_s8 + $0x640] sm:$0xff]  ;;  %v591_v22 = vld [vmem:[%s9519_s8 + $0x7e8] sm:$0xff] }
  0x9f   : > { %6597 = vmatprep.mubr.bf16.mxu0 %v9638_v34  ;;  %6925 = vmatprep.mubr.bf16.mxu1 %v9638_v34  ;;  %v542_v31 = vld [vmem:[%s9519_s8 + $0x660] sm:$0xff]  ;;  %v9701_v23 = vld [vmem:[%s10813_s0 + $0x8] sm:$0xff] }
  0xa0   : > { %v8203_v42 = vcombine.low %v538_v30, %v542_v31 }
  0xa1   : > { %6568 = vmatpush1.bf16.msra.mxu0 %v8139_v36  ;;  %6896 = vmatpush1.bf16.msra.mxu1 %v8141_v37  ;;  %v8204_v36 = vcombine.high %v538_v30, %v542_v31  ;;  %v8206_v37 = vcombine.high %v539_v32, %v543_v33  ;;  %v598_v30 = vld [vmem:[%s9519_s8 + $0x820] sm:$0xff]  ;;  %v9707_v31 = vrot.slane %v9701_v23, %v9562_v53  ;;  %v595_v32 = vld [vmem:[%s9519_s8 + $0x808] sm:$0xff] }
  0xa2   : > { %6569 = vmatprep.subr.bf16.mxu0 %v8148_v38  ;;  %6897 = vmatprep.subr.bf16.mxu1 %v8150_v39  ;;  %v546_v38 = vld [vmem:[%s9519_s8 + $0x680] sm:$0xff]  ;;  %v599_v33 = vld [vmem:[%s9519_s8 + $0x828] sm:$0xff] }
  0xa3   : > { %v550_v39 = vld [vmem:[%s9519_s8 + $0x6a0] sm:$0xff] }
  0xa4   : > { %v8211_v51 = vcombine.low %v546_v38, %v550_v39 }
  0xa5   : > { %6570 = vmatpush1.bf16.msra.mxu0 %v8147_v45  ;;  %6898 = vmatpush1.bf16.msra.mxu1 %v8149_v46  ;;  %v8212_v45 = vcombine.high %v546_v38, %v550_v39  ;;  %v8214_v46 = vcombine.high %v547_v40, %v551_v41  ;;  %v602_v38 = vld [vmem:[%s9519_s8 + $0x840] sm:$0xff]  ;;  %v270_v40 = vcombine.high %v9707_v31, %v9707_v31 }
  0xa6   : > { %6571 = vmatprep.subr.bf16.mxu0 %v8156_v47  ;;  %6899 = vmatprep.subr.bf16.mxu1 %v8158_v48  ;;  %v554_v47 = vld [vmem:[%s9519_s8 + $0x6c0] sm:$0xff]  ;;  %v9717_v41 = vpack.c.bf16 %v9622_v16, %v9622_v16  ;;  %v611_v16 = vld [vmem:[%s9519_s8 + $0x888] sm:$0xff] }
  0xa7   : > { %v558_v48 = vld [vmem:[%s9519_s8 + $0x6e0] sm:$0xff] }
  0xa8   : > { %v8219_v61 = vcombine.low %v554_v47, %v558_v48  ;;  %v606_v39 = vld [vmem:[%s9519_s8 + $0x860] sm:$0xff] }
  0xa9   : > { %6572 = vmatpush1.bf16.msra.mxu0 %v8155_v54  ;;  %6900 = vmatpush1.bf16.msra.mxu1 %v8157_v55  ;;  %v8220_v54 = vcombine.high %v554_v47, %v558_v48  ;;  %v8222_v55 = vcombine.high %v555_v49, %v559_v50  ;;  %v8268_v47 = vcombine.high %v602_v38, %v606_v39  ;;  %v610_v49 = vld [vmem:[%s9519_s8 + $0x880] sm:$0xff] }
  0xaa   : > { %6573 = vmatprep.subr.bf16.mxu0 %v8164_v56  ;;  %6901 = vmatprep.subr.bf16.mxu1 %v8166_v57  ;;  %v562_v56 = vld [vmem:[%s9519_s8 + $0x700] sm:$0xff] }
  0xab   : > { %v566_v57 = vld [vmem:[%s9519_s8 + $0x720] sm:$0xff] }
  0xac   : > { %v8227_v6 = vcombine.low %v562_v56, %v566_v57  ;;  %v614_v50 = vld [vmem:[%s9519_s8 + $0x8a0] sm:$0xff] }
  0xad   : > { %6574 = vmatpush1.bf16.msra.mxu0 %v8163_v0  ;;  %6902 = vmatpush1.bf16.msra.mxu1 %v8165_v1  ;;  %v8228_v0 = vcombine.high %v562_v56, %v566_v57  ;;  %v8230_v1 = vcombine.high %v563_v58, %v567_v60  ;;  %v8276_v56 = vcombine.high %v610_v49, %v614_v50  ;;  %v618_v58 = vld [vmem:[%s9519_s8 + $0x8c0] sm:$0xff] }
  0xae   : > { %6575 = vmatprep.subr.bf16.mxu0 %v8172_v2  ;;  %6903 = vmatprep.subr.bf16.mxu1 %v8174_v3  ;;  %v570_v2 = vld [vmem:[%s9519_s8 + $0x740] sm:$0xff] }
  0xaf   : > { %v574_v3 = vld [vmem:[%s9519_s8 + $0x760] sm:$0xff] }
  0xb0   : > { %v8235_v15 = vcombine.low %v570_v2, %v574_v3  ;;  %v622_v60 = vld [vmem:[%s9519_s8 + $0x8e0] sm:$0xff] }
  0xb1   : > { %6576 = vmatpush1.bf16.msra.mxu0 %v8171_v8  ;;  %6904 = vmatpush1.bf16.msra.mxu1 %v8173_v10  ;;  %v8236_v8 = vcombine.high %v570_v2, %v574_v3  ;;  %v8238_v10 = vcombine.high %v571_v4, %v575_v5  ;;  %v8284_v2 = vcombine.high %v618_v58, %v622_v60  ;;  %v626_v4 = vld [vmem:[%s9519_s8 + $0x900] sm:$0xff] }
  0xb2   : > { %6577 = vmatprep.subr.bf16.mxu0 %v8180_v11  ;;  %6905 = vmatprep.subr.bf16.mxu1 %v8182_v12  ;;  %v578_v11 = vld [vmem:[%s9519_s8 + $0x780] sm:$0xff] }
  0xb3   : > { %v582_v12 = vld [vmem:[%s9519_s8 + $0x7a0] sm:$0xff] }
  0xb4   : > { %v8243_v24 = vcombine.low %v578_v11, %v582_v12  ;;  %v630_v5 = vld [vmem:[%s9519_s8 + $0x920] sm:$0xff] }
  0xb5   : > { %6578 = vmatpush1.bf16.msra.mxu0 %v8179_v17  ;;  %6906 = vmatpush1.bf16.msra.mxu1 %v8181_v18  ;;  %v8244_v17 = vcombine.high %v578_v11, %v582_v12  ;;  %v8246_v18 = vcombine.high %v579_v13, %v583_v14  ;;  %v8292_v11 = vcombine.high %v626_v4, %v630_v5 }
  0xb6   : > { %6579 = vmatprep.subr.bf16.mxu0 %v8188_v19  ;;  %6907 = vmatprep.subr.bf16.mxu1 %v8190_v20  ;;  %v586_v19 = vld [vmem:[%s9519_s8 + $0x7c0] sm:$0xff] }
  0xb7   : > { %v590_v20 = vld [vmem:[%s9519_s8 + $0x7e0] sm:$0xff] }
  0xb9   : > { %6580 = vmatpush1.bf16.msra.mxu0 %v8187_v26  ;;  %6908 = vmatpush1.bf16.msra.mxu1 %v8189_v27  ;;  %v8245_v26 = vcombine.low %v579_v13, %v583_v14  ;;  %v8252_v27 = vcombine.high %v586_v19, %v590_v20  ;;  %v634_v13 = vld [vmem:[%s9519_s8 + $0x940] sm:$0xff] }
  0xba   : > { %6581 = vmatprep.subr.bf16.mxu0 %v8196_v28  ;;  %6909 = vmatprep.subr.bf16.mxu1 %v8198_v29  ;;  %v8254_v28 = vcombine.high %v587_v21, %v591_v22  ;;  %v594_v29 = vld [vmem:[%s9519_s8 + $0x800] sm:$0xff] }
  0xbb   : > { %v638_v14 = vld [vmem:[%s9519_s8 + $0x960] sm:$0xff] }
  0xbd   : > { %6582 = vmatpush1.bf16.msra.mxu0 %v8195_v63  ;;  %6910 = vmatpush1.bf16.msra.mxu1 %v8197_v35  ;;  %v8251_v63 = vcombine.low %v586_v19, %v590_v20  ;;  %v8253_v35 = vcombine.low %v587_v21, %v591_v22  ;;  %v8300_v19 = vcombine.high %v634_v13, %v638_v14  ;;  %v642_v21 = vld [vmem:[%s9519_s8 + $0x980] sm:$0xff] }
  0xbe   : > { %6583 = vmatprep.subr.bf16.mxu0 %v8204_v36  ;;  %6911 = vmatprep.subr.bf16.mxu1 %v8206_v37  ;;  %v8260_v36 = vcombine.high %v594_v29, %v598_v30  ;;  %v8262_v37 = vcombine.high %v595_v32, %v599_v33  ;;  %v646_v22 = vld [vmem:[%s9519_s8 + $0x9a0] sm:$0xff] }
  0xc1   : > { %6584 = vmatpush1.bf16.msra.mxu0 %v8203_v42  ;;  %6912 = vmatpush1.bf16.msra.mxu1 %v8205_v43  ;;  %v603_v42 = vld [vmem:[%s9519_s8 + $0x848] sm:$0xff] }
  0xc2   : > { %6585 = vmatprep.subr.bf16.mxu0 %v8212_v45  ;;  %6913 = vmatprep.subr.bf16.mxu1 %v8214_v46  ;;  %v607_v43 = vld [vmem:[%s9519_s8 + $0x868] sm:$0xff]  ;;  %v8259_v45 = vcombine.low %v594_v29, %v598_v30  ;;  %v8261_v46 = vcombine.low %v595_v32, %v599_v33  ;;  %v8308_v29 = vcombine.high %v642_v21, %v646_v22  ;;  %v650_v32 = vld [vmem:[%s9519_s8 + $0x9c0] sm:$0xff] }
  0xc3   : > { %v8270_v48 = vcombine.high %v603_v42, %v607_v43  ;;  %v654_v33 = vld [vmem:[%s9519_s8 + $0x9e0] sm:$0xff] }
  0xc5   : > { %6586 = vmatpush1.bf16.msra.mxu0 %v8211_v51  ;;  %6914 = vmatpush1.bf16.msra.mxu1 %v8213_v52  ;;  %v9723_v51 = vpack.c.bf16 %v270_v40, %v270_v40  ;;  %v615_v52 = vld [vmem:[%s9519_s8 + $0x8a8] sm:$0xff]  ;;  %v658_v40 = vld [vmem:[%s9519_s8 + $0xa00] sm:$0xff] }
  0xc6   : > { %6587 = vmatprep.subr.bf16.mxu0 %v8220_v54  ;;  %6915 = vmatprep.subr.bf16.mxu1 %v8222_v55  ;;  %v8267_v54 = vcombine.low %v602_v38, %v606_v39  ;;  %v8269_v55 = vcombine.low %v603_v42, %v607_v43  ;;  %v8278_v57 = vcombine.high %v611_v16, %v615_v52  ;;  %v662_v42 = vld [vmem:[%s9519_s8 + $0xa20] sm:$0xff]  ;;  %v659_v43 = vld [vmem:[%s9519_s8 + $0xa08] sm:$0xff] }
  0xc7   : > { %v8316_v38 = vcombine.high %v650_v32, %v654_v33 }
  0xc9   : > { %6588 = vmatpush1.bf16.msra.mxu0 %v8219_v61  ;;  %6916 = vmatpush1.bf16.msra.mxu1 %v8221_v62  ;;  %v619_v61 = vld [vmem:[%s9519_s8 + $0x8c8] sm:$0xff] }
  0xca   : > { %6589 = vmatprep.subr.bf16.mxu0 %v8228_v0  ;;  %6917 = vmatprep.subr.bf16.mxu1 %v8230_v1  ;;  %v623_v62 = vld [vmem:[%s9519_s8 + $0x8e8] sm:$0xff]  ;;  %v8275_v0 = vcombine.low %v610_v49, %v614_v50  ;;  %v8277_v1 = vcombine.low %v611_v16, %v615_v52  ;;  %v666_v50 = vld [vmem:[%s9519_s8 + $0xa40] sm:$0xff] }
  0xcb   : > { %v8286_v3 = vcombine.high %v619_v61, %v623_v62  ;;  %v670_v16 = vld [vmem:[%s9519_s8 + $0xa60] sm:$0xff]  ;;  %v667_v52 = vld [vmem:[%s9519_s8 + $0xa48] sm:$0xff] }
  0xcd   : > { %6590 = vmatpush1.bf16.msra.mxu0 %v8227_v6  ;;  %6918 = vmatpush1.bf16.msra.mxu1 %v8229_v7  ;;  %v627_v6 = vld [vmem:[%s9519_s8 + $0x908] sm:$0xff] }
  0xce   : > { %6591 = vmatprep.subr.bf16.mxu0 %v8236_v8  ;;  %6919 = vmatprep.subr.bf16.mxu1 %v8238_v10  ;;  %v631_v7 = vld [vmem:[%s9519_s8 + $0x928] sm:$0xff]  ;;  %v8283_v8 = vcombine.low %v618_v58, %v622_v60  ;;  %v8285_v10 = vcombine.low %v619_v61, %v623_v62  ;;  %v674_v60 = vld [vmem:[%s9519_s8 + $0xa80] sm:$0xff] }
  0xcf   : > { %v8294_v12 = vcombine.high %v627_v6, %v631_v7  ;;  %v678_v61 = vld [vmem:[%s9519_s8 + $0xaa0] sm:$0xff]  ;;  %v675_v62 = vld [vmem:[%s9519_s8 + $0xa88] sm:$0xff] }
  0xd1   : > { %6592 = vmatpush1.bf16.msra.mxu0 %v8235_v15  ;;  %6920 = vmatpush1.bf16.msra.mxu1 %v8237_v59  ;;  %v635_v15 = vld [vmem:[%s9519_s8 + $0x948] sm:$0xff] }
  0xd2   : > { %6593 = vmatprep.subr.bf16.mxu0 %v8244_v17  ;;  %6921 = vmatprep.subr.bf16.mxu1 %v8246_v18  ;;  %v639_v59 = vld [vmem:[%s9519_s8 + $0x968] sm:$0xff]  ;;  %v8291_v17 = vcombine.low %v626_v4, %v630_v5  ;;  %v8293_v18 = vcombine.low %v627_v6, %v631_v7  ;;  %v682_v5 = vld [vmem:[%s9519_s8 + $0xac0] sm:$0xff] }
  0xd3   : > { %v8302_v20 = vcombine.high %v635_v15, %v639_v59  ;;  %v686_v6 = vld [vmem:[%s9519_s8 + $0xae0] sm:$0xff]  ;;  %v683_v7 = vld [vmem:[%s9519_s8 + $0xac8] sm:$0xff] }
  0xd5   : > { %6594 = vmatpush1.bf16.msra.mxu0 %v8243_v24  ;;  %6922 = vmatpush1.bf16.msra.mxu1 %v8245_v26  ;;  %v643_v24 = vld [vmem:[%s9519_s8 + $0x988] sm:$0xff] }
  0xd6   : > { %6595 = vmatprep.subr.bf16.mxu0 %v8252_v27  ;;  %6923 = vmatprep.subr.bf16.mxu1 %v8254_v28  ;;  %v647_v26 = vld [vmem:[%s9519_s8 + $0x9a8] sm:$0xff]  ;;  %v8299_v27 = vcombine.low %v634_v13, %v638_v14  ;;  %v8301_v28 = vcombine.low %v635_v15, %v639_v59  ;;  %v690_v14 = vld [vmem:[%s9519_s8 + $0xb00] sm:$0xff] }
  0xd7   : > { %v8310_v30 = vcombine.high %v643_v24, %v647_v26  ;;  %v694_v15 = vld [vmem:[%s9519_s8 + $0xb20] sm:$0xff]  ;;  %v691_v59 = vld [vmem:[%s9519_s8 + $0xb08] sm:$0xff] }
  0xd9   : > { %6596 = vmatpush1.bf16.msra.mxu0 %v8251_v63  ;;  %6924 = vmatpush1.bf16.msra.mxu1 %v8253_v35  ;;  %v651_v63 = vld [vmem:[%s9519_s8 + $0x9c8] sm:$0xff] }
  0xda   : > { %6606 = vmatprep.subr.bf16.mxu0 %v8260_v36  ;;  %6934 = vmatprep.subr.bf16.mxu1 %v8262_v37  ;;  %v655_v35 = vld [vmem:[%s9519_s8 + $0x9e8] sm:$0xff]  ;;  %v8307_v36 = vcombine.low %v642_v21, %v646_v22  ;;  %v8309_v37 = vcombine.low %v643_v24, %v647_v26  ;;  %v698_v22 = vld [vmem:[%s9519_s8 + $0xb40] sm:$0xff] }
  0xdb   : > { %v8318_v39 = vcombine.high %v651_v63, %v655_v35  ;;  %v702_v24 = vld [vmem:[%s9519_s8 + $0xb60] sm:$0xff]  ;;  %v699_v26 = vld [vmem:[%s9519_s8 + $0xb48] sm:$0xff] }
  0xdc   : > { %6598 = vmatmul.mubr.bf16.vlgmr.msra.gmra.mrb[0].mxu0 %v9717_v41  ;;  %6926 = vmatmul.mubr.bf16.vlgmr.msra.gmra.mrb[0].mxu1 %v9717_v41 }
  0xdd   : > { %6607 = vmatpush1.bf16.msra.mxu0 %v8259_v45  ;;  %6935 = vmatpush1.bf16.msra.mxu1 %v8261_v46  ;;  %v663_v45 = vld [vmem:[%s9519_s8 + $0xa28] sm:$0xff]  ;;  %v8315_v46 = vcombine.low %v650_v32, %v654_v33  ;;  %v706_v33 = vld [vmem:[%s9519_s8 + $0xb80] sm:$0xff] }
  0xde   : > { %6608 = vmatprep.subr.bf16.mxu0 %v8268_v47  ;;  %6936 = vmatprep.subr.bf16.mxu1 %v8270_v48  ;;  %v8317_v47 = vcombine.low %v651_v63, %v655_v35  ;;  %v8324_v48 = vcombine.high %v658_v40, %v662_v42  ;;  %v8326_v49 = vcombine.high %v659_v43, %v663_v45  ;;  %v710_v63 = vld [vmem:[%s9519_s8 + $0xba0] sm:$0xff]  ;;  %v707_v35 = vld [vmem:[%s9519_s8 + $0xb88] sm:$0xff] }
  0xdf   : > { %6638 = vmatprep.mubr.bf16.mxu0 %v9723_v51  ;;  %6966 = vmatprep.mubr.bf16.mxu1 %v9723_v51 }
  0xe1   : > { %6609 = vmatpush1.bf16.msra.mxu0 %v8267_v54  ;;  %6937 = vmatpush1.bf16.msra.mxu1 %v8269_v55  ;;  %v671_v54 = vld [vmem:[%s9519_s8 + $0xa68] sm:$0xff]  ;;  %v8323_v55 = vcombine.low %v658_v40, %v662_v42  ;;  %v714_v42 = vld [vmem:[%s9519_s8 + $0xbc0] sm:$0xff] }
  0xe2   : > { %6610 = vmatprep.subr.bf16.mxu0 %v8276_v56  ;;  %6938 = vmatprep.subr.bf16.mxu1 %v8278_v57  ;;  %v8325_v56 = vcombine.low %v659_v43, %v663_v45  ;;  %v8332_v57 = vcombine.high %v666_v50, %v670_v16  ;;  %v8334_v58 = vcombine.high %v667_v52, %v671_v54  ;;  %v718_v43 = vld [vmem:[%s9519_s8 + $0xbe0] sm:$0xff] }
  0xe3   : > { %v255_v45 = vcombine.high %v9701_v23, %v9701_v23  ;;  %v723_v23 = vld [vmem:[%s9519_s8 + $0xc08] sm:$0xff] }
  0xe5   : > { %6611 = vmatpush1.bf16.msra.mxu0 %v8275_v0  ;;  %6939 = vmatpush1.bf16.msra.mxu1 %v8277_v1  ;;  %v679_v0 = vld [vmem:[%s9519_s8 + $0xaa8] sm:$0xff]  ;;  %v8331_v1 = vcombine.low %v666_v50, %v670_v16  ;;  %v8380_v50 = vcombine.high %v714_v42, %v718_v43 }
  0xe6   : > { %6612 = vmatprep.subr.bf16.mxu0 %v8284_v2  ;;  %6940 = vmatprep.subr.bf16.mxu1 %v8286_v3  ;;  %v8333_v2 = vcombine.low %v667_v52, %v671_v54  ;;  %v8340_v3 = vcombine.high %v674_v60, %v678_v61  ;;  %v8342_v4 = vcombine.high %v675_v62, %v679_v0  ;;  %v722_v52 = vld [vmem:[%s9519_s8 + $0xc00] sm:$0xff] }
  0xe7   : > { %v726_v54 = vld [vmem:[%s9519_s8 + $0xc20] sm:$0xff] }
  0xe9   : > { %6613 = vmatpush1.bf16.msra.mxu0 %v8283_v8  ;;  %6941 = vmatpush1.bf16.msra.mxu1 %v8285_v10  ;;  %v687_v8 = vld [vmem:[%s9519_s8 + $0xae8] sm:$0xff]  ;;  %v8339_v10 = vcombine.low %v674_v60, %v678_v61  ;;  %v8388_v60 = vcombine.high %v722_v52, %v726_v54 }
  0xea   : > { %6614 = vmatprep.subr.bf16.mxu0 %v8292_v11  ;;  %6942 = vmatprep.subr.bf16.mxu1 %v8294_v12  ;;  %v8341_v11 = vcombine.low %v675_v62, %v679_v0  ;;  %v8348_v12 = vcombine.high %v682_v5, %v686_v6  ;;  %v8350_v13 = vcombine.high %v683_v7, %v687_v8  ;;  %v730_v62 = vld [vmem:[%s9519_s8 + $0xc40] sm:$0xff] }
  0xeb   : > { %v734_v0 = vld [vmem:[%s9519_s8 + $0xc60] sm:$0xff] }
  0xed   : > { %6615 = vmatpush1.bf16.msra.mxu0 %v8291_v17  ;;  %6943 = vmatpush1.bf16.msra.mxu1 %v8293_v18  ;;  %v695_v17 = vld [vmem:[%s9519_s8 + $0xb28] sm:$0xff]  ;;  %v8347_v18 = vcombine.low %v682_v5, %v686_v6  ;;  %v8387_v5 = vcombine.low %v722_v52, %v726_v54 }
  0xee   : > { %6616 = vmatprep.subr.bf16.mxu0 %v8300_v19  ;;  %6944 = vmatprep.subr.bf16.mxu1 %v8302_v20  ;;  %v8349_v19 = vcombine.low %v683_v7, %v687_v8  ;;  %v8356_v20 = vcombine.high %v690_v14, %v694_v15  ;;  %v8358_v21 = vcombine.high %v691_v59, %v695_v17 }
  0xef   : > { %v8396_v7 = vcombine.high %v730_v62, %v734_v0 }
  0xf1   : > { %6617 = vmatpush1.bf16.msra.mxu0 %v8299_v27  ;;  %6945 = vmatpush1.bf16.msra.mxu1 %v8301_v28  ;;  %v703_v27 = vld [vmem:[%s9519_s8 + $0xb68] sm:$0xff]  ;;  %v8355_v28 = vcombine.low %v690_v14, %v694_v15  ;;  %v8395_v14 = vcombine.low %v730_v62, %v734_v0 }
  0xf2   : > { %6618 = vmatprep.subr.bf16.mxu0 %v8308_v29  ;;  %6946 = vmatprep.subr.bf16.mxu1 %v8310_v30  ;;  %v8357_v29 = vcombine.low %v691_v59, %v695_v17  ;;  %v8364_v30 = vcombine.high %v698_v22, %v702_v24  ;;  %v8366_v32 = vcombine.high %v699_v26, %v703_v27 }
  0xf5   : > { %6619 = vmatpush1.bf16.msra.mxu0 %v8307_v36  ;;  %6947 = vmatpush1.bf16.msra.mxu1 %v8309_v37  ;;  %v711_v36 = vld [vmem:[%s9519_s8 + $0xba8] sm:$0xff]  ;;  %v8363_v37 = vcombine.low %v698_v22, %v702_v24 }
  0xf6   : > { %6620 = vmatprep.subr.bf16.mxu0 %v8316_v38  ;;  %6948 = vmatprep.subr.bf16.mxu1 %v8318_v39  ;;  %v8365_v38 = vcombine.low %v699_v26, %v703_v27  ;;  %v8372_v39 = vcombine.high %v706_v33, %v710_v63  ;;  %v8374_v40 = vcombine.high %v707_v35, %v711_v36 }
  0xf9   : > { %6621 = vmatpush1.bf16.msra.mxu0 %v8315_v46  ;;  %6949 = vmatpush1.bf16.msra.mxu1 %v8317_v47  ;;  %v715_v46 = vld [vmem:[%s9519_s8 + $0xbc8] sm:$0xff] }
  0xfa   : > { %6622 = vmatprep.subr.bf16.mxu0 %v8324_v48  ;;  %6950 = vmatprep.subr.bf16.mxu1 %v8326_v49  ;;  %v719_v47 = vld [vmem:[%s9519_s8 + $0xbe8] sm:$0xff]  ;;  %v8371_v48 = vcombine.low %v706_v33, %v710_v63  ;;  %v8373_v49 = vcombine.low %v707_v35, %v711_v36 }
  0xfb   : > { %v8382_v16 = vcombine.high %v715_v46, %v719_v47 }
  0xfd   : > { %6623 = vmatpush1.bf16.msra.mxu0 %v8323_v55  ;;  %6951 = vmatpush1.bf16.msra.mxu1 %v8325_v56  ;;  %v9788_v55 = vrot.slane %v255_v45, %v9562_v53  ;;  %v727_v56 = vld [vmem:[%s9519_s8 + $0xc28] sm:$0xff] }
  0xfe   : > { %6624 = vmatprep.subr.bf16.mxu0 %v8332_v57  ;;  %6952 = vmatprep.subr.bf16.mxu1 %v8334_v58  ;;  %v8379_v57 = vcombine.low %v714_v42, %v718_v43  ;;  %v8381_v58 = vcombine.low %v715_v46, %v719_v47  ;;  %v8390_v61 = vcombine.high %v723_v23, %v727_v56  ;;  %v770_v47 = vld [vmem:[%s9519_s8 + $0xd80] sm:$0xff] }
  0xff   : > { %v8389_v6 = vcombine.low %v723_v23, %v727_v56  ;;  %v778_v56 = vld [vmem:[%s9519_s8 + $0xdc0] sm:$0xff] }
 0x101   : > { %6625 = vmatpush1.bf16.msra.mxu0 %v8331_v1  ;;  %6953 = vmatpush1.bf16.msra.mxu1 %v8333_v2  ;;  %v271_v1 = vcombine.high %v9788_v55, %v9788_v55  ;;  %v9798_v2 = vpack.c.bf16 %v9707_v31, %v9707_v31  ;;  %v739_v31 = vld [vmem:[%s9519_s8 + $0xc88] sm:$0xff] }
 0x102   : > { %6626 = vmatprep.subr.bf16.mxu0 %v8340_v3  ;;  %6954 = vmatprep.subr.bf16.mxu1 %v8342_v4  ;;  %v731_v3 = vld [vmem:[%s9519_s8 + $0xc48] sm:$0xff] }
 0x103   : > { %v735_v4 = vld [vmem:[%s9519_s8 + $0xc68] sm:$0xff] }
 0x104   : > { %v8398_v8 = vcombine.high %v731_v3, %v735_v4  ;;  %v8397_v15 = vcombine.low %v731_v3, %v735_v4  ;;  %v786_v3 = vld [vmem:[%s9519_s8 + $0xe00] sm:$0xff] }
 0x105   : > { %6627 = vmatpush1.bf16.msra.mxu0 %v8339_v10  ;;  %6955 = vmatpush1.bf16.msra.mxu1 %v8341_v11  ;;  %v738_v10 = vld [vmem:[%s9519_s8 + $0xc80] sm:$0xff] }
 0x106   : > { %6628 = vmatprep.subr.bf16.mxu0 %v8348_v12  ;;  %6956 = vmatprep.subr.bf16.mxu1 %v8350_v13  ;;  %v742_v11 = vld [vmem:[%s9519_s8 + $0xca0] sm:$0xff]  ;;  %v9804_v12 = vpack.c.bf16 %v271_v1, %v271_v1  ;;  %v743_v13 = vld [vmem:[%s9519_s8 + $0xca8] sm:$0xff] }
 0x107   : > { %v8404_v59 = vcombine.high %v738_v10, %v742_v11  ;;  %v8406_v17 = vcombine.high %v739_v31, %v743_v13  ;;  %v8403_v22 = vcombine.low %v738_v10, %v742_v11  ;;  %v8405_v24 = vcombine.low %v739_v31, %v743_v13  ;;  %v790_v4 = vld [vmem:[%s9519_s8 + $0xe20] sm:$0xff] }
 0x108   : > { %v8452_v10 = vcombine.high %v786_v3, %v790_v4  ;;  %v794_v31 = vld [vmem:[%s9519_s8 + $0xe40] sm:$0xff] }
 0x109   : > { %6629 = vmatpush1.bf16.msra.mxu0 %v8347_v18  ;;  %6957 = vmatpush1.bf16.msra.mxu1 %v8349_v19  ;;  %v746_v18 = vld [vmem:[%s9519_s8 + $0xcc0] sm:$0xff] }
 0x10a   : > { %6630 = vmatprep.subr.bf16.mxu0 %v8356_v20  ;;  %6958 = vmatprep.subr.bf16.mxu1 %v8358_v21  ;;  %v750_v19 = vld [vmem:[%s9519_s8 + $0xce0] sm:$0xff]  ;;  %v747_v20 = vld [vmem:[%s9519_s8 + $0xcc8] sm:$0xff] }
 0x10b   : > { %v751_v21 = vld [vmem:[%s9519_s8 + $0xce8] sm:$0xff]  ;;  %v8412_v26 = vcombine.high %v746_v18, %v750_v19  ;;  %v8411_v33 = vcombine.low %v746_v18, %v750_v19  ;;  %v798_v13 = vld [vmem:[%s9519_s8 + $0xe60] sm:$0xff] }
 0x10c   : > { %v8414_v27 = vcombine.high %v747_v20, %v751_v21  ;;  %v8413_v63 = vcombine.low %v747_v20, %v751_v21  ;;  %v8460_v18 = vcombine.high %v794_v31, %v798_v13  ;;  %v802_v20 = vld [vmem:[%s9519_s8 + $0xe80] sm:$0xff] }
 0x10d   : > { %6631 = vmatpush1.bf16.msra.mxu0 %v8355_v28  ;;  %6959 = vmatpush1.bf16.msra.mxu1 %v8357_v29  ;;  %v754_v28 = vld [vmem:[%s9519_s8 + $0xd00] sm:$0xff] }
 0x10e   : > { %6632 = vmatprep.subr.bf16.mxu0 %v8364_v30  ;;  %6960 = vmatprep.subr.bf16.mxu1 %v8366_v32  ;;  %v758_v29 = vld [vmem:[%s9519_s8 + $0xd20] sm:$0xff]  ;;  %v755_v30 = vld [vmem:[%s9519_s8 + $0xd08] sm:$0xff] }
 0x10f   : > { %v759_v32 = vld [vmem:[%s9519_s8 + $0xd28] sm:$0xff]  ;;  %v8420_v35 = vcombine.high %v754_v28, %v758_v29  ;;  %v8419_v42 = vcombine.low %v754_v28, %v758_v29  ;;  %v806_v21 = vld [vmem:[%s9519_s8 + $0xea0] sm:$0xff] }
 0x110   : > { %v8422_v36 = vcombine.high %v755_v30, %v759_v32  ;;  %v8421_v43 = vcombine.low %v755_v30, %v759_v32  ;;  %v8468_v28 = vcombine.high %v802_v20, %v806_v21  ;;  %v810_v30 = vld [vmem:[%s9519_s8 + $0xec0] sm:$0xff] }
 0x111   : > { %6633 = vmatpush1.bf16.msra.mxu0 %v8363_v37  ;;  %6961 = vmatpush1.bf16.msra.mxu1 %v8365_v38  ;;  %v762_v37 = vld [vmem:[%s9519_s8 + $0xd40] sm:$0xff] }
 0x112   : > { %6634 = vmatprep.subr.bf16.mxu0 %v8372_v39  ;;  %6962 = vmatprep.subr.bf16.mxu1 %v8374_v40  ;;  %v766_v38 = vld [vmem:[%s9519_s8 + $0xd60] sm:$0xff]  ;;  %v763_v39 = vld [vmem:[%s9519_s8 + $0xd48] sm:$0xff] }
 0x113   : > { %v767_v40 = vld [vmem:[%s9519_s8 + $0xd68] sm:$0xff]  ;;  %v8428_v45 = vcombine.high %v762_v37, %v766_v38  ;;  %v814_v32 = vld [vmem:[%s9519_s8 + $0xee0] sm:$0xff] }
 0x114   : > { %v8430_v46 = vcombine.high %v763_v39, %v767_v40  ;;  %v8429_v52 = vcombine.low %v763_v39, %v767_v40  ;;  %v818_v39 = vld [vmem:[%s9519_s8 + $0xf00] sm:$0xff] }
 0x115   : > { %6635 = vmatpush1.bf16.msra.mxu0 %v8371_v48  ;;  %6963 = vmatpush1.bf16.msra.mxu1 %v8373_v49  ;;  %v774_v48 = vld [vmem:[%s9519_s8 + $0xda0] sm:$0xff]  ;;  %v771_v49 = vld [vmem:[%s9519_s8 + $0xd88] sm:$0xff] }
 0x116   : > { %6636 = vmatprep.subr.bf16.mxu0 %v8380_v50  ;;  %6964 = vmatprep.subr.bf16.mxu1 %v8382_v16  ;;  %v775_v50 = vld [vmem:[%s9519_s8 + $0xda8] sm:$0xff]  ;;  %v8427_v16 = vcombine.low %v762_v37, %v766_v38  ;;  %v8436_v54 = vcombine.high %v770_v47, %v774_v48  ;;  %v8476_v37 = vcombine.high %v810_v30, %v814_v32  ;;  %v822_v40 = vld [vmem:[%s9519_s8 + $0xf20] sm:$0xff] }
 0x117   : > { %v8438_v23 = vcombine.high %v771_v49, %v775_v50  ;;  %v8437_v62 = vcombine.low %v771_v49, %v775_v50  ;;  %v826_v49 = vld [vmem:[%s9519_s8 + $0xf40] sm:$0xff] }
 0x118   : > { %v830_v50 = vld [vmem:[%s9519_s8 + $0xf60] sm:$0xff] }
 0x119   : > { %6637 = vmatpush1.bf16.msra.mxu0 %v8379_v57  ;;  %6965 = vmatpush1.bf16.msra.mxu1 %v8381_v58  ;;  %v782_v57 = vld [vmem:[%s9519_s8 + $0xde0] sm:$0xff]  ;;  %v779_v58 = vld [vmem:[%s9519_s8 + $0xdc8] sm:$0xff] }
 0x11a   : > { %6647 = vmatprep.subr.bf16.mxu0 %v8388_v60  ;;  %6975 = vmatprep.subr.bf16.mxu1 %v8390_v61  ;;  %v783_v60 = vld [vmem:[%s9519_s8 + $0xde8] sm:$0xff]  ;;  %v8435_v61 = vcombine.low %v770_v47, %v774_v48  ;;  %v8444_v0 = vcombine.high %v778_v56, %v782_v57  ;;  %v8484_v47 = vcombine.high %v818_v39, %v822_v40 }
 0x11b   : > { %v8446_v1 = vcombine.high %v779_v58, %v783_v60 }
 0x11c   : > { %6639 = vmatmul.mubr.bf16.vlgmr.msra.gmra.mrb[0].mxu0 %v9798_v2  ;;  %6967 = vmatmul.mubr.bf16.vlgmr.msra.gmra.mrb[0].mxu1 %v9798_v2 }
 0x11d   : > { %6648 = vmatpush1.bf16.msra.mxu0 %v8387_v5  ;;  %6976 = vmatpush1.bf16.msra.mxu1 %v8389_v6  ;;  %v787_v5 = vld [vmem:[%s9519_s8 + $0xe08] sm:$0xff] }
 0x11e   : > { %6649 = vmatprep.subr.bf16.mxu0 %v8396_v7  ;;  %6977 = vmatprep.subr.bf16.mxu1 %v8398_v8  ;;  %v791_v6 = vld [vmem:[%s9519_s8 + $0xe28] sm:$0xff]  ;;  %v8443_v7 = vcombine.low %v778_v56, %v782_v57  ;;  %v8445_v8 = vcombine.low %v779_v58, %v783_v60  ;;  %v8492_v56 = vcombine.high %v826_v49, %v830_v50  ;;  %v834_v58 = vld [vmem:[%s9519_s8 + $0xf80] sm:$0xff] }
 0x11f   : > { %6679 = vmatprep.mubr.bf16.mxu0 %v9804_v12  ;;  %7007 = vmatprep.mubr.bf16.mxu1 %v9804_v12  ;;  %v8454_v11 = vcombine.high %v787_v5, %v791_v6  ;;  %v838_v60 = vld [vmem:[%s9519_s8 + $0xfa0] sm:$0xff] }
 0x121   : > { %6650 = vmatpush1.bf16.msra.mxu0 %v8395_v14  ;;  %6978 = vmatpush1.bf16.msra.mxu1 %v8397_v15  ;;  %v795_v14 = vld [vmem:[%s9519_s8 + $0xe48] sm:$0xff] }
 0x122   : > { %6651 = vmatprep.subr.bf16.mxu0 %v8404_v59  ;;  %6979 = vmatprep.subr.bf16.mxu1 %v8406_v17  ;;  %v799_v15 = vld [vmem:[%s9519_s8 + $0xe68] sm:$0xff]  ;;  %v8451_v59 = vcombine.low %v786_v3, %v790_v4  ;;  %v8453_v17 = vcombine.low %v787_v5, %v791_v6  ;;  %v8500_v3 = vcombine.high %v834_v58, %v838_v60  ;;  %v842_v5 = vld [vmem:[%s9519_s8 + $0xfc0] sm:$0xff] }
 0x123   : > { %v8462_v19 = vcombine.high %v795_v14, %v799_v15  ;;  %v846_v6 = vld [vmem:[%s9519_s8 + $0xfe0] sm:$0xff] }
 0x125   : > { %6652 = vmatpush1.bf16.msra.mxu0 %v8403_v22  ;;  %6980 = vmatpush1.bf16.msra.mxu1 %v8405_v24  ;;  %v803_v22 = vld [vmem:[%s9519_s8 + $0xe88] sm:$0xff] }
 0x126   : > { %6653 = vmatprep.subr.bf16.mxu0 %v8412_v26  ;;  %6981 = vmatprep.subr.bf16.mxu1 %v8414_v27  ;;  %v807_v24 = vld [vmem:[%s9519_s8 + $0xea8] sm:$0xff]  ;;  %v8459_v26 = vcombine.low %v794_v31, %v798_v13  ;;  %v8461_v27 = vcombine.low %v795_v14, %v799_v15  ;;  %v8508_v13 = vcombine.high %v842_v5, %v846_v6  ;;  %v850_v15 = vld [vmem:[%s9519_s8 + $0x1000] sm:$0xff] }
 0x127   : > { %v8470_v29 = vcombine.high %v803_v22, %v807_v24 }
 0x129   : > { %6654 = vmatpush1.bf16.msra.mxu0 %v8411_v33  ;;  %6982 = vmatpush1.bf16.msra.mxu1 %v8413_v63  ;;  %v811_v33 = vld [vmem:[%s9519_s8 + $0xec8] sm:$0xff] }
 0x12a   : > { %6655 = vmatprep.subr.bf16.mxu0 %v8420_v35  ;;  %6983 = vmatprep.subr.bf16.mxu1 %v8422_v36  ;;  %v815_v63 = vld [vmem:[%s9519_s8 + $0xee8] sm:$0xff]  ;;  %v8467_v35 = vcombine.low %v802_v20, %v806_v21  ;;  %v8469_v36 = vcombine.low %v803_v22, %v807_v24  ;;  %v8507_v20 = vcombine.low %v842_v5, %v846_v6 }
 0x12b   : > { %v8478_v38 = vcombine.high %v811_v33, %v815_v63  ;;  %v891_v5 = vld [vmem:[%s9519_s8 + $0x1148] sm:$0xff] }
 0x12c   : > { %v895_v6 = vld [vmem:[%s9519_s8 + $0x1168] sm:$0xff] }
 0x12d   : > { %6656 = vmatpush1.bf16.msra.mxu0 %v8419_v42  ;;  %6984 = vmatpush1.bf16.msra.mxu1 %v8421_v43  ;;  %v819_v42 = vld [vmem:[%s9519_s8 + $0xf08] sm:$0xff] }
 0x12e   : > { %6657 = vmatprep.subr.bf16.mxu0 %v8428_v45  ;;  %6985 = vmatprep.subr.bf16.mxu1 %v8430_v46  ;;  %v823_v43 = vld [vmem:[%s9519_s8 + $0xf28] sm:$0xff]  ;;  %v8475_v45 = vcombine.low %v810_v30, %v814_v32  ;;  %v8477_v46 = vcombine.low %v811_v33, %v815_v63 }
 0x12f   : > { %v8486_v48 = vcombine.high %v819_v42, %v823_v43  ;;  %v859_v30 = vld [vmem:[%s9519_s8 + $0x1048] sm:$0xff] }
 0x130   : > { %v863_v32 = vld [vmem:[%s9519_s8 + $0x1068] sm:$0xff] }
 0x131   : > { %6658 = vmatpush1.bf16.msra.mxu0 %v8427_v16  ;;  %6986 = vmatpush1.bf16.msra.mxu1 %v8429_v52  ;;  %v827_v16 = vld [vmem:[%s9519_s8 + $0xf48] sm:$0xff] }
 0x132   : > { %6659 = vmatprep.subr.bf16.mxu0 %v8436_v54  ;;  %6987 = vmatprep.subr.bf16.mxu1 %v8438_v23  ;;  %v831_v52 = vld [vmem:[%s9519_s8 + $0xf68] sm:$0xff]  ;;  %v8483_v54 = vcombine.low %v818_v39, %v822_v40  ;;  %v8485_v23 = vcombine.low %v819_v42, %v823_v43  ;;  %v8525_v43 = vcombine.low %v859_v30, %v863_v32 }
 0x133   : > { %v8494_v57 = vcombine.high %v827_v16, %v831_v52  ;;  %v871_v40 = vld [vmem:[%s9519_s8 + $0x10a8] sm:$0xff] }
 0x135   : > { %6660 = vmatpush1.bf16.msra.mxu0 %v8435_v61  ;;  %6988 = vmatpush1.bf16.msra.mxu1 %v8437_v62  ;;  %v835_v61 = vld [vmem:[%s9519_s8 + $0xf88] sm:$0xff] }
 0x136   : > { %6661 = vmatprep.subr.bf16.mxu0 %v8444_v0  ;;  %6989 = vmatprep.subr.bf16.mxu1 %v8446_v1  ;;  %v839_v62 = vld [vmem:[%s9519_s8 + $0xfa8] sm:$0xff]  ;;  %v8491_v0 = vcombine.low %v826_v49, %v830_v50  ;;  %v8493_v1 = vcombine.low %v827_v16, %v831_v52 }
 0x137   : > { %v8502_v4 = vcombine.high %v835_v61, %v839_v62  ;;  %v8501_v31 = vcombine.low %v835_v61, %v839_v62  ;;  %v875_v49 = vld [vmem:[%s9519_s8 + $0x10c8] sm:$0xff] }
 0x138   : > { %v879_v50 = vld [vmem:[%s9519_s8 + $0x10e8] sm:$0xff] }
 0x139   : > { %6662 = vmatpush1.bf16.msra.mxu0 %v8443_v7  ;;  %6990 = vmatpush1.bf16.msra.mxu1 %v8445_v8  ;;  %v843_v7 = vld [vmem:[%s9519_s8 + $0xfc8] sm:$0xff]  ;;  %v8541_v62 = vcombine.low %v875_v49, %v879_v50 }
 0x13a   : > { %6663 = vmatprep.subr.bf16.mxu0 %v8452_v10  ;;  %6991 = vmatprep.subr.bf16.mxu1 %v8454_v11  ;;  %v847_v8 = vld [vmem:[%s9519_s8 + $0xfe8] sm:$0xff]  ;;  %v9867_v10 = vld [vmem:[%s10813_s0 + $0x10] sm:$0xff]  ;;  %v8499_v11 = vcombine.low %v834_v58, %v838_v60 }
 0x13b   : > { %v8510_v14 = vcombine.high %v843_v7, %v847_v8  ;;  %v8509_v21 = vcombine.low %v843_v7, %v847_v8  ;;  %v883_v58 = vld [vmem:[%s9519_s8 + $0x1108] sm:$0xff] }
 0x13c   : > { %v887_v60 = vld [vmem:[%s9519_s8 + $0x1128] sm:$0xff] }
 0x13d   : > { %6664 = vmatpush1.bf16.msra.mxu0 %v8451_v59  ;;  %6992 = vmatpush1.bf16.msra.mxu1 %v8453_v17  ;;  %v854_v59 = vld [vmem:[%s9519_s8 + $0x1020] sm:$0xff]  ;;  %v9873_v17 = vrot.slane %v9867_v10, %v9562_v53  ;;  %v8549_v8 = vcombine.low %v883_v58, %v887_v60 }
 0x13e   : > { %6665 = vmatprep.subr.bf16.mxu0 %v8460_v18  ;;  %6993 = vmatprep.subr.bf16.mxu1 %v8462_v19  ;;  %v851_v18 = vld [vmem:[%s9519_s8 + $0x1008] sm:$0xff]  ;;  %v8516_v22 = vcombine.high %v850_v15, %v854_v59  ;;  %v8515_v33 = vcombine.low %v850_v15, %v854_v59 }
 0x13f   : > { %v855_v19 = vld [vmem:[%s9519_s8 + $0x1028] sm:$0xff] }
 0x140   : > { %v8518_v24 = vcombine.high %v851_v18, %v855_v19  ;;  %v8517_v63 = vcombine.low %v851_v18, %v855_v19  ;;  %v899_v15 = vld [vmem:[%s9519_s8 + $0x1188] sm:$0xff]  ;;  %v8557_v19 = vcombine.low %v891_v5, %v895_v6 }
 0x141   : > { %6666 = vmatpush1.bf16.msra.mxu0 %v8459_v26  ;;  %6994 = vmatpush1.bf16.msra.mxu1 %v8461_v27  ;;  %v858_v26 = vld [vmem:[%s9519_s8 + $0x1040] sm:$0xff]  ;;  %v903_v59 = vld [vmem:[%s9519_s8 + $0x11a8] sm:$0xff] }
 0x142   : > { %6667 = vmatprep.subr.bf16.mxu0 %v8468_v28  ;;  %6995 = vmatprep.subr.bf16.mxu1 %v8470_v29  ;;  %v862_v27 = vld [vmem:[%s9519_s8 + $0x1060] sm:$0xff]  ;;  %v287_v28 = vcombine.high %v9873_v17, %v9873_v17  ;;  %v9883_v29 = vpack.c.bf16 %v9788_v55, %v9788_v55  ;;  %v867_v55 = vld [vmem:[%s9519_s8 + $0x1088] sm:$0xff] }
 0x143   : > { %v8523_v42 = vcombine.low %v858_v26, %v862_v27  ;;  %v8533_v52 = vcombine.low %v867_v55, %v871_v40 }
 0x144   : > { %v9889_v39 = vpack.c.bf16 %v287_v28, %v287_v28 }
 0x145   : > { %6668 = vmatpush1.bf16.msra.mxu0 %v8467_v35  ;;  %6996 = vmatpush1.bf16.msra.mxu1 %v8469_v36  ;;  %v8524_v35 = vcombine.high %v858_v26, %v862_v27  ;;  %v8526_v36 = vcombine.high %v859_v30, %v863_v32  ;;  %v907_v26 = vld [vmem:[%s9519_s8 + $0x11c8] sm:$0xff]  ;;  %v8565_v30 = vcombine.low %v899_v15, %v903_v59 }
 0x146   : > { %6669 = vmatprep.subr.bf16.mxu0 %v8476_v37  ;;  %6997 = vmatprep.subr.bf16.mxu1 %v8478_v38  ;;  %v866_v37 = vld [vmem:[%s9519_s8 + $0x1080] sm:$0xff]  ;;  %v911_v27 = vld [vmem:[%s9519_s8 + $0x11e8] sm:$0xff] }
 0x147   : > { %v870_v38 = vld [vmem:[%s9519_s8 + $0x10a0] sm:$0xff] }
 0x148   : > { %v8531_v16 = vcombine.low %v866_v37, %v870_v38 }
 0x149   : > { %6670 = vmatpush1.bf16.msra.mxu0 %v8475_v45  ;;  %6998 = vmatpush1.bf16.msra.mxu1 %v8477_v46  ;;  %v8532_v45 = vcombine.high %v866_v37, %v870_v38  ;;  %v8534_v46 = vcombine.high %v867_v55, %v871_v40  ;;  %v919_v37 = vld [vmem:[%s9519_s8 + $0x1228] sm:$0xff]  ;;  %v8573_v55 = vcombine.low %v907_v26, %v911_v27 }
 0x14a   : > { %6671 = vmatprep.subr.bf16.mxu0 %v8484_v47  ;;  %6999 = vmatprep.subr.bf16.mxu1 %v8486_v48  ;;  %v874_v47 = vld [vmem:[%s9519_s8 + $0x10c0] sm:$0xff] }
 0x14b   : > { %v878_v48 = vld [vmem:[%s9519_s8 + $0x10e0] sm:$0xff] }
 0x14c   : > { %v8539_v61 = vcombine.low %v874_v47, %v878_v48 }
 0x14d   : > { %6672 = vmatpush1.bf16.msra.mxu0 %v8483_v54  ;;  %7000 = vmatpush1.bf16.msra.mxu1 %v8485_v23  ;;  %v8540_v54 = vcombine.high %v874_v47, %v878_v48  ;;  %v8542_v23 = vcombine.high %v875_v49, %v879_v50  ;;  %v927_v47 = vld [vmem:[%s9519_s8 + $0x1268] sm:$0xff] }
 0x14e   : > { %6673 = vmatprep.subr.bf16.mxu0 %v8492_v56  ;;  %7001 = vmatprep.subr.bf16.mxu1 %v8494_v57  ;;  %v882_v56 = vld [vmem:[%s9519_s8 + $0x1100] sm:$0xff] }
 0x14f   : > { %v886_v57 = vld [vmem:[%s9519_s8 + $0x1120] sm:$0xff] }
 0x150   : > { %v8547_v7 = vcombine.low %v882_v56, %v886_v57 }
 0x151   : > { %6674 = vmatpush1.bf16.msra.mxu0 %v8491_v0  ;;  %7002 = vmatpush1.bf16.msra.mxu1 %v8493_v1  ;;  %v8548_v0 = vcombine.high %v882_v56, %v886_v57  ;;  %v8550_v1 = vcombine.high %v883_v58, %v887_v60  ;;  %v935_v56 = vld [vmem:[%s9519_s8 + $0x12a8] sm:$0xff] }
 0x152   : > { %6675 = vmatprep.subr.bf16.mxu0 %v8500_v3  ;;  %7003 = vmatprep.subr.bf16.mxu1 %v8502_v4  ;;  %v890_v3 = vld [vmem:[%s9519_s8 + $0x1140] sm:$0xff] }
 0x153   : > { %v894_v4 = vld [vmem:[%s9519_s8 + $0x1160] sm:$0xff] }
 0x154   : > { %v8555_v18 = vcombine.low %v890_v3, %v894_v4 }
 0x155   : > { %6676 = vmatpush1.bf16.msra.mxu0 %v8499_v11  ;;  %7004 = vmatpush1.bf16.msra.mxu1 %v8501_v31  ;;  %v8556_v11 = vcombine.high %v890_v3, %v894_v4  ;;  %v8558_v31 = vcombine.high %v891_v5, %v895_v6  ;;  %v943_v3 = vld [vmem:[%s9519_s8 + $0x12e8] sm:$0xff] }
 0x156   : > { %6677 = vmatprep.subr.bf16.mxu0 %v8508_v13  ;;  %7005 = vmatprep.subr.bf16.mxu1 %v8510_v14  ;;  %v898_v13 = vld [vmem:[%s9519_s8 + $0x1180] sm:$0xff] }
 0x157   : > { %v902_v14 = vld [vmem:[%s9519_s8 + $0x11a0] sm:$0xff] }
 0x158   : > { %v8563_v28 = vcombine.low %v898_v13, %v902_v14 }
 0x159   : > { %6678 = vmatpush1.bf16.msra.mxu0 %v8507_v20  ;;  %7006 = vmatpush1.bf16.msra.mxu1 %v8509_v21  ;;  %v8564_v20 = vcombine.high %v898_v13, %v902_v14  ;;  %v8566_v21 = vcombine.high %v899_v15, %v903_v59  ;;  %v951_v13 = vld [vmem:[%s9519_s8 + $0x1328] sm:$0xff] }
 0x15a   : > { %6688 = vmatprep.subr.bf16.mxu0 %v8516_v22  ;;  %7016 = vmatprep.subr.bf16.mxu1 %v8518_v24  ;;  %v906_v22 = vld [vmem:[%s9519_s8 + $0x11c0] sm:$0xff] }
 0x15b   : > { %v910_v24 = vld [vmem:[%s9519_s8 + $0x11e0] sm:$0xff] }
 0x15c   : > { %6680 = vmatmul.mubr.bf16.vlgmr.msra.gmra.mrb[0].mxu0 %v9883_v29  ;;  %7008 = vmatmul.mubr.bf16.vlgmr.msra.gmra.mrb[0].mxu1 %v9883_v29  ;;  %v8572_v32 = vcombine.high %v906_v22, %v910_v24  ;;  %v8571_v38 = vcombine.low %v906_v22, %v910_v24  ;;  %v959_v22 = vld [vmem:[%s9519_s8 + $0x1368] sm:$0xff] }
 0x15d   : > { %6689 = vmatpush1.bf16.msra.mxu0 %v8515_v33  ;;  %7017 = vmatpush1.bf16.msra.mxu1 %v8517_v63  ;;  %v8574_v33 = vcombine.high %v907_v26, %v911_v27  ;;  %v914_v63 = vld [vmem:[%s9519_s8 + $0x1200] sm:$0xff] }
 0x15e   : > { %6690 = vmatprep.subr.bf16.mxu0 %v8524_v35  ;;  %7018 = vmatprep.subr.bf16.mxu1 %v8526_v36  ;;  %v918_v35 = vld [vmem:[%s9519_s8 + $0x1220] sm:$0xff]  ;;  %v915_v36 = vld [vmem:[%s9519_s8 + $0x1208] sm:$0xff] }
 0x15f   : > { %6720 = vmatprep.mubr.bf16.mxu0 %v9889_v39  ;;  %7048 = vmatprep.mubr.bf16.mxu1 %v9889_v39  ;;  %v8580_v40 = vcombine.high %v914_v63, %v918_v35  ;;  %v8579_v48 = vcombine.low %v914_v63, %v918_v35  ;;  %v8581_v49 = vcombine.low %v915_v36, %v919_v37  ;;  %v967_v63 = vld [vmem:[%s9519_s8 + $0x13a8] sm:$0xff] }
 0x161   : > { %6691 = vmatpush1.bf16.msra.mxu0 %v8523_v42  ;;  %7019 = vmatpush1.bf16.msra.mxu1 %v8525_v43  ;;  %v8582_v42 = vcombine.high %v915_v36, %v919_v37  ;;  %v922_v43 = vld [vmem:[%s9519_s8 + $0x1240] sm:$0xff] }
 0x162   : > { %6692 = vmatprep.subr.bf16.mxu0 %v8532_v45  ;;  %7020 = vmatprep.subr.bf16.mxu1 %v8534_v46  ;;  %v926_v45 = vld [vmem:[%s9519_s8 + $0x1260] sm:$0xff]  ;;  %v923_v46 = vld [vmem:[%s9519_s8 + $0x1248] sm:$0xff] }
 0x163   : > { %v8588_v50 = vcombine.high %v922_v43, %v926_v45  ;;  %v8587_v57 = vcombine.low %v922_v43, %v926_v45  ;;  %v8589_v58 = vcombine.low %v923_v46, %v927_v47  ;;  %v971_v43 = vld [vmem:[%s9519_s8 + $0x13c8] sm:$0xff] }
 0x164   : > { %v975_v45 = vld [vmem:[%s9519_s8 + $0x13e8] sm:$0xff] }
 0x165   : > { %6693 = vmatpush1.bf16.msra.mxu0 %v8531_v16  ;;  %7021 = vmatpush1.bf16.msra.mxu1 %v8533_v52  ;;  %v8590_v16 = vcombine.high %v923_v46, %v927_v47  ;;  %v930_v52 = vld [vmem:[%s9519_s8 + $0x1280] sm:$0xff] }
 0x166   : > { %6694 = vmatprep.subr.bf16.mxu0 %v8540_v54  ;;  %7022 = vmatprep.subr.bf16.mxu1 %v8542_v23  ;;  %v934_v54 = vld [vmem:[%s9519_s8 + $0x12a0] sm:$0xff]  ;;  %v931_v23 = vld [vmem:[%s9519_s8 + $0x1288] sm:$0xff] }
 0x167   : > { %v8596_v60 = vcombine.high %v930_v52, %v934_v54  ;;  %v8595_v4 = vcombine.low %v930_v52, %v934_v54  ;;  %v8597_v5 = vcombine.low %v931_v23, %v935_v56  ;;  %v983_v54 = vld [vmem:[%s9519_s8 + $0x1428] sm:$0xff] }
 0x169   : > { %6695 = vmatpush1.bf16.msra.mxu0 %v8539_v61  ;;  %7023 = vmatpush1.bf16.msra.mxu1 %v8541_v62  ;;  %v8598_v61 = vcombine.high %v931_v23, %v935_v56  ;;  %v938_v62 = vld [vmem:[%s9519_s8 + $0x12c0] sm:$0xff]  ;;  %v8637_v56 = vcombine.low %v971_v43, %v975_v45 }
 0x16a   : > { %6696 = vmatprep.subr.bf16.mxu0 %v8548_v0  ;;  %7024 = vmatprep.subr.bf16.mxu1 %v8550_v1  ;;  %v942_v0 = vld [vmem:[%s9519_s8 + $0x12e0] sm:$0xff]  ;;  %v939_v1 = vld [vmem:[%s9519_s8 + $0x12c8] sm:$0xff] }
 0x16b   : > { %v8604_v6 = vcombine.high %v938_v62, %v942_v0  ;;  %v8603_v14 = vcombine.low %v938_v62, %v942_v0  ;;  %v8605_v15 = vcombine.low %v939_v1, %v943_v3  ;;  %v9964_v0 = vpack.c.bf16 %v9873_v17, %v9873_v17  ;;  %v995_v17 = vld [vmem:[%s9519_s8 + $0x1488] sm:$0xff] }
 0x16d   : > { %6697 = vmatpush1.bf16.msra.mxu0 %v8547_v7  ;;  %7025 = vmatpush1.bf16.msra.mxu1 %v8549_v8  ;;  %v8606_v7 = vcombine.high %v939_v1, %v943_v3  ;;  %v946_v8 = vld [vmem:[%s9519_s8 + $0x1300] sm:$0xff]  ;;  %v987_v1 = vld [vmem:[%s9519_s8 + $0x1448] sm:$0xff] }
 0x16e   : > { %6698 = vmatprep.subr.bf16.mxu0 %v8556_v11  ;;  %7026 = vmatprep.subr.bf16.mxu1 %v8558_v31  ;;  %v950_v11 = vld [vmem:[%s9519_s8 + $0x1320] sm:$0xff]  ;;  %v947_v31 = vld [vmem:[%s9519_s8 + $0x1308] sm:$0xff] }
 0x16f   : > { %v8612_v59 = vcombine.high %v946_v8, %v950_v11  ;;  %v8611_v24 = vcombine.low %v946_v8, %v950_v11  ;;  %v8613_v26 = vcombine.low %v947_v31, %v951_v13  ;;  %v991_v3 = vld [vmem:[%s9519_s8 + $0x1468] sm:$0xff]  ;;  %v994_v8 = vld [vmem:[%s9519_s8 + $0x1480] sm:$0xff] }
 0x170   : > { %v998_v11 = vld [vmem:[%s9519_s8 + $0x14a0] sm:$0xff] }
 0x171   : > { %6699 = vmatpush1.bf16.msra.mxu0 %v8555_v18  ;;  %7027 = vmatpush1.bf16.msra.mxu1 %v8557_v19  ;;  %v8614_v18 = vcombine.high %v947_v31, %v951_v13  ;;  %v954_v19 = vld [vmem:[%s9519_s8 + $0x1340] sm:$0xff]  ;;  %v999_v13 = vld [vmem:[%s9519_s8 + $0x14a8] sm:$0xff] }
 0x172   : > { %6700 = vmatprep.subr.bf16.mxu0 %v8564_v20  ;;  %7028 = vmatprep.subr.bf16.mxu1 %v8566_v21  ;;  %v958_v20 = vld [vmem:[%s9519_s8 + $0x1360] sm:$0xff]  ;;  %v955_v21 = vld [vmem:[%s9519_s8 + $0x1348] sm:$0xff] }
 0x173   : > { %v8620_v27 = vcombine.high %v954_v19, %v958_v20  ;;  %v8619_v35 = vcombine.low %v954_v19, %v958_v20  ;;  %v8621_v36 = vcombine.low %v955_v21, %v959_v22  ;;  %v1002_v19 = vld [vmem:[%s9519_s8 + $0x14c0] sm:$0xff] }
 0x174   : > { %v1006_v20 = vld [vmem:[%s9519_s8 + $0x14e0] sm:$0xff] }
 0x175   : > { %6701 = vmatpush1.bf16.msra.mxu0 %v8563_v28  ;;  %7029 = vmatpush1.bf16.msra.mxu1 %v8565_v30  ;;  %v8622_v28 = vcombine.high %v955_v21, %v959_v22  ;;  %v962_v30 = vld [vmem:[%s9519_s8 + $0x1380] sm:$0xff]  ;;  %v1003_v21 = vld [vmem:[%s9519_s8 + $0x14c8] sm:$0xff] }
 0x176   : > { %6702 = vmatprep.subr.bf16.mxu0 %v8572_v32  ;;  %7030 = vmatprep.subr.bf16.mxu1 %v8574_v33  ;;  %v966_v32 = vld [vmem:[%s9519_s8 + $0x13a0] sm:$0xff]  ;;  %v963_v33 = vld [vmem:[%s9519_s8 + $0x1388] sm:$0xff] }
 0x177   : > { %v8628_v37 = vcombine.high %v962_v30, %v966_v32  ;;  %v8627_v46 = vcombine.low %v962_v30, %v966_v32  ;;  %v8629_v47 = vcombine.low %v963_v33, %v967_v63  ;;  %v1007_v22 = vld [vmem:[%s9519_s8 + $0x14e8] sm:$0xff]  ;;  %v1010_v30 = vld [vmem:[%s9519_s8 + $0x1500] sm:$0xff] }
 0x178   : > { %v1014_v32 = vld [vmem:[%s9519_s8 + $0x1520] sm:$0xff] }
 0x179   : > { %6703 = vmatpush1.bf16.msra.mxu0 %v8571_v38  ;;  %7031 = vmatpush1.bf16.msra.mxu1 %v8573_v55  ;;  %v8630_v38 = vcombine.high %v963_v33, %v967_v63  ;;  %v970_v55 = vld [vmem:[%s9519_s8 + $0x13c0] sm:$0xff]  ;;  %v1011_v33 = vld [vmem:[%s9519_s8 + $0x1508] sm:$0xff] }
 0x17a   : > { %6704 = vmatprep.subr.bf16.mxu0 %v8580_v40  ;;  %7032 = vmatprep.subr.bf16.mxu1 %v8582_v42  ;;  %v974_v40 = vld [vmem:[%s9519_s8 + $0x13e0] sm:$0xff]  ;;  %v272_v42 = vcombine.high %v9867_v10, %v9867_v10  ;;  %v979_v10 = vld [vmem:[%s9519_s8 + $0x1408] sm:$0xff] }
 0x17b   : > { %v8635_v23 = vcombine.low %v970_v55, %v974_v40  ;;  %v1015_v63 = vld [vmem:[%s9519_s8 + $0x1528] sm:$0xff] }
 0x17c   : > { %v9954_v52 = vrot.slane %v272_v42, %v9562_v53  ;;  %v1019_v42 = vld [vmem:[%s9519_s8 + $0x1548] sm:$0xff] }
 0x17d   : > { %6705 = vmatpush1.bf16.msra.mxu0 %v8579_v48  ;;  %7033 = vmatpush1.bf16.msra.mxu1 %v8581_v49  ;;  %v8636_v48 = vcombine.high %v970_v55, %v974_v40  ;;  %v8638_v49 = vcombine.high %v971_v43, %v975_v45  ;;  %v1018_v55 = vld [vmem:[%s9519_s8 + $0x1540] sm:$0xff]  ;;  %v1023_v43 = vld [vmem:[%s9519_s8 + $0x1568] sm:$0xff]  ;;  %v8675_v45 = vcombine.low %v1010_v30, %v1014_v32 }
 0x17e   : > { %6706 = vmatprep.subr.bf16.mxu0 %v8588_v50  ;;  %7034 = vmatprep.subr.bf16.mxu1 %v8590_v16  ;;  %v978_v50 = vld [vmem:[%s9519_s8 + $0x1400] sm:$0xff]  ;;  %v288_v62 = vcombine.high %v9954_v52, %v9954_v52 }
 0x17f   : > { %v982_v16 = vld [vmem:[%s9519_s8 + $0x1420] sm:$0xff] }
 0x180   : > { %v9970_v31 = vpack.c.bf16 %v288_v62, %v288_v62  ;;  %v1022_v40 = vld [vmem:[%s9519_s8 + $0x1560] sm:$0xff]  ;;  %v1039_v62 = vld [vmem:[%s9519_s8 + $0x15e8] sm:$0xff] }
 0x181   : > { %6707 = vmatpush1.bf16.msra.mxu0 %v8587_v57  ;;  %7035 = vmatpush1.bf16.msra.mxu1 %v8589_v58  ;;  %v8644_v57 = vcombine.high %v978_v50, %v982_v16  ;;  %v8646_v58 = vcombine.high %v979_v10, %v983_v54 }
 0x182   : > { %6708 = vmatprep.subr.bf16.mxu0 %v8596_v60  ;;  %7036 = vmatprep.subr.bf16.mxu1 %v8598_v61  ;;  %v986_v60 = vld [vmem:[%s9519_s8 + $0x1440] sm:$0xff] }
 0x183   : > { %v990_v61 = vld [vmem:[%s9519_s8 + $0x1460] sm:$0xff] }
 0x185   : > { %6709 = vmatpush1.bf16.msra.mxu0 %v8595_v4  ;;  %7037 = vmatpush1.bf16.msra.mxu1 %v8597_v5  ;;  %v8643_v4 = vcombine.low %v978_v50, %v982_v16  ;;  %v8645_v5 = vcombine.low %v979_v10, %v983_v54  ;;  %v1030_v50 = vld [vmem:[%s9519_s8 + $0x15a0] sm:$0xff]  ;;  %v1027_v16 = vld [vmem:[%s9519_s8 + $0x1588] sm:$0xff]  ;;  %v8683_v54 = vcombine.low %v1018_v55, %v1022_v40 }
 0x186   : > { %6710 = vmatprep.subr.bf16.mxu0 %v8604_v6  ;;  %7038 = vmatprep.subr.bf16.mxu1 %v8606_v7  ;;  %v8652_v6 = vcombine.high %v986_v60, %v990_v61  ;;  %v8654_v7 = vcombine.high %v987_v1, %v991_v3  ;;  %v1031_v10 = vld [vmem:[%s9519_s8 + $0x15a8] sm:$0xff] }
 0x189   : > { %6711 = vmatpush1.bf16.msra.mxu0 %v8603_v14  ;;  %7039 = vmatpush1.bf16.msra.mxu1 %v8605_v15  ;;  %v8651_v14 = vcombine.low %v986_v60, %v990_v61  ;;  %v8653_v15 = vcombine.low %v987_v1, %v991_v3  ;;  %v1038_v60 = vld [vmem:[%s9519_s8 + $0x15e0] sm:$0xff]  ;;  %v1035_v61 = vld [vmem:[%s9519_s8 + $0x15c8] sm:$0xff]  ;;  %v8693_v3 = vcombine.low %v1027_v16, %v1031_v10 }
 0x18a   : > { %6712 = vmatprep.subr.bf16.mxu0 %v8612_v59  ;;  %7040 = vmatprep.subr.bf16.mxu1 %v8614_v18  ;;  %v8660_v59 = vcombine.high %v994_v8, %v998_v11  ;;  %v8662_v18 = vcombine.high %v995_v17, %v999_v13 }
 0x18d   : > { %6713 = vmatpush1.bf16.msra.mxu0 %v8611_v24  ;;  %7041 = vmatpush1.bf16.msra.mxu1 %v8613_v26  ;;  %v8659_v24 = vcombine.low %v994_v8, %v998_v11  ;;  %v8661_v26 = vcombine.low %v995_v17, %v999_v13  ;;  %v1043_v8 = vld [vmem:[%s9519_s8 + $0x1608] sm:$0xff]  ;;  %v8701_v13 = vcombine.low %v1035_v61, %v1039_v62 }
 0x18e   : > { %6714 = vmatprep.subr.bf16.mxu0 %v8620_v27  ;;  %7042 = vmatprep.subr.bf16.mxu1 %v8622_v28  ;;  %v8668_v27 = vcombine.high %v1002_v19, %v1006_v20  ;;  %v8670_v28 = vcombine.high %v1003_v21, %v1007_v22  ;;  %v1047_v11 = vld [vmem:[%s9519_s8 + $0x1628] sm:$0xff] }
 0x191   : > { %6715 = vmatpush1.bf16.msra.mxu0 %v8619_v35  ;;  %7043 = vmatpush1.bf16.msra.mxu1 %v8621_v36  ;;  %v8667_v35 = vcombine.low %v1002_v19, %v1006_v20  ;;  %v8669_v36 = vcombine.low %v1003_v21, %v1007_v22  ;;  %v1051_v19 = vld [vmem:[%s9519_s8 + $0x1648] sm:$0xff]  ;;  %v8709_v22 = vcombine.low %v1043_v8, %v1047_v11 }
 0x192   : > { %6716 = vmatprep.subr.bf16.mxu0 %v8628_v37  ;;  %7044 = vmatprep.subr.bf16.mxu1 %v8630_v38  ;;  %v8676_v37 = vcombine.high %v1010_v30, %v1014_v32  ;;  %v8678_v38 = vcombine.high %v1011_v33, %v1015_v63  ;;  %v1055_v20 = vld [vmem:[%s9519_s8 + $0x1668] sm:$0xff] }
 0x193   : > { %v1059_v30 = vld [vmem:[%s9519_s8 + $0x1688] sm:$0xff] }
 0x194   : > { %v1063_v32 = vld [vmem:[%s9519_s8 + $0x16a8] sm:$0xff] }
 0x195   : > { %6717 = vmatpush1.bf16.msra.mxu0 %v8627_v46  ;;  %7045 = vmatpush1.bf16.msra.mxu1 %v8629_v47  ;;  %v8677_v46 = vcombine.low %v1011_v33, %v1015_v63  ;;  %v8684_v47 = vcombine.high %v1018_v55, %v1022_v40  ;;  %v8717_v63 = vcombine.low %v1051_v19, %v1055_v20  ;;  %v1067_v55 = vld [vmem:[%s9519_s8 + $0x16c8] sm:$0xff] }
 0x196   : > { %6718 = vmatprep.subr.bf16.mxu0 %v8636_v48  ;;  %7046 = vmatprep.subr.bf16.mxu1 %v8638_v49  ;;  %v8686_v48 = vcombine.high %v1019_v42, %v1023_v43  ;;  %v1026_v49 = vld [vmem:[%s9519_s8 + $0x1580] sm:$0xff]  ;;  %v1071_v40 = vld [vmem:[%s9519_s8 + $0x16e8] sm:$0xff] }
 0x197   : > { %v8691_v1 = vcombine.low %v1026_v49, %v1030_v50 }
 0x199   : > { %6719 = vmatpush1.bf16.msra.mxu0 %v8635_v23  ;;  %7047 = vmatpush1.bf16.msra.mxu1 %v8637_v56  ;;  %v8685_v23 = vcombine.low %v1019_v42, %v1023_v43  ;;  %v8692_v56 = vcombine.high %v1026_v49, %v1030_v50  ;;  %v8725_v43 = vcombine.low %v1059_v30, %v1063_v32  ;;  %v1075_v49 = vld [vmem:[%s9519_s8 + $0x1708] sm:$0xff] }
 0x19a   : > { %6729 = vmatprep.subr.bf16.mxu0 %v8644_v57  ;;  %7057 = vmatprep.subr.bf16.mxu1 %v8646_v58  ;;  %v8694_v57 = vcombine.high %v1027_v16, %v1031_v10  ;;  %v1034_v58 = vld [vmem:[%s9519_s8 + $0x15c0] sm:$0xff]  ;;  %v1079_v50 = vld [vmem:[%s9519_s8 + $0x1728] sm:$0xff]  ;;  %v8733_v10 = vcombine.low %v1067_v55, %v1071_v40 }
 0x19b   : > { %v8699_v17 = vcombine.low %v1034_v58, %v1038_v60 }
 0x19c   : > { %6721 = vmatmul.mubr.bf16.vlgmr.msra.gmra.mrb[0].mxu0 %v9964_v0  ;;  %7049 = vmatmul.mubr.bf16.vlgmr.msra.gmra.mrb[0].mxu1 %v9964_v0 }
 0x19d   : > { %6730 = vmatpush1.bf16.msra.mxu0 %v8643_v4  ;;  %7058 = vmatpush1.bf16.msra.mxu1 %v8645_v5  ;;  %v8700_v4 = vcombine.high %v1034_v58, %v1038_v60  ;;  %v8702_v5 = vcombine.high %v1035_v61, %v1039_v62  ;;  %v1083_v58 = vld [vmem:[%s9519_s8 + $0x1748] sm:$0xff]  ;;  %v8741_v62 = vcombine.low %v1075_v49, %v1079_v50 }
 0x19e   : > { %6731 = vmatprep.subr.bf16.mxu0 %v8652_v6  ;;  %7059 = vmatprep.subr.bf16.mxu1 %v8654_v7  ;;  %v1042_v6 = vld [vmem:[%s9519_s8 + $0x1600] sm:$0xff]  ;;  %v1087_v60 = vld [vmem:[%s9519_s8 + $0x1768] sm:$0xff] }
 0x19f   : > { %6761 = vmatprep.mubr.bf16.mxu0 %v9970_v31  ;;  %7089 = vmatprep.mubr.bf16.mxu1 %v9970_v31  ;;  %v1046_v7 = vld [vmem:[%s9519_s8 + $0x1620] sm:$0xff] }
 0x1a0   : > { %v8707_v21 = vcombine.low %v1042_v6, %v1046_v7 }
 0x1a1   : > { %6732 = vmatpush1.bf16.msra.mxu0 %v8651_v14  ;;  %7060 = vmatpush1.bf16.msra.mxu1 %v8653_v15  ;;  %v8708_v14 = vcombine.high %v1042_v6, %v1046_v7  ;;  %v8710_v15 = vcombine.high %v1043_v8, %v1047_v11  ;;  %v1091_v6 = vld [vmem:[%s9519_s8 + $0x1788] sm:$0xff]  ;;  %v8749_v11 = vcombine.low %v1083_v58, %v1087_v60 }
 0x1a2   : > { %6733 = vmatprep.subr.bf16.mxu0 %v8660_v59  ;;  %7061 = vmatprep.subr.bf16.mxu1 %v8662_v18  ;;  %v1050_v59 = vld [vmem:[%s9519_s8 + $0x1640] sm:$0xff]  ;;  %v1095_v7 = vld [vmem:[%s9519_s8 + $0x17a8] sm:$0xff] }
 0x1a3   : > { %v1054_v18 = vld [vmem:[%s9519_s8 + $0x1660] sm:$0xff] }
 0x1a4   : > { %v8715_v33 = vcombine.low %v1050_v59, %v1054_v18 }
 0x1a5   : > { %6734 = vmatpush1.bf16.msra.mxu0 %v8659_v24  ;;  %7062 = vmatpush1.bf16.msra.mxu1 %v8661_v26  ;;  %v8716_v24 = vcombine.high %v1050_v59, %v1054_v18  ;;  %v8718_v26 = vcombine.high %v1051_v19, %v1055_v20  ;;  %v1099_v59 = vld [vmem:[%s9519_s8 + $0x17c8] sm:$0xff]  ;;  %v10033_v19 = vld [vmem:[%s10813_s0 + $0x18] sm:$0xff] }
 0x1a6   : > { %6735 = vmatprep.subr.bf16.mxu0 %v8668_v27  ;;  %7063 = vmatprep.subr.bf16.mxu1 %v8670_v28  ;;  %v1058_v27 = vld [vmem:[%s9519_s8 + $0x1680] sm:$0xff]  ;;  %v1103_v18 = vld [vmem:[%s9519_s8 + $0x17e8] sm:$0xff] }
 0x1a7   : > { %v1062_v28 = vld [vmem:[%s9519_s8 + $0x16a0] sm:$0xff] }
 0x1a8   : > { %v8723_v42 = vcombine.low %v1058_v27, %v1062_v28 }
 0x1a9   : > { %6736 = vmatpush1.bf16.msra.mxu0 %v8667_v35  ;;  %7064 = vmatpush1.bf16.msra.mxu1 %v8669_v36  ;;  %v8724_v35 = vcombine.high %v1058_v27, %v1062_v28  ;;  %v8726_v36 = vcombine.high %v1059_v30, %v1063_v32  ;;  %v1110_v27 = vld [vmem:[%s9519_s8 + $0x1820] sm:$0xff]  ;;  %v10039_v28 = vrot.slane %v10033_v19, %v9562_v53  ;;  %v1107_v30 = vld [vmem:[%s9519_s8 + $0x1808] sm:$0xff] }
 0x1aa   : > { %6737 = vmatprep.subr.bf16.mxu0 %v8676_v37  ;;  %7065 = vmatprep.subr.bf16.mxu1 %v8678_v38  ;;  %v1066_v37 = vld [vmem:[%s9519_s8 + $0x16c0] sm:$0xff]  ;;  %v1111_v32 = vld [vmem:[%s9519_s8 + $0x1828] sm:$0xff] }
 0x1ab   : > { %v1070_v38 = vld [vmem:[%s9519_s8 + $0x16e0] sm:$0xff] }
 0x1ac   : > { %v8731_v16 = vcombine.low %v1066_v37, %v1070_v38 }
 0x1ad   : > { %6738 = vmatpush1.bf16.msra.mxu0 %v8675_v45  ;;  %7066 = vmatpush1.bf16.msra.mxu1 %v8677_v46  ;;  %v8732_v45 = vcombine.high %v1066_v37, %v1070_v38  ;;  %v8734_v46 = vcombine.high %v1067_v55, %v1071_v40  ;;  %v1114_v37 = vld [vmem:[%s9519_s8 + $0x1840] sm:$0xff]  ;;  %v304_v55 = vcombine.high %v10039_v28, %v10039_v28 }
 0x1ae   : > { %6739 = vmatprep.subr.bf16.mxu0 %v8684_v47  ;;  %7067 = vmatprep.subr.bf16.mxu1 %v8686_v48  ;;  %v1074_v47 = vld [vmem:[%s9519_s8 + $0x1700] sm:$0xff]  ;;  %v10049_v40 = vpack.c.bf16 %v9954_v52, %v9954_v52  ;;  %v1123_v52 = vld [vmem:[%s9519_s8 + $0x1888] sm:$0xff] }
 0x1af   : > { %v1078_v48 = vld [vmem:[%s9519_s8 + $0x1720] sm:$0xff] }
 0x1b0   : > { %v8739_v61 = vcombine.low %v1074_v47, %v1078_v48  ;;  %v1118_v38 = vld [vmem:[%s9519_s8 + $0x1860] sm:$0xff] }
 0x1b1   : > { %6740 = vmatpush1.bf16.msra.mxu0 %v8683_v54  ;;  %7068 = vmatpush1.bf16.msra.mxu1 %v8685_v23  ;;  %v8740_v54 = vcombine.high %v1074_v47, %v1078_v48  ;;  %v8742_v23 = vcombine.high %v1075_v49, %v1079_v50  ;;  %v8780_v47 = vcombine.high %v1114_v37, %v1118_v38  ;;  %v1122_v49 = vld [vmem:[%s9519_s8 + $0x1880] sm:$0xff] }
 0x1b2   : > { %6741 = vmatprep.subr.bf16.mxu0 %v8692_v56  ;;  %7069 = vmatprep.subr.bf16.mxu1 %v8694_v57  ;;  %v1082_v56 = vld [vmem:[%s9519_s8 + $0x1740] sm:$0xff] }
 0x1b3   : > { %v1086_v57 = vld [vmem:[%s9519_s8 + $0x1760] sm:$0xff] }
 0x1b4   : > { %v8747_v8 = vcombine.low %v1082_v56, %v1086_v57  ;;  %v1126_v50 = vld [vmem:[%s9519_s8 + $0x18a0] sm:$0xff] }
 0x1b5   : > { %6742 = vmatpush1.bf16.msra.mxu0 %v8691_v1  ;;  %7070 = vmatpush1.bf16.msra.mxu1 %v8693_v3  ;;  %v8748_v1 = vcombine.high %v1082_v56, %v1086_v57  ;;  %v8750_v3 = vcombine.high %v1083_v58, %v1087_v60  ;;  %v8788_v56 = vcombine.high %v1122_v49, %v1126_v50  ;;  %v1130_v58 = vld [vmem:[%s9519_s8 + $0x18c0] sm:$0xff] }
 0x1b6   : > { %6743 = vmatprep.subr.bf16.mxu0 %v8700_v4  ;;  %7071 = vmatprep.subr.bf16.mxu1 %v8702_v5  ;;  %v1090_v4 = vld [vmem:[%s9519_s8 + $0x1780] sm:$0xff] }
 0x1b7   : > { %v1094_v5 = vld [vmem:[%s9519_s8 + $0x17a0] sm:$0xff] }
 0x1b8   : > { %v8755_v20 = vcombine.low %v1090_v4, %v1094_v5  ;;  %v1134_v60 = vld [vmem:[%s9519_s8 + $0x18e0] sm:$0xff] }
 0x1b9   : > { %6744 = vmatpush1.bf16.msra.mxu0 %v8699_v17  ;;  %7072 = vmatpush1.bf16.msra.mxu1 %v8701_v13  ;;  %v8756_v17 = vcombine.high %v1090_v4, %v1094_v5  ;;  %v8758_v13 = vcombine.high %v1091_v6, %v1095_v7  ;;  %v8796_v4 = vcombine.high %v1130_v58, %v1134_v60 }
 0x1ba   : > { %6745 = vmatprep.subr.bf16.mxu0 %v8708_v14  ;;  %7073 = vmatprep.subr.bf16.mxu1 %v8710_v15  ;;  %v1098_v14 = vld [vmem:[%s9519_s8 + $0x17c0] sm:$0xff] }
 0x1bb   : > { %v1102_v15 = vld [vmem:[%s9519_s8 + $0x17e0] sm:$0xff] }
 0x1bd   : > { %6746 = vmatpush1.bf16.msra.mxu0 %v8707_v21  ;;  %7074 = vmatpush1.bf16.msra.mxu1 %v8709_v22  ;;  %v8757_v21 = vcombine.low %v1091_v6, %v1095_v7  ;;  %v8764_v22 = vcombine.high %v1098_v14, %v1102_v15  ;;  %v1138_v6 = vld [vmem:[%s9519_s8 + $0x1900] sm:$0xff] }
 0x1be   : > { %6747 = vmatprep.subr.bf16.mxu0 %v8716_v24  ;;  %7075 = vmatprep.subr.bf16.mxu1 %v8718_v26  ;;  %v8766_v24 = vcombine.high %v1099_v59, %v1103_v18  ;;  %v1106_v26 = vld [vmem:[%s9519_s8 + $0x1800] sm:$0xff] }
 0x1bf   : > { %v1142_v7 = vld [vmem:[%s9519_s8 + $0x1920] sm:$0xff] }
 0x1c1   : > { %6748 = vmatpush1.bf16.msra.mxu0 %v8715_v33  ;;  %7076 = vmatpush1.bf16.msra.mxu1 %v8717_v63  ;;  %v8763_v33 = vcombine.low %v1098_v14, %v1102_v15  ;;  %v8765_v63 = vcombine.low %v1099_v59, %v1103_v18  ;;  %v8804_v14 = vcombine.high %v1138_v6, %v1142_v7  ;;  %v1146_v59 = vld [vmem:[%s9519_s8 + $0x1940] sm:$0xff] }
 0x1c2   : > { %6749 = vmatprep.subr.bf16.mxu0 %v8724_v35  ;;  %7077 = vmatprep.subr.bf16.mxu1 %v8726_v36  ;;  %v8772_v35 = vcombine.high %v1106_v26, %v1110_v27  ;;  %v8774_v36 = vcombine.high %v1107_v30, %v1111_v32  ;;  %v1150_v18 = vld [vmem:[%s9519_s8 + $0x1960] sm:$0xff] }
 0x1c5   : > { %6750 = vmatpush1.bf16.msra.mxu0 %v8723_v42  ;;  %7078 = vmatpush1.bf16.msra.mxu1 %v8725_v43  ;;  %v1115_v42 = vld [vmem:[%s9519_s8 + $0x1848] sm:$0xff] }
 0x1c6   : > { %6751 = vmatprep.subr.bf16.mxu0 %v8732_v45  ;;  %7079 = vmatprep.subr.bf16.mxu1 %v8734_v46  ;;  %v1119_v43 = vld [vmem:[%s9519_s8 + $0x1868] sm:$0xff]  ;;  %v8771_v45 = vcombine.low %v1106_v26, %v1110_v27  ;;  %v8773_v46 = vcombine.low %v1107_v30, %v1111_v32  ;;  %v8812_v26 = vcombine.high %v1146_v59, %v1150_v18  ;;  %v1154_v30 = vld [vmem:[%s9519_s8 + $0x1980] sm:$0xff] }
 0x1c7   : > { %v8782_v48 = vcombine.high %v1115_v42, %v1119_v43  ;;  %v1158_v32 = vld [vmem:[%s9519_s8 + $0x19a0] sm:$0xff] }
 0x1c9   : > { %6752 = vmatpush1.bf16.msra.mxu0 %v8731_v16  ;;  %7080 = vmatpush1.bf16.msra.mxu1 %v8733_v10  ;;  %v10055_v16 = vpack.c.bf16 %v304_v55, %v304_v55  ;;  %v1127_v10 = vld [vmem:[%s9519_s8 + $0x18a8] sm:$0xff]  ;;  %v1162_v55 = vld [vmem:[%s9519_s8 + $0x19c0] sm:$0xff] }
 0x1ca   : > { %6753 = vmatprep.subr.bf16.mxu0 %v8740_v54  ;;  %7081 = vmatprep.subr.bf16.mxu1 %v8742_v23  ;;  %v8779_v54 = vcombine.low %v1114_v37, %v1118_v38  ;;  %v8781_v23 = vcombine.low %v1115_v42, %v1119_v43  ;;  %v8790_v57 = vcombine.high %v1123_v52, %v1127_v10  ;;  %v1166_v42 = vld [vmem:[%s9519_s8 + $0x19e0] sm:$0xff]  ;;  %v1163_v43 = vld [vmem:[%s9519_s8 + $0x19c8] sm:$0xff] }
 0x1cb   : > { %v8820_v37 = vcombine.high %v1154_v30, %v1158_v32 }
 0x1cd   : > { %6754 = vmatpush1.bf16.msra.mxu0 %v8739_v61  ;;  %7082 = vmatpush1.bf16.msra.mxu1 %v8741_v62  ;;  %v1131_v61 = vld [vmem:[%s9519_s8 + $0x18c8] sm:$0xff] }
 0x1ce   : > { %6755 = vmatprep.subr.bf16.mxu0 %v8748_v1  ;;  %7083 = vmatprep.subr.bf16.mxu1 %v8750_v3  ;;  %v1135_v62 = vld [vmem:[%s9519_s8 + $0x18e8] sm:$0xff]  ;;  %v8787_v1 = vcombine.low %v1122_v49, %v1126_v50  ;;  %v8789_v3 = vcombine.low %v1123_v52, %v1127_v10  ;;  %v1170_v50 = vld [vmem:[%s9519_s8 + $0x1a00] sm:$0xff] }
 0x1cf   : > { %v8798_v5 = vcombine.high %v1131_v61, %v1135_v62  ;;  %v1174_v52 = vld [vmem:[%s9519_s8 + $0x1a20] sm:$0xff]  ;;  %v1171_v10 = vld [vmem:[%s9519_s8 + $0x1a08] sm:$0xff] }
 0x1d1   : > { %6756 = vmatpush1.bf16.msra.mxu0 %v8747_v8  ;;  %7084 = vmatpush1.bf16.msra.mxu1 %v8749_v11  ;;  %v1139_v8 = vld [vmem:[%s9519_s8 + $0x1908] sm:$0xff] }
 0x1d2   : > { %6757 = vmatprep.subr.bf16.mxu0 %v8756_v17  ;;  %7085 = vmatprep.subr.bf16.mxu1 %v8758_v13  ;;  %v1143_v11 = vld [vmem:[%s9519_s8 + $0x1928] sm:$0xff]  ;;  %v8795_v17 = vcombine.low %v1130_v58, %v1134_v60  ;;  %v8797_v13 = vcombine.low %v1131_v61, %v1135_v62  ;;  %v1178_v60 = vld [vmem:[%s9519_s8 + $0x1a40] sm:$0xff] }
 0x1d3   : > { %v8806_v15 = vcombine.high %v1139_v8, %v1143_v11  ;;  %v1182_v61 = vld [vmem:[%s9519_s8 + $0x1a60] sm:$0xff]  ;;  %v1179_v62 = vld [vmem:[%s9519_s8 + $0x1a48] sm:$0xff] }
 0x1d5   : > { %6758 = vmatpush1.bf16.msra.mxu0 %v8755_v20  ;;  %7086 = vmatpush1.bf16.msra.mxu1 %v8757_v21  ;;  %v1147_v20 = vld [vmem:[%s9519_s8 + $0x1948] sm:$0xff] }
 0x1d6   : > { %6759 = vmatprep.subr.bf16.mxu0 %v8764_v22  ;;  %7087 = vmatprep.subr.bf16.mxu1 %v8766_v24  ;;  %v1151_v21 = vld [vmem:[%s9519_s8 + $0x1968] sm:$0xff]  ;;  %v8803_v22 = vcombine.low %v1138_v6, %v1142_v7  ;;  %v8805_v24 = vcombine.low %v1139_v8, %v1143_v11  ;;  %v1186_v7 = vld [vmem:[%s9519_s8 + $0x1a80] sm:$0xff] }
 0x1d7   : > { %v8814_v27 = vcombine.high %v1147_v20, %v1151_v21  ;;  %v1190_v8 = vld [vmem:[%s9519_s8 + $0x1aa0] sm:$0xff]  ;;  %v1187_v11 = vld [vmem:[%s9519_s8 + $0x1a88] sm:$0xff] }
 0x1d9   : > { %6760 = vmatpush1.bf16.msra.mxu0 %v8763_v33  ;;  %7088 = vmatpush1.bf16.msra.mxu1 %v8765_v63  ;;  %v1155_v33 = vld [vmem:[%s9519_s8 + $0x1988] sm:$0xff] }
 0x1da   : > { %6770 = vmatprep.subr.bf16.mxu0 %v8772_v35  ;;  %7098 = vmatprep.subr.bf16.mxu1 %v8774_v36  ;;  %v1159_v63 = vld [vmem:[%s9519_s8 + $0x19a8] sm:$0xff]  ;;  %v8811_v35 = vcombine.low %v1146_v59, %v1150_v18  ;;  %v8813_v36 = vcombine.low %v1147_v20, %v1151_v21  ;;  %v1194_v18 = vld [vmem:[%s9519_s8 + $0x1ac0] sm:$0xff] }
 0x1db   : > { %v8822_v38 = vcombine.high %v1155_v33, %v1159_v63  ;;  %v1198_v20 = vld [vmem:[%s9519_s8 + $0x1ae0] sm:$0xff]  ;;  %v1195_v21 = vld [vmem:[%s9519_s8 + $0x1ac8] sm:$0xff] }
 0x1dc   : > { %6762 = vmatmul.mubr.bf16.vlgmr.msra.gmra.mrb[0].mxu0 %v10049_v40  ;;  %7090 = vmatmul.mubr.bf16.vlgmr.msra.gmra.mrb[0].mxu1 %v10049_v40 }
 0x1dd   : > { %6771 = vmatpush1.bf16.msra.mxu0 %v8771_v45  ;;  %7099 = vmatpush1.bf16.msra.mxu1 %v8773_v46  ;;  %v1167_v45 = vld [vmem:[%s9519_s8 + $0x19e8] sm:$0xff]  ;;  %v8819_v46 = vcombine.low %v1154_v30, %v1158_v32  ;;  %v1202_v32 = vld [vmem:[%s9519_s8 + $0x1b00] sm:$0xff] }
 0x1de   : > { %6772 = vmatprep.subr.bf16.mxu0 %v8780_v47  ;;  %7100 = vmatprep.subr.bf16.mxu1 %v8782_v48  ;;  %v8821_v47 = vcombine.low %v1155_v33, %v1159_v63  ;;  %v8828_v48 = vcombine.high %v1162_v55, %v1166_v42  ;;  %v8830_v49 = vcombine.high %v1163_v43, %v1167_v45  ;;  %v1206_v33 = vld [vmem:[%s9519_s8 + $0x1b20] sm:$0xff]  ;;  %v1203_v63 = vld [vmem:[%s9519_s8 + $0x1b08] sm:$0xff] }
 0x1df   : > { %6802 = vmatprep.mubr.bf16.mxu0 %v10055_v16  ;;  %7130 = vmatprep.mubr.bf16.mxu1 %v10055_v16 }
 0x1e1   : > { %6773 = vmatpush1.bf16.msra.mxu0 %v8779_v54  ;;  %7101 = vmatpush1.bf16.msra.mxu1 %v8781_v23  ;;  %v1175_v54 = vld [vmem:[%s9519_s8 + $0x1a28] sm:$0xff]  ;;  %v8827_v23 = vcombine.low %v1162_v55, %v1166_v42  ;;  %v1210_v42 = vld [vmem:[%s9519_s8 + $0x1b40] sm:$0xff] }
 0x1e2   : > { %6774 = vmatprep.subr.bf16.mxu0 %v8788_v56  ;;  %7102 = vmatprep.subr.bf16.mxu1 %v8790_v57  ;;  %v8829_v56 = vcombine.low %v1163_v43, %v1167_v45  ;;  %v8836_v57 = vcombine.high %v1170_v50, %v1174_v52  ;;  %v8838_v58 = vcombine.high %v1171_v10, %v1175_v54  ;;  %v1214_v43 = vld [vmem:[%s9519_s8 + $0x1b60] sm:$0xff]  ;;  %v1211_v45 = vld [vmem:[%s9519_s8 + $0x1b48] sm:$0xff] }
 0x1e5   : > { %6775 = vmatpush1.bf16.msra.mxu0 %v8787_v1  ;;  %7103 = vmatpush1.bf16.msra.mxu1 %v8789_v3  ;;  %v1183_v1 = vld [vmem:[%s9519_s8 + $0x1a68] sm:$0xff]  ;;  %v8835_v3 = vcombine.low %v1170_v50, %v1174_v52  ;;  %v1218_v52 = vld [vmem:[%s9519_s8 + $0x1b80] sm:$0xff] }
 0x1e6   : > { %6776 = vmatprep.subr.bf16.mxu0 %v8796_v4  ;;  %7104 = vmatprep.subr.bf16.mxu1 %v8798_v5  ;;  %v8837_v4 = vcombine.low %v1171_v10, %v1175_v54  ;;  %v8844_v5 = vcombine.high %v1178_v60, %v1182_v61  ;;  %v8846_v6 = vcombine.high %v1179_v62, %v1183_v1  ;;  %v1222_v10 = vld [vmem:[%s9519_s8 + $0x1ba0] sm:$0xff]  ;;  %v1219_v54 = vld [vmem:[%s9519_s8 + $0x1b88] sm:$0xff] }
 0x1e9   : > { %6777 = vmatpush1.bf16.msra.mxu0 %v8795_v17  ;;  %7105 = vmatpush1.bf16.msra.mxu1 %v8797_v13  ;;  %v1191_v17 = vld [vmem:[%s9519_s8 + $0x1aa8] sm:$0xff]  ;;  %v8843_v13 = vcombine.low %v1178_v60, %v1182_v61  ;;  %v1226_v61 = vld [vmem:[%s9519_s8 + $0x1bc0] sm:$0xff] }
 0x1ea   : > { %6778 = vmatprep.subr.bf16.mxu0 %v8804_v14  ;;  %7106 = vmatprep.subr.bf16.mxu1 %v8806_v15  ;;  %v8845_v14 = vcombine.low %v1179_v62, %v1183_v1  ;;  %v8852_v15 = vcombine.high %v1186_v7, %v1190_v8  ;;  %v8854_v59 = vcombine.high %v1187_v11, %v1191_v17  ;;  %v1230_v62 = vld [vmem:[%s9519_s8 + $0x1be0] sm:$0xff] }
 0x1eb   : > { %v289_v1 = vcombine.high %v10033_v19, %v10033_v19  ;;  %v1235_v19 = vld [vmem:[%s9519_s8 + $0x1c08] sm:$0xff] }
 0x1ed   : > { %6779 = vmatpush1.bf16.msra.mxu0 %v8803_v22  ;;  %7107 = vmatpush1.bf16.msra.mxu1 %v8805_v24  ;;  %v1199_v22 = vld [vmem:[%s9519_s8 + $0x1ae8] sm:$0xff]  ;;  %v8851_v24 = vcombine.low %v1186_v7, %v1190_v8  ;;  %v8892_v7 = vcombine.high %v1226_v61, %v1230_v62 }
 0x1ee   : > { %6780 = vmatprep.subr.bf16.mxu0 %v8812_v26  ;;  %7108 = vmatprep.subr.bf16.mxu1 %v8814_v27  ;;  %v8853_v26 = vcombine.low %v1187_v11, %v1191_v17  ;;  %v8860_v27 = vcombine.high %v1194_v18, %v1198_v20  ;;  %v8862_v30 = vcombine.high %v1195_v21, %v1199_v22  ;;  %v1234_v11 = vld [vmem:[%s9519_s8 + $0x1c00] sm:$0xff] }
 0x1ef   : > { %v1238_v17 = vld [vmem:[%s9519_s8 + $0x1c20] sm:$0xff] }
 0x1f1   : > { %6781 = vmatpush1.bf16.msra.mxu0 %v8811_v35  ;;  %7109 = vmatpush1.bf16.msra.mxu1 %v8813_v36  ;;  %v1207_v35 = vld [vmem:[%s9519_s8 + $0x1b28] sm:$0xff]  ;;  %v8859_v36 = vcombine.low %v1194_v18, %v1198_v20  ;;  %v8900_v18 = vcombine.high %v1234_v11, %v1238_v17 }
 0x1f2   : > { %6782 = vmatprep.subr.bf16.mxu0 %v8820_v37  ;;  %7110 = vmatprep.subr.bf16.mxu1 %v8822_v38  ;;  %v8861_v37 = vcombine.low %v1195_v21, %v1199_v22  ;;  %v8868_v38 = vcombine.high %v1202_v32, %v1206_v33  ;;  %v8870_v55 = vcombine.high %v1203_v63, %v1207_v35  ;;  %v1242_v21 = vld [vmem:[%s9519_s8 + $0x1c40] sm:$0xff] }
 0x1f3   : > { %v1246_v22 = vld [vmem:[%s9519_s8 + $0x1c60] sm:$0xff] }
 0x1f5   : > { %6783 = vmatpush1.bf16.msra.mxu0 %v8819_v46  ;;  %7111 = vmatpush1.bf16.msra.mxu1 %v8821_v47  ;;  %v1215_v46 = vld [vmem:[%s9519_s8 + $0x1b68] sm:$0xff]  ;;  %v8867_v47 = vcombine.low %v1202_v32, %v1206_v33  ;;  %v8899_v32 = vcombine.low %v1234_v11, %v1238_v17 }
 0x1f6   : > { %6784 = vmatprep.subr.bf16.mxu0 %v8828_v48  ;;  %7112 = vmatprep.subr.bf16.mxu1 %v8830_v49  ;;  %v8869_v48 = vcombine.low %v1203_v63, %v1207_v35  ;;  %v8876_v49 = vcombine.high %v1210_v42, %v1214_v43  ;;  %v8878_v50 = vcombine.high %v1211_v45, %v1215_v46 }
 0x1f7   : > { %v8908_v63 = vcombine.high %v1242_v21, %v1246_v22 }
 0x1f9   : > { %6785 = vmatpush1.bf16.msra.mxu0 %v8827_v23  ;;  %7113 = vmatpush1.bf16.msra.mxu1 %v8829_v56  ;;  %v1223_v23 = vld [vmem:[%s9519_s8 + $0x1ba8] sm:$0xff]  ;;  %v8875_v56 = vcombine.low %v1210_v42, %v1214_v43  ;;  %v8907_v42 = vcombine.low %v1242_v21, %v1246_v22 }
 0x1fa   : > { %6786 = vmatprep.subr.bf16.mxu0 %v8836_v57  ;;  %7114 = vmatprep.subr.bf16.mxu1 %v8838_v58  ;;  %v8877_v57 = vcombine.low %v1211_v45, %v1215_v46  ;;  %v8884_v58 = vcombine.high %v1218_v52, %v1222_v10  ;;  %v8886_v60 = vcombine.high %v1219_v54, %v1223_v23 }
 0x1fd   : > { %6787 = vmatpush1.bf16.msra.mxu0 %v8835_v3  ;;  %7115 = vmatpush1.bf16.msra.mxu1 %v8837_v4  ;;  %v1227_v3 = vld [vmem:[%s9519_s8 + $0x1bc8] sm:$0xff] }
 0x1fe   : > { %6788 = vmatprep.subr.bf16.mxu0 %v8844_v5  ;;  %7116 = vmatprep.subr.bf16.mxu1 %v8846_v6  ;;  %v1231_v4 = vld [vmem:[%s9519_s8 + $0x1be8] sm:$0xff]  ;;  %v8883_v5 = vcombine.low %v1218_v52, %v1222_v10  ;;  %v8885_v6 = vcombine.low %v1219_v54, %v1223_v23 }
 0x1ff   : > { %v8894_v8 = vcombine.high %v1227_v3, %v1231_v4 }
 0x201   : > { %6789 = vmatpush1.bf16.msra.mxu0 %v8843_v13  ;;  %7117 = vmatpush1.bf16.msra.mxu1 %v8845_v14  ;;  %v10120_v13 = vrot.slane %v289_v1, %v9562_v53  ;;  %v1239_v14 = vld [vmem:[%s9519_s8 + $0x1c28] sm:$0xff] }
 0x202   : > { %6790 = vmatprep.subr.bf16.mxu0 %v8852_v15  ;;  %7118 = vmatprep.subr.bf16.mxu1 %v8854_v59  ;;  %v8891_v15 = vcombine.low %v1226_v61, %v1230_v62  ;;  %v8893_v59 = vcombine.low %v1227_v3, %v1231_v4  ;;  %v8902_v20 = vcombine.high %v1235_v19, %v1239_v14  ;;  %v1274_v4 = vld [vmem:[%s9519_s8 + $0x1d40] sm:$0xff] }
 0x203   : > { %v8901_v33 = vcombine.low %v1235_v19, %v1239_v14  ;;  %v1282_v14 = vld [vmem:[%s9519_s8 + $0x1d80] sm:$0xff] }
 0x205   : > { %6791 = vmatpush1.bf16.msra.mxu0 %v8851_v24  ;;  %7119 = vmatpush1.bf16.msra.mxu1 %v8853_v26  ;;  %v305_v24 = vcombine.high %v10120_v13, %v10120_v13  ;;  %v10130_v26 = vpack.c.bf16 %v10039_v28, %v10039_v28  ;;  %v1251_v28 = vld [vmem:[%s9519_s8 + $0x1c88] sm:$0xff] }
 0x206   : > { %6792 = vmatprep.subr.bf16.mxu0 %v8860_v27  ;;  %7120 = vmatprep.subr.bf16.mxu1 %v8862_v30  ;;  %v1243_v27 = vld [vmem:[%s9519_s8 + $0x1c48] sm:$0xff] }
 0x207   : > { %v1247_v30 = vld [vmem:[%s9519_s8 + $0x1c68] sm:$0xff] }
 0x208   : > { %v8910_v35 = vcombine.high %v1243_v27, %v1247_v30  ;;  %v8909_v43 = vcombine.low %v1243_v27, %v1247_v30  ;;  %v1290_v27 = vld [vmem:[%s9519_s8 + $0x1dc0] sm:$0xff] }
 0x209   : > { %6793 = vmatpush1.bf16.msra.mxu0 %v8859_v36  ;;  %7121 = vmatpush1.bf16.msra.mxu1 %v8861_v37  ;;  %v1250_v36 = vld [vmem:[%s9519_s8 + $0x1c80] sm:$0xff] }
 0x20a   : > { %6794 = vmatprep.subr.bf16.mxu0 %v8868_v38  ;;  %7122 = vmatprep.subr.bf16.mxu1 %v8870_v55  ;;  %v1254_v37 = vld [vmem:[%s9519_s8 + $0x1ca0] sm:$0xff]  ;;  %v10136_v38 = vpack.c.bf16 %v305_v24, %v305_v24  ;;  %v1255_v55 = vld [vmem:[%s9519_s8 + $0x1ca8] sm:$0xff] }
 0x20b   : > { %v8916_v45 = vcombine.high %v1250_v36, %v1254_v37  ;;  %v8918_v46 = vcombine.high %v1251_v28, %v1255_v55  ;;  %v8915_v52 = vcombine.low %v1250_v36, %v1254_v37  ;;  %v8917_v10 = vcombine.low %v1251_v28, %v1255_v55  ;;  %v1294_v30 = vld [vmem:[%s9519_s8 + $0x1de0] sm:$0xff] }
 0x20c   : > { %v8956_v36 = vcombine.high %v1290_v27, %v1294_v30  ;;  %v1298_v28 = vld [vmem:[%s9519_s8 + $0x1e00] sm:$0xff] }
 0x20d   : > { %6795 = vmatpush1.bf16.msra.mxu0 %v8867_v47  ;;  %7123 = vmatpush1.bf16.msra.mxu1 %v8869_v48  ;;  %v1258_v47 = vld [vmem:[%s9519_s8 + $0x1cc0] sm:$0xff] }
 0x20e   : > { %6796 = vmatprep.subr.bf16.mxu0 %v8876_v49  ;;  %7124 = vmatprep.subr.bf16.mxu1 %v8878_v50  ;;  %v1262_v48 = vld [vmem:[%s9519_s8 + $0x1ce0] sm:$0xff]  ;;  %v1259_v49 = vld [vmem:[%s9519_s8 + $0x1cc8] sm:$0xff] }
 0x20f   : > { %v1263_v50 = vld [vmem:[%s9519_s8 + $0x1ce8] sm:$0xff]  ;;  %v8924_v54 = vcombine.high %v1258_v47, %v1262_v48  ;;  %v8923_v61 = vcombine.low %v1258_v47, %v1262_v48  ;;  %v1302_v55 = vld [vmem:[%s9519_s8 + $0x1e20] sm:$0xff] }
 0x210   : > { %v8926_v23 = vcombine.high %v1259_v49, %v1263_v50  ;;  %v8925_v62 = vcombine.low %v1259_v49, %v1263_v50  ;;  %v8964_v47 = vcombine.high %v1298_v28, %v1302_v55  ;;  %v1306_v49 = vld [vmem:[%s9519_s8 + $0x1e40] sm:$0xff] }
 0x211   : > { %6797 = vmatpush1.bf16.msra.mxu0 %v8875_v56  ;;  %7125 = vmatpush1.bf16.msra.mxu1 %v8877_v57  ;;  %v1266_v56 = vld [vmem:[%s9519_s8 + $0x1d00] sm:$0xff] }
 0x212   : > { %6798 = vmatprep.subr.bf16.mxu0 %v8884_v58  ;;  %7126 = vmatprep.subr.bf16.mxu1 %v8886_v60  ;;  %v1270_v57 = vld [vmem:[%s9519_s8 + $0x1d20] sm:$0xff]  ;;  %v1267_v58 = vld [vmem:[%s9519_s8 + $0x1d08] sm:$0xff] }
 0x213   : > { %v1271_v60 = vld [vmem:[%s9519_s8 + $0x1d28] sm:$0xff]  ;;  %v8932_v1 = vcombine.high %v1266_v56, %v1270_v57  ;;  %v1310_v50 = vld [vmem:[%s9519_s8 + $0x1e60] sm:$0xff] }
 0x214   : > { %v8934_v3 = vcombine.high %v1267_v58, %v1271_v60  ;;  %v8933_v11 = vcombine.low %v1267_v58, %v1271_v60  ;;  %v1314_v58 = vld [vmem:[%s9519_s8 + $0x1e80] sm:$0xff] }
 0x215   : > { %6799 = vmatpush1.bf16.msra.mxu0 %v8883_v5  ;;  %7127 = vmatpush1.bf16.msra.mxu1 %v8885_v6  ;;  %v1278_v5 = vld [vmem:[%s9519_s8 + $0x1d60] sm:$0xff]  ;;  %v1275_v6 = vld [vmem:[%s9519_s8 + $0x1d48] sm:$0xff] }
 0x216   : > { %6800 = vmatprep.subr.bf16.mxu0 %v8892_v7  ;;  %7128 = vmatprep.subr.bf16.mxu1 %v8894_v8  ;;  %v1279_v7 = vld [vmem:[%s9519_s8 + $0x1d68] sm:$0xff]  ;;  %v8931_v8 = vcombine.low %v1266_v56, %v1270_v57  ;;  %v8940_v17 = vcombine.high %v1274_v4, %v1278_v5  ;;  %v8972_v56 = vcombine.high %v1306_v49, %v1310_v50  ;;  %v1318_v60 = vld [vmem:[%s9519_s8 + $0x1ea0] sm:$0xff] }
 0x217   : > { %v8942_v19 = vcombine.high %v1275_v6, %v1279_v7  ;;  %v8941_v21 = vcombine.low %v1275_v6, %v1279_v7  ;;  %v1322_v6 = vld [vmem:[%s9519_s8 + $0x1ec0] sm:$0xff] }
 0x218   : > { %v1326_v7 = vld [vmem:[%s9519_s8 + $0x1ee0] sm:$0xff] }
 0x219   : > { %6801 = vmatpush1.bf16.msra.mxu0 %v8891_v15  ;;  %7129 = vmatpush1.bf16.msra.mxu1 %v8893_v59  ;;  %v1286_v15 = vld [vmem:[%s9519_s8 + $0x1da0] sm:$0xff]  ;;  %v1283_v59 = vld [vmem:[%s9519_s8 + $0x1d88] sm:$0xff] }
 0x21a   : > { %6811 = vmatprep.subr.bf16.mxu0 %v8900_v18  ;;  %7139 = vmatprep.subr.bf16.mxu1 %v8902_v20  ;;  %v1287_v18 = vld [vmem:[%s9519_s8 + $0x1da8] sm:$0xff]  ;;  %v8939_v20 = vcombine.low %v1274_v4, %v1278_v5  ;;  %v8948_v22 = vcombine.high %v1282_v14, %v1286_v15  ;;  %v8980_v4 = vcombine.high %v1314_v58, %v1318_v60 }
 0x21b   : > { %v8950_v24 = vcombine.high %v1283_v59, %v1287_v18 }
 0x21c   : > { %6803 = vmatmul.mubr.bf16.vlgmr.msra.gmra.mrb[0].mxu0 %v10130_v26  ;;  %7131 = vmatmul.mubr.bf16.vlgmr.msra.gmra.mrb[0].mxu1 %v10130_v26 }
 0x21d   : > { %6812 = vmatpush1.bf16.msra.mxu0 %v8899_v32  ;;  %7140 = vmatpush1.bf16.msra.mxu1 %v8901_v33  ;;  %v1291_v32 = vld [vmem:[%s9519_s8 + $0x1dc8] sm:$0xff] }
 0x21e   : > { %6813 = vmatprep.subr.bf16.mxu0 %v8908_v63  ;;  %7141 = vmatprep.subr.bf16.mxu1 %v8910_v35  ;;  %v1295_v33 = vld [vmem:[%s9519_s8 + $0x1de8] sm:$0xff]  ;;  %v8947_v63 = vcombine.low %v1282_v14, %v1286_v15  ;;  %v8949_v35 = vcombine.low %v1283_v59, %v1287_v18  ;;  %v8988_v14 = vcombine.high %v1322_v6, %v1326_v7  ;;  %v1330_v59 = vld [vmem:[%s9519_s8 + $0x1f00] sm:$0xff] }
 0x21f   : > { %6843 = vmatprep.mubr.bf16.mxu0 %v10136_v38  ;;  %7171 = vmatprep.mubr.bf16.mxu1 %v10136_v38  ;;  %v8958_v37 = vcombine.high %v1291_v32, %v1295_v33  ;;  %v1334_v18 = vld [vmem:[%s9519_s8 + $0x1f20] sm:$0xff] }
 0x221   : > { %6814 = vmatpush1.bf16.msra.mxu0 %v8907_v42  ;;  %7142 = vmatpush1.bf16.msra.mxu1 %v8909_v43  ;;  %v1299_v42 = vld [vmem:[%s9519_s8 + $0x1e08] sm:$0xff] }
 0x222   : > { %6815 = vmatprep.subr.bf16.mxu0 %v8916_v45  ;;  %7143 = vmatprep.subr.bf16.mxu1 %v8918_v46  ;;  %v1303_v43 = vld [vmem:[%s9519_s8 + $0x1e28] sm:$0xff]  ;;  %v8955_v45 = vcombine.low %v1290_v27, %v1294_v30  ;;  %v8957_v46 = vcombine.low %v1291_v32, %v1295_v33  ;;  %v8996_v27 = vcombine.high %v1330_v59, %v1334_v18  ;;  %v1338_v32 = vld [vmem:[%s9519_s8 + $0x1f40] sm:$0xff] }
 0x223   : > { %v8966_v48 = vcombine.high %v1299_v42, %v1303_v43  ;;  %v1342_v33 = vld [vmem:[%s9519_s8 + $0x1f60] sm:$0xff] }
 0x225   : > { %6816 = vmatpush1.bf16.msra.mxu0 %v8915_v52  ;;  %7144 = vmatpush1.bf16.msra.mxu1 %v8917_v10  ;;  %v1307_v52 = vld [vmem:[%s9519_s8 + $0x1e48] sm:$0xff] }
 0x226   : > { %6817 = vmatprep.subr.bf16.mxu0 %v8924_v54  ;;  %7145 = vmatprep.subr.bf16.mxu1 %v8926_v23  ;;  %v1311_v10 = vld [vmem:[%s9519_s8 + $0x1e68] sm:$0xff]  ;;  %v8963_v54 = vcombine.low %v1298_v28, %v1302_v55  ;;  %v8965_v23 = vcombine.low %v1299_v42, %v1303_v43  ;;  %v9004_v28 = vcombine.high %v1338_v32, %v1342_v33  ;;  %v1346_v42 = vld [vmem:[%s9519_s8 + $0x1f80] sm:$0xff] }
 0x227   : > { %v8974_v57 = vcombine.high %v1307_v52, %v1311_v10  ;;  %v1350_v43 = vld [vmem:[%s9519_s8 + $0x1fa0] sm:$0xff] }
 0x229   : > { %6818 = vmatpush1.bf16.msra.mxu0 %v8923_v61  ;;  %7146 = vmatpush1.bf16.msra.mxu1 %v8925_v62  ;;  %v1315_v61 = vld [vmem:[%s9519_s8 + $0x1e88] sm:$0xff] }
 0x22a   : > { %6819 = vmatprep.subr.bf16.mxu0 %v8932_v1  ;;  %7147 = vmatprep.subr.bf16.mxu1 %v8934_v3  ;;  %v1319_v62 = vld [vmem:[%s9519_s8 + $0x1ea8] sm:$0xff]  ;;  %v8971_v1 = vcombine.low %v1306_v49, %v1310_v50  ;;  %v8973_v3 = vcombine.low %v1307_v52, %v1311_v10  ;;  %v9012_v49 = vcombine.high %v1346_v42, %v1350_v43  ;;  %v1354_v52 = vld [vmem:[%s9519_s8 + $0x1fc0] sm:$0xff] }
 0x22b   : > { %v8982_v5 = vcombine.high %v1315_v61, %v1319_v62  ;;  %v1358_v10 = vld [vmem:[%s9519_s8 + $0x1fe0] sm:$0xff] }
 0x22d   : > { %6820 = vmatpush1.bf16.msra.mxu0 %v8931_v8  ;;  %7148 = vmatpush1.bf16.msra.mxu1 %v8933_v11  ;;  %v1323_v8 = vld [vmem:[%s9519_s8 + $0x1ec8] sm:$0xff] }
 0x22e   : > { %6821 = vmatprep.subr.bf16.mxu0 %v8940_v17  ;;  %7149 = vmatprep.subr.bf16.mxu1 %v8942_v19  ;;  %v1327_v11 = vld [vmem:[%s9519_s8 + $0x1ee8] sm:$0xff]  ;;  %v8979_v17 = vcombine.low %v1314_v58, %v1318_v60  ;;  %v8981_v19 = vcombine.low %v1315_v61, %v1319_v62  ;;  %v9020_v58 = vcombine.high %v1354_v52, %v1358_v10  ;;  %v340_v61 = vld [vmem:[%s9519_s8 + $0x10] sm:$0xff] }
 0x22f   : > { %v8990_v15 = vcombine.high %v1323_v8, %v1327_v11  ;;  %v344_v62 = vld [vmem:[%s9519_s8 + $0x30] sm:$0xff] }
 0x231   : > { %6822 = vmatpush1.bf16.msra.mxu0 %v8939_v20  ;;  %7150 = vmatpush1.bf16.msra.mxu1 %v8941_v21  ;;  %v1331_v20 = vld [vmem:[%s9519_s8 + $0x1f08] sm:$0xff] }
 0x232   : > { %6823 = vmatprep.subr.bf16.mxu0 %v8948_v22  ;;  %7151 = vmatprep.subr.bf16.mxu1 %v8950_v24  ;;  %v1335_v21 = vld [vmem:[%s9519_s8 + $0x1f28] sm:$0xff]  ;;  %v8987_v22 = vcombine.low %v1322_v6, %v1326_v7  ;;  %v8989_v24 = vcombine.low %v1323_v8, %v1327_v11  ;;  %v8008_v6 = vcombine.high %v340_v61, %v344_v62  ;;  %v348_v8 = vld [vmem:[%s9519_s8 + $0x50] sm:$0xff] }
 0x233   : > { %v8998_v30 = vcombine.high %v1331_v20, %v1335_v21  ;;  %v352_v11 = vld [vmem:[%s9519_s8 + $0x70] sm:$0xff] }
 0x235   : > { %6824 = vmatpush1.bf16.msra.mxu0 %v8947_v63  ;;  %7152 = vmatpush1.bf16.msra.mxu1 %v8949_v35  ;;  %v1339_v63 = vld [vmem:[%s9519_s8 + $0x1f48] sm:$0xff] }
 0x236   : > { %6825 = vmatprep.subr.bf16.mxu0 %v8956_v36  ;;  %7153 = vmatprep.subr.bf16.mxu1 %v8958_v37  ;;  %v1343_v35 = vld [vmem:[%s9519_s8 + $0x1f68] sm:$0xff]  ;;  %v8995_v36 = vcombine.low %v1330_v59, %v1334_v18  ;;  %v8997_v37 = vcombine.low %v1331_v20, %v1335_v21  ;;  %v8016_v18 = vcombine.high %v348_v8, %v352_v11  ;;  %v356_v21 = vld [vmem:[%s9519_s8 + $0x90] sm:$0xff] }
 0x237   : > { %v9006_v55 = vcombine.high %v1339_v63, %v1343_v35 }
 0x239   : > { %6826 = vmatpush1.bf16.msra.mxu0 %v8955_v45  ;;  %7154 = vmatpush1.bf16.msra.mxu1 %v8957_v46  ;;  %v1347_v45 = vld [vmem:[%s9519_s8 + $0x1f88] sm:$0xff] }
 0x23a   : > { %6827 = vmatprep.subr.bf16.mxu0 %v8964_v47  ;;  %7155 = vmatprep.subr.bf16.mxu1 %v8966_v48  ;;  %v1351_v46 = vld [vmem:[%s9519_s8 + $0x1fa8] sm:$0xff]  ;;  %v9003_v47 = vcombine.low %v1338_v32, %v1342_v33  ;;  %v9005_v48 = vcombine.low %v1339_v63, %v1343_v35  ;;  %v364_v63 = vld [vmem:[%s9519_s8 + $0xd0] sm:$0xff] }
 0x23b   : > { %v9014_v50 = vcombine.high %v1347_v45, %v1351_v46  ;;  %v368_v35 = vld [vmem:[%s9519_s8 + $0xf0] sm:$0xff] }
 0x23d   : > { %6828 = vmatpush1.bf16.msra.mxu0 %v8963_v54  ;;  %7156 = vmatpush1.bf16.msra.mxu1 %v8965_v23  ;;  %v1355_v54 = vld [vmem:[%s9519_s8 + $0x1fc8] sm:$0xff] }
 0x23e   : > { %6829 = vmatprep.subr.bf16.mxu0 %v8972_v56  ;;  %7157 = vmatprep.subr.bf16.mxu1 %v8974_v57  ;;  %v1359_v23 = vld [vmem:[%s9519_s8 + $0x1fe8] sm:$0xff]  ;;  %v9011_v56 = vcombine.low %v1346_v42, %v1350_v43  ;;  %v9013_v57 = vcombine.low %v1347_v45, %v1351_v46  ;;  %v8032_v42 = vcombine.high %v364_v63, %v368_v35  ;;  %v372_v45 = vld [vmem:[%s9519_s8 + $0x110] sm:$0xff] }
 0x23f   : > { %v9022_v60 = vcombine.high %v1355_v54, %v1359_v23  ;;  %v376_v46 = vld [vmem:[%s9519_s8 + $0x130] sm:$0xff] }
 0x241   : > { %6830 = vmatpush1.bf16.msra.mxu0 %v8971_v1  ;;  %7158 = vmatpush1.bf16.msra.mxu1 %v8973_v3  ;;  %v341_v1 = vld [vmem:[%s9519_s8 + $0x18] sm:$0xff] }
 0x242   : > { %6831 = vmatprep.subr.bf16.mxu0 %v8980_v4  ;;  %7159 = vmatprep.subr.bf16.mxu1 %v8982_v5  ;;  %v345_v3 = vld [vmem:[%s9519_s8 + $0x38] sm:$0xff]  ;;  %v9019_v4 = vcombine.low %v1354_v52, %v1358_v10  ;;  %v9021_v5 = vcombine.low %v1355_v54, %v1359_v23  ;;  %v380_v10 = vld [vmem:[%s9519_s8 + $0x150] sm:$0xff] }
 0x243   : > { %v8010_v7 = vcombine.high %v341_v1, %v345_v3  ;;  %v8009_v59 = vcombine.low %v341_v1, %v345_v3  ;;  %v384_v54 = vld [vmem:[%s9519_s8 + $0x170] sm:$0xff]  ;;  %v381_v23 = vld [vmem:[%s9519_s8 + $0x158] sm:$0xff] }
 0x244   : > { %v392_v1 = vld [vmem:[%s9519_s8 + $0x1b0] sm:$0xff]  ;;  %v389_v3 = vld [vmem:[%s9519_s8 + $0x198] sm:$0xff] }
 0x245   : > { %6832 = vmatpush1.bf16.msra.mxu0 %v8979_v17  ;;  %7160 = vmatpush1.bf16.msra.mxu1 %v8981_v19  ;;  %v10204_v17 = vpack.c.bf16 %v10120_v13, %v10120_v13  ;;  %v349_v19 = vld [vmem:[%s9519_s8 + $0x58] sm:$0xff] }
 0x246   : > { %6833 = vmatprep.subr.bf16.mxu0 %v8988_v14  ;;  %7161 = vmatprep.subr.bf16.mxu1 %v8990_v15  ;;  %v353_v14 = vld [vmem:[%s9519_s8 + $0x78] sm:$0xff]  ;;  %v8007_v15 = vcombine.low %v340_v61, %v344_v62  ;;  %v388_v62 = vld [vmem:[%s9519_s8 + $0x190] sm:$0xff] }
 0x247   : > { %v8018_v20 = vcombine.high %v349_v19, %v353_v14  ;;  %v357_v13 = vld [vmem:[%s9519_s8 + $0x98] sm:$0xff] }
 0x249   : > { %6834 = vmatpush1.bf16.msra.mxu0 %v8987_v22  ;;  %7162 = vmatpush1.bf16.msra.mxu1 %v8989_v24  ;;  %v360_v22 = vld [vmem:[%s9519_s8 + $0xb0] sm:$0xff]  ;;  %v361_v24 = vld [vmem:[%s9519_s8 + $0xb8] sm:$0xff] }
 0x24a   : > { %6835 = vmatprep.subr.bf16.mxu0 %v8996_v27  ;;  %7163 = vmatprep.subr.bf16.mxu1 %v8998_v30  ;;  %v8015_v27 = vcombine.low %v348_v8, %v352_v11  ;;  %v8017_v30 = vcombine.low %v349_v19, %v353_v14  ;;  %v8024_v32 = vcombine.high %v356_v21, %v360_v22  ;;  %v396_v11 = vld [vmem:[%s9519_s8 + $0x1d0] sm:$0xff]  ;;  %v397_v14 = vld [vmem:[%s9519_s8 + $0x1d8] sm:$0xff] }
 0x24b   : > { %v8026_v33 = vcombine.high %v357_v13, %v361_v24  ;;  %v400_v19 = vld [vmem:[%s9519_s8 + $0x1f0] sm:$0xff] }
 0x24d   : > { %6836 = vmatpush1.bf16.msra.mxu0 %v8995_v36  ;;  %7164 = vmatpush1.bf16.msra.mxu1 %v8997_v37  ;;  %v365_v36 = vld [vmem:[%s9519_s8 + $0xd8] sm:$0xff] }
 0x24e   : > { %6837 = vmatprep.subr.bf16.mxu0 %v9004_v28  ;;  %7165 = vmatprep.subr.bf16.mxu1 %v9006_v55  ;;  %v369_v37 = vld [vmem:[%s9519_s8 + $0xf8] sm:$0xff]  ;;  %v8023_v28 = vcombine.low %v356_v21, %v360_v22  ;;  %v8025_v55 = vcombine.low %v357_v13, %v361_v24  ;;  %v404_v22 = vld [vmem:[%s9519_s8 + $0x210] sm:$0xff] }
 0x24f   : > { %v8034_v43 = vcombine.high %v365_v36, %v369_v37  ;;  %v408_v13 = vld [vmem:[%s9519_s8 + $0x230] sm:$0xff]  ;;  %v405_v24 = vld [vmem:[%s9519_s8 + $0x218] sm:$0xff] }
 0x251   : > { %6838 = vmatpush1.bf16.msra.mxu0 %v9003_v47  ;;  %7166 = vmatpush1.bf16.msra.mxu1 %v9005_v48  ;;  %v373_v47 = vld [vmem:[%s9519_s8 + $0x118] sm:$0xff] }
 0x252   : > { %6839 = vmatprep.subr.bf16.mxu0 %v9012_v49  ;;  %7167 = vmatprep.subr.bf16.mxu1 %v9014_v50  ;;  %v377_v48 = vld [vmem:[%s9519_s8 + $0x138] sm:$0xff]  ;;  %v8031_v49 = vcombine.low %v364_v63, %v368_v35  ;;  %v8040_v50 = vcombine.high %v372_v45, %v376_v46  ;;  %v412_v35 = vld [vmem:[%s9519_s8 + $0x250] sm:$0xff] }
 0x253   : > { %v8042_v52 = vcombine.high %v373_v47, %v377_v48 }
 0x255   : > { %6840 = vmatpush1.bf16.msra.mxu0 %v9011_v56  ;;  %7168 = vmatpush1.bf16.msra.mxu1 %v9013_v57  ;;  %v385_v56 = vld [vmem:[%s9519_s8 + $0x178] sm:$0xff]  ;;  %v8039_v57 = vcombine.low %v372_v45, %v376_v46  ;;  %v420_v46 = vld [vmem:[%s9519_s8 + $0x290] sm:$0xff] }
 0x256   : > { %6841 = vmatprep.subr.bf16.mxu0 %v9020_v58  ;;  %7169 = vmatprep.subr.bf16.mxu1 %v9022_v60  ;;  %v8041_v58 = vcombine.low %v373_v47, %v377_v48  ;;  %v8048_v60 = vcombine.high %v380_v10, %v384_v54  ;;  %v8050_v61 = vcombine.high %v381_v23, %v385_v56  ;;  %v424_v47 = vld [vmem:[%s9519_s8 + $0x2b0] sm:$0xff]  ;;  %v421_v48 = vld [vmem:[%s9519_s8 + $0x298] sm:$0xff] }
 0x259   : > { %6842 = vmatpush1.bf16.msra.mxu0 %v9019_v4  ;;  %7170 = vmatpush1.bf16.msra.mxu1 %v9021_v5  ;;  %v393_v4 = vld [vmem:[%s9519_s8 + $0x1b8] sm:$0xff]  ;;  %v8047_v5 = vcombine.low %v380_v10, %v384_v54  ;;  %v428_v54 = vld [vmem:[%s9519_s8 + $0x2d0] sm:$0xff] }
 0x25a   : > { %7180 = vmatprep.subr.bf16.mxu0 %v8008_v6  ;;  %7508 = vmatprep.subr.bf16.mxu1 %v8010_v7  ;;  %v8049_v6 = vcombine.low %v381_v23, %v385_v56  ;;  %v8056_v7 = vcombine.high %v388_v62, %v392_v1  ;;  %v8058_v8 = vcombine.high %v389_v3, %v393_v4  ;;  %v432_v23 = vld [vmem:[%s9519_s8 + $0x2f0] sm:$0xff]  ;;  %v429_v56 = vld [vmem:[%s9519_s8 + $0x2d8] sm:$0xff] }
 0x25c   : > { %6844 = vmatmul.mubr.bf16.vlgmr.msra.gmra.mrb[0].mxu0 %v10204_v17  ;;  %7172 = vmatmul.mubr.bf16.vlgmr.msra.gmra.mrb[0].mxu1 %v10204_v17 }
 0x25d   : > { %7181 = vmatpush1.bf16.msra.mxu0 %v8007_v15  ;;  %7509 = vmatpush1.bf16.msra.mxu1 %v8009_v59  ;;  %v401_v15 = vld [vmem:[%s9519_s8 + $0x1f8] sm:$0xff]  ;;  %v8055_v59 = vcombine.low %v388_v62, %v392_v1  ;;  %v436_v1 = vld [vmem:[%s9519_s8 + $0x310] sm:$0xff] }
 0x25e   : > { %7182 = vmatprep.subr.bf16.mxu0 %v8016_v18  ;;  %7510 = vmatprep.subr.bf16.mxu1 %v8018_v20  ;;  %v8057_v18 = vcombine.low %v389_v3, %v393_v4  ;;  %v8064_v20 = vcombine.high %v396_v11, %v400_v19  ;;  %v8066_v21 = vcombine.high %v397_v14, %v401_v15  ;;  %v440_v3 = vld [vmem:[%s9519_s8 + $0x330] sm:$0xff]  ;;  %v437_v4 = vld [vmem:[%s9519_s8 + $0x318] sm:$0xff] }
 0x25f   : > { %7212 = vmatprep.mubr.bf16.mxu0 %v9583_v9  ;;  %7540 = vmatprep.mubr.bf16.mxu1 %v9583_v9  ;;  %v8033_v9 = vcombine.low %v365_v36, %v369_v37  ;;  %v416_v36 = vld [vmem:[%s9519_s8 + $0x270] sm:$0xff]  ;;  %v413_v37 = vld [vmem:[%s9519_s8 + $0x258] sm:$0xff] }
 0x261   : > { %7183 = vmatpush1.bf16.msra.mxu0 %v8015_v27  ;;  %7511 = vmatpush1.bf16.msra.mxu1 %v8017_v30  ;;  %v409_v27 = vld [vmem:[%s9519_s8 + $0x238] sm:$0xff]  ;;  %v8063_v30 = vcombine.low %v396_v11, %v400_v19  ;;  %v444_v19 = vld [vmem:[%s9519_s8 + $0x350] sm:$0xff] }
 0x262   : > { %7184 = vmatprep.subr.bf16.mxu0 %v8024_v32  ;;  %7512 = vmatprep.subr.bf16.mxu1 %v8026_v33  ;;  %v8065_v32 = vcombine.low %v397_v14, %v401_v15  ;;  %v8072_v33 = vcombine.high %v404_v22, %v408_v13  ;;  %v8074_v63 = vcombine.high %v405_v24, %v409_v27  ;;  %v448_v14 = vld [vmem:[%s9519_s8 + $0x370] sm:$0xff]  ;;  %v445_v15 = vld [vmem:[%s9519_s8 + $0x358] sm:$0xff] }
 0x265   : > { %7185 = vmatpush1.bf16.msra.mxu0 %v8023_v28  ;;  %7513 = vmatpush1.bf16.msra.mxu1 %v8025_v55  ;;  %v417_v28 = vld [vmem:[%s9519_s8 + $0x278] sm:$0xff]  ;;  %v8071_v55 = vcombine.low %v404_v22, %v408_v13  ;;  %v452_v13 = vld [vmem:[%s9519_s8 + $0x390] sm:$0xff] }
 0x266   : > { %7186 = vmatprep.subr.bf16.mxu0 %v8032_v42  ;;  %7514 = vmatprep.subr.bf16.mxu1 %v8034_v43  ;;  %v8073_v42 = vcombine.low %v405_v24, %v409_v27  ;;  %v8080_v43 = vcombine.high %v412_v35, %v416_v36  ;;  %v8082_v45 = vcombine.high %v413_v37, %v417_v28  ;;  %v456_v24 = vld [vmem:[%s9519_s8 + $0x3b0] sm:$0xff]  ;;  %v453_v27 = vld [vmem:[%s9519_s8 + $0x398] sm:$0xff] }
 0x269   : > { %7187 = vmatpush1.bf16.msra.mxu0 %v8031_v49  ;;  %7515 = vmatpush1.bf16.msra.mxu1 %v8033_v9  ;;  %v425_v49 = vld [vmem:[%s9519_s8 + $0x2b8] sm:$0xff]  ;;  %v8079_v9 = vcombine.low %v412_v35, %v416_v36  ;;  %v460_v36 = vld [vmem:[%s9519_s8 + $0x3d0] sm:$0xff] }
 0x26a   : > { %7188 = vmatprep.subr.bf16.mxu0 %v8040_v50  ;;  %7516 = vmatprep.subr.bf16.mxu1 %v8042_v52  ;;  %v8081_v50 = vcombine.low %v413_v37, %v417_v28  ;;  %v8088_v52 = vcombine.high %v420_v46, %v424_v47  ;;  %v8090_v10 = vcombine.high %v421_v48, %v425_v49  ;;  %v464_v37 = vld [vmem:[%s9519_s8 + $0x3f0] sm:$0xff]  ;;  %v461_v28 = vld [vmem:[%s9519_s8 + $0x3d8] sm:$0xff] }
 0x26d   : > { %7189 = vmatpush1.bf16.msra.mxu0 %v8039_v57  ;;  %7517 = vmatpush1.bf16.msra.mxu1 %v8041_v58  ;;  %v433_v57 = vld [vmem:[%s9519_s8 + $0x2f8] sm:$0xff]  ;;  %v8087_v58 = vcombine.low %v420_v46, %v424_v47  ;;  %v468_v47 = vld [vmem:[%s9519_s8 + $0x410] sm:$0xff] }
 0x26e   : > { %7190 = vmatprep.subr.bf16.mxu0 %v8048_v60  ;;  %7518 = vmatprep.subr.bf16.mxu1 %v8050_v61  ;;  %v8089_v60 = vcombine.low %v421_v48, %v425_v49  ;;  %v8096_v61 = vcombine.high %v428_v54, %v432_v23  ;;  %v8098_v62 = vcombine.high %v429_v56, %v433_v57  ;;  %v472_v48 = vld [vmem:[%s9519_s8 + $0x430] sm:$0xff]  ;;  %v469_v49 = vld [vmem:[%s9519_s8 + $0x418] sm:$0xff] }
 0x271   : > { %7191 = vmatpush1.bf16.msra.mxu0 %v8047_v5  ;;  %7519 = vmatpush1.bf16.msra.mxu1 %v8049_v6  ;;  %v441_v5 = vld [vmem:[%s9519_s8 + $0x338] sm:$0xff]  ;;  %v8095_v6 = vcombine.low %v428_v54, %v432_v23  ;;  %v476_v23 = vld [vmem:[%s9519_s8 + $0x450] sm:$0xff] }
 0x272   : > { %7192 = vmatprep.subr.bf16.mxu0 %v8056_v7  ;;  %7520 = vmatprep.subr.bf16.mxu1 %v8058_v8  ;;  %v8097_v7 = vcombine.low %v429_v56, %v433_v57  ;;  %v8104_v8 = vcombine.high %v436_v1, %v440_v3  ;;  %v8106_v11 = vcombine.high %v437_v4, %v441_v5  ;;  %v480_v56 = vld [vmem:[%s9519_s8 + $0x470] sm:$0xff]  ;;  %v477_v57 = vld [vmem:[%s9519_s8 + $0x458] sm:$0xff] }
 0x275   : > { %7193 = vmatpush1.bf16.msra.mxu0 %v8055_v59  ;;  %7521 = vmatpush1.bf16.msra.mxu1 %v8057_v18  ;;  %v449_v59 = vld [vmem:[%s9519_s8 + $0x378] sm:$0xff]  ;;  %v8103_v18 = vcombine.low %v436_v1, %v440_v3  ;;  %v484_v3 = vld [vmem:[%s9519_s8 + $0x490] sm:$0xff] }
 0x276   : > { %7194 = vmatprep.subr.bf16.mxu0 %v8064_v20  ;;  %7522 = vmatprep.subr.bf16.mxu1 %v8066_v21  ;;  %v8105_v20 = vcombine.low %v437_v4, %v441_v5  ;;  %v8112_v21 = vcombine.high %v444_v19, %v448_v14  ;;  %v8114_v22 = vcombine.high %v445_v15, %v449_v59  ;;  %v488_v4 = vld [vmem:[%s9519_s8 + $0x4b0] sm:$0xff]  ;;  %v485_v5 = vld [vmem:[%s9519_s8 + $0x498] sm:$0xff] }
 0x279   : > { %7195 = vmatpush1.bf16.msra.mxu0 %v8063_v30  ;;  %7523 = vmatpush1.bf16.msra.mxu1 %v8065_v32  ;;  %v457_v30 = vld [vmem:[%s9519_s8 + $0x3b8] sm:$0xff]  ;;  %v8111_v32 = vcombine.low %v444_v19, %v448_v14  ;;  %v492_v14 = vld [vmem:[%s9519_s8 + $0x4d0] sm:$0xff] }
 0x27a   : > { %7196 = vmatprep.subr.bf16.mxu0 %v8072_v33  ;;  %7524 = vmatprep.subr.bf16.mxu1 %v8074_v63  ;;  %v8113_v33 = vcombine.low %v445_v15, %v449_v59  ;;  %v8120_v63 = vcombine.high %v452_v13, %v456_v24  ;;  %v8122_v35 = vcombine.high %v453_v27, %v457_v30  ;;  %v496_v15 = vld [vmem:[%s9519_s8 + $0x4f0] sm:$0xff]  ;;  %v493_v59 = vld [vmem:[%s9519_s8 + $0x4d8] sm:$0xff] }
 0x27d   : > { %7197 = vmatpush1.bf16.msra.mxu0 %v8071_v55  ;;  %7525 = vmatpush1.bf16.msra.mxu1 %v8073_v42  ;;  %v465_v55 = vld [vmem:[%s9519_s8 + $0x3f8] sm:$0xff]  ;;  %v8119_v42 = vcombine.low %v452_v13, %v456_v24  ;;  %v500_v13 = vld [vmem:[%s9519_s8 + $0x510] sm:$0xff] }
 0x27e   : > { %7198 = vmatprep.subr.bf16.mxu0 %v8080_v43  ;;  %7526 = vmatprep.subr.bf16.mxu1 %v8082_v45  ;;  %v8121_v43 = vcombine.low %v453_v27, %v457_v30  ;;  %v8128_v45 = vcombine.high %v460_v36, %v464_v37  ;;  %v8130_v46 = vcombine.high %v461_v28, %v465_v55  ;;  %v504_v24 = vld [vmem:[%s9519_s8 + $0x530] sm:$0xff]  ;;  %v501_v27 = vld [vmem:[%s9519_s8 + $0x518] sm:$0xff] }
 0x27f   : > { %v505_v30 = vld [vmem:[%s9519_s8 + $0x538] sm:$0xff] }
 0x281   : > { %7199 = vmatpush1.bf16.msra.mxu0 %v8079_v9  ;;  %7527 = vmatpush1.bf16.msra.mxu1 %v8081_v50  ;;  %v473_v9 = vld [vmem:[%s9519_s8 + $0x438] sm:$0xff]  ;;  %v8127_v50 = vcombine.low %v460_v36, %v464_v37  ;;  %v512_v36 = vld [vmem:[%s9519_s8 + $0x570] sm:$0xff] }
 0x282   : > { %7200 = vmatprep.subr.bf16.mxu0 %v8088_v52  ;;  %7528 = vmatprep.subr.bf16.mxu1 %v8090_v10  ;;  %v8129_v52 = vcombine.low %v461_v28, %v465_v55  ;;  %v8136_v10 = vcombine.high %v468_v47, %v472_v48  ;;  %v8138_v54 = vcombine.high %v469_v49, %v473_v9  ;;  %v509_v37 = vld [vmem:[%s9519_s8 + $0x558] sm:$0xff] }
 0x283   : > { %v513_v28 = vld [vmem:[%s9519_s8 + $0x578] sm:$0xff]  ;;  %v8167_v55 = vcombine.low %v500_v13, %v504_v24 }
 0x285   : > { %7201 = vmatpush1.bf16.msra.mxu0 %v8087_v58  ;;  %7529 = vmatpush1.bf16.msra.mxu1 %v8089_v60  ;;  %v481_v58 = vld [vmem:[%s9519_s8 + $0x478] sm:$0xff]  ;;  %v8135_v60 = vcombine.low %v468_v47, %v472_v48  ;;  %v520_v47 = vld [vmem:[%s9519_s8 + $0x5b0] sm:$0xff] }
 0x286   : > { %7202 = vmatprep.subr.bf16.mxu0 %v8096_v61  ;;  %7530 = vmatprep.subr.bf16.mxu1 %v8098_v62  ;;  %v8137_v61 = vcombine.low %v469_v49, %v473_v9  ;;  %v8144_v62 = vcombine.high %v476_v23, %v480_v56  ;;  %v8146_v1 = vcombine.high %v477_v57, %v481_v58  ;;  %v517_v48 = vld [vmem:[%s9519_s8 + $0x598] sm:$0xff] }
 0x287   : > { %v521_v49 = vld [vmem:[%s9519_s8 + $0x5b8] sm:$0xff] }
 0x289   : > { %7203 = vmatpush1.bf16.msra.mxu0 %v8095_v6  ;;  %7531 = vmatpush1.bf16.msra.mxu1 %v8097_v7  ;;  %v489_v6 = vld [vmem:[%s9519_s8 + $0x4b8] sm:$0xff]  ;;  %v8143_v7 = vcombine.low %v476_v23, %v480_v56  ;;  %v528_v23 = vld [vmem:[%s9519_s8 + $0x5f0] sm:$0xff] }
 0x28a   : > { %7204 = vmatprep.subr.bf16.mxu0 %v8104_v8  ;;  %7532 = vmatprep.subr.bf16.mxu1 %v8106_v11  ;;  %v8145_v8 = vcombine.low %v477_v57, %v481_v58  ;;  %v8152_v11 = vcombine.high %v484_v3, %v488_v4  ;;  %v8154_v19 = vcombine.high %v485_v5, %v489_v6  ;;  %v525_v56 = vld [vmem:[%s9519_s8 + $0x5d8] sm:$0xff] }
 0x28b   : > { %v529_v57 = vld [vmem:[%s9519_s8 + $0x5f8] sm:$0xff] }
 0x28d   : > { %7205 = vmatpush1.bf16.msra.mxu0 %v8103_v18  ;;  %7533 = vmatpush1.bf16.msra.mxu1 %v8105_v20  ;;  %v497_v18 = vld [vmem:[%s9519_s8 + $0x4f8] sm:$0xff]  ;;  %v8153_v20 = vcombine.low %v485_v5, %v489_v6 }
 0x28e   : > { %7206 = vmatprep.subr.bf16.mxu0 %v8112_v21  ;;  %7534 = vmatprep.subr.bf16.mxu1 %v8114_v22  ;;  %v8160_v21 = vcombine.high %v492_v14, %v496_v15  ;;  %v8162_v22 = vcombine.high %v493_v59, %v497_v18  ;;  %v537_v5 = vld [vmem:[%s9519_s8 + $0x638] sm:$0xff] }
 0x291   : > { %7207 = vmatpush1.bf16.msra.mxu0 %v8111_v32  ;;  %7535 = vmatpush1.bf16.msra.mxu1 %v8113_v33  ;;  %v8159_v32 = vcombine.low %v492_v14, %v496_v15  ;;  %v8168_v33 = vcombine.high %v500_v13, %v504_v24  ;;  %v544_v14 = vld [vmem:[%s9519_s8 + $0x670] sm:$0xff]  ;;  %v541_v15 = vld [vmem:[%s9519_s8 + $0x658] sm:$0xff] }
 0x292   : > { %7208 = vmatprep.subr.bf16.mxu0 %v8120_v63  ;;  %7536 = vmatprep.subr.bf16.mxu1 %v8122_v35  ;;  %v8170_v63 = vcombine.high %v501_v27, %v505_v30  ;;  %v508_v35 = vld [vmem:[%s9519_s8 + $0x550] sm:$0xff]  ;;  %v549_v24 = vld [vmem:[%s9519_s8 + $0x698] sm:$0xff] }
 0x293   : > { %v8175_v9 = vcombine.low %v508_v35, %v512_v36  ;;  %v552_v13 = vld [vmem:[%s9519_s8 + $0x6b0] sm:$0xff] }
 0x295   : > { %7209 = vmatpush1.bf16.msra.mxu0 %v8119_v42  ;;  %7537 = vmatpush1.bf16.msra.mxu1 %v8121_v43  ;;  %v8169_v42 = vcombine.low %v501_v27, %v505_v30  ;;  %v8176_v43 = vcombine.high %v508_v35, %v512_v36  ;;  %v553_v27 = vld [vmem:[%s9519_s8 + $0x6b8] sm:$0xff]  ;;  %v560_v35 = vld [vmem:[%s9519_s8 + $0x6f0] sm:$0xff] }
 0x296   : > { %7210 = vmatprep.subr.bf16.mxu0 %v8128_v45  ;;  %7538 = vmatprep.subr.bf16.mxu1 %v8130_v46  ;;  %v8178_v45 = vcombine.high %v509_v37, %v513_v28  ;;  %v516_v46 = vld [vmem:[%s9519_s8 + $0x590] sm:$0xff]  ;;  %v557_v36 = vld [vmem:[%s9519_s8 + $0x6d8] sm:$0xff] }
 0x297   : > { %v8183_v58 = vcombine.low %v516_v46, %v520_v47 }
 0x299   : > { %7211 = vmatpush1.bf16.msra.mxu0 %v8127_v50  ;;  %7539 = vmatpush1.bf16.msra.mxu1 %v8129_v52  ;;  %v8177_v50 = vcombine.low %v509_v37, %v513_v28  ;;  %v8184_v52 = vcombine.high %v516_v46, %v520_v47  ;;  %v561_v37 = vld [vmem:[%s9519_s8 + $0x6f8] sm:$0xff]  ;;  %v568_v46 = vld [vmem:[%s9519_s8 + $0x730] sm:$0xff] }
 0x29a   : > { %7221 = vmatprep.subr.bf16.mxu0 %v8136_v10  ;;  %7549 = vmatprep.subr.bf16.mxu1 %v8138_v54  ;;  %v8186_v10 = vcombine.high %v517_v48, %v521_v49  ;;  %v524_v54 = vld [vmem:[%s9519_s8 + $0x5d0] sm:$0xff]  ;;  %v565_v47 = vld [vmem:[%s9519_s8 + $0x718] sm:$0xff] }
 0x29b   : > { %v8191_v6 = vcombine.low %v524_v54, %v528_v23 }
 0x29c   : > { %7213 = vmatmul.mubr.bf16.vlgmr.msra.gmra.mrb[4].mxu0 %v9632_v25  ;;  %7541 = vmatmul.mubr.bf16.vlgmr.msra.gmra.mrb[4].mxu1 %v9632_v25  ;;  %v8151_v25 = vcombine.low %v484_v3, %v488_v4  ;;  %v536_v3 = vld [vmem:[%s9519_s8 + $0x630] sm:$0xff]  ;;  %v533_v4 = vld [vmem:[%s9519_s8 + $0x618] sm:$0xff] }
 0x29d   : > { %7222 = vmatpush1.bf16.msra.mxu0 %v8135_v60  ;;  %7550 = vmatpush1.bf16.msra.mxu1 %v8137_v61  ;;  %v8185_v60 = vcombine.low %v517_v48, %v521_v49  ;;  %v8192_v61 = vcombine.high %v524_v54, %v528_v23  ;;  %v569_v48 = vld [vmem:[%s9519_s8 + $0x738] sm:$0xff]  ;;  %v576_v54 = vld [vmem:[%s9519_s8 + $0x770] sm:$0xff] }
 0x29e   : > { %7223 = vmatprep.subr.bf16.mxu0 %v8144_v62  ;;  %7551 = vmatprep.subr.bf16.mxu1 %v8146_v1  ;;  %v8194_v62 = vcombine.high %v525_v56, %v529_v57  ;;  %v532_v1 = vld [vmem:[%s9519_s8 + $0x610] sm:$0xff]  ;;  %v573_v23 = vld [vmem:[%s9519_s8 + $0x758] sm:$0xff] }
 0x29f   : > { %7253 = vmatprep.mubr.bf16.mxu0 %v9638_v34  ;;  %7581 = vmatprep.mubr.bf16.mxu1 %v9638_v34  ;;  %v8161_v34 = vcombine.low %v493_v59, %v497_v18  ;;  %v545_v59 = vld [vmem:[%s9519_s8 + $0x678] sm:$0xff]  ;;  %v8199_v18 = vcombine.low %v532_v1, %v536_v3 }
 0x2a1   : > { %7224 = vmatpush1.bf16.msra.mxu0 %v8143_v7  ;;  %7552 = vmatpush1.bf16.msra.mxu1 %v8145_v8  ;;  %v8193_v7 = vcombine.low %v525_v56, %v529_v57  ;;  %v8200_v8 = vcombine.high %v532_v1, %v536_v3  ;;  %v577_v56 = vld [vmem:[%s9519_s8 + $0x778] sm:$0xff]  ;;  %v584_v1 = vld [vmem:[%s9519_s8 + $0x7b0] sm:$0xff] }
 0x2a2   : > { %7225 = vmatprep.subr.bf16.mxu0 %v8152_v11  ;;  %7553 = vmatprep.subr.bf16.mxu1 %v8154_v19  ;;  %v8202_v11 = vcombine.high %v533_v4, %v537_v5  ;;  %v540_v19 = vld [vmem:[%s9519_s8 + $0x650] sm:$0xff]  ;;  %v581_v3 = vld [vmem:[%s9519_s8 + $0x798] sm:$0xff] }
 0x2a3   : > { %v8207_v30 = vcombine.low %v540_v19, %v544_v14 }
 0x2a5   : > { %7226 = vmatpush1.bf16.msra.mxu0 %v8151_v25  ;;  %7554 = vmatpush1.bf16.msra.mxu1 %v8153_v20  ;;  %v8201_v25 = vcombine.low %v533_v4, %v537_v5  ;;  %v8208_v20 = vcombine.high %v540_v19, %v544_v14  ;;  %v585_v4 = vld [vmem:[%s9519_s8 + $0x7b8] sm:$0xff]  ;;  %v592_v19 = vld [vmem:[%s9519_s8 + $0x7f0] sm:$0xff] }
 0x2a6   : > { %7227 = vmatprep.subr.bf16.mxu0 %v8160_v21  ;;  %7555 = vmatprep.subr.bf16.mxu1 %v8162_v22  ;;  %v8210_v21 = vcombine.high %v541_v15, %v545_v59  ;;  %v548_v22 = vld [vmem:[%s9519_s8 + $0x690] sm:$0xff]  ;;  %v589_v14 = vld [vmem:[%s9519_s8 + $0x7d8] sm:$0xff] }
 0x2a7   : > { %v8215_v28 = vcombine.low %v548_v22, %v552_v13 }
 0x2a9   : > { %7228 = vmatpush1.bf16.msra.mxu0 %v8159_v32  ;;  %7556 = vmatpush1.bf16.msra.mxu1 %v8161_v34  ;;  %v8209_v32 = vcombine.low %v541_v15, %v545_v59  ;;  %v8216_v34 = vcombine.high %v548_v22, %v552_v13  ;;  %v593_v15 = vld [vmem:[%s9519_s8 + $0x7f8] sm:$0xff]  ;;  %v600_v22 = vld [vmem:[%s9519_s8 + $0x830] sm:$0xff] }
 0x2aa   : > { %7229 = vmatprep.subr.bf16.mxu0 %v8168_v33  ;;  %7557 = vmatprep.subr.bf16.mxu1 %v8170_v63  ;;  %v8218_v33 = vcombine.high %v549_v24, %v553_v27  ;;  %v556_v63 = vld [vmem:[%s9519_s8 + $0x6d0] sm:$0xff]  ;;  %v597_v13 = vld [vmem:[%s9519_s8 + $0x818] sm:$0xff] }
 0x2ab   : > { %v8223_v49 = vcombine.low %v556_v63, %v560_v35 }
 0x2ad   : > { %7230 = vmatpush1.bf16.msra.mxu0 %v8167_v55  ;;  %7558 = vmatpush1.bf16.msra.mxu1 %v8169_v42  ;;  %v8217_v55 = vcombine.low %v549_v24, %v553_v27  ;;  %v8224_v42 = vcombine.high %v556_v63, %v560_v35  ;;  %v601_v24 = vld [vmem:[%s9519_s8 + $0x838] sm:$0xff]  ;;  %v608_v63 = vld [vmem:[%s9519_s8 + $0x870] sm:$0xff] }
 0x2ae   : > { %7231 = vmatprep.subr.bf16.mxu0 %v8176_v43  ;;  %7559 = vmatprep.subr.bf16.mxu1 %v8178_v45  ;;  %v8226_v43 = vcombine.high %v557_v36, %v561_v37  ;;  %v564_v45 = vld [vmem:[%s9519_s8 + $0x710] sm:$0xff]  ;;  %v605_v35 = vld [vmem:[%s9519_s8 + $0x858] sm:$0xff] }
 0x2af   : > { %v8231_v57 = vcombine.low %v564_v45, %v568_v46 }
 0x2b1   : > { %7232 = vmatpush1.bf16.msra.mxu0 %v8175_v9  ;;  %7560 = vmatpush1.bf16.msra.mxu1 %v8177_v50  ;;  %v8225_v9 = vcombine.low %v557_v36, %v561_v37  ;;  %v8232_v50 = vcombine.high %v564_v45, %v568_v46  ;;  %v609_v36 = vld [vmem:[%s9519_s8 + $0x878] sm:$0xff]  ;;  %v616_v45 = vld [vmem:[%s9519_s8 + $0x8b0] sm:$0xff] }
 0x2b2   : > { %7233 = vmatprep.subr.bf16.mxu0 %v8184_v52  ;;  %7561 = vmatprep.subr.bf16.mxu1 %v8186_v10  ;;  %v8234_v52 = vcombine.high %v565_v47, %v569_v48  ;;  %v572_v10 = vld [vmem:[%s9519_s8 + $0x750] sm:$0xff]  ;;  %v613_v46 = vld [vmem:[%s9519_s8 + $0x898] sm:$0xff] }
 0x2b3   : > { %v8239_v5 = vcombine.low %v572_v10, %v576_v54 }
 0x2b5   : > { %7234 = vmatpush1.bf16.msra.mxu0 %v8183_v58  ;;  %7562 = vmatpush1.bf16.msra.mxu1 %v8185_v60  ;;  %v8233_v58 = vcombine.low %v565_v47, %v569_v48  ;;  %v8240_v60 = vcombine.high %v572_v10, %v576_v54  ;;  %v617_v47 = vld [vmem:[%s9519_s8 + $0x8b8] sm:$0xff]  ;;  %v624_v10 = vld [vmem:[%s9519_s8 + $0x8f0] sm:$0xff] }
 0x2b6   : > { %7235 = vmatprep.subr.bf16.mxu0 %v8192_v61  ;;  %7563 = vmatprep.subr.bf16.mxu1 %v8194_v62  ;;  %v8242_v61 = vcombine.high %v573_v23, %v577_v56  ;;  %v580_v62 = vld [vmem:[%s9519_s8 + $0x790] sm:$0xff]  ;;  %v621_v54 = vld [vmem:[%s9519_s8 + $0x8d8] sm:$0xff] }
 0x2b7   : > { %v8247_v59 = vcombine.low %v580_v62, %v584_v1 }
 0x2b9   : > { %7236 = vmatpush1.bf16.msra.mxu0 %v8191_v6  ;;  %7564 = vmatpush1.bf16.msra.mxu1 %v8193_v7  ;;  %v8241_v6 = vcombine.low %v573_v23, %v577_v56  ;;  %v8248_v7 = vcombine.high %v580_v62, %v584_v1  ;;  %v625_v23 = vld [vmem:[%s9519_s8 + $0x8f8] sm:$0xff]  ;;  %v8281_v56 = vcombine.low %v613_v46, %v617_v47 }
 0x2ba   : > { %7237 = vmatprep.subr.bf16.mxu0 %v8200_v8  ;;  %7565 = vmatprep.subr.bf16.mxu1 %v8202_v11  ;;  %v8250_v8 = vcombine.high %v581_v3, %v585_v4  ;;  %v588_v11 = vld [vmem:[%s9519_s8 + $0x7d0] sm:$0xff]  ;;  %v629_v62 = vld [vmem:[%s9519_s8 + $0x918] sm:$0xff] }
 0x2bb   : > { %v8255_v27 = vcombine.low %v588_v11, %v592_v19  ;;  %v633_v1 = vld [vmem:[%s9519_s8 + $0x938] sm:$0xff] }
 0x2bd   : > { %7238 = vmatpush1.bf16.msra.mxu0 %v8199_v18  ;;  %7566 = vmatpush1.bf16.msra.mxu1 %v8201_v25  ;;  %v8249_v18 = vcombine.low %v581_v3, %v585_v4  ;;  %v8256_v25 = vcombine.high %v588_v11, %v592_v19  ;;  %v641_v11 = vld [vmem:[%s9519_s8 + $0x978] sm:$0xff] }
 0x2be   : > { %7239 = vmatprep.subr.bf16.mxu0 %v8208_v20  ;;  %7567 = vmatprep.subr.bf16.mxu1 %v8210_v21  ;;  %v8258_v20 = vcombine.high %v589_v14, %v593_v15  ;;  %v596_v21 = vld [vmem:[%s9519_s8 + $0x810] sm:$0xff] }
 0x2bf   : > { %v8263_v37 = vcombine.low %v596_v21, %v600_v22 }
 0x2c1   : > { %7240 = vmatpush1.bf16.msra.mxu0 %v8207_v30  ;;  %7568 = vmatpush1.bf16.msra.mxu1 %v8209_v32  ;;  %v8257_v30 = vcombine.low %v589_v14, %v593_v15  ;;  %v8264_v32 = vcombine.high %v596_v21, %v600_v22  ;;  %v8297_v14 = vcombine.low %v629_v62, %v633_v1  ;;  %v649_v21 = vld [vmem:[%s9519_s8 + $0x9b8] sm:$0xff] }
 0x2c2   : > { %7241 = vmatprep.subr.bf16.mxu0 %v8216_v34  ;;  %7569 = vmatprep.subr.bf16.mxu1 %v8218_v33  ;;  %v8266_v34 = vcombine.high %v597_v13, %v601_v24  ;;  %v604_v33 = vld [vmem:[%s9519_s8 + $0x850] sm:$0xff] }
 0x2c3   : > { %v8271_v48 = vcombine.low %v604_v33, %v608_v63 }
 0x2c5   : > { %7242 = vmatpush1.bf16.msra.mxu0 %v8215_v28  ;;  %7570 = vmatpush1.bf16.msra.mxu1 %v8217_v55  ;;  %v8265_v28 = vcombine.low %v597_v13, %v601_v24  ;;  %v8272_v55 = vcombine.high %v604_v33, %v608_v63  ;;  %v657_v33 = vld [vmem:[%s9519_s8 + $0x9f8] sm:$0xff] }
 0x2c6   : > { %7243 = vmatprep.subr.bf16.mxu0 %v8224_v42  ;;  %7571 = vmatprep.subr.bf16.mxu1 %v8226_v43  ;;  %v8274_v42 = vcombine.high %v605_v35, %v609_v36  ;;  %v612_v43 = vld [vmem:[%s9519_s8 + $0x890] sm:$0xff] }
 0x2c9   : > { %7244 = vmatpush1.bf16.msra.mxu0 %v8223_v49  ;;  %7572 = vmatpush1.bf16.msra.mxu1 %v8225_v9  ;;  %v8273_v49 = vcombine.low %v605_v35, %v609_v36  ;;  %v8280_v9 = vcombine.high %v612_v43, %v616_v45 }
 0x2ca   : > { %7245 = vmatprep.subr.bf16.mxu0 %v8232_v50  ;;  %7573 = vmatprep.subr.bf16.mxu1 %v8234_v52  ;;  %v8282_v50 = vcombine.high %v613_v46, %v617_v47  ;;  %v620_v52 = vld [vmem:[%s9519_s8 + $0x8d0] sm:$0xff] }
 0x2cb   : > { %v8287_v3 = vcombine.low %v620_v52, %v624_v10 }
 0x2cd   : > { %7246 = vmatpush1.bf16.msra.mxu0 %v8231_v57  ;;  %7574 = vmatpush1.bf16.msra.mxu1 %v8233_v58  ;;  %v8288_v57 = vcombine.high %v620_v52, %v624_v10  ;;  %v8290_v58 = vcombine.high %v621_v54, %v625_v23  ;;  %v673_v52 = vld [vmem:[%s9519_s8 + $0xa78] sm:$0xff] }
 0x2ce   : > { %7247 = vmatprep.subr.bf16.mxu0 %v8240_v60  ;;  %7575 = vmatprep.subr.bf16.mxu1 %v8242_v61  ;;  %v628_v60 = vld [vmem:[%s9519_s8 + $0x910] sm:$0xff] }
 0x2cf   : > { %v632_v61 = vld [vmem:[%s9519_s8 + $0x930] sm:$0xff] }
 0x2d0   : > { %v8296_v4 = vcombine.high %v628_v60, %v632_v61  ;;  %v8295_v19 = vcombine.low %v628_v60, %v632_v61  ;;  %v681_v60 = vld [vmem:[%s9519_s8 + $0xab8] sm:$0xff] }
 0x2d1   : > { %7248 = vmatpush1.bf16.msra.mxu0 %v8239_v5  ;;  %7576 = vmatpush1.bf16.msra.mxu1 %v8241_v6  ;;  %v8298_v5 = vcombine.high %v629_v62, %v633_v1  ;;  %v636_v6 = vld [vmem:[%s9519_s8 + $0x950] sm:$0xff] }
 0x2d2   : > { %7249 = vmatprep.subr.bf16.mxu0 %v8248_v7  ;;  %7577 = vmatprep.subr.bf16.mxu1 %v8250_v8  ;;  %v640_v7 = vld [vmem:[%s9519_s8 + $0x970] sm:$0xff]  ;;  %v637_v8 = vld [vmem:[%s9519_s8 + $0x958] sm:$0xff] }
 0x2d3   : > { %v8304_v15 = vcombine.high %v636_v6, %v640_v7  ;;  %v8303_v22 = vcombine.low %v636_v6, %v640_v7  ;;  %v8305_v13 = vcombine.low %v637_v8, %v641_v11  ;;  %v689_v6 = vld [vmem:[%s9519_s8 + $0xaf8] sm:$0xff] }
 0x2d5   : > { %7250 = vmatpush1.bf16.msra.mxu0 %v8247_v59  ;;  %7578 = vmatpush1.bf16.msra.mxu1 %v8249_v18  ;;  %v8306_v59 = vcombine.high %v637_v8, %v641_v11  ;;  %v644_v18 = vld [vmem:[%s9519_s8 + $0x990] sm:$0xff] }
 0x2d6   : > { %7251 = vmatprep.subr.bf16.mxu0 %v8256_v25  ;;  %7579 = vmatprep.subr.bf16.mxu1 %v8258_v20  ;;  %v648_v25 = vld [vmem:[%s9519_s8 + $0x9b0] sm:$0xff]  ;;  %v645_v20 = vld [vmem:[%s9519_s8 + $0x998] sm:$0xff] }
 0x2d7   : > { %v8312_v24 = vcombine.high %v644_v18, %v648_v25  ;;  %v8311_v63 = vcombine.low %v644_v18, %v648_v25  ;;  %v8313_v35 = vcombine.low %v645_v20, %v649_v21  ;;  %v697_v18 = vld [vmem:[%s9519_s8 + $0xb38] sm:$0xff] }
 0x2d9   : > { %7252 = vmatpush1.bf16.msra.mxu0 %v8255_v27  ;;  %7580 = vmatpush1.bf16.msra.mxu1 %v8257_v30  ;;  %v8314_v27 = vcombine.high %v645_v20, %v649_v21  ;;  %v652_v30 = vld [vmem:[%s9519_s8 + $0x9d0] sm:$0xff] }
 0x2da   : > { %7262 = vmatprep.subr.bf16.mxu0 %v8264_v32  ;;  %7590 = vmatprep.subr.bf16.mxu1 %v8266_v34  ;;  %v656_v32 = vld [vmem:[%s9519_s8 + $0x9f0] sm:$0xff]  ;;  %v653_v34 = vld [vmem:[%s9519_s8 + $0x9d8] sm:$0xff] }
 0x2db   : > { %v8320_v36 = vcombine.high %v652_v30, %v656_v32  ;;  %v8321_v46 = vcombine.low %v653_v34, %v657_v33 }
 0x2dc   : > { %7254 = vmatmul.mubr.bf16.vlgmr.msra.gmra.mrb[4].mxu0 %v9717_v41  ;;  %7582 = vmatmul.mubr.bf16.vlgmr.msra.gmra.mrb[4].mxu1 %v9717_v41  ;;  %v8279_v41 = vcombine.low %v612_v43, %v616_v45  ;;  %v665_v43 = vld [vmem:[%s9519_s8 + $0xa38] sm:$0xff]  ;;  %v8319_v45 = vcombine.low %v652_v30, %v656_v32 }
 0x2dd   : > { %7263 = vmatpush1.bf16.msra.mxu0 %v8263_v37  ;;  %7591 = vmatpush1.bf16.msra.mxu1 %v8265_v28  ;;  %v8322_v37 = vcombine.high %v653_v34, %v657_v33  ;;  %v660_v28 = vld [vmem:[%s9519_s8 + $0xa10] sm:$0xff]  ;;  %v705_v30 = vld [vmem:[%s9519_s8 + $0xb78] sm:$0xff] }
 0x2de   : > { %7264 = vmatprep.subr.bf16.mxu0 %v8272_v55  ;;  %7592 = vmatprep.subr.bf16.mxu1 %v8274_v42  ;;  %v664_v55 = vld [vmem:[%s9519_s8 + $0xa30] sm:$0xff]  ;;  %v661_v42 = vld [vmem:[%s9519_s8 + $0xa18] sm:$0xff] }
 0x2df   : > { %7294 = vmatprep.mubr.bf16.mxu0 %v9723_v51  ;;  %7622 = vmatprep.mubr.bf16.mxu1 %v9723_v51  ;;  %v8289_v51 = vcombine.low %v621_v54, %v625_v23  ;;  %v8328_v47 = vcombine.high %v660_v28, %v664_v55  ;;  %v8327_v10 = vcombine.low %v660_v28, %v664_v55  ;;  %v713_v28 = vld [vmem:[%s9519_s8 + $0xbb8] sm:$0xff] }
 0x2e0   : > { %v8329_v54 = vcombine.low %v661_v42, %v665_v43 }
 0x2e1   : > { %7265 = vmatpush1.bf16.msra.mxu0 %v8271_v48  ;;  %7593 = vmatpush1.bf16.msra.mxu1 %v8273_v49  ;;  %v8330_v48 = vcombine.high %v661_v42, %v665_v43  ;;  %v668_v49 = vld [vmem:[%s9519_s8 + $0xa50] sm:$0xff] }
 0x2e2   : > { %7266 = vmatprep.subr.bf16.mxu0 %v8280_v9  ;;  %7594 = vmatprep.subr.bf16.mxu1 %v8282_v50  ;;  %v672_v9 = vld [vmem:[%s9519_s8 + $0xa70] sm:$0xff]  ;;  %v669_v50 = vld [vmem:[%s9519_s8 + $0xa58] sm:$0xff] }
 0x2e3   : > { %v8336_v23 = vcombine.high %v668_v49, %v672_v9  ;;  %v8335_v61 = vcombine.low %v668_v49, %v672_v9  ;;  %v8337_v62 = vcombine.low %v669_v50, %v673_v52  ;;  %v721_v49 = vld [vmem:[%s9519_s8 + $0xbf8] sm:$0xff] }
 0x2e5   : > { %7267 = vmatpush1.bf16.msra.mxu0 %v8279_v41  ;;  %7595 = vmatpush1.bf16.msra.mxu1 %v8281_v56  ;;  %v8338_v41 = vcombine.high %v669_v50, %v673_v52  ;;  %v676_v56 = vld [vmem:[%s9519_s8 + $0xa90] sm:$0xff] }
 0x2e6   : > { %7268 = vmatprep.subr.bf16.mxu0 %v8288_v57  ;;  %7596 = vmatprep.subr.bf16.mxu1 %v8290_v58  ;;  %v680_v57 = vld [vmem:[%s9519_s8 + $0xab0] sm:$0xff]  ;;  %v677_v58 = vld [vmem:[%s9519_s8 + $0xa98] sm:$0xff] }
 0x2e7   : > { %v8344_v1 = vcombine.high %v676_v56, %v680_v57  ;;  %v8343_v7 = vcombine.low %v676_v56, %v680_v57  ;;  %v8345_v8 = vcombine.low %v677_v58, %v681_v60  ;;  %v729_v56 = vld [vmem:[%s9519_s8 + $0xc38] sm:$0xff] }
 0x2e9   : > { %7269 = vmatpush1.bf16.msra.mxu0 %v8287_v3  ;;  %7597 = vmatpush1.bf16.msra.mxu1 %v8289_v51  ;;  %v8346_v3 = vcombine.high %v677_v58, %v681_v60  ;;  %v684_v51 = vld [vmem:[%s9519_s8 + $0xad0] sm:$0xff] }
 0x2ea   : > { %7270 = vmatprep.subr.bf16.mxu0 %v8296_v4  ;;  %7598 = vmatprep.subr.bf16.mxu1 %v8298_v5  ;;  %v688_v4 = vld [vmem:[%s9519_s8 + $0xaf0] sm:$0xff]  ;;  %v685_v5 = vld [vmem:[%s9519_s8 + $0xad8] sm:$0xff] }
 0x2eb   : > { %v8352_v11 = vcombine.high %v684_v51, %v688_v4  ;;  %v8351_v25 = vcombine.low %v684_v51, %v688_v4  ;;  %v8353_v20 = vcombine.low %v685_v5, %v689_v6  ;;  %v737_v51 = vld [vmem:[%s9519_s8 + $0xc78] sm:$0xff] }
 0x2ed   : > { %7271 = vmatpush1.bf16.msra.mxu0 %v8295_v19  ;;  %7599 = vmatpush1.bf16.msra.mxu1 %v8297_v14  ;;  %v8354_v19 = vcombine.high %v685_v5, %v689_v6  ;;  %v692_v14 = vld [vmem:[%s9519_s8 + $0xb10] sm:$0xff] }
 0x2ee   : > { %7272 = vmatprep.subr.bf16.mxu0 %v8304_v15  ;;  %7600 = vmatprep.subr.bf16.mxu1 %v8306_v59  ;;  %v696_v15 = vld [vmem:[%s9519_s8 + $0xb30] sm:$0xff]  ;;  %v693_v59 = vld [vmem:[%s9519_s8 + $0xb18] sm:$0xff] }
 0x2ef   : > { %v8360_v21 = vcombine.high %v692_v14, %v696_v15  ;;  %v8359_v32 = vcombine.low %v692_v14, %v696_v15  ;;  %v8361_v34 = vcombine.low %v693_v59, %v697_v18  ;;  %v745_v14 = vld [vmem:[%s9519_s8 + $0xcb8] sm:$0xff] }
 0x2f1   : > { %7273 = vmatpush1.bf16.msra.mxu0 %v8303_v22  ;;  %7601 = vmatpush1.bf16.msra.mxu1 %v8305_v13  ;;  %v8362_v22 = vcombine.high %v693_v59, %v697_v18  ;;  %v700_v13 = vld [vmem:[%s9519_s8 + $0xb50] sm:$0xff] }
 0x2f2   : > { %7274 = vmatprep.subr.bf16.mxu0 %v8312_v24  ;;  %7602 = vmatprep.subr.bf16.mxu1 %v8314_v27  ;;  %v704_v24 = vld [vmem:[%s9519_s8 + $0xb70] sm:$0xff]  ;;  %v701_v27 = vld [vmem:[%s9519_s8 + $0xb58] sm:$0xff] }
 0x2f3   : > { %v8368_v33 = vcombine.high %v700_v13, %v704_v24  ;;  %v8367_v55 = vcombine.low %v700_v13, %v704_v24  ;;  %v8369_v42 = vcombine.low %v701_v27, %v705_v30  ;;  %v753_v13 = vld [vmem:[%s9519_s8 + $0xcf8] sm:$0xff] }
 0x2f5   : > { %7275 = vmatpush1.bf16.msra.mxu0 %v8311_v63  ;;  %7603 = vmatpush1.bf16.msra.mxu1 %v8313_v35  ;;  %v8370_v63 = vcombine.high %v701_v27, %v705_v30  ;;  %v708_v35 = vld [vmem:[%s9519_s8 + $0xb90] sm:$0xff] }
 0x2f6   : > { %7276 = vmatprep.subr.bf16.mxu0 %v8320_v36  ;;  %7604 = vmatprep.subr.bf16.mxu1 %v8322_v37  ;;  %v712_v36 = vld [vmem:[%s9519_s8 + $0xbb0] sm:$0xff]  ;;  %v709_v37 = vld [vmem:[%s9519_s8 + $0xb98] sm:$0xff] }
 0x2f7   : > { %v8376_v43 = vcombine.high %v708_v35, %v712_v36  ;;  %v8375_v9 = vcombine.low %v708_v35, %v712_v36  ;;  %v8377_v50 = vcombine.low %v709_v37, %v713_v28 }
 0x2f9   : > { %7277 = vmatpush1.bf16.msra.mxu0 %v8319_v45  ;;  %7605 = vmatpush1.bf16.msra.mxu1 %v8321_v46  ;;  %v8378_v45 = vcombine.high %v709_v37, %v713_v28  ;;  %v716_v46 = vld [vmem:[%s9519_s8 + $0xbd0] sm:$0xff] }
 0x2fa   : > { %7278 = vmatprep.subr.bf16.mxu0 %v8328_v47  ;;  %7606 = vmatprep.subr.bf16.mxu1 %v8330_v48  ;;  %v720_v47 = vld [vmem:[%s9519_s8 + $0xbf0] sm:$0xff]  ;;  %v717_v48 = vld [vmem:[%s9519_s8 + $0xbd8] sm:$0xff] }
 0x2fb   : > { %v8384_v52 = vcombine.high %v716_v46, %v720_v47  ;;  %v8383_v57 = vcombine.low %v716_v46, %v720_v47  ;;  %v8385_v58 = vcombine.low %v717_v48, %v721_v49  ;;  %v764_v28 = vld [vmem:[%s9519_s8 + $0xd50] sm:$0xff]  ;;  %v1362_v47 = vld [vmem:[%s9527_s22] sm:$0xff] }
 0x2fd   : > { %7279 = vmatpush1.bf16.msra.mxu0 %v8327_v10  ;;  %7607 = vmatpush1.bf16.msra.mxu1 %v8329_v54  ;;  %v8386_v10 = vcombine.high %v717_v48, %v721_v49  ;;  %v724_v54 = vld [vmem:[%s9519_s8 + $0xc10] sm:$0xff]  ;;  %v1374_v48 = vsub.s32 2, %v9555_v44  ;;  %v1370_v49 = vsub.s32 1, %v9555_v44 }
 0x2fe   : > { %7280 = vmatprep.subr.bf16.mxu0 %v8336_v23  ;;  %7608 = vmatprep.subr.bf16.mxu1 %v8338_v41  ;;  %v728_v23 = vld [vmem:[%s9519_s8 + $0xc30] sm:$0xff]  ;;  %v725_v41 = vld [vmem:[%s9519_s8 + $0xc18] sm:$0xff] }
 0x2ff   : > { %v8392_v60 = vcombine.high %v724_v54, %v728_v23  ;;  %v8391_v4 = vcombine.low %v724_v54, %v728_v23  ;;  %v8393_v5 = vcombine.low %v725_v41, %v729_v56  ;;  %v772_v54 = vld [vmem:[%s9519_s8 + $0xd90] sm:$0xff] }
 0x300   : > { %v776_v23 = vld [vmem:[%s9519_s8 + $0xdb0] sm:$0xff] }
 0x301   : > { %7281 = vmatpush1.bf16.msra.mxu0 %v8335_v61  ;;  %7609 = vmatpush1.bf16.msra.mxu1 %v8337_v62  ;;  %v8394_v61 = vcombine.high %v725_v41, %v729_v56  ;;  %v732_v62 = vld [vmem:[%s9519_s8 + $0xc50] sm:$0xff]  ;;  %v773_v56 = vld [vmem:[%s9519_s8 + $0xd98] sm:$0xff] }
 0x302   : > { %7282 = vmatprep.subr.bf16.mxu0 %v8344_v1  ;;  %7610 = vmatprep.subr.bf16.mxu1 %v8346_v3  ;;  %v736_v1 = vld [vmem:[%s9519_s8 + $0xc70] sm:$0xff]  ;;  %v733_v3 = vld [vmem:[%s9519_s8 + $0xc58] sm:$0xff] }
 0x303   : > { %v8400_v6 = vcombine.high %v732_v62, %v736_v1  ;;  %v8399_v15 = vcombine.low %v732_v62, %v736_v1  ;;  %v8401_v59 = vcombine.low %v733_v3, %v737_v51 }
 0x305   : > { %7283 = vmatpush1.bf16.msra.mxu0 %v8343_v7  ;;  %7611 = vmatpush1.bf16.msra.mxu1 %v8345_v8  ;;  %v8402_v7 = vcombine.high %v733_v3, %v737_v51  ;;  %v740_v8 = vld [vmem:[%s9519_s8 + $0xc90] sm:$0xff]  ;;  %v8440_v3 = vcombine.high %v772_v54, %v776_v23 }
 0x306   : > { %7284 = vmatprep.subr.bf16.mxu0 %v8352_v11  ;;  %7612 = vmatprep.subr.bf16.mxu1 %v8354_v19  ;;  %v744_v11 = vld [vmem:[%s9519_s8 + $0xcb0] sm:$0xff]  ;;  %v741_v19 = vld [vmem:[%s9519_s8 + $0xc98] sm:$0xff] }
 0x307   : > { %v8408_v18 = vcombine.high %v740_v8, %v744_v11  ;;  %v8409_v24 = vcombine.low %v741_v19, %v745_v14 }
 0x309   : > { %7285 = vmatpush1.bf16.msra.mxu0 %v8351_v25  ;;  %7613 = vmatpush1.bf16.msra.mxu1 %v8353_v20  ;;  %v8410_v25 = vcombine.high %v741_v19, %v745_v14  ;;  %v748_v20 = vld [vmem:[%s9519_s8 + $0xcd0] sm:$0xff]  ;;  %v781_v19 = vld [vmem:[%s9519_s8 + $0xdd8] sm:$0xff] }
 0x30a   : > { %7286 = vmatprep.subr.bf16.mxu0 %v8360_v21  ;;  %7614 = vmatprep.subr.bf16.mxu1 %v8362_v22  ;;  %v752_v21 = vld [vmem:[%s9519_s8 + $0xcf0] sm:$0xff]  ;;  %v749_v22 = vld [vmem:[%s9519_s8 + $0xcd8] sm:$0xff] }
 0x30b   : > { %v8416_v27 = vcombine.high %v748_v20, %v752_v21  ;;  %v8418_v30 = vcombine.high %v749_v22, %v753_v13  ;;  %v8415_v35 = vcombine.low %v748_v20, %v752_v21  ;;  %v785_v14 = vld [vmem:[%s9519_s8 + $0xdf8] sm:$0xff]  ;;  %v8439_v20 = vcombine.low %v772_v54, %v776_v23  ;;  %v804_v54 = vld [vmem:[%s9519_s8 + $0xe90] sm:$0xff] }
 0x30c   : > { %v808_v23 = vld [vmem:[%s9519_s8 + $0xeb0] sm:$0xff] }
 0x30d   : > { %7287 = vmatpush1.bf16.msra.mxu0 %v8359_v32  ;;  %7615 = vmatpush1.bf16.msra.mxu1 %v8361_v34  ;;  %v756_v32 = vld [vmem:[%s9519_s8 + $0xd10] sm:$0xff] }
 0x30e   : > { %7288 = vmatprep.subr.bf16.mxu0 %v8368_v33  ;;  %7616 = vmatprep.subr.bf16.mxu1 %v8370_v63  ;;  %v760_v34 = vld [vmem:[%s9519_s8 + $0xd30] sm:$0xff]  ;;  %v757_v33 = vld [vmem:[%s9519_s8 + $0xd18] sm:$0xff] }
 0x30f   : > { %v761_v63 = vld [vmem:[%s9519_s8 + $0xd38] sm:$0xff]  ;;  %v8424_v36 = vcombine.high %v756_v32, %v760_v34  ;;  %v8423_v46 = vcombine.low %v756_v32, %v760_v34  ;;  %v8450_v32 = vcombine.high %v781_v19, %v785_v14  ;;  %v788_v34 = vld [vmem:[%s9519_s8 + $0xe10] sm:$0xff] }
 0x310   : > { %v8426_v37 = vcombine.high %v757_v33, %v761_v63 }
 0x311   : > { %7289 = vmatpush1.bf16.msra.mxu0 %v8367_v55  ;;  %7617 = vmatpush1.bf16.msra.mxu1 %v8369_v42  ;;  %v768_v55 = vld [vmem:[%s9519_s8 + $0xd70] sm:$0xff]  ;;  %v1366_v42 = vsub.s32 0, %v9555_v44 }
 0x312   : > { %7290 = vmatprep.subr.bf16.mxu0 %v8376_v43  ;;  %7618 = vmatprep.subr.bf16.mxu1 %v8378_v45  ;;  %v765_v43 = vld [vmem:[%s9519_s8 + $0xd58] sm:$0xff] }
 0x313   : > { %v769_v45 = vld [vmem:[%s9519_s8 + $0xd78] sm:$0xff]  ;;  %v1367_v41 = vrot.slane %v1362_v47, %v1366_v42 }
 0x314   : > { %v8433_v1 = vcombine.low %v765_v43, %v769_v45 }
 0x315   : > { %7291 = vmatpush1.bf16.msra.mxu0 %v8375_v9  ;;  %7619 = vmatpush1.bf16.msra.mxu1 %v8377_v50  ;;  %v8425_v9 = vcombine.low %v757_v33, %v761_v63  ;;  %v1378_v50 = vsub.s32 3, %v9555_v44  ;;  %v792_v33 = vld [vmem:[%s9519_s8 + $0xe30] sm:$0xff] }
 0x316   : > { %7292 = vmatprep.subr.bf16.mxu0 %v8384_v52  ;;  %7620 = vmatprep.subr.bf16.mxu1 %v8386_v10  ;;  %v8432_v52 = vcombine.high %v764_v28, %v768_v55  ;;  %v8434_v10 = vcombine.high %v765_v43, %v769_v45  ;;  %v8456_v42 = vcombine.high %v788_v34, %v792_v33  ;;  %v796_v45 = vld [vmem:[%s9519_s8 + $0xe50] sm:$0xff] }
 0x317   : > { %v1379_v62 = vrot.slane %v1362_v47, %v1378_v50 }
 0x319   : > { %7293 = vmatpush1.bf16.msra.mxu0 %v8383_v57  ;;  %7621 = vmatpush1.bf16.msra.mxu1 %v8385_v58  ;;  %v777_v57 = vld [vmem:[%s9519_s8 + $0xdb8] sm:$0xff]  ;;  %v1375_v58 = vrot.slane %v1362_v47, %v1374_v48 }
 0x31a   : > { %7303 = vmatprep.subr.bf16.mxu0 %v8392_v60  ;;  %7631 = vmatprep.subr.bf16.mxu1 %v8394_v61  ;;  %v1371_v60 = vrot.slane %v1362_v47, %v1370_v49  ;;  %v8431_v61 = vcombine.low %v764_v28, %v768_v55  ;;  %v8449_v55 = vcombine.low %v781_v19, %v785_v14  ;;  %v797_v48 = vld [vmem:[%s9519_s8 + $0xe58] sm:$0xff] }
 0x31b   : > { %v801_v49 = vld [vmem:[%s9519_s8 + $0xe78] sm:$0xff] }
 0x31c   : > { %7295 = vmatmul.mubr.bf16.vlgmr.msra.gmra.mrb[4].mxu0 %v9798_v2  ;;  %7623 = vmatmul.mubr.bf16.vlgmr.msra.gmra.mrb[4].mxu1 %v9798_v2  ;;  %v8407_v2 = vcombine.low %v740_v8, %v744_v11  ;;  %v821_v19 = vld [vmem:[%s9519_s8 + $0xf18] sm:$0xff] }
 0x31d   : > { %7304 = vmatpush1.bf16.msra.mxu0 %v8391_v4  ;;  %7632 = vmatpush1.bf16.msra.mxu1 %v8393_v5  ;;  %v8442_v4 = vcombine.high %v773_v56, %v777_v57  ;;  %v780_v5 = vld [vmem:[%s9519_s8 + $0xdd0] sm:$0xff]  ;;  %v825_v14 = vld [vmem:[%s9519_s8 + $0xf38] sm:$0xff] }
 0x31e   : > { %7305 = vmatprep.subr.bf16.mxu0 %v8400_v6  ;;  %7633 = vmatprep.subr.bf16.mxu1 %v8402_v7  ;;  %v784_v6 = vld [vmem:[%s9519_s8 + $0xdf0] sm:$0xff] }
 0x31f   : > { %7335 = vmatprep.mubr.bf16.mxu0 %v9804_v12  ;;  %7663 = vmatprep.mubr.bf16.mxu1 %v9804_v12  ;;  %v8417_v12 = vcombine.low %v749_v22, %v753_v13 }
 0x321   : > { %7306 = vmatpush1.bf16.msra.mxu0 %v8399_v15  ;;  %7634 = vmatpush1.bf16.msra.mxu1 %v8401_v59 }
 0x322   : > { %7307 = vmatprep.subr.bf16.mxu0 %v8408_v18  ;;  %7635 = vmatprep.subr.bf16.mxu1 %v8410_v25 }
 0x325   : > { %7308 = vmatpush1.bf16.msra.mxu0 %v8407_v2  ;;  %7636 = vmatpush1.bf16.msra.mxu1 %v8409_v24  ;;  %v8441_v2 = vcombine.low %v773_v56, %v777_v57  ;;  %v8448_v24 = vcombine.high %v780_v5, %v784_v6  ;;  %v809_v56 = vld [vmem:[%s9519_s8 + $0xeb8] sm:$0xff] }
 0x326   : > { %7309 = vmatprep.subr.bf16.mxu0 %v8416_v27  ;;  %7637 = vmatprep.subr.bf16.mxu1 %v8418_v30 }
 0x329   : > { %7310 = vmatpush1.bf16.msra.mxu0 %v8415_v35  ;;  %7638 = vmatpush1.bf16.msra.mxu1 %v8417_v12  ;;  %v789_v35 = vld [vmem:[%s9519_s8 + $0xe18] sm:$0xff] }
 0x32a   : > { %7311 = vmatprep.subr.bf16.mxu0 %v8424_v36  ;;  %7639 = vmatprep.subr.bf16.mxu1 %v8426_v37  ;;  %v793_v12 = vld [vmem:[%s9519_s8 + $0xe38] sm:$0xff]  ;;  %v8447_v37 = vcombine.low %v780_v5, %v784_v6 }
 0x32b   : > { %v8458_v43 = vcombine.high %v789_v35, %v793_v12  ;;  %v8457_v50 = vcombine.low %v789_v35, %v793_v12 }
 0x32d   : > { %7312 = vmatpush1.bf16.msra.mxu0 %v8423_v46  ;;  %7640 = vmatpush1.bf16.msra.mxu1 %v8425_v9  ;;  %v800_v46 = vld [vmem:[%s9519_s8 + $0xe70] sm:$0xff]  ;;  %v8455_v9 = vcombine.low %v788_v34, %v792_v33  ;;  %v837_v33 = vld [vmem:[%s9519_s8 + $0xf98] sm:$0xff] }
 0x32e   : > { %7313 = vmatprep.subr.bf16.mxu0 %v8432_v52  ;;  %7641 = vmatprep.subr.bf16.mxu1 %v8434_v10  ;;  %v8464_v52 = vcombine.high %v796_v45, %v800_v46  ;;  %v8466_v10 = vcombine.high %v797_v48, %v801_v49  ;;  %v8463_v57 = vcombine.low %v796_v45, %v800_v46  ;;  %v840_v34 = vld [vmem:[%s9519_s8 + $0xfb0] sm:$0xff] }
 0x32f   : > { %v6845_v51 = vpop.f32.mrb[0].mxu0  ;;  %v7173_v8 = vpop.f32.mrb[0].mxu1 }
 0x330   : > { %v9035_v7 = vadd.f32 %v6845_v51, %v1367_v41  ;;  %v6847_v11 = vpop.f32.mrb[1].mxu0  ;;  %v9037_v15 = vadd.f32 %v7173_v8, %v1375_v58  ;;  %v7175_v18 = vpop.f32.mrb[1].mxu1  ;;  %v805_v41 = vld [vmem:[%s9519_s8 + $0xe98] sm:$0xff]  ;;  %v8465_v58 = vcombine.low %v797_v48, %v801_v49  ;;  %v820_v8 = vld [vmem:[%s9519_s8 + $0xf10] sm:$0xff] }
 0x331   : > { %v9036_v59 = vadd.f32 %v6847_v11, %v1371_v60  ;;  %v6849_v25 = vpop.f32.mrb[2].mxu0  ;;  %7314 = vmatpush1.bf16.msra.mxu0 %v8431_v61  ;;  %v9038_v21 = vadd.f32 %v7175_v18, %v1379_v62  ;;  %v7177_v22 = vpop.f32.mrb[2].mxu1  ;;  %7642 = vmatpush1.bf16.msra.mxu1 %v8433_v1  ;;  %v8472_v60 = vcombine.high %v804_v54, %v808_v23  ;;  %v812_v62 = vld [vmem:[%s9519_s8 + $0xed0] sm:$0xff]  ;;  %v817_v51 = vld [vmem:[%s9519_s8 + $0xef8] sm:$0xff] }
 0x332   : > { %v6850_v13 = vpop.f32.mrb[3].mxu0  ;;  %7315 = vmatprep.subr.bf16.mxu0 %v8440_v3  ;;  %v7178_v30 = vpop.f32.mrb[3].mxu1  ;;  %7643 = vmatprep.subr.bf16.mxu1 %v8442_v4  ;;  %v8474_v61 = vcombine.high %v805_v41, %v809_v56  ;;  %v816_v1 = vld [vmem:[%s9519_s8 + $0xef0] sm:$0xff]  ;;  %v813_v3 = vld [vmem:[%s9519_s8 + $0xed8] sm:$0xff]  ;;  %v8471_v4 = vcombine.low %v804_v54, %v808_v23  ;;  %v8473_v5 = vcombine.low %v805_v41, %v809_v56 }
 0x333   : > { %v7844_v27 = vcombine.low %v9035_v7, %v9036_v59  ;;  %v7845_v63 = vcombine.low %v9037_v15, %v9038_v21  ;;  %v8480_v6 = vcombine.high %v812_v62, %v816_v1  ;;  %v8482_v7 = vcombine.high %v813_v3, %v817_v51  ;;  %v824_v11 = vld [vmem:[%s9519_s8 + $0xf30] sm:$0xff]  ;;  %v829_v22 = vld [vmem:[%s9519_s8 + $0xf58] sm:$0xff] }
 0x334   : > { %v8479_v15 = vcombine.low %v812_v62, %v816_v1  ;;  %v8481_v59 = vcombine.low %v813_v3, %v817_v51  ;;  %v8488_v18 = vcombine.high %v820_v8, %v824_v11  ;;  %v8490_v25 = vcombine.high %v821_v19, %v825_v14  ;;  %v832_v21 = vld [vmem:[%s9519_s8 + $0xf70] sm:$0xff]  ;;  %v833_v13 = vld [vmem:[%s9519_s8 + $0xf78] sm:$0xff] }
 0x335   : > { %v7852_v36 = vrot.slane %v7844_v27, %v9562_v53  ;;  %7316 = vmatpush1.bf16.msra.mxu0 %v8439_v20  ;;  %v7859_v28 = vrot.slane %v7845_v63, %v9562_v53  ;;  %7644 = vmatpush1.bf16.msra.mxu1 %v8441_v2  ;;  %v828_v20 = vld [vmem:[%s9519_s8 + $0xf50] sm:$0xff]  ;;  %v8487_v2 = vcombine.low %v820_v8, %v824_v11  ;;  %v841_v63 = vld [vmem:[%s9519_s8 + $0xfb8] sm:$0xff] }
 0x336   : > { %7317 = vmatprep.subr.bf16.mxu0 %v8448_v24  ;;  %7645 = vmatprep.subr.bf16.mxu1 %v8450_v32  ;;  %v8489_v24 = vcombine.low %v821_v19, %v825_v14  ;;  %v8496_v27 = vcombine.high %v828_v20, %v832_v21  ;;  %v8498_v30 = vcombine.high %v829_v22, %v833_v13  ;;  %v836_v32 = vld [vmem:[%s9519_s8 + $0xf90] sm:$0xff] }
 0x337   : > { %v7860_v47 = vcombine.low %v7852_v36, %v7859_v28  ;;  %v8495_v35 = vcombine.low %v828_v20, %v832_v21  ;;  %v8497_v12 = vcombine.low %v829_v22, %v833_v13  ;;  %v8504_v36 = vcombine.high %v836_v32, %v840_v34  ;;  %v844_v28 = vld [vmem:[%s9519_s8 + $0xfd0] sm:$0xff] }
 0x338   : > { %v8503_v45 = vcombine.low %v836_v32, %v840_v34  ;;  %v8505_v46 = vcombine.low %v837_v33, %v841_v63  ;;  %v852_v49 = vld [vmem:[%s9519_s8 + $0x1010] sm:$0xff] }
 0x339   : > { %7318 = vmatpush1.bf16.msra.mxu0 %v8447_v37  ;;  %7646 = vmatpush1.bf16.msra.mxu1 %v8449_v55  ;;  %7880 = vst [vmem:[%s10456_s11] sm:$0xff] %v7860_v47  ;;  %v8506_v37 = vcombine.high %v837_v33, %v841_v63  ;;  %v848_v55 = vld [vmem:[%s9519_s8 + $0xff0] sm:$0xff]  ;;  %v893_v63 = vld [vmem:[%s9519_s8 + $0x1158] sm:$0xff] }
 0x33a   : > { %7319 = vmatprep.subr.bf16.mxu0 %v8456_v42  ;;  %7647 = vmatprep.subr.bf16.mxu1 %v8458_v43  ;;  %v845_v42 = vld [vmem:[%s9519_s8 + $0xfd8] sm:$0xff]  ;;  %v8512_v47 = vcombine.high %v844_v28, %v848_v55  ;;  %v860_v56 = vld [vmem:[%s9519_s8 + $0x1050] sm:$0xff] }
 0x33b   : > { %v849_v43 = vld [vmem:[%s9519_s8 + $0xff8] sm:$0xff]  ;;  %v868_v51 = vld [vmem:[%s9519_s8 + $0x1090] sm:$0xff] }
 0x33c   : > { %v8514_v48 = vcombine.high %v845_v42, %v849_v43  ;;  %v8513_v54 = vcombine.low %v845_v42, %v849_v43  ;;  %v876_v14 = vld [vmem:[%s9519_s8 + $0x10d0] sm:$0xff]  ;;  %v901_v43 = vld [vmem:[%s9519_s8 + $0x1198] sm:$0xff] }
 0x33d   : > { %7320 = vmatpush1.bf16.msra.mxu0 %v8455_v9  ;;  %7648 = vmatpush1.bf16.msra.mxu1 %v8457_v50  ;;  %v856_v9 = vld [vmem:[%s9519_s8 + $0x1030] sm:$0xff]  ;;  %v853_v50 = vld [vmem:[%s9519_s8 + $0x1018] sm:$0xff] }
 0x33e   : > { %7321 = vmatprep.subr.bf16.mxu0 %v8464_v52  ;;  %7649 = vmatprep.subr.bf16.mxu1 %v8466_v10  ;;  %v857_v52 = vld [vmem:[%s9519_s8 + $0x1038] sm:$0xff]  ;;  %v8511_v10 = vcombine.low %v844_v28, %v848_v55  ;;  %v8520_v23 = vcombine.high %v852_v49, %v856_v9  ;;  %v884_v22 = vld [vmem:[%s9519_s8 + $0x1110] sm:$0xff] }
 0x33f   : > { %v8522_v41 = vcombine.high %v853_v50, %v857_v52  ;;  %v8521_v62 = vcombine.low %v853_v50, %v857_v52  ;;  %v888_v13 = vld [vmem:[%s9519_s8 + $0x1130] sm:$0xff]  ;;  %v909_v52 = vld [vmem:[%s9519_s8 + $0x11d8] sm:$0xff] }
 0x340   : > { %v892_v34 = vld [vmem:[%s9519_s8 + $0x1150] sm:$0xff] }
 0x341   : > { %7322 = vmatpush1.bf16.msra.mxu0 %v8463_v57  ;;  %7650 = vmatpush1.bf16.msra.mxu1 %v8465_v58  ;;  %v864_v57 = vld [vmem:[%s9519_s8 + $0x1070] sm:$0xff]  ;;  %v861_v58 = vld [vmem:[%s9519_s8 + $0x1058] sm:$0xff] }
 0x342   : > { %7323 = vmatprep.subr.bf16.mxu0 %v8472_v60  ;;  %7651 = vmatprep.subr.bf16.mxu1 %v8474_v61  ;;  %v865_v60 = vld [vmem:[%s9519_s8 + $0x1078] sm:$0xff]  ;;  %v8519_v61 = vcombine.low %v852_v49, %v856_v9  ;;  %v8528_v1 = vcombine.high %v860_v56, %v864_v57  ;;  %v896_v33 = vld [vmem:[%s9519_s8 + $0x1170] sm:$0xff] }
 0x343   : > { %v8530_v3 = vcombine.high %v861_v58, %v865_v60  ;;  %v8529_v8 = vcombine.low %v861_v58, %v865_v60  ;;  %v900_v55 = vld [vmem:[%s9519_s8 + $0x1190] sm:$0xff]  ;;  %v917_v60 = vld [vmem:[%s9519_s8 + $0x1218] sm:$0xff] }
 0x344   : > { %v904_v42 = vld [vmem:[%s9519_s8 + $0x11b0] sm:$0xff] }
 0x345   : > { %7324 = vmatpush1.bf16.msra.mxu0 %v8471_v4  ;;  %7652 = vmatpush1.bf16.msra.mxu1 %v8473_v5  ;;  %v872_v4 = vld [vmem:[%s9519_s8 + $0x10b0] sm:$0xff]  ;;  %v869_v5 = vld [vmem:[%s9519_s8 + $0x1098] sm:$0xff] }
 0x346   : > { %7325 = vmatprep.subr.bf16.mxu0 %v8480_v6  ;;  %7653 = vmatprep.subr.bf16.mxu1 %v8482_v7  ;;  %v873_v6 = vld [vmem:[%s9519_s8 + $0x10b8] sm:$0xff]  ;;  %v8527_v7 = vcombine.low %v860_v56, %v864_v57  ;;  %v8536_v11 = vcombine.high %v868_v51, %v872_v4  ;;  %v908_v9 = vld [vmem:[%s9519_s8 + $0x11d0] sm:$0xff] }
 0x347   : > { %v8538_v19 = vcombine.high %v869_v5, %v873_v6  ;;  %v912_v50 = vld [vmem:[%s9519_s8 + $0x11f0] sm:$0xff] }
 0x348   : > { %v916_v57 = vld [vmem:[%s9519_s8 + $0x1210] sm:$0xff] }
 0x349   : > { %7326 = vmatpush1.bf16.msra.mxu0 %v8479_v15  ;;  %7654 = vmatpush1.bf16.msra.mxu1 %v8481_v59  ;;  %v880_v15 = vld [vmem:[%s9519_s8 + $0x10f0] sm:$0xff]  ;;  %v877_v59 = vld [vmem:[%s9519_s8 + $0x10d8] sm:$0xff] }
 0x34a   : > { %7327 = vmatprep.subr.bf16.mxu0 %v8488_v18  ;;  %7655 = vmatprep.subr.bf16.mxu1 %v8490_v25  ;;  %v881_v18 = vld [vmem:[%s9519_s8 + $0x10f8] sm:$0xff]  ;;  %v8537_v25 = vcombine.low %v869_v5, %v873_v6  ;;  %v8544_v20 = vcombine.high %v876_v14, %v880_v15  ;;  %v920_v58 = vld [vmem:[%s9519_s8 + $0x1230] sm:$0xff] }
 0x34b   : > { %v8546_v21 = vcombine.high %v877_v59, %v881_v18  ;;  %v928_v5 = vld [vmem:[%s9519_s8 + $0x1270] sm:$0xff]  ;;  %v925_v6 = vld [vmem:[%s9519_s8 + $0x1258] sm:$0xff] }
 0x34d   : > { %7328 = vmatpush1.bf16.msra.mxu0 %v8487_v2  ;;  %7656 = vmatpush1.bf16.msra.mxu1 %v8489_v24  ;;  %v885_v2 = vld [vmem:[%s9519_s8 + $0x1118] sm:$0xff] }
 0x34e   : > { %7329 = vmatprep.subr.bf16.mxu0 %v8496_v27  ;;  %7657 = vmatprep.subr.bf16.mxu1 %v8498_v30  ;;  %v889_v24 = vld [vmem:[%s9519_s8 + $0x1138] sm:$0xff]  ;;  %v8543_v27 = vcombine.low %v876_v14, %v880_v15  ;;  %v8552_v30 = vcombine.high %v884_v22, %v888_v13  ;;  %v932_v15 = vld [vmem:[%s9519_s8 + $0x1290] sm:$0xff] }
 0x34f   : > { %v8554_v32 = vcombine.high %v885_v2, %v889_v24 }
 0x351   : > { %7330 = vmatpush1.bf16.msra.mxu0 %v8495_v35  ;;  %7658 = vmatpush1.bf16.msra.mxu1 %v8497_v12  ;;  %v897_v35 = vld [vmem:[%s9519_s8 + $0x1178] sm:$0xff]  ;;  %v8551_v12 = vcombine.low %v884_v22, %v888_v13  ;;  %v940_v13 = vld [vmem:[%s9519_s8 + $0x12d0] sm:$0xff] }
 0x352   : > { %7331 = vmatprep.subr.bf16.mxu0 %v8504_v36  ;;  %7659 = vmatprep.subr.bf16.mxu1 %v8506_v37  ;;  %v8553_v36 = vcombine.low %v885_v2, %v889_v24  ;;  %v8560_v37 = vcombine.high %v892_v34, %v896_v33  ;;  %v8562_v28 = vcombine.high %v893_v63, %v897_v35  ;;  %v944_v2 = vld [vmem:[%s9519_s8 + $0x12f0] sm:$0xff]  ;;  %v941_v24 = vld [vmem:[%s9519_s8 + $0x12d8] sm:$0xff] }
 0x355   : > { %7332 = vmatpush1.bf16.msra.mxu0 %v8503_v45  ;;  %7660 = vmatpush1.bf16.msra.mxu1 %v8505_v46  ;;  %v905_v45 = vld [vmem:[%s9519_s8 + $0x11b8] sm:$0xff]  ;;  %v8559_v46 = vcombine.low %v892_v34, %v896_v33  ;;  %v948_v33 = vld [vmem:[%s9519_s8 + $0x1310] sm:$0xff] }
 0x356   : > { %7333 = vmatprep.subr.bf16.mxu0 %v8512_v47  ;;  %7661 = vmatprep.subr.bf16.mxu1 %v8514_v48  ;;  %v8561_v47 = vcombine.low %v893_v63, %v897_v35  ;;  %v8568_v48 = vcombine.high %v900_v55, %v904_v42  ;;  %v8570_v49 = vcombine.high %v901_v43, %v905_v45  ;;  %v952_v63 = vld [vmem:[%s9519_s8 + $0x1330] sm:$0xff]  ;;  %v949_v35 = vld [vmem:[%s9519_s8 + $0x1318] sm:$0xff] }
 0x359   : > { %7334 = vmatpush1.bf16.msra.mxu0 %v8511_v10  ;;  %7662 = vmatpush1.bf16.msra.mxu1 %v8513_v54  ;;  %v913_v10 = vld [vmem:[%s9519_s8 + $0x11f8] sm:$0xff]  ;;  %v8567_v54 = vcombine.low %v900_v55, %v904_v42  ;;  %v956_v42 = vld [vmem:[%s9519_s8 + $0x1350] sm:$0xff] }
 0x35a   : > { %7344 = vmatprep.subr.bf16.mxu0 %v8520_v23  ;;  %7672 = vmatprep.subr.bf16.mxu1 %v8522_v41  ;;  %v8569_v23 = vcombine.low %v901_v43, %v905_v45  ;;  %v8576_v41 = vcombine.high %v908_v9, %v912_v50  ;;  %v8578_v56 = vcombine.high %v909_v52, %v913_v10  ;;  %v960_v43 = vld [vmem:[%s9519_s8 + $0x1370] sm:$0xff]  ;;  %v957_v45 = vld [vmem:[%s9519_s8 + $0x1358] sm:$0xff] }
 0x35c   : > { %7336 = vmatmul.mubr.bf16.vlgmr.msra.gmra.mrb[4].mxu0 %v9883_v29  ;;  %7664 = vmatmul.mubr.bf16.vlgmr.msra.gmra.mrb[4].mxu1 %v9883_v29  ;;  %v8535_v29 = vcombine.low %v868_v51, %v872_v4  ;;  %v924_v4 = vld [vmem:[%s9519_s8 + $0x1250] sm:$0xff] }
 0x35d   : > { %7345 = vmatpush1.bf16.msra.mxu0 %v8519_v61  ;;  %7673 = vmatpush1.bf16.msra.mxu1 %v8521_v62  ;;  %v921_v61 = vld [vmem:[%s9519_s8 + $0x1238] sm:$0xff]  ;;  %v8575_v62 = vcombine.low %v908_v9, %v912_v50  ;;  %v964_v50 = vld [vmem:[%s9519_s8 + $0x1390] sm:$0xff] }
 0x35e   : > { %7346 = vmatprep.subr.bf16.mxu0 %v8528_v1  ;;  %7674 = vmatprep.subr.bf16.mxu1 %v8530_v3  ;;  %v8577_v1 = vcombine.low %v909_v52, %v913_v10  ;;  %v8584_v3 = vcombine.high %v916_v57, %v920_v58  ;;  %v8586_v51 = vcombine.high %v917_v60, %v921_v61  ;;  %v968_v52 = vld [vmem:[%s9519_s8 + $0x13b0] sm:$0xff]  ;;  %v965_v10 = vld [vmem:[%s9519_s8 + $0x1398] sm:$0xff] }
 0x35f   : > { %7376 = vmatprep.mubr.bf16.mxu0 %v9889_v39  ;;  %7704 = vmatprep.mubr.bf16.mxu1 %v9889_v39  ;;  %v8545_v39 = vcombine.low %v877_v59, %v881_v18  ;;  %v936_v59 = vld [vmem:[%s9519_s8 + $0x12b0] sm:$0xff]  ;;  %v933_v18 = vld [vmem:[%s9519_s8 + $0x1298] sm:$0xff] }
 0x361   : > { %7347 = vmatpush1.bf16.msra.mxu0 %v8527_v7  ;;  %7675 = vmatpush1.bf16.msra.mxu1 %v8529_v8  ;;  %v929_v7 = vld [vmem:[%s9519_s8 + $0x1278] sm:$0xff]  ;;  %v8583_v8 = vcombine.low %v916_v57, %v920_v58  ;;  %v972_v58 = vld [vmem:[%s9519_s8 + $0x13d0] sm:$0xff] }
 0x362   : > { %7348 = vmatprep.subr.bf16.mxu0 %v8536_v11  ;;  %7676 = vmatprep.subr.bf16.mxu1 %v8538_v19  ;;  %v8585_v11 = vcombine.low %v917_v60, %v921_v61  ;;  %v8592_v19 = vcombine.high %v924_v4, %v928_v5  ;;  %v8594_v14 = vcombine.high %v925_v6, %v929_v7  ;;  %v976_v60 = vld [vmem:[%s9519_s8 + $0x13f0] sm:$0xff]  ;;  %v973_v61 = vld [vmem:[%s9519_s8 + $0x13d8] sm:$0xff] }
 0x365   : > { %7349 = vmatpush1.bf16.msra.mxu0 %v8535_v29  ;;  %7677 = vmatpush1.bf16.msra.mxu1 %v8537_v25  ;;  %v937_v29 = vld [vmem:[%s9519_s8 + $0x12b8] sm:$0xff]  ;;  %v8591_v25 = vcombine.low %v924_v4, %v928_v5  ;;  %v980_v5 = vld [vmem:[%s9519_s8 + $0x1410] sm:$0xff] }
 0x366   : > { %7350 = vmatprep.subr.bf16.mxu0 %v8544_v20  ;;  %7678 = vmatprep.subr.bf16.mxu1 %v8546_v21  ;;  %v8593_v20 = vcombine.low %v925_v6, %v929_v7  ;;  %v8600_v21 = vcombine.high %v932_v15, %v936_v59  ;;  %v8602_v22 = vcombine.high %v933_v18, %v937_v29  ;;  %v984_v6 = vld [vmem:[%s9519_s8 + $0x1430] sm:$0xff]  ;;  %v981_v7 = vld [vmem:[%s9519_s8 + $0x1418] sm:$0xff] }
 0x369   : > { %7351 = vmatpush1.bf16.msra.mxu0 %v8543_v27  ;;  %7679 = vmatpush1.bf16.msra.mxu1 %v8545_v39  ;;  %v945_v27 = vld [vmem:[%s9519_s8 + $0x12f8] sm:$0xff]  ;;  %v8599_v39 = vcombine.low %v932_v15, %v936_v59  ;;  %v988_v59 = vld [vmem:[%s9519_s8 + $0x1450] sm:$0xff] }
 0x36a   : > { %7352 = vmatprep.subr.bf16.mxu0 %v8552_v30  ;;  %7680 = vmatprep.subr.bf16.mxu1 %v8554_v32  ;;  %v8601_v30 = vcombine.low %v933_v18, %v937_v29  ;;  %v8608_v32 = vcombine.high %v940_v13, %v944_v2  ;;  %v8610_v34 = vcombine.high %v941_v24, %v945_v27  ;;  %v992_v18 = vld [vmem:[%s9519_s8 + $0x1470] sm:$0xff]  ;;  %v989_v29 = vld [vmem:[%s9519_s8 + $0x1458] sm:$0xff] }
 0x36d   : > { %7353 = vmatpush1.bf16.msra.mxu0 %v8551_v12  ;;  %7681 = vmatpush1.bf16.msra.mxu1 %v8553_v36  ;;  %v953_v12 = vld [vmem:[%s9519_s8 + $0x1338] sm:$0xff]  ;;  %v8607_v36 = vcombine.low %v940_v13, %v944_v2  ;;  %v996_v2 = vld [vmem:[%s9519_s8 + $0x1490] sm:$0xff] }
 0x36e   : > { %7354 = vmatprep.subr.bf16.mxu0 %v8560_v37  ;;  %7682 = vmatprep.subr.bf16.mxu1 %v8562_v28  ;;  %v8609_v37 = vcombine.low %v941_v24, %v945_v27  ;;  %v8616_v28 = vcombine.high %v948_v33, %v952_v63  ;;  %v8618_v55 = vcombine.high %v949_v35, %v953_v12  ;;  %v1000_v24 = vld [vmem:[%s9519_s8 + $0x14b0] sm:$0xff]  ;;  %v997_v27 = vld [vmem:[%s9519_s8 + $0x1498] sm:$0xff] }
 0x371   : > { %7355 = vmatpush1.bf16.msra.mxu0 %v8559_v46  ;;  %7683 = vmatpush1.bf16.msra.mxu1 %v8561_v47  ;;  %v961_v46 = vld [vmem:[%s9519_s8 + $0x1378] sm:$0xff]  ;;  %v8615_v47 = vcombine.low %v948_v33, %v952_v63  ;;  %v1004_v63 = vld [vmem:[%s9519_s8 + $0x14d0] sm:$0xff] }
 0x372   : > { %7356 = vmatprep.subr.bf16.mxu0 %v8568_v48  ;;  %7684 = vmatprep.subr.bf16.mxu1 %v8570_v49  ;;  %v8617_v48 = vcombine.low %v949_v35, %v953_v12  ;;  %v8624_v49 = vcombine.high %v956_v42, %v960_v43  ;;  %v8626_v9 = vcombine.high %v957_v45, %v961_v46  ;;  %v1008_v35 = vld [vmem:[%s9519_s8 + $0x14f0] sm:$0xff]  ;;  %v1005_v12 = vld [vmem:[%s9519_s8 + $0x14d8] sm:$0xff] }
 0x375   : > { %7357 = vmatpush1.bf16.msra.mxu0 %v8567_v54  ;;  %7685 = vmatpush1.bf16.msra.mxu1 %v8569_v23  ;;  %v969_v54 = vld [vmem:[%s9519_s8 + $0x13b8] sm:$0xff]  ;;  %v8623_v23 = vcombine.low %v956_v42, %v960_v43  ;;  %v1012_v42 = vld [vmem:[%s9519_s8 + $0x1510] sm:$0xff] }
 0x376   : > { %7358 = vmatprep.subr.bf16.mxu0 %v8576_v41  ;;  %7686 = vmatprep.subr.bf16.mxu1 %v8578_v56  ;;  %v8625_v41 = vcombine.low %v957_v45, %v961_v46  ;;  %v8632_v56 = vcombine.high %v964_v50, %v968_v52  ;;  %v8634_v57 = vcombine.high %v965_v10, %v969_v54  ;;  %v1016_v43 = vld [vmem:[%s9519_s8 + $0x1530] sm:$0xff]  ;;  %v1013_v45 = vld [vmem:[%s9519_s8 + $0x1518] sm:$0xff] }
 0x377   : > { %v1017_v46 = vld [vmem:[%s9519_s8 + $0x1538] sm:$0xff] }
 0x379   : > { %7359 = vmatpush1.bf16.msra.mxu0 %v8575_v62  ;;  %7687 = vmatpush1.bf16.msra.mxu1 %v8577_v1  ;;  %v977_v62 = vld [vmem:[%s9519_s8 + $0x13f8] sm:$0xff]  ;;  %v8631_v1 = vcombine.low %v964_v50, %v968_v52  ;;  %v1024_v50 = vld [vmem:[%s9519_s8 + $0x1570] sm:$0xff] }
 0x37a   : > { %7360 = vmatprep.subr.bf16.mxu0 %v8584_v3  ;;  %7688 = vmatprep.subr.bf16.mxu1 %v8586_v51  ;;  %v8633_v3 = vcombine.low %v965_v10, %v969_v54  ;;  %v8640_v51 = vcombine.high %v972_v58, %v976_v60  ;;  %v8642_v4 = vcombine.high %v973_v61, %v977_v62  ;;  %v1021_v52 = vld [vmem:[%s9519_s8 + $0x1558] sm:$0xff] }
 0x37b   : > { %v1025_v10 = vld [vmem:[%s9519_s8 + $0x1578] sm:$0xff]  ;;  %v8679_v54 = vcombine.low %v1012_v42, %v1016_v43 }
 0x37d   : > { %7361 = vmatpush1.bf16.msra.mxu0 %v8583_v8  ;;  %7689 = vmatpush1.bf16.msra.mxu1 %v8585_v11  ;;  %v985_v8 = vld [vmem:[%s9519_s8 + $0x1438] sm:$0xff]  ;;  %v8639_v11 = vcombine.low %v972_v58, %v976_v60  ;;  %v1032_v58 = vld [vmem:[%s9519_s8 + $0x15b0] sm:$0xff] }
 0x37e   : > { %7362 = vmatprep.subr.bf16.mxu0 %v8592_v19  ;;  %7690 = vmatprep.subr.bf16.mxu1 %v8594_v14  ;;  %v8641_v19 = vcombine.low %v973_v61, %v977_v62  ;;  %v8648_v14 = vcombine.high %v980_v5, %v984_v6  ;;  %v8650_v15 = vcombine.high %v981_v7, %v985_v8  ;;  %v1029_v60 = vld [vmem:[%s9519_s8 + $0x1598] sm:$0xff] }
 0x37f   : > { %v1033_v61 = vld [vmem:[%s9519_s8 + $0x15b8] sm:$0xff] }
 0x381   : > { %7363 = vmatpush1.bf16.msra.mxu0 %v8591_v25  ;;  %7691 = vmatpush1.bf16.msra.mxu1 %v8593_v20  ;;  %v993_v25 = vld [vmem:[%s9519_s8 + $0x1478] sm:$0xff]  ;;  %v8647_v20 = vcombine.low %v980_v5, %v984_v6  ;;  %v1040_v5 = vld [vmem:[%s9519_s8 + $0x15f0] sm:$0xff] }
 0x382   : > { %7364 = vmatprep.subr.bf16.mxu0 %v8600_v21  ;;  %7692 = vmatprep.subr.bf16.mxu1 %v8602_v22  ;;  %v8649_v21 = vcombine.low %v981_v7, %v985_v8  ;;  %v8656_v22 = vcombine.high %v988_v59, %v992_v18  ;;  %v8658_v13 = vcombine.high %v989_v29, %v993_v25  ;;  %v1037_v6 = vld [vmem:[%s9519_s8 + $0x15d8] sm:$0xff] }
 0x383   : > { %v1041_v7 = vld [vmem:[%s9519_s8 + $0x15f8] sm:$0xff] }
 0x385   : > { %7365 = vmatpush1.bf16.msra.mxu0 %v8599_v39  ;;  %7693 = vmatpush1.bf16.msra.mxu1 %v8601_v30  ;;  %v1001_v39 = vld [vmem:[%s9519_s8 + $0x14b8] sm:$0xff]  ;;  %v8655_v30 = vcombine.low %v988_v59, %v992_v18  ;;  %v1048_v59 = vld [vmem:[%s9519_s8 + $0x1630] sm:$0xff] }
 0x386   : > { %7366 = vmatprep.subr.bf16.mxu0 %v8608_v32  ;;  %7694 = vmatprep.subr.bf16.mxu1 %v8610_v34  ;;  %v8657_v32 = vcombine.low %v989_v29, %v993_v25  ;;  %v8664_v34 = vcombine.high %v996_v2, %v1000_v24  ;;  %v8666_v33 = vcombine.high %v997_v27, %v1001_v39  ;;  %v1045_v18 = vld [vmem:[%s9519_s8 + $0x1618] sm:$0xff] }
 0x387   : > { %v1049_v29 = vld [vmem:[%s9519_s8 + $0x1638] sm:$0xff] }
 0x389   : > { %7367 = vmatpush1.bf16.msra.mxu0 %v8607_v36  ;;  %7695 = vmatpush1.bf16.msra.mxu1 %v8609_v37  ;;  %v1009_v36 = vld [vmem:[%s9519_s8 + $0x14f8] sm:$0xff]  ;;  %v8665_v37 = vcombine.low %v997_v27, %v1001_v39 }
 0x38a   : > { %7368 = vmatprep.subr.bf16.mxu0 %v8616_v28  ;;  %7696 = vmatprep.subr.bf16.mxu1 %v8618_v55  ;;  %v8672_v28 = vcombine.high %v1004_v63, %v1008_v35  ;;  %v8674_v55 = vcombine.high %v1005_v12, %v1009_v36  ;;  %v1057_v27 = vld [vmem:[%s9519_s8 + $0x1678] sm:$0xff] }
 0x38d   : > { %7369 = vmatpush1.bf16.msra.mxu0 %v8615_v47  ;;  %7697 = vmatpush1.bf16.msra.mxu1 %v8617_v48  ;;  %v8671_v47 = vcombine.low %v1004_v63, %v1008_v35  ;;  %v8680_v48 = vcombine.high %v1012_v42, %v1016_v43  ;;  %v1064_v63 = vld [vmem:[%s9519_s8 + $0x16b0] sm:$0xff]  ;;  %v1061_v35 = vld [vmem:[%s9519_s8 + $0x1698] sm:$0xff] }
 0x38e   : > { %7370 = vmatprep.subr.bf16.mxu0 %v8624_v49  ;;  %7698 = vmatprep.subr.bf16.mxu1 %v8626_v9  ;;  %v8682_v49 = vcombine.high %v1013_v45, %v1017_v46  ;;  %v1020_v9 = vld [vmem:[%s9519_s8 + $0x1550] sm:$0xff]  ;;  %v1069_v43 = vld [vmem:[%s9519_s8 + $0x16d8] sm:$0xff] }
 0x38f   : > { %v8687_v62 = vcombine.low %v1020_v9, %v1024_v50  ;;  %v1072_v42 = vld [vmem:[%s9519_s8 + $0x16f0] sm:$0xff] }
 0x391   : > { %7371 = vmatpush1.bf16.msra.mxu0 %v8623_v23  ;;  %7699 = vmatpush1.bf16.msra.mxu1 %v8625_v41  ;;  %v8681_v23 = vcombine.low %v1013_v45, %v1017_v46  ;;  %v8688_v41 = vcombine.high %v1020_v9, %v1024_v50  ;;  %v1073_v45 = vld [vmem:[%s9519_s8 + $0x16f8] sm:$0xff]  ;;  %v1080_v9 = vld [vmem:[%s9519_s8 + $0x1730] sm:$0xff] }
 0x392   : > { %7372 = vmatprep.subr.bf16.mxu0 %v8632_v56  ;;  %7700 = vmatprep.subr.bf16.mxu1 %v8634_v57  ;;  %v8690_v56 = vcombine.high %v1021_v52, %v1025_v10  ;;  %v1028_v57 = vld [vmem:[%s9519_s8 + $0x1590] sm:$0xff]  ;;  %v1077_v50 = vld [vmem:[%s9519_s8 + $0x1718] sm:$0xff] }
 0x393   : > { %v8695_v8 = vcombine.low %v1028_v57, %v1032_v58 }
 0x395   : > { %7373 = vmatpush1.bf16.msra.mxu0 %v8631_v1  ;;  %7701 = vmatpush1.bf16.msra.mxu1 %v8633_v3  ;;  %v8689_v1 = vcombine.low %v1021_v52, %v1025_v10  ;;  %v8696_v3 = vcombine.high %v1028_v57, %v1032_v58  ;;  %v1081_v52 = vld [vmem:[%s9519_s8 + $0x1738] sm:$0xff]  ;;  %v1088_v57 = vld [vmem:[%s9519_s8 + $0x1770] sm:$0xff] }
 0x396   : > { %7374 = vmatprep.subr.bf16.mxu0 %v8640_v51  ;;  %7702 = vmatprep.subr.bf16.mxu1 %v8642_v4  ;;  %v8698_v51 = vcombine.high %v1029_v60, %v1033_v61  ;;  %v1036_v4 = vld [vmem:[%s9519_s8 + $0x15d0] sm:$0xff]  ;;  %v1085_v58 = vld [vmem:[%s9519_s8 + $0x1758] sm:$0xff] }
 0x397   : > { %v8703_v25 = vcombine.low %v1036_v4, %v1040_v5 }
 0x399   : > { %7375 = vmatpush1.bf16.msra.mxu0 %v8639_v11  ;;  %7703 = vmatpush1.bf16.msra.mxu1 %v8641_v19  ;;  %v8697_v11 = vcombine.low %v1029_v60, %v1033_v61  ;;  %v8704_v19 = vcombine.high %v1036_v4, %v1040_v5  ;;  %v1089_v60 = vld [vmem:[%s9519_s8 + $0x1778] sm:$0xff]  ;;  %v1096_v4 = vld [vmem:[%s9519_s8 + $0x17b0] sm:$0xff] }
 0x39a   : > { %7385 = vmatprep.subr.bf16.mxu0 %v8648_v14  ;;  %7713 = vmatprep.subr.bf16.mxu1 %v8650_v15  ;;  %v8706_v14 = vcombine.high %v1037_v6, %v1041_v7  ;;  %v1044_v15 = vld [vmem:[%s9519_s8 + $0x1610] sm:$0xff]  ;;  %v1093_v5 = vld [vmem:[%s9519_s8 + $0x1798] sm:$0xff] }
 0x39b   : > { %v8711_v39 = vcombine.low %v1044_v15, %v1048_v59 }
 0x39c   : > { %7377 = vmatmul.mubr.bf16.vlgmr.msra.gmra.mrb[4].mxu0 %v9964_v0  ;;  %7705 = vmatmul.mubr.bf16.vlgmr.msra.gmra.mrb[4].mxu1 %v9964_v0  ;;  %v8663_v0 = vcombine.low %v996_v2, %v1000_v24  ;;  %v1056_v2 = vld [vmem:[%s9519_s8 + $0x1670] sm:$0xff]  ;;  %v1053_v24 = vld [vmem:[%s9519_s8 + $0x1658] sm:$0xff] }
 0x39d   : > { %7386 = vmatpush1.bf16.msra.mxu0 %v8647_v20  ;;  %7714 = vmatpush1.bf16.msra.mxu1 %v8649_v21  ;;  %v8705_v20 = vcombine.low %v1037_v6, %v1041_v7  ;;  %v8712_v21 = vcombine.high %v1044_v15, %v1048_v59  ;;  %v1097_v6 = vld [vmem:[%s9519_s8 + $0x17b8] sm:$0xff]  ;;  %v1104_v15 = vld [vmem:[%s9519_s8 + $0x17f0] sm:$0xff] }
 0x39e   : > { %7387 = vmatprep.subr.bf16.mxu0 %v8656_v22  ;;  %7715 = vmatprep.subr.bf16.mxu1 %v8658_v13  ;;  %v8714_v22 = vcombine.high %v1045_v18, %v1049_v29  ;;  %v1052_v13 = vld [vmem:[%s9519_s8 + $0x1650] sm:$0xff]  ;;  %v1101_v59 = vld [vmem:[%s9519_s8 + $0x17d8] sm:$0xff] }
 0x39f   : > { %7417 = vmatprep.mubr.bf16.mxu0 %v9970_v31  ;;  %7745 = vmatprep.mubr.bf16.mxu1 %v9970_v31  ;;  %v8673_v31 = vcombine.low %v1005_v12, %v1009_v36  ;;  %v1065_v12 = vld [vmem:[%s9519_s8 + $0x16b8] sm:$0xff]  ;;  %v8719_v36 = vcombine.low %v1052_v13, %v1056_v2 }
 0x3a1   : > { %7388 = vmatpush1.bf16.msra.mxu0 %v8655_v30  ;;  %7716 = vmatpush1.bf16.msra.mxu1 %v8657_v32  ;;  %v8713_v30 = vcombine.low %v1045_v18, %v1049_v29  ;;  %v8720_v32 = vcombine.high %v1052_v13, %v1056_v2  ;;  %v1105_v18 = vld [vmem:[%s9519_s8 + $0x17f8] sm:$0xff]  ;;  %v1112_v13 = vld [vmem:[%s9519_s8 + $0x1830] sm:$0xff] }
 0x3a2   : > { %7389 = vmatprep.subr.bf16.mxu0 %v8664_v34  ;;  %7717 = vmatprep.subr.bf16.mxu1 %v8666_v33  ;;  %v8722_v34 = vcombine.high %v1053_v24, %v1057_v27  ;;  %v1060_v33 = vld [vmem:[%s9519_s8 + $0x1690] sm:$0xff]  ;;  %v1109_v2 = vld [vmem:[%s9519_s8 + $0x1818] sm:$0xff] }
 0x3a3   : > { %v8727_v46 = vcombine.low %v1060_v33, %v1064_v63 }
 0x3a5   : > { %7390 = vmatpush1.bf16.msra.mxu0 %v8663_v0  ;;  %7718 = vmatpush1.bf16.msra.mxu1 %v8665_v37  ;;  %v8721_v0 = vcombine.low %v1053_v24, %v1057_v27  ;;  %v8728_v37 = vcombine.high %v1060_v33, %v1064_v63  ;;  %v1113_v24 = vld [vmem:[%s9519_s8 + $0x1838] sm:$0xff]  ;;  %v1120_v33 = vld [vmem:[%s9519_s8 + $0x1870] sm:$0xff] }
 0x3a6   : > { %7391 = vmatprep.subr.bf16.mxu0 %v8672_v28  ;;  %7719 = vmatprep.subr.bf16.mxu1 %v8674_v55  ;;  %v8730_v28 = vcombine.high %v1061_v35, %v1065_v12  ;;  %v1068_v55 = vld [vmem:[%s9519_s8 + $0x16d0] sm:$0xff]  ;;  %v1117_v63 = vld [vmem:[%s9519_s8 + $0x1858] sm:$0xff] }
 0x3a7   : > { %v8735_v10 = vcombine.low %v1068_v55, %v1072_v42 }
 0x3a9   : > { %7392 = vmatpush1.bf16.msra.mxu0 %v8671_v47  ;;  %7720 = vmatpush1.bf16.msra.mxu1 %v8673_v31  ;;  %v8729_v47 = vcombine.low %v1061_v35, %v1065_v12  ;;  %v8736_v31 = vcombine.high %v1068_v55, %v1072_v42  ;;  %v1121_v35 = vld [vmem:[%s9519_s8 + $0x1878] sm:$0xff]  ;;  %v1128_v55 = vld [vmem:[%s9519_s8 + $0x18b0] sm:$0xff] }
 0x3aa   : > { %7393 = vmatprep.subr.bf16.mxu0 %v8680_v48  ;;  %7721 = vmatprep.subr.bf16.mxu1 %v8682_v49  ;;  %v8738_v48 = vcombine.high %v1069_v43, %v1073_v45  ;;  %v1076_v49 = vld [vmem:[%s9519_s8 + $0x1710] sm:$0xff]  ;;  %v1125_v42 = vld [vmem:[%s9519_s8 + $0x1898] sm:$0xff] }
 0x3ab   : > { %v8743_v61 = vcombine.low %v1076_v49, %v1080_v9 }
 0x3ad   : > { %7394 = vmatpush1.bf16.msra.mxu0 %v8679_v54  ;;  %7722 = vmatpush1.bf16.msra.mxu1 %v8681_v23  ;;  %v8737_v54 = vcombine.low %v1069_v43, %v1073_v45  ;;  %v8744_v23 = vcombine.high %v1076_v49, %v1080_v9  ;;  %v1129_v43 = vld [vmem:[%s9519_s8 + $0x18b8] sm:$0xff]  ;;  %v1136_v49 = vld [vmem:[%s9519_s8 + $0x18f0] sm:$0xff] }
 0x3ae   : > { %7395 = vmatprep.subr.bf16.mxu0 %v8688_v41  ;;  %7723 = vmatprep.subr.bf16.mxu1 %v8690_v56  ;;  %v8746_v41 = vcombine.high %v1077_v50, %v1081_v52  ;;  %v1084_v56 = vld [vmem:[%s9519_s8 + $0x1750] sm:$0xff]  ;;  %v1133_v9 = vld [vmem:[%s9519_s8 + $0x18d8] sm:$0xff] }
 0x3af   : > { %v8751_v7 = vcombine.low %v1084_v56, %v1088_v57 }
 0x3b1   : > { %7396 = vmatpush1.bf16.msra.mxu0 %v8687_v62  ;;  %7724 = vmatpush1.bf16.msra.mxu1 %v8689_v1  ;;  %v8745_v62 = vcombine.low %v1077_v50, %v1081_v52  ;;  %v8752_v1 = vcombine.high %v1084_v56, %v1088_v57  ;;  %v1137_v50 = vld [vmem:[%s9519_s8 + $0x18f8] sm:$0xff]  ;;  %v8793_v52 = vcombine.low %v1125_v42, %v1129_v43 }
 0x3b2   : > { %7397 = vmatprep.subr.bf16.mxu0 %v8696_v3  ;;  %7725 = vmatprep.subr.bf16.mxu1 %v8698_v51  ;;  %v8754_v3 = vcombine.high %v1085_v58, %v1089_v60  ;;  %v1092_v51 = vld [vmem:[%s9519_s8 + $0x1790] sm:$0xff]  ;;  %v1141_v56 = vld [vmem:[%s9519_s8 + $0x1918] sm:$0xff] }
 0x3b3   : > { %v8759_v29 = vcombine.low %v1092_v51, %v1096_v4  ;;  %v1145_v57 = vld [vmem:[%s9519_s8 + $0x1938] sm:$0xff] }
 0x3b5   : > { %7398 = vmatpush1.bf16.msra.mxu0 %v8695_v8  ;;  %7726 = vmatpush1.bf16.msra.mxu1 %v8697_v11  ;;  %v8753_v8 = vcombine.low %v1085_v58, %v1089_v60  ;;  %v8760_v11 = vcombine.high %v1092_v51, %v1096_v4  ;;  %v1153_v51 = vld [vmem:[%s9519_s8 + $0x1978] sm:$0xff] }
 0x3b6   : > { %7399 = vmatprep.subr.bf16.mxu0 %v8704_v19  ;;  %7727 = vmatprep.subr.bf16.mxu1 %v8706_v14  ;;  %v8762_v19 = vcombine.high %v1093_v5, %v1097_v6  ;;  %v1100_v14 = vld [vmem:[%s9519_s8 + $0x17d0] sm:$0xff] }
 0x3b7   : > { %v8767_v27 = vcombine.low %v1100_v14, %v1104_v15 }
 0x3b9   : > { %7400 = vmatpush1.bf16.msra.mxu0 %v8703_v25  ;;  %7728 = vmatpush1.bf16.msra.mxu1 %v8705_v20  ;;  %v8761_v25 = vcombine.low %v1093_v5, %v1097_v6  ;;  %v8768_v20 = vcombine.high %v1100_v14, %v1104_v15  ;;  %v8809_v5 = vcombine.low %v1141_v56, %v1145_v57  ;;  %v1161_v14 = vld [vmem:[%s9519_s8 + $0x19b8] sm:$0xff] }
 0x3ba   : > { %7401 = vmatprep.subr.bf16.mxu0 %v8712_v21  ;;  %7729 = vmatprep.subr.bf16.mxu1 %v8714_v22  ;;  %v8770_v21 = vcombine.high %v1101_v59, %v1105_v18  ;;  %v1108_v22 = vld [vmem:[%s9519_s8 + $0x1810] sm:$0xff] }
 0x3bb   : > { %v8775_v12 = vcombine.low %v1108_v22, %v1112_v13 }
 0x3bd   : > { %7402 = vmatpush1.bf16.msra.mxu0 %v8711_v39  ;;  %7730 = vmatpush1.bf16.msra.mxu1 %v8713_v30  ;;  %v8769_v39 = vcombine.low %v1101_v59, %v1105_v18  ;;  %v8776_v30 = vcombine.high %v1108_v22, %v1112_v13  ;;  %v1169_v22 = vld [vmem:[%s9519_s8 + $0x19f8] sm:$0xff] }
 0x3be   : > { %7403 = vmatprep.subr.bf16.mxu0 %v8720_v32  ;;  %7731 = vmatprep.subr.bf16.mxu1 %v8722_v34  ;;  %v8778_v32 = vcombine.high %v1109_v2, %v1113_v24  ;;  %v1116_v34 = vld [vmem:[%s9519_s8 + $0x1850] sm:$0xff] }
 0x3bf   : > { %v8783_v45 = vcombine.low %v1116_v34, %v1120_v33 }
 0x3c1   : > { %7404 = vmatpush1.bf16.msra.mxu0 %v8719_v36  ;;  %7732 = vmatpush1.bf16.msra.mxu1 %v8721_v0  ;;  %v8777_v36 = vcombine.low %v1109_v2, %v1113_v24  ;;  %v8784_v0 = vcombine.high %v1116_v34, %v1120_v33  ;;  %v1177_v34 = vld [vmem:[%s9519_s8 + $0x1a38] sm:$0xff] }
 0x3c2   : > { %7405 = vmatprep.subr.bf16.mxu0 %v8728_v37  ;;  %7733 = vmatprep.subr.bf16.mxu1 %v8730_v28  ;;  %v8786_v37 = vcombine.high %v1117_v63, %v1121_v35  ;;  %v1124_v28 = vld [vmem:[%s9519_s8 + $0x1890] sm:$0xff] }
 0x3c5   : > { %7406 = vmatpush1.bf16.msra.mxu0 %v8727_v46  ;;  %7734 = vmatpush1.bf16.msra.mxu1 %v8729_v47  ;;  %v8785_v46 = vcombine.low %v1117_v63, %v1121_v35  ;;  %v8792_v47 = vcombine.high %v1124_v28, %v1128_v55 }
 0x3c6   : > { %7407 = vmatprep.subr.bf16.mxu0 %v8736_v31  ;;  %7735 = vmatprep.subr.bf16.mxu1 %v8738_v48  ;;  %v8794_v31 = vcombine.high %v1125_v42, %v1129_v43  ;;  %v1132_v48 = vld [vmem:[%s9519_s8 + $0x18d0] sm:$0xff] }
 0x3c7   : > { %v8799_v58 = vcombine.low %v1132_v48, %v1136_v49 }
 0x3c9   : > { %7408 = vmatpush1.bf16.msra.mxu0 %v8735_v10  ;;  %7736 = vmatpush1.bf16.msra.mxu1 %v8737_v54  ;;  %v8800_v10 = vcombine.high %v1132_v48, %v1136_v49  ;;  %v8802_v54 = vcombine.high %v1133_v9, %v1137_v50  ;;  %v1193_v48 = vld [vmem:[%s9519_s8 + $0x1ab8] sm:$0xff] }
 0x3ca   : > { %7409 = vmatprep.subr.bf16.mxu0 %v8744_v23  ;;  %7737 = vmatprep.subr.bf16.mxu1 %v8746_v41  ;;  %v1140_v23 = vld [vmem:[%s9519_s8 + $0x1910] sm:$0xff] }
 0x3cb   : > { %v1144_v41 = vld [vmem:[%s9519_s8 + $0x1930] sm:$0xff] }
 0x3cc   : > { %v8808_v60 = vcombine.high %v1140_v23, %v1144_v41  ;;  %v8807_v4 = vcombine.low %v1140_v23, %v1144_v41  ;;  %v1201_v23 = vld [vmem:[%s9519_s8 + $0x1af8] sm:$0xff] }
 0x3cd   : > { %7410 = vmatpush1.bf16.msra.mxu0 %v8743_v61  ;;  %7738 = vmatpush1.bf16.msra.mxu1 %v8745_v62  ;;  %v8810_v61 = vcombine.high %v1141_v56, %v1145_v57  ;;  %v1148_v62 = vld [vmem:[%s9519_s8 + $0x1950] sm:$0xff] }
 0x3ce   : > { %7411 = vmatprep.subr.bf16.mxu0 %v8752_v1  ;;  %7739 = vmatprep.subr.bf16.mxu1 %v8754_v3  ;;  %v1152_v1 = vld [vmem:[%s9519_s8 + $0x1970] sm:$0xff]  ;;  %v1149_v3 = vld [vmem:[%s9519_s8 + $0x1958] sm:$0xff] }
 0x3cf   : > { %v8816_v6 = vcombine.high %v1148_v62, %v1152_v1  ;;  %v8815_v15 = vcombine.low %v1148_v62, %v1152_v1  ;;  %v8817_v59 = vcombine.low %v1149_v3, %v1153_v51  ;;  %v1209_v62 = vld [vmem:[%s9519_s8 + $0x1b38] sm:$0xff] }
 0x3d1   : > { %7412 = vmatpush1.bf16.msra.mxu0 %v8751_v7  ;;  %7740 = vmatpush1.bf16.msra.mxu1 %v8753_v8  ;;  %v8818_v7 = vcombine.high %v1149_v3, %v1153_v51  ;;  %v1156_v8 = vld [vmem:[%s9519_s8 + $0x1990] sm:$0xff] }
 0x3d2   : > { %7413 = vmatprep.subr.bf16.mxu0 %v8760_v11  ;;  %7741 = vmatprep.subr.bf16.mxu1 %v8762_v19  ;;  %v1160_v11 = vld [vmem:[%s9519_s8 + $0x19b0] sm:$0xff]  ;;  %v1157_v19 = vld [vmem:[%s9519_s8 + $0x1998] sm:$0xff] }
 0x3d3   : > { %v8824_v18 = vcombine.high %v1156_v8, %v1160_v11  ;;  %v8823_v13 = vcombine.low %v1156_v8, %v1160_v11  ;;  %v8825_v2 = vcombine.low %v1157_v19, %v1161_v14  ;;  %v1217_v8 = vld [vmem:[%s9519_s8 + $0x1b78] sm:$0xff] }
 0x3d5   : > { %7414 = vmatpush1.bf16.msra.mxu0 %v8759_v29  ;;  %7742 = vmatpush1.bf16.msra.mxu1 %v8761_v25  ;;  %v8826_v29 = vcombine.high %v1157_v19, %v1161_v14  ;;  %v1164_v25 = vld [vmem:[%s9519_s8 + $0x19d0] sm:$0xff] }
 0x3d6   : > { %7415 = vmatprep.subr.bf16.mxu0 %v8768_v20  ;;  %7743 = vmatprep.subr.bf16.mxu1 %v8770_v21  ;;  %v1168_v20 = vld [vmem:[%s9519_s8 + $0x19f0] sm:$0xff]  ;;  %v1165_v21 = vld [vmem:[%s9519_s8 + $0x19d8] sm:$0xff] }
 0x3d7   : > { %v8832_v24 = vcombine.high %v1164_v25, %v1168_v20  ;;  %v8831_v33 = vcombine.low %v1164_v25, %v1168_v20  ;;  %v8833_v63 = vcombine.low %v1165_v21, %v1169_v22  ;;  %v1225_v25 = vld [vmem:[%s9519_s8 + $0x1bb8] sm:$0xff] }
 0x3d9   : > { %7416 = vmatpush1.bf16.msra.mxu0 %v8767_v27  ;;  %7744 = vmatpush1.bf16.msra.mxu1 %v8769_v39  ;;  %v8834_v27 = vcombine.high %v1165_v21, %v1169_v22  ;;  %v1172_v39 = vld [vmem:[%s9519_s8 + $0x1a10] sm:$0xff] }
 0x3da   : > { %7426 = vmatprep.subr.bf16.mxu0 %v8776_v30  ;;  %7754 = vmatprep.subr.bf16.mxu1 %v8778_v32  ;;  %v1176_v30 = vld [vmem:[%s9519_s8 + $0x1a30] sm:$0xff]  ;;  %v1173_v32 = vld [vmem:[%s9519_s8 + $0x1a18] sm:$0xff] }
 0x3db   : > { %v8840_v35 = vcombine.high %v1172_v39, %v1176_v30  ;;  %v8841_v42 = vcombine.low %v1173_v32, %v1177_v34 }
 0x3dc   : > { %7418 = vmatmul.mubr.bf16.vlgmr.msra.gmra.mrb[4].mxu0 %v10049_v40  ;;  %7746 = vmatmul.mubr.bf16.vlgmr.msra.gmra.mrb[4].mxu1 %v10049_v40  ;;  %v8791_v40 = vcombine.low %v1124_v28, %v1128_v55  ;;  %v1185_v28 = vld [vmem:[%s9519_s8 + $0x1a78] sm:$0xff]  ;;  %v8839_v55 = vcombine.low %v1172_v39, %v1176_v30 }
 0x3dd   : > { %7427 = vmatpush1.bf16.msra.mxu0 %v8775_v12  ;;  %7755 = vmatpush1.bf16.msra.mxu1 %v8777_v36  ;;  %v8842_v12 = vcombine.high %v1173_v32, %v1177_v34  ;;  %v1180_v36 = vld [vmem:[%s9519_s8 + $0x1a50] sm:$0xff]  ;;  %v1233_v39 = vld [vmem:[%s9519_s8 + $0x1bf8] sm:$0xff] }
 0x3de   : > { %7428 = vmatprep.subr.bf16.mxu0 %v8784_v0  ;;  %7756 = vmatprep.subr.bf16.mxu1 %v8786_v37  ;;  %v1184_v0 = vld [vmem:[%s9519_s8 + $0x1a70] sm:$0xff]  ;;  %v1181_v37 = vld [vmem:[%s9519_s8 + $0x1a58] sm:$0xff] }
 0x3df   : > { %7458 = vmatprep.mubr.bf16.mxu0 %v10055_v16  ;;  %7786 = vmatprep.mubr.bf16.mxu1 %v10055_v16  ;;  %v8801_v16 = vcombine.low %v1133_v9, %v1137_v50  ;;  %v8848_v43 = vcombine.high %v1180_v36, %v1184_v0  ;;  %v8847_v49 = vcombine.low %v1180_v36, %v1184_v0  ;;  %v1241_v36 = vld [vmem:[%s9519_s8 + $0x1c38] sm:$0xff] }
 0x3e0   : > { %v8849_v9 = vcombine.low %v1181_v37, %v1185_v28 }
 0x3e1   : > { %7429 = vmatpush1.bf16.msra.mxu0 %v8783_v45  ;;  %7757 = vmatpush1.bf16.msra.mxu1 %v8785_v46  ;;  %v8850_v45 = vcombine.high %v1181_v37, %v1185_v28  ;;  %v1188_v46 = vld [vmem:[%s9519_s8 + $0x1a90] sm:$0xff] }
 0x3e2   : > { %7430 = vmatprep.subr.bf16.mxu0 %v8792_v47  ;;  %7758 = vmatprep.subr.bf16.mxu1 %v8794_v31  ;;  %v1192_v47 = vld [vmem:[%s9519_s8 + $0x1ab0] sm:$0xff]  ;;  %v1189_v31 = vld [vmem:[%s9519_s8 + $0x1a98] sm:$0xff] }
 0x3e3   : > { %v8856_v50 = vcombine.high %v1188_v46, %v1192_v47  ;;  %v8855_v41 = vcombine.low %v1188_v46, %v1192_v47  ;;  %v8857_v56 = vcombine.low %v1189_v31, %v1193_v48  ;;  %v1249_v46 = vld [vmem:[%s9519_s8 + $0x1c78] sm:$0xff] }
 0x3e5   : > { %7431 = vmatpush1.bf16.msra.mxu0 %v8791_v40  ;;  %7759 = vmatpush1.bf16.msra.mxu1 %v8793_v52  ;;  %v8858_v40 = vcombine.high %v1189_v31, %v1193_v48  ;;  %v1196_v52 = vld [vmem:[%s9519_s8 + $0x1ad0] sm:$0xff] }
 0x3e6   : > { %7432 = vmatprep.subr.bf16.mxu0 %v8800_v10  ;;  %7760 = vmatprep.subr.bf16.mxu1 %v8802_v54  ;;  %v1200_v10 = vld [vmem:[%s9519_s8 + $0x1af0] sm:$0xff]  ;;  %v1197_v54 = vld [vmem:[%s9519_s8 + $0x1ad8] sm:$0xff] }
 0x3e7   : > { %v8864_v57 = vcombine.high %v1196_v52, %v1200_v10  ;;  %v8863_v1 = vcombine.low %v1196_v52, %v1200_v10  ;;  %v8865_v3 = vcombine.low %v1197_v54, %v1201_v23  ;;  %v1257_v52 = vld [vmem:[%s9519_s8 + $0x1cb8] sm:$0xff] }
 0x3e9   : > { %7433 = vmatpush1.bf16.msra.mxu0 %v8799_v58  ;;  %7761 = vmatpush1.bf16.msra.mxu1 %v8801_v16  ;;  %v8866_v58 = vcombine.high %v1197_v54, %v1201_v23  ;;  %v1204_v16 = vld [vmem:[%s9519_s8 + $0x1b10] sm:$0xff] }
 0x3ea   : > { %7434 = vmatprep.subr.bf16.mxu0 %v8808_v60  ;;  %7762 = vmatprep.subr.bf16.mxu1 %v8810_v61  ;;  %v1208_v60 = vld [vmem:[%s9519_s8 + $0x1b30] sm:$0xff]  ;;  %v1205_v61 = vld [vmem:[%s9519_s8 + $0x1b18] sm:$0xff] }
 0x3eb   : > { %v8872_v51 = vcombine.high %v1204_v16, %v1208_v60  ;;  %v8871_v11 = vcombine.low %v1204_v16, %v1208_v60  ;;  %v8873_v19 = vcombine.low %v1205_v61, %v1209_v62  ;;  %v1265_v16 = vld [vmem:[%s9519_s8 + $0x1cf8] sm:$0xff] }
 0x3ed   : > { %7435 = vmatpush1.bf16.msra.mxu0 %v8807_v4  ;;  %7763 = vmatpush1.bf16.msra.mxu1 %v8809_v5  ;;  %v8874_v4 = vcombine.high %v1205_v61, %v1209_v62  ;;  %v1212_v5 = vld [vmem:[%s9519_s8 + $0x1b50] sm:$0xff] }
 0x3ee   : > { %7436 = vmatprep.subr.bf16.mxu0 %v8816_v6  ;;  %7764 = vmatprep.subr.bf16.mxu1 %v8818_v7  ;;  %v1216_v6 = vld [vmem:[%s9519_s8 + $0x1b70] sm:$0xff]  ;;  %v1213_v7 = vld [vmem:[%s9519_s8 + $0x1b58] sm:$0xff] }
 0x3ef   : > { %v8880_v14 = vcombine.high %v1212_v5, %v1216_v6  ;;  %v8879_v20 = vcombine.low %v1212_v5, %v1216_v6  ;;  %v8881_v21 = vcombine.low %v1213_v7, %v1217_v8 }
 0x3f1   : > { %7437 = vmatpush1.bf16.msra.mxu0 %v8815_v15  ;;  %7765 = vmatpush1.bf16.msra.mxu1 %v8817_v59  ;;  %v8882_v15 = vcombine.high %v1213_v7, %v1217_v8  ;;  %v1220_v59 = vld [vmem:[%s9519_s8 + $0x1b90] sm:$0xff] }
 0x3f2   : > { %7438 = vmatprep.subr.bf16.mxu0 %v8824_v18  ;;  %7766 = vmatprep.subr.bf16.mxu1 %v8826_v29  ;;  %v1224_v18 = vld [vmem:[%s9519_s8 + $0x1bb0] sm:$0xff]  ;;  %v1221_v29 = vld [vmem:[%s9519_s8 + $0x1b98] sm:$0xff] }
 0x3f3   : > { %v8888_v22 = vcombine.high %v1220_v59, %v1224_v18  ;;  %v8887_v30 = vcombine.low %v1220_v59, %v1224_v18  ;;  %v8889_v32 = vcombine.low %v1221_v29, %v1225_v25  ;;  %v1276_v8 = vld [vmem:[%s9519_s8 + $0x1d50] sm:$0xff] }
 0x3f5   : > { %7439 = vmatpush1.bf16.msra.mxu0 %v8823_v13  ;;  %7767 = vmatpush1.bf16.msra.mxu1 %v8825_v2  ;;  %v8890_v13 = vcombine.high %v1221_v29, %v1225_v25  ;;  %v1228_v2 = vld [vmem:[%s9519_s8 + $0x1bd0] sm:$0xff] }
 0x3f6   : > { %7440 = vmatprep.subr.bf16.mxu0 %v8832_v24  ;;  %7768 = vmatprep.subr.bf16.mxu1 %v8834_v27  ;;  %v1232_v24 = vld [vmem:[%s9519_s8 + $0x1bf0] sm:$0xff]  ;;  %v1229_v27 = vld [vmem:[%s9519_s8 + $0x1bd8] sm:$0xff] }
 0x3f7   : > { %v8896_v34 = vcombine.high %v1228_v2, %v1232_v24  ;;  %v8895_v0 = vcombine.low %v1228_v2, %v1232_v24  ;;  %v8897_v37 = vcombine.low %v1229_v27, %v1233_v39  ;;  %v1284_v25 = vld [vmem:[%s9519_s8 + $0x1d90] sm:$0xff] }
 0x3f9   : > { %7441 = vmatpush1.bf16.msra.mxu0 %v8831_v33  ;;  %7769 = vmatpush1.bf16.msra.mxu1 %v8833_v63  ;;  %v8898_v33 = vcombine.high %v1229_v27, %v1233_v39  ;;  %v1236_v63 = vld [vmem:[%s9519_s8 + $0x1c10] sm:$0xff] }
 0x3fa   : > { %7442 = vmatprep.subr.bf16.mxu0 %v8840_v35  ;;  %7770 = vmatprep.subr.bf16.mxu1 %v8842_v12  ;;  %v1240_v35 = vld [vmem:[%s9519_s8 + $0x1c30] sm:$0xff]  ;;  %v1237_v12 = vld [vmem:[%s9519_s8 + $0x1c18] sm:$0xff] }
 0x3fb   : > { %v8904_v28 = vcombine.high %v1236_v63, %v1240_v35  ;;  %v8903_v47 = vcombine.low %v1236_v63, %v1240_v35  ;;  %v8905_v31 = vcombine.low %v1237_v12, %v1241_v36  ;;  %v1292_v39 = vld [vmem:[%s9519_s8 + $0x1dd0] sm:$0xff] }
 0x3fd   : > { %7443 = vmatpush1.bf16.msra.mxu0 %v8839_v55  ;;  %7771 = vmatpush1.bf16.msra.mxu1 %v8841_v42  ;;  %v8906_v55 = vcombine.high %v1237_v12, %v1241_v36  ;;  %v1244_v42 = vld [vmem:[%s9519_s8 + $0x1c50] sm:$0xff] }
 0x3fe   : > { %7444 = vmatprep.subr.bf16.mxu0 %v8848_v43  ;;  %7772 = vmatprep.subr.bf16.mxu1 %v8850_v45  ;;  %v1248_v43 = vld [vmem:[%s9519_s8 + $0x1c70] sm:$0xff]  ;;  %v1245_v45 = vld [vmem:[%s9519_s8 + $0x1c58] sm:$0xff] }
 0x3ff   : > { %v8912_v48 = vcombine.high %v1244_v42, %v1248_v43  ;;  %v8911_v10 = vcombine.low %v1244_v42, %v1248_v43  ;;  %v8913_v54 = vcombine.low %v1245_v45, %v1249_v46  ;;  %v1300_v36 = vld [vmem:[%s9519_s8 + $0x1e10] sm:$0xff] }
 0x401   : > { %7445 = vmatpush1.bf16.msra.mxu0 %v8847_v49  ;;  %7773 = vmatpush1.bf16.msra.mxu1 %v8849_v9  ;;  %v8914_v49 = vcombine.high %v1245_v45, %v1249_v46  ;;  %v1252_v9 = vld [vmem:[%s9519_s8 + $0x1c90] sm:$0xff] }
 0x402   : > { %7446 = vmatprep.subr.bf16.mxu0 %v8856_v50  ;;  %7774 = vmatprep.subr.bf16.mxu1 %v8858_v40  ;;  %v1256_v50 = vld [vmem:[%s9519_s8 + $0x1cb0] sm:$0xff]  ;;  %v1253_v40 = vld [vmem:[%s9519_s8 + $0x1c98] sm:$0xff] }
 0x403   : > { %v8920_v23 = vcombine.high %v1252_v9, %v1256_v50  ;;  %v8921_v60 = vcombine.low %v1253_v40, %v1257_v52  ;;  %v1308_v46 = vld [vmem:[%s9519_s8 + $0x1e50] sm:$0xff] }
 0x405   : > { %7447 = vmatpush1.bf16.msra.mxu0 %v8855_v41  ;;  %7775 = vmatpush1.bf16.msra.mxu1 %v8857_v56  ;;  %v8922_v41 = vcombine.high %v1253_v40, %v1257_v52  ;;  %v1260_v56 = vld [vmem:[%s9519_s8 + $0x1cd0] sm:$0xff] }
 0x406   : > { %7448 = vmatprep.subr.bf16.mxu0 %v8864_v57  ;;  %7776 = vmatprep.subr.bf16.mxu1 %v8866_v58  ;;  %v1264_v57 = vld [vmem:[%s9519_s8 + $0x1cf0] sm:$0xff]  ;;  %v1261_v58 = vld [vmem:[%s9519_s8 + $0x1cd8] sm:$0xff] }
 0x407   : > { %v8928_v61 = vcombine.high %v1260_v56, %v1264_v57  ;;  %v8930_v62 = vcombine.high %v1261_v58, %v1265_v16  ;;  %v8927_v5 = vcombine.low %v1260_v56, %v1264_v57  ;;  %v1316_v52 = vld [vmem:[%s9519_s8 + $0x1e90] sm:$0xff] }
 0x409   : > { %7449 = vmatpush1.bf16.msra.mxu0 %v8863_v1  ;;  %7777 = vmatpush1.bf16.msra.mxu1 %v8865_v3  ;;  %v1268_v1 = vld [vmem:[%s9519_s8 + $0x1d10] sm:$0xff] }
 0x40a   : > { %7450 = vmatprep.subr.bf16.mxu0 %v8872_v51  ;;  %7778 = vmatprep.subr.bf16.mxu1 %v8874_v4  ;;  %v1272_v3 = vld [vmem:[%s9519_s8 + $0x1d30] sm:$0xff]  ;;  %v1269_v51 = vld [vmem:[%s9519_s8 + $0x1d18] sm:$0xff] }
 0x40b   : > { %v1273_v4 = vld [vmem:[%s9519_s8 + $0x1d38] sm:$0xff]  ;;  %v8936_v6 = vcombine.high %v1268_v1, %v1272_v3 }
 0x40c   : > { %v8938_v7 = vcombine.high %v1269_v51, %v1273_v4  ;;  %v8937_v59 = vcombine.low %v1269_v51, %v1273_v4  ;;  %v1332_v4 = vld [vmem:[%s9519_s8 + $0x1f10] sm:$0xff] }
 0x40d   : > { %7451 = vmatpush1.bf16.msra.mxu0 %v8871_v11  ;;  %7779 = vmatpush1.bf16.msra.mxu1 %v8873_v19  ;;  %v1280_v11 = vld [vmem:[%s9519_s8 + $0x1d70] sm:$0xff]  ;;  %v1277_v19 = vld [vmem:[%s9519_s8 + $0x1d58] sm:$0xff] }
 0x40e   : > { %7452 = vmatprep.subr.bf16.mxu0 %v8880_v14  ;;  %7780 = vmatprep.subr.bf16.mxu1 %v8882_v15  ;;  %v1281_v14 = vld [vmem:[%s9519_s8 + $0x1d78] sm:$0xff]  ;;  %v8935_v15 = vcombine.low %v1268_v1, %v1272_v3  ;;  %v8944_v18 = vcombine.high %v1276_v8, %v1280_v11 }
 0x40f   : > { %v8946_v29 = vcombine.high %v1277_v19, %v1281_v14  ;;  %v8945_v2 = vcombine.low %v1277_v19, %v1281_v14  ;;  %v1340_v14 = vld [vmem:[%s9519_s8 + $0x1f50] sm:$0xff] }
 0x411   : > { %7453 = vmatpush1.bf16.msra.mxu0 %v8879_v20  ;;  %7781 = vmatpush1.bf16.msra.mxu1 %v8881_v21  ;;  %v1288_v20 = vld [vmem:[%s9519_s8 + $0x1db0] sm:$0xff]  ;;  %v1285_v21 = vld [vmem:[%s9519_s8 + $0x1d98] sm:$0xff] }
 0x412   : > { %7454 = vmatprep.subr.bf16.mxu0 %v8888_v22  ;;  %7782 = vmatprep.subr.bf16.mxu1 %v8890_v13  ;;  %v1289_v22 = vld [vmem:[%s9519_s8 + $0x1db8] sm:$0xff]  ;;  %v8943_v13 = vcombine.low %v1276_v8, %v1280_v11  ;;  %v8952_v24 = vcombine.high %v1284_v25, %v1288_v20 }
 0x413   : > { %v8954_v27 = vcombine.high %v1285_v21, %v1289_v22  ;;  %v8953_v63 = vcombine.low %v1285_v21, %v1289_v22  ;;  %v1348_v22 = vld [vmem:[%s9519_s8 + $0x1f90] sm:$0xff] }
 0x415   : > { %7455 = vmatpush1.bf16.msra.mxu0 %v8887_v30  ;;  %7783 = vmatpush1.bf16.msra.mxu1 %v8889_v32  ;;  %v1296_v30 = vld [vmem:[%s9519_s8 + $0x1df0] sm:$0xff]  ;;  %v1293_v32 = vld [vmem:[%s9519_s8 + $0x1dd8] sm:$0xff] }
 0x416   : > { %7456 = vmatprep.subr.bf16.mxu0 %v8896_v34  ;;  %7784 = vmatprep.subr.bf16.mxu1 %v8898_v33  ;;  %v1297_v34 = vld [vmem:[%s9519_s8 + $0x1df8] sm:$0xff]  ;;  %v8951_v33 = vcombine.low %v1284_v25, %v1288_v20  ;;  %v8960_v35 = vcombine.high %v1292_v39, %v1296_v30 }
 0x417   : > { %v8962_v12 = vcombine.high %v1293_v32, %v1297_v34  ;;  %v8961_v42 = vcombine.low %v1293_v32, %v1297_v34  ;;  %v1356_v34 = vld [vmem:[%s9519_s8 + $0x1fd0] sm:$0xff] }
 0x419   : > { %7457 = vmatpush1.bf16.msra.mxu0 %v8895_v0  ;;  %7785 = vmatpush1.bf16.msra.mxu1 %v8897_v37  ;;  %v1304_v0 = vld [vmem:[%s9519_s8 + $0x1e30] sm:$0xff]  ;;  %v1301_v37 = vld [vmem:[%s9519_s8 + $0x1e18] sm:$0xff] }
 0x41a   : > { %7467 = vmatprep.subr.bf16.mxu0 %v8904_v28  ;;  %7795 = vmatprep.subr.bf16.mxu1 %v8906_v55  ;;  %v1305_v28 = vld [vmem:[%s9519_s8 + $0x1e38] sm:$0xff]  ;;  %v8959_v55 = vcombine.low %v1292_v39, %v1296_v30  ;;  %v8968_v43 = vcombine.high %v1300_v36, %v1304_v0 }
 0x41b   : > { %v8970_v45 = vcombine.high %v1301_v37, %v1305_v28 }
 0x41c   : > { %7459 = vmatmul.mubr.bf16.vlgmr.msra.gmra.mrb[4].mxu0 %v10130_v26  ;;  %7787 = vmatmul.mubr.bf16.vlgmr.msra.gmra.mrb[4].mxu1 %v10130_v26  ;;  %v8919_v26 = vcombine.low %v1252_v9, %v1256_v50  ;;  %v8969_v9 = vcombine.low %v1301_v37, %v1305_v28 }
 0x41d   : > { %7468 = vmatpush1.bf16.msra.mxu0 %v8903_v47  ;;  %7796 = vmatpush1.bf16.msra.mxu1 %v8905_v31  ;;  %v1312_v47 = vld [vmem:[%s9519_s8 + $0x1e70] sm:$0xff]  ;;  %v1309_v31 = vld [vmem:[%s9519_s8 + $0x1e58] sm:$0xff] }
 0x41e   : > { %7469 = vmatprep.subr.bf16.mxu0 %v8912_v48  ;;  %7797 = vmatprep.subr.bf16.mxu1 %v8914_v49  ;;  %v1313_v48 = vld [vmem:[%s9519_s8 + $0x1e78] sm:$0xff]  ;;  %v8967_v49 = vcombine.low %v1300_v36, %v1304_v0  ;;  %v8976_v50 = vcombine.high %v1308_v46, %v1312_v47 }
 0x41f   : > { %7499 = vmatprep.mubr.bf16.mxu0 %v10136_v38  ;;  %7827 = vmatprep.mubr.bf16.mxu1 %v10136_v38  ;;  %v8929_v38 = vcombine.low %v1261_v58, %v1265_v16  ;;  %v8978_v40 = vcombine.high %v1309_v31, %v1313_v48  ;;  %v8977_v56 = vcombine.low %v1309_v31, %v1313_v48  ;;  %v1324_v16 = vld [vmem:[%s9519_s8 + $0x1ed0] sm:$0xff] }
 0x421   : > { %7470 = vmatpush1.bf16.msra.mxu0 %v8911_v10  ;;  %7798 = vmatpush1.bf16.msra.mxu1 %v8913_v54  ;;  %v1320_v10 = vld [vmem:[%s9519_s8 + $0x1eb0] sm:$0xff]  ;;  %v1317_v54 = vld [vmem:[%s9519_s8 + $0x1e98] sm:$0xff] }
 0x422   : > { %7471 = vmatprep.subr.bf16.mxu0 %v8920_v23  ;;  %7799 = vmatprep.subr.bf16.mxu1 %v8922_v41  ;;  %v1321_v23 = vld [vmem:[%s9519_s8 + $0x1eb8] sm:$0xff]  ;;  %v8975_v41 = vcombine.low %v1308_v46, %v1312_v47  ;;  %v8984_v57 = vcombine.high %v1316_v52, %v1320_v10  ;;  %v1394_v46 = vsub.s32 7, %v9555_v44  ;;  %v9214_v47 = vld [vmem:[%s9527_s22] sm:$0xff]  ;;  %s9275_s22 = scalar_lea.vmem %s10771_s27, 256 }
 0x423   : > { %v8986_v58 = vcombine.high %v1317_v54, %v1321_v23  ;;  %v8985_v1 = vcombine.low %v1317_v54, %v1321_v23  ;;  %p9276_p12 = scmp.ne.s32.totalorder %s10771_s27, %s9275_s22  ;;  %p9283_p7 = scmp.lt.s32.totalorder %s9281_s28, %s9275_s22 }
 0x425   : > { %7472 = vmatpush1.bf16.msra.mxu0 %v8919_v26  ;;  %7800 = vmatpush1.bf16.msra.mxu1 %v8921_v60  ;;  %v1328_v26 = vld [vmem:[%s9519_s8 + $0x1ef0] sm:$0xff]  ;;  %v1325_v60 = vld [vmem:[%s9519_s8 + $0x1ed8] sm:$0xff]  ;;  %p9277_p11 = pnand %p9276_p12, %p10828_p1  ;;  %p9284_p13 = por %p9283_p7, %p9282_p5 }
 0x426   : > { %7473 = vmatprep.subr.bf16.mxu0 %v8928_v61  ;;  %7801 = vmatprep.subr.bf16.mxu1 %v8930_v62  ;;  %v1329_v61 = vld [vmem:[%s9519_s8 + $0x1ef8] sm:$0xff]  ;;  %v8983_v62 = vcombine.low %v1316_v52, %v1320_v10  ;;  %v8992_v3 = vcombine.high %v1324_v16, %v1328_v26 }
 0x427   : > { %v8994_v51 = vcombine.high %v1325_v60, %v1329_v61  ;;  %v8993_v8 = vcombine.low %v1325_v60, %v1329_v61  ;;  %p9278_p4 = pneg %p9277_p11 }
 0x429   : > { %7474 = vmatpush1.bf16.msra.mxu0 %v8927_v5  ;;  %7802 = vmatpush1.bf16.msra.mxu1 %v8929_v38  ;;  %v1336_v5 = vld [vmem:[%s9519_s8 + $0x1f30] sm:$0xff]  ;;  %v1333_v38 = vld [vmem:[%s9519_s8 + $0x1f18] sm:$0xff]  ;;  %p9285_p10 = pnand %p9284_p13, %p9278_p4 }
 0x42a   : > { %7475 = vmatprep.subr.bf16.mxu0 %v8936_v6  ;;  %7803 = vmatprep.subr.bf16.mxu1 %v8938_v7  ;;  %v1337_v6 = vld [vmem:[%s9519_s8 + $0x1f38] sm:$0xff]  ;;  %v8991_v7 = vcombine.low %v1324_v16, %v1328_v26  ;;  %v9000_v11 = vcombine.high %v1332_v4, %v1336_v5 }
 0x42b   : > { %v9002_v19 = vcombine.high %v1333_v38, %v1337_v6  ;;  %v9001_v25 = vcombine.low %v1333_v38, %v1337_v6 }
 0x42d   : > { %7476 = vmatpush1.bf16.msra.mxu0 %v8935_v15  ;;  %7804 = vmatpush1.bf16.msra.mxu1 %v8937_v59  ;;  %v1344_v15 = vld [vmem:[%s9519_s8 + $0x1f70] sm:$0xff]  ;;  %v1341_v59 = vld [vmem:[%s9519_s8 + $0x1f58] sm:$0xff] }
 0x42e   : > { %7477 = vmatprep.subr.bf16.mxu0 %v8944_v18  ;;  %7805 = vmatprep.subr.bf16.mxu1 %v8946_v29  ;;  %v1345_v18 = vld [vmem:[%s9519_s8 + $0x1f78] sm:$0xff]  ;;  %v8999_v29 = vcombine.low %v1332_v4, %v1336_v5  ;;  %v9008_v20 = vcombine.high %v1340_v14, %v1344_v15 }
 0x42f   : > { %v9010_v21 = vcombine.high %v1341_v59, %v1345_v18  ;;  %v9009_v39 = vcombine.low %v1341_v59, %v1345_v18 }
 0x431   : > { %7478 = vmatpush1.bf16.msra.mxu0 %v8943_v13  ;;  %7806 = vmatpush1.bf16.msra.mxu1 %v8945_v2  ;;  %v1352_v13 = vld [vmem:[%s9519_s8 + $0x1fb0] sm:$0xff]  ;;  %v1349_v2 = vld [vmem:[%s9519_s8 + $0x1f98] sm:$0xff] }
 0x432   : > { %7479 = vmatprep.subr.bf16.mxu0 %v8952_v24  ;;  %7807 = vmatprep.subr.bf16.mxu1 %v8954_v27  ;;  %v1353_v24 = vld [vmem:[%s9519_s8 + $0x1fb8] sm:$0xff]  ;;  %v9007_v27 = vcombine.low %v1340_v14, %v1344_v15  ;;  %v9016_v30 = vcombine.high %v1348_v22, %v1352_v13 }
 0x433   : > { %v9018_v32 = vcombine.high %v1349_v2, %v1353_v24  ;;  %v9017_v36 = vcombine.low %v1349_v2, %v1353_v24 }
 0x435   : > { %7480 = vmatpush1.bf16.msra.mxu0 %v8951_v33  ;;  %7808 = vmatpush1.bf16.msra.mxu1 %v8953_v63  ;;  %v1360_v33 = vld [vmem:[%s9519_s8 + $0x1ff0] sm:$0xff]  ;;  %v1357_v63 = vld [vmem:[%s9519_s8 + $0x1fd8] sm:$0xff] }
 0x436   : > { %7481 = vmatprep.subr.bf16.mxu0 %v8960_v35  ;;  %7809 = vmatprep.subr.bf16.mxu1 %v8962_v12  ;;  %v1361_v35 = vld [vmem:[%s9519_s8 + $0x1ff8] sm:$0xff]  ;;  %v9015_v12 = vcombine.low %v1348_v22, %v1352_v13  ;;  %v9024_v0 = vcombine.high %v1356_v34, %v1360_v33  ;;  %v9023_v28 = vcombine.low %v1356_v34, %v1360_v33 }
 0x437   : > { %v9026_v37 = vcombine.high %v1357_v63, %v1361_v35 }
 0x439   : > { %7482 = vmatpush1.bf16.msra.mxu0 %v8959_v55  ;;  %7810 = vmatpush1.bf16.msra.mxu1 %v8961_v42  ;;  %v9025_v55 = vcombine.low %v1357_v63, %v1361_v35  ;;  %v1382_v42 = vsub.s32 4, %v9555_v44 }
 0x43a   : > { %7483 = vmatprep.subr.bf16.mxu0 %v8968_v43  ;;  %7811 = vmatprep.subr.bf16.mxu1 %v8970_v45  ;;  %v1390_v43 = vsub.s32 6, %v9555_v44  ;;  %v1386_v45 = vsub.s32 5, %v9555_v44 }
 0x43b   : > { %v1383_v31 = vrot.slane %v9214_v47, %v1382_v42 }
 0x43c   : > { %v1391_v48 = vrot.slane %v9214_v47, %v1390_v43 }
 0x43d   : > { %7484 = vmatpush1.bf16.msra.mxu0 %v8967_v49  ;;  %7812 = vmatpush1.bf16.msra.mxu1 %v8969_v9  ;;  %v1387_v49 = vrot.slane %v9214_v47, %v1386_v45  ;;  %v1395_v9 = vrot.slane %v9214_v47, %v1394_v46 }
 0x43e   : > { %7485 = vmatprep.subr.bf16.mxu0 %v8976_v50  ;;  %7813 = vmatprep.subr.bf16.mxu1 %v8978_v40 }
 0x441   : > { %7486 = vmatpush1.bf16.msra.mxu0 %v8975_v41  ;;  %7814 = vmatpush1.bf16.msra.mxu1 %v8977_v56 }
 0x442   : > { %7487 = vmatprep.subr.bf16.mxu0 %v8984_v57  ;;  %7815 = vmatprep.subr.bf16.mxu1 %v8986_v58 }
 0x445   : > { %7488 = vmatpush1.bf16.msra.mxu0 %v8983_v62  ;;  %7816 = vmatpush1.bf16.msra.mxu1 %v8985_v1 }
 0x446   : > { %7489 = vmatprep.subr.bf16.mxu0 %v8992_v3  ;;  %7817 = vmatprep.subr.bf16.mxu1 %v8994_v51 }
 0x449   : > { %7490 = vmatpush1.bf16.msra.mxu0 %v8991_v7  ;;  %7818 = vmatpush1.bf16.msra.mxu1 %v8993_v8 }
 0x44a   : > { %7491 = vmatprep.subr.bf16.mxu0 %v9000_v11  ;;  %7819 = vmatprep.subr.bf16.mxu1 %v9002_v19 }
 0x44d   : > { %7492 = vmatpush1.bf16.msra.mxu0 %v8999_v29  ;;  %7820 = vmatpush1.bf16.msra.mxu1 %v9001_v25 }
 0x44e   : > { %7493 = vmatprep.subr.bf16.mxu0 %v9008_v20  ;;  %7821 = vmatprep.subr.bf16.mxu1 %v9010_v21 }
 0x451   : > { %7494 = vmatpush1.bf16.msra.mxu0 %v9007_v27  ;;  %7822 = vmatpush1.bf16.msra.mxu1 %v9009_v39 }
 0x452   : > { %7495 = vmatprep.subr.bf16.mxu0 %v9016_v30  ;;  %7823 = vmatprep.subr.bf16.mxu1 %v9018_v32 }
 0x455   : > { %7496 = vmatpush1.bf16.msra.mxu0 %v9015_v12  ;;  %7824 = vmatpush1.bf16.msra.mxu1 %v9017_v36 }
 0x456   : > { %7497 = vmatprep.subr.bf16.mxu0 %v9024_v0  ;;  %7825 = vmatprep.subr.bf16.mxu1 %v9026_v37 }
 0x459   : > { %7498 = vmatpush1.bf16.msra.mxu0 %v9023_v28  ;;  %7826 = vmatpush1.bf16.msra.mxu1 %v9025_v55 }
 0x45c   : > { %7500 = vmatmul.mubr.bf16.vlgmr.msra.gmra.mrb[4].mxu0 %v10204_v17  ;;  %7828 = vmatmul.mubr.bf16.vlgmr.msra.gmra.mrb[4].mxu1 %v10204_v17 }
 0x52f   : > { %v7501_v50 = vpop.f32.mrb[4].mxu0  ;;  %v7829_v52 = vpop.f32.mrb[4].mxu1 }
 0x530   : > { %v9039_v40 = vadd.f32 %v7501_v50, %v1383_v31  ;;  %v7503_v10 = vpop.f32.mrb[5].mxu0  ;;  %v9041_v17 = vadd.f32 %v7829_v52, %v1391_v48  ;;  %v7831_v23 = vpop.f32.mrb[5].mxu1 }
 0x531   : > { %v9040_v54 = vadd.f32 %v7503_v10, %v1387_v49  ;;  %v7505_v41 = vpop.f32.mrb[6].mxu0  ;;  %v9042_v56 = vadd.f32 %v7831_v23, %v1395_v9  ;;  %v7833_v57 = vpop.f32.mrb[6].mxu1 }
 0x532   : > { %v7506_v44 = vpop.f32.mrb[7].mxu0  ;;  %v7834_v16 = vpop.f32.mrb[7].mxu1 }
 0x533   : > { %v7861_v58 = vcombine.low %v9039_v40, %v9040_v54  ;;  %v7862_v26 = vcombine.low %v9041_v17, %v9042_v56 }
 0x535   : > { %v7869_v60 = vrot.slane %v7861_v58, %v9562_v53  ;;  %v7876_v61 = vrot.slane %v7862_v26, %v9562_v53 }
 0x537   : > { %v7877_v62 = vcombine.low %v7869_v60, %v7876_v61 }
 0x539   : > { %7881 = vst [vmem:[%s10456_s11 + $0x8] sm:$0xff] %v7877_v62 }
 0x53a   : > { %9288 = shalt.err (!%p9285_p10)
}
 0x53b   : > { %s9289_s20 = scalar_lea.hbm %s10769_s7, 256  ;;  %s9293_s30 = scalar_lea.hbm %s10816_s3, 768 }
 0x53c   : > { %p9290_p3 = scmp.ne.s32.totalorder %s10769_s7, %s9289_s20  ;;  %p9294_p2 = scmp.lt.u32.totalorder %s10769_s7, %s10816_s3 }
 0x53d   : > { %p9295_p9 = scmp.lt.u32.totalorder %s9293_s30, %s9289_s20  ;;  %p9297_p12 = scmp.lt.u32.totalorder %s9289_s20, %s10769_s7 }
 0x53e   : > { %p9291_p8 = pnand %p9290_p3, %p10828_p1 }
 0x53f   : > { %p9296_p6 = por %p9295_p9, %p9294_p2 }
 0x540   : > { %p9292_p0 = pneg %p9291_p8 }
 0x541   : > { %p9298_p11 = por %p9297_p12, %p9296_p6 }
 0x543   : > { %p9299_p4 = pnand %p9298_p11, %p9292_p0 }
 0x545   : > { %9302 = shalt.err (!%p9299_p4)
}
 0x546   : > { %9159 = dma.vmem_to_hbm [thread:$0]  (%p10828_p1), %s10771_s27, 256, %s10769_s7, %s7883_s17  }
 0x547 PF: > { %p9173_p5 = scmp.ge.s32.totalorder %s9345_s15, 2  ;;  %s7909_s26 = sand.u32 1, %s9333_s12  }
 0x548   : > { %p10829_p7 = scmp.ne.s32.totalorder %s10822_s25, 0  ;;  %s7910_s10 = scalar_lea.sflag [#allocation4], %s7909_s26 }
 0x54a   : > { %p9169_p13 = pnand %p9173_p5, %p10829_p7 }
 0x54c   : > { %9328 = dma.done.wait (!%p9169_p13), %s7910_s10, 256  }
 0x54d   : > { %9330 = vsyncadd (!%p9169_p13), %s7910_s10, 4294967040  ;;  %p19_p10 = scmp.ge.s32.totalorder %s9399_s18, 5   ;;  %s10830_s12 = smov %s9337_s13 }
 0x54e   : > { %s10831_s13 = smov %s9341_s14  ;;  %s10832_s14 = smov %s9411_s21 }
 0x54f   : > { %s10833_s15 = smov %s9399_s18  ;;  %21 = sbr.rel (!%p19_p10) target bundleno = 7 (0x7), region = 90 }
 0x556   :  { %7915 = vsyncpa [#allocation3], 1 }
 0x557   :  { %7917 = vsyncpa [#allocation3 + $0x1], 1 }
 0x558   :  { %7918 = vsyncpa [#allocation6], 1 }
 0x559   :  { %7920 = vsyncpa [#allocation6 + $0x1], 1 }
 0x55a   :  { %7921 = vsyncpa [#allocation4], 1 }
 0x55b   :  { %7923 = vsyncpa [#allocation4 + $0x1], 1 }

</bundles_post_ra>
